<compile_context>
chip_gen: v7x
topology: tpu7x:2x2x1
jax: 0.10.0
libtpu: 0.0.40
codegen_flags: <defaults>
</compile_context>

<pallas_src>
import functools

import jax
import jax.numpy as jnp
from jax.experimental import pallas as pl
from jax.experimental.pallas import tpu as pltpu

# ----------------------------- small HuBERT config -----------------------------
CONV_KERNELS = (10, 3, 3, 3, 3, 2, 2)
CONV_STRIDES = (5, 2, 2, 2, 2, 2, 2)
CONV_DIM = 32
HIDDEN = 32
N_HEADS = 4
HEAD_DIM = HIDDEN // N_HEADS
INTERMEDIATE = 64
N_LAYERS = 2
POS_KERNEL = 3        # HuBERT base uses 128 (even, with trailing-sample removal)
POS_GROUPS = 4        # HuBERT base uses 16
EPS = 1e-5
# TODO(synk): weight_norm on the positional conv, even-kernel padding removal and
# exact (erf) GELU are omitted (tanh GELU used); dropout is identity in eval.


# ----------------------------- in-kernel helpers --------------------------------
def _mm(a, b):
    """MXU matmul: bf16 operands (weights pre-cast at prep time), f32 accumulation."""
    return jnp.dot(a.astype(jnp.bfloat16), b, preferred_element_type=jnp.float32)


def _ln(x, g, b, eps=EPS):
    """LayerNorm over the last axis; g/b are (1, N) rows (broadcast in-kernel)."""
    mean = jnp.mean(x, axis=-1, keepdims=True)
    var = jnp.mean(jnp.square(x - mean), axis=-1, keepdims=True)
    return (x - mean) * jax.lax.rsqrt(var + eps) * g + b


def _gelu(x):
    return jax.nn.gelu(x, approximate=True)


def _full_spec(shape):
    """Whole array as one resident block (weights / biases)."""
    nd = len(shape)
    return pl.BlockSpec(shape, lambda b, nd=nd: (0,) * nd)


# Operand order for the fused kernel (must match the kernel signature below).
_PREP_KEYS = ("w0", "gn_g", "gn_b",
              "cw1", "cw2", "cw3", "cw4", "cw5", "cw6",
              "fp_ln_g", "fp_ln_b", "fp_w", "fp_b",
              "pos_w", "pos_b", "enc_ln_g", "enc_ln_b",
              "wqkv", "bqkv", "wo", "bo",
              "ln1_g", "ln1_b", "w1", "b1", "w2", "b2",
              "ln2_g", "ln2_b")


# ----------------------------- the fused kernel ----------------------------------
def _ssl_kernel(xwin_ref, w0_ref, gng_ref, gnb_ref,
                cw1_ref, cw2_ref, cw3_ref, cw4_ref, cw5_ref, cw6_ref,
                fplng_ref, fplnb_ref, fpw_ref, fpb_ref,
                posw_ref, posb_ref, encg_ref, encb_ref,
                wqkv_ref, bqkv_ref, wo_ref, bo_ref,
                ln1g_ref, ln1b_ref, w1_ref, b1_ref, w2_ref, b2_ref,
                ln2g_ref, ln2b_ref,
                o_ref,
                s0, s1, s2, s3, s4, s5, *, frames):
    """Entire SSLModel forward for one batch element (grid=(B,))."""
    scratch = (s0, s1, s2, s3, s4, s5)
    conv_w = (cw1_ref, cw2_ref, cw3_ref, cw4_ref, cw5_ref, cw6_ref)

    # ---- conv0 (bias=False) -> GroupNorm(num_groups=C) over time -> GELU -------
    y = jnp.dot(xwin_ref[0], w0_ref[...], preferred_element_type=jnp.float32)   # (F0, C)
    mean = jnp.mean(y, axis=0, keepdims=True)
    var = jnp.mean(jnp.square(y - mean), axis=0, keepdims=True)
    y = (y - mean) * jax.lax.rsqrt(var + EPS) * gng_ref[...] + gnb_ref[...]
    s0[...] = _gelu(y)

    # ---- conv1..conv6: strided VMEM window reads + per-tap matmul accumulation --
    feats = None
    for i in range(1, len(CONV_KERNELS)):
        ksz, st = CONV_KERNELS[i], CONV_STRIDES[i]
        fo = frames[i]
        src = scratch[i - 1]
        acc = None
        for k in range(ksz):
            xk = src[pl.ds(k, fo, stride=st), :].astype(jnp.bfloat16)           # (fo, C)
            t = jnp.dot(xk, conv_w[i - 1][k], preferred_element_type=jnp.float32)
            acc = t if acc is None else acc + t
        y = _gelu(acc)                                                           # (fo, C)
        if i < len(CONV_KERNELS) - 1:
            scratch[i][...] = y
        else:
            feats = y                                                            # (Tp, C)

    # ---- feature projection + grouped positional conv + encoder LayerNorm ------
    xn = _ln(feats, fplng_ref[...], fplnb_ref[...])
    h = _mm(xn, fpw_ref[...]) + fpb_ref[...]                                     # (Tp, H)
    # pos-conv (K=3, pad=1, groups) as 3 per-tap block-diagonal matmuls (no concat)
    z = jnp.zeros((1, HIDDEN), jnp.float32)
    h_prev = jnp.concatenate([z, h[:-1, :]], axis=0)                             # index t-1
    h_next = jnp.concatenate([h[1:, :], z], axis=0)                              # index t+1
    pos = (_mm(h_prev, posw_ref[0]) + _mm(h, posw_ref[1]) + _mm(h_next, posw_ref[2])
           + posb_ref[...])
    h = _ln(h + _gelu(pos), encg_ref[...], encb_ref[...])

    # ---- transformer encoder layers (weights stacked on a leading N_LAYERS dim) --
    for li in range(N_LAYERS):
        qkv = _mm(h, wqkv_ref[li]) + bqkv_ref[li]                                # (Tp, 3H)
        q = qkv[:, :HIDDEN]          # 1/sqrt(head_dim) already folded into W_q / b_q
        kk = qkv[:, HIDDEN:2 * HIDDEN]
        v = qkv[:, 2 * HIDDEN:]

        # merged multi-head attention: stack heads, ONE softmax, batched matmuls
        q3 = jnp.stack([q[:, hn * HEAD_DIM:(hn + 1) * HEAD_DIM]
                        for hn in range(N_HEADS)], axis=0).astype(jnp.bfloat16)
        k3 = jnp.stack([kk[:, hn * HEAD_DIM:(hn + 1) * HEAD_DIM]
                        for hn in range(N_HEADS)], axis=0).astype(jnp.bfloat16)
        v3 = jnp.stack([v[:, hn * HEAD_DIM:(hn + 1) * HEAD_DIM]
                        for hn in range(N_HEADS)], axis=0).astype(jnp.bfloat16)
        s = jnp.einsum("nqd,nkd->nqk", q3, k3,
                       preferred_element_type=jnp.float32)                       # (NH,Tp,Tp)
        s = s - jnp.max(s, axis=-1, keepdims=True)
        p = jnp.exp(s)
        p = p * pl.reciprocal(jnp.sum(p, axis=-1, keepdims=True), approx=True)
        ctx = jnp.einsum("nqk,nkd->nqd", p.astype(jnp.bfloat16), v3,
                         preferred_element_type=jnp.float32)                     # (NH,Tp,HD)
        attn = jnp.concatenate([ctx[hn] for hn in range(N_HEADS)], axis=-1)      # (Tp, H)

        attn = _mm(attn, wo_ref[li]) + bo_ref[li]
        h1 = _ln(h + attn, ln1g_ref[li], ln1b_ref[li])
        ff = _gelu(_mm(h1, w1_ref[li]) + b1_ref[li])
        ff = _mm(ff, w2_ref[li]) + b2_ref[li]
        h = _ln(h1 + ff, ln2g_ref[li], ln2b_ref[li])

    # ---- last_hidden_state.transpose(1, 2) folded into the epilogue -------------
    # Exact f32 identity-matmul transpose on the MXU: (H, Tp) = I_H @ h^T.
    eye = jnp.eye(HIDDEN, dtype=jnp.float32)
    o_ref[0] = jax.lax.dot_general(eye, h, (((1,), (1,)), ((), ())),
                                   preferred_element_type=jnp.float32)


# ----------------------------- wrapper -------------------------------------------
def _frame_schedule(n_samples):
    frames, t = [], n_samples
    for ksz, st in zip(CONV_KERNELS, CONV_STRIDES):
        t = (t - ksz) // st + 1
        frames.append(t)
    return frames


def ssl_forward(prep, ref_audio_16k):
    B, T = ref_audio_16k.shape
    frames = _frame_schedule(T)
    f0, Tp = frames[0], frames[-1]
    k0, st0 = CONV_KERNELS[0], CONV_STRIDES[0]

    # conv0 im2col on the raw audio (one tiny XLA strided-slice fusion, bf16 ~25 KB).
    # TODO(synk): could be moved in-kernel via a (B, T, 1) block to save this HBM hop.
    xwin = jnp.stack(
        [ref_audio_16k[:, k:k + (f0 - 1) * st0 + 1:st0] for k in range(k0)],
        axis=-1).astype(jnp.bfloat16)                                # (B, F0, K0)

    in_specs = [pl.BlockSpec((1, f0, k0), lambda b: (b, 0, 0))]
    in_specs += [_full_spec(prep[k].shape) for k in _PREP_KEYS]

    kern = functools.partial(_ssl_kernel, frames=tuple(frames))
    return pl.pallas_call(
        kern,
        out_shape=jax.ShapeDtypeStruct((B, HIDDEN, Tp), jnp.float32),
        grid=(B,),
        in_specs=in_specs,
        out_specs=pl.BlockSpec((1, HIDDEN, Tp), lambda b: (b, 0, 0)),
        scratch_shapes=[pltpu.VMEM((frames[i], CONV_DIM), jnp.float32)
                        for i in range(len(CONV_KERNELS) - 1)],
        compiler_params=pltpu.CompilerParams(dimension_semantics=("parallel",)),
    )(xwin, *[prep[k] for k in _PREP_KEYS])


# ----------------------------- parameters ----------------------------------------
def _dense_init(key, shape, scale=0.02):
    return scale * jax.random.normal(key, shape, jnp.float32)


def init_params(key):
    """Torch-layout parameters (Conv1d weights are (Cout, Cin, K); conv_bias=False)."""
    keys = iter(jax.random.split(key, 64))
    p = {}
    convs = []
    cin = 1
    for k_sz in CONV_KERNELS:
        convs.append({"w": _dense_init(next(keys), (CONV_DIM, cin, k_sz))})
        cin = CONV_DIM
    p["convs"] = convs
    p["gn_gamma"] = jnp.ones((CONV_DIM,), jnp.float32)
    p["gn_beta"] = jnp.zeros((CONV_DIM,), jnp.float32)
    p["fp_ln_g"] = jnp.ones((CONV_DIM,), jnp.float32)
    p["fp_ln_b"] = jnp.zeros((CONV_DIM,), jnp.float32)
    p["fp_w"] = _dense_init(next(keys), (CONV_DIM, HIDDEN))
    p["fp_b"] = jnp.zeros((HIDDEN,), jnp.float32)
    p["pos_w"] = _dense_init(next(keys), (HIDDEN, HIDDEN // POS_GROUPS, POS_KERNEL))
    p["pos_b"] = jnp.zeros((HIDDEN,), jnp.float32)
    p["enc_ln_g"] = jnp.ones((HIDDEN,), jnp.float32)
    p["enc_ln_b"] = jnp.zeros((HIDDEN,), jnp.float32)
    layers = []
    for _ in range(N_LAYERS):
        layers.append({
            "wq": _dense_init(next(keys), (HIDDEN, HIDDEN)), "bq": jnp.zeros((HIDDEN,), jnp.float32),
            "wk": _dense_init(next(keys), (HIDDEN, HIDDEN)), "bk": jnp.zeros((HIDDEN,), jnp.float32),
            "wv": _dense_init(next(keys), (HIDDEN, HIDDEN)), "bv": jnp.zeros((HIDDEN,), jnp.float32),
            "wo": _dense_init(next(keys), (HIDDEN, HIDDEN)), "bo": jnp.zeros((HIDDEN,), jnp.float32),
            "ln1_g": jnp.ones((HIDDEN,), jnp.float32), "ln1_b": jnp.zeros((HIDDEN,), jnp.float32),
            "w1": _dense_init(next(keys), (HIDDEN, INTERMEDIATE)), "b1": jnp.zeros((INTERMEDIATE,), jnp.float32),
            "w2": _dense_init(next(keys), (INTERMEDIATE, HIDDEN)), "b2": jnp.zeros((HIDDEN,), jnp.float32),
            "ln2_g": jnp.ones((HIDDEN,), jnp.float32), "ln2_b": jnp.zeros((HIDDEN,), jnp.float32),
        })
    p["layers"] = layers
    return p


def prepare_inference_params(p):
    """One-time (eager) re-layout: bf16 matmul weights, per-tap conv matrices,
    block-diagonal pos-conv taps, fused+scaled QKV, stacked per-layer weights."""
    bf = jnp.bfloat16
    q = {}
    # conv0: (Cout, 1, K0) -> (K0, Cout) bf16
    q["w0"] = jnp.transpose(p["convs"][0]["w"][:, 0, :], (1, 0)).astype(bf)
    q["gn_g"] = p["gn_gamma"].reshape(1, CONV_DIM)
    q["gn_b"] = p["gn_beta"].reshape(1, CONV_DIM)
    # conv1..6: (Cout, Cin, K) -> per-tap (K, Cin, Cout) bf16
    for i in range(1, len(CONV_KERNELS)):
        q[f"cw{i}"] = jnp.transpose(p["convs"][i]["w"], (2, 1, 0)).astype(bf)
    q["fp_ln_g"] = p["fp_ln_g"].reshape(1, CONV_DIM)
    q["fp_ln_b"] = p["fp_ln_b"].reshape(1, CONV_DIM)
    q["fp_w"] = p["fp_w"].astype(bf)
    q["fp_b"] = p["fp_b"].reshape(1, HIDDEN)
    # grouped positional conv -> per-tap block-diagonal (K, H, H) bf16
    cg = HIDDEN // POS_GROUPS
    wtaps = jnp.zeros((POS_KERNEL, HIDDEN, HIDDEN), jnp.float32)
    for g in range(POS_GROUPS):
        blk = p["pos_w"][g * cg:(g + 1) * cg]                 # (cg_out, cg_in, K)
        wtaps = wtaps.at[:, g * cg:(g + 1) * cg, g * cg:(g + 1) * cg].set(
            jnp.transpose(blk, (2, 1, 0)))                    # (K, cg_in, cg_out)
    q["pos_w"] = wtaps.astype(bf)
    q["pos_b"] = p["pos_b"].reshape(1, HIDDEN)
    q["enc_ln_g"] = p["enc_ln_g"].reshape(1, HIDDEN)
    q["enc_ln_b"] = p["enc_ln_b"].reshape(1, HIDDEN)

    scale = 1.0 / (HEAD_DIM ** 0.5)
    acc = {k: [] for k in ("wqkv", "bqkv", "wo", "bo", "ln1_g", "ln1_b",
                           "w1", "b1", "w2", "b2", "ln2_g", "ln2_b")}
    for l in p["layers"]:
        # fold the attention scale into the Q columns / bias of the fused QKV weight
        acc["wqkv"].append(jnp.concatenate([l["wq"] * scale, l["wk"], l["wv"]], axis=1))
        acc["bqkv"].append(jnp.concatenate([l["bq"] * scale, l["bk"], l["bv"]]
                                           ).reshape(1, 3 * HIDDEN))
        acc["wo"].append(l["wo"]); acc["bo"].append(l["bo"].reshape(1, HIDDEN))
        acc["ln1_g"].append(l["ln1_g"].reshape(1, HIDDEN))
        acc["ln1_b"].append(l["ln1_b"].reshape(1, HIDDEN))
        acc["w1"].append(l["w1"]); acc["b1"].append(l["b1"].reshape(1, INTERMEDIATE))
        acc["w2"].append(l["w2"]); acc["b2"].append(l["b2"].reshape(1, HIDDEN))
        acc["ln2_g"].append(l["ln2_g"].reshape(1, HIDDEN))
        acc["ln2_b"].append(l["ln2_b"].reshape(1, HIDDEN))
    bf16_keys = ("wqkv", "wo", "w1", "w2")
    for k, vals in acc.items():
        stacked = jnp.stack(vals, axis=0)
        q[k] = stacked.astype(bf) if k in bf16_keys else stacked
    return q


# ----------------------------- main ------------------------------------------------
if __name__ == "__main__":
    key = jax.random.PRNGKey(0)
    pkey, xkey = jax.random.split(key)
    params = init_params(pkey)
    prep = prepare_inference_params(params)

    n_samples = 3200                                   # small stand-in for 16 kHz audio
    ref_audio_16k = jax.random.normal(xkey, (2, n_samples), jnp.float32)

    out = jax.jit(ssl_forward)(prep, ref_audio_16k)
    out = jax.block_until_ready(out)

    # expected frame count after the 7-conv downsampling stack
    t = n_samples
    for ksz, st in zip(CONV_KERNELS, CONV_STRIDES):
        t = (t - ksz) // st + 1
    assert out.shape == (2, HIDDEN, t), out.shape
    assert bool(jnp.all(jnp.isfinite(out)))
    print("KERNEL_OK")
</pallas_src>

<mosaic_0001>
module attributes {stable_mosaic.version = 11 : i64} {
  func.func @_ssl_kernel(%arg0: i32, %arg1: memref<1x639x10xbf16, #tpu.memory_space<vmem>>, %arg2: memref<10x32xbf16, #tpu.memory_space<vmem>>, %arg3: memref<1x32xf32, #tpu.memory_space<vmem>>, %arg4: memref<1x32xf32, #tpu.memory_space<vmem>>, %arg5: memref<3x32x32xbf16, #tpu.memory_space<vmem>>, %arg6: memref<3x32x32xbf16, #tpu.memory_space<vmem>>, %arg7: memref<3x32x32xbf16, #tpu.memory_space<vmem>>, %arg8: memref<3x32x32xbf16, #tpu.memory_space<vmem>>, %arg9: memref<2x32x32xbf16, #tpu.memory_space<vmem>>, %arg10: memref<2x32x32xbf16, #tpu.memory_space<vmem>>, %arg11: memref<1x32xf32, #tpu.memory_space<vmem>>, %arg12: memref<1x32xf32, #tpu.memory_space<vmem>>, %arg13: memref<32x32xbf16, #tpu.memory_space<vmem>>, %arg14: memref<1x32xf32, #tpu.memory_space<vmem>>, %arg15: memref<3x32x32xbf16, #tpu.memory_space<vmem>>, %arg16: memref<1x32xf32, #tpu.memory_space<vmem>>, %arg17: memref<1x32xf32, #tpu.memory_space<vmem>>, %arg18: memref<1x32xf32, #tpu.memory_space<vmem>>, %arg19: memref<2x32x96xbf16, #tpu.memory_space<vmem>>, %arg20: memref<2x1x96xf32, #tpu.memory_space<vmem>>, %arg21: memref<2x32x32xbf16, #tpu.memory_space<vmem>>, %arg22: memref<2x1x32xf32, #tpu.memory_space<vmem>>, %arg23: memref<2x1x32xf32, #tpu.memory_space<vmem>>, %arg24: memref<2x1x32xf32, #tpu.memory_space<vmem>>, %arg25: memref<2x32x64xbf16, #tpu.memory_space<vmem>>, %arg26: memref<2x1x64xf32, #tpu.memory_space<vmem>>, %arg27: memref<2x64x32xbf16, #tpu.memory_space<vmem>>, %arg28: memref<2x1x32xf32, #tpu.memory_space<vmem>>, %arg29: memref<2x1x32xf32, #tpu.memory_space<vmem>>, %arg30: memref<2x1x32xf32, #tpu.memory_space<vmem>>, %arg31: memref<1x32x9xf32, #tpu.memory_space<vmem>>, %arg32: memref<639x32xf32, #tpu.memory_space<vmem>>, %arg33: memref<319x32xf32, #tpu.memory_space<vmem>>, %arg34: memref<159x32xf32, #tpu.memory_space<vmem>>, %arg35: memref<79x32xf32, #tpu.memory_space<vmem>>, %arg36: memref<39x32xf32, #tpu.memory_space<vmem>>, %arg37: memref<19x32xf32, #tpu.memory_space<vmem>>) attributes {dimension_semantics = [#tpu.dimension_semantics<parallel>], iteration_bounds = array<i64: 2>, scalar_prefetch = 0 : i64, scratch_operands = 6 : i64, tpu.core_type = #tpu.core_type<tc>, window_params = [{transform_indices = @transform_0, window_bounds = array<i64: 1, 639, 10>}, {pipeline_mode = #tpu.pipeline_mode<synchronous>, transform_indices = @transform_1, window_bounds = array<i64: 10, 32>}, {pipeline_mode = #tpu.pipeline_mode<synchronous>, transform_indices = @transform_2, window_bounds = array<i64: 1, 32>}, {pipeline_mode = #tpu.pipeline_mode<synchronous>, transform_indices = @transform_3, window_bounds = array<i64: 1, 32>}, {pipeline_mode = #tpu.pipeline_mode<synchronous>, transform_indices = @transform_4, window_bounds = array<i64: 3, 32, 32>}, {pipeline_mode = #tpu.pipeline_mode<synchronous>, transform_indices = @transform_5, window_bounds = array<i64: 3, 32, 32>}, {pipeline_mode = #tpu.pipeline_mode<synchronous>, transform_indices = @transform_6, window_bounds = array<i64: 3, 32, 32>}, {pipeline_mode = #tpu.pipeline_mode<synchronous>, transform_indices = @transform_7, window_bounds = array<i64: 3, 32, 32>}, {pipeline_mode = #tpu.pipeline_mode<synchronous>, transform_indices = @transform_8, window_bounds = array<i64: 2, 32, 32>}, {pipeline_mode = #tpu.pipeline_mode<synchronous>, transform_indices = @transform_9, window_bounds = array<i64: 2, 32, 32>}, {pipeline_mode = #tpu.pipeline_mode<synchronous>, transform_indices = @transform_10, window_bounds = array<i64: 1, 32>}, {pipeline_mode = #tpu.pipeline_mode<synchronous>, transform_indices = @transform_11, window_bounds = array<i64: 1, 32>}, {pipeline_mode = #tpu.pipeline_mode<synchronous>, transform_indices = @transform_12, window_bounds = array<i64: 32, 32>}, {pipeline_mode = #tpu.pipeline_mode<synchronous>, transform_indices = @transform_13, window_bounds = array<i64: 1, 32>}, {pipeline_mode = #tpu.pipeline_mode<synchronous>, transform_indices = @transform_14, window_bounds = array<i64: 3, 32, 32>}, {pipeline_mode = #tpu.pipeline_mode<synchronous>, transform_indices = @transform_15, window_bounds = array<i64: 1, 32>}, {pipeline_mode = #tpu.pipeline_mode<synchronous>, transform_indices = @transform_16, window_bounds = array<i64: 1, 32>}, {pipeline_mode = #tpu.pipeline_mode<synchronous>, transform_indices = @transform_17, window_bounds = array<i64: 1, 32>}, {pipeline_mode = #tpu.pipeline_mode<synchronous>, transform_indices = @transform_18, window_bounds = array<i64: 2, 32, 96>}, {pipeline_mode = #tpu.pipeline_mode<synchronous>, transform_indices = @transform_19, window_bounds = array<i64: 2, 1, 96>}, {pipeline_mode = #tpu.pipeline_mode<synchronous>, transform_indices = @transform_20, window_bounds = array<i64: 2, 32, 32>}, {pipeline_mode = #tpu.pipeline_mode<synchronous>, transform_indices = @transform_21, window_bounds = array<i64: 2, 1, 32>}, {pipeline_mode = #tpu.pipeline_mode<synchronous>, transform_indices = @transform_22, window_bounds = array<i64: 2, 1, 32>}, {pipeline_mode = #tpu.pipeline_mode<synchronous>, transform_indices = @transform_23, window_bounds = array<i64: 2, 1, 32>}, {pipeline_mode = #tpu.pipeline_mode<synchronous>, transform_indices = @transform_24, window_bounds = array<i64: 2, 32, 64>}, {pipeline_mode = #tpu.pipeline_mode<synchronous>, transform_indices = @transform_25, window_bounds = array<i64: 2, 1, 64>}, {pipeline_mode = #tpu.pipeline_mode<synchronous>, transform_indices = @transform_26, window_bounds = array<i64: 2, 64, 32>}, {pipeline_mode = #tpu.pipeline_mode<synchronous>, transform_indices = @transform_27, window_bounds = array<i64: 2, 1, 32>}, {pipeline_mode = #tpu.pipeline_mode<synchronous>, transform_indices = @transform_28, window_bounds = array<i64: 2, 1, 32>}, {pipeline_mode = #tpu.pipeline_mode<synchronous>, transform_indices = @transform_29, window_bounds = array<i64: 2, 1, 32>}, {transform_indices = @transform_30, window_bounds = array<i64: 1, 32, 9>}]} {
    %c0 = arith.constant 0 : index
    %c0_0 = arith.constant 0 : index
    %c0_1 = arith.constant 0 : index
    %0 = vector.load %arg1[%c0, %c0_0, %c0_1] : memref<1x639x10xbf16, #tpu.memory_space<vmem>>, vector<1x639x10xbf16>
    %1 = vector.shape_cast %0 : vector<1x639x10xbf16> to vector<639x10xbf16>
    %c0_2 = arith.constant 0 : index
    %c0_3 = arith.constant 0 : index
    %2 = vector.load %arg2[%c0_2, %c0_3] : memref<10x32xbf16, #tpu.memory_space<vmem>>, vector<10x32xbf16>
    %cst = arith.constant dense<0.000000e+00> : vector<639x32xf32>
    %3 = tpu.matmul %1, %2, %cst {dimension_numbers = #tpu.dot_dimension_numbers<[1], [0], [0], [1], [0, 0, 1, 1], [], []>} : vector<639x10xbf16>, vector<10x32xbf16>, vector<639x32xf32> -> vector<639x32xf32>
    %cst_4 = arith.constant dense<0.000000e+00> : vector<32xf32>
    %4 = vector.multi_reduction <add>, %3, %cst_4 [0] : vector<639x32xf32> to vector<32xf32>
    %5 = vector.shape_cast %4 : vector<32xf32> to vector<1x32xf32>
    %cst_5 = arith.constant 6.390000e+02 : f32
    %6 = vector.broadcast %cst_5 : f32 to vector<1x32xf32>
    %7 = arith.divf %5, %6 : vector<1x32xf32>
    %8 = vector.broadcast %7 : vector<1x32xf32> to vector<639x32xf32>
    %9 = arith.subf %3, %8 : vector<639x32xf32>
    %10 = arith.mulf %9, %9 : vector<639x32xf32>
    %cst_6 = arith.constant dense<0.000000e+00> : vector<32xf32>
    %11 = vector.multi_reduction <add>, %10, %cst_6 [0] : vector<639x32xf32> to vector<32xf32>
    %12 = vector.shape_cast %11 : vector<32xf32> to vector<1x32xf32>
    %cst_7 = arith.constant 6.390000e+02 : f32
    %13 = vector.broadcast %cst_7 : f32 to vector<1x32xf32>
    %14 = arith.divf %12, %13 : vector<1x32xf32>
    %15 = vector.broadcast %7 : vector<1x32xf32> to vector<639x32xf32>
    %16 = arith.subf %3, %15 : vector<639x32xf32>
    %cst_8 = arith.constant 9.99999974E-6 : f32
    %17 = vector.broadcast %cst_8 : f32 to vector<1x32xf32>
    %18 = arith.addf %14, %17 : vector<1x32xf32>
    %19 = math.rsqrt %18 : vector<1x32xf32>
    %20 = vector.broadcast %19 : vector<1x32xf32> to vector<639x32xf32>
    %21 = arith.mulf %16, %20 : vector<639x32xf32>
    %c0_9 = arith.constant 0 : index
    %c0_10 = arith.constant 0 : index
    %22 = vector.load %arg3[%c0_9, %c0_10] : memref<1x32xf32, #tpu.memory_space<vmem>>, vector<1x32xf32>
    %23 = vector.broadcast %22 : vector<1x32xf32> to vector<639x32xf32>
    %24 = arith.mulf %21, %23 : vector<639x32xf32>
    %c0_11 = arith.constant 0 : index
    %c0_12 = arith.constant 0 : index
    %25 = vector.load %arg4[%c0_11, %c0_12] : memref<1x32xf32, #tpu.memory_space<vmem>>, vector<1x32xf32>
    %26 = vector.broadcast %25 : vector<1x32xf32> to vector<639x32xf32>
    %27 = arith.addf %24, %26 : vector<639x32xf32>
    %28 = arith.mulf %27, %27 : vector<639x32xf32>
    %29 = arith.mulf %27, %28 : vector<639x32xf32>
    %cst_13 = arith.constant 4.471500e-02 : f32
    %30 = vector.broadcast %cst_13 : f32 to vector<639x32xf32>
    %31 = arith.mulf %30, %29 : vector<639x32xf32>
    %32 = arith.addf %27, %31 : vector<639x32xf32>
    %cst_14 = arith.constant 0.797884583 : f32
    %33 = vector.broadcast %cst_14 : f32 to vector<639x32xf32>
    %34 = arith.mulf %33, %32 : vector<639x32xf32>
    %35 = math.tanh %34 : vector<639x32xf32>
    %cst_15 = arith.constant 1.000000e+00 : f32
    %36 = vector.broadcast %cst_15 : f32 to vector<639x32xf32>
    %37 = arith.addf %36, %35 : vector<639x32xf32>
    %cst_16 = arith.constant 5.000000e-01 : f32
    %38 = vector.broadcast %cst_16 : f32 to vector<639x32xf32>
    %39 = arith.mulf %38, %37 : vector<639x32xf32>
    %40 = arith.mulf %27, %39 : vector<639x32xf32>
    %c0_17 = arith.constant 0 : index
    %c0_18 = arith.constant 0 : index
    %41 = vector.load %arg32[%c0_17, %c0_18] : memref<639x32xf32, #tpu.memory_space<vmem>>, vector<639x32xf32>
    tpu.vector_store %arg32[%c0_17, %c0_18], %40 {strides = array<i32>} : memref<639x32xf32, #tpu.memory_space<vmem>>, vector<639x32xf32>,
    %c0_19 = arith.constant 0 : index
    %c0_20 = arith.constant 0 : index
    %42 = tpu.strided_load %arg32[%c0_19, %c0_20] {strides = array<i32: 2, 1>} : memref<639x32xf32, #tpu.memory_space<vmem>>, vector<319x32xf32>
    %43 = arith.truncf %42 : vector<319x32xf32> to vector<319x32xbf16>
    %c0_21 = arith.constant 0 : index
    %c0_22 = arith.constant 0 : index
    %c0_23 = arith.constant 0 : index
    %44 = vector.load %arg5[%c0_21, %c0_22, %c0_23] : memref<3x32x32xbf16, #tpu.memory_space<vmem>>, vector<1x32x32xbf16>
    %45 = vector.shape_cast %44 : vector<1x32x32xbf16> to vector<32x32xbf16>
    %cst_24 = arith.constant dense<0.000000e+00> : vector<319x32xf32>
    %46 = tpu.matmul %43, %45, %cst_24 {dimension_numbers = #tpu.dot_dimension_numbers<[1], [0], [0], [1], [0, 0, 1, 1], [], []>} : vector<319x32xbf16>, vector<32x32xbf16>, vector<319x32xf32> -> vector<319x32xf32>
    %c1 = arith.constant 1 : index
    %c0_25 = arith.constant 0 : index
    %47 = tpu.strided_load %arg32[%c1, %c0_25] {strides = array<i32: 2, 1>} : memref<639x32xf32, #tpu.memory_space<vmem>>, vector<319x32xf32>
    %48 = arith.truncf %47 : vector<319x32xf32> to vector<319x32xbf16>
    %c1_26 = arith.constant 1 : index
    %c0_27 = arith.constant 0 : index
    %c0_28 = arith.constant 0 : index
    %49 = vector.load %arg5[%c1_26, %c0_27, %c0_28] : memref<3x32x32xbf16, #tpu.memory_space<vmem>>, vector<1x32x32xbf16>
    %50 = vector.shape_cast %49 : vector<1x32x32xbf16> to vector<32x32xbf16>
    %cst_29 = arith.constant dense<0.000000e+00> : vector<319x32xf32>
    %51 = tpu.matmul %48, %50, %cst_29 {dimension_numbers = #tpu.dot_dimension_numbers<[1], [0], [0], [1], [0, 0, 1, 1], [], []>} : vector<319x32xbf16>, vector<32x32xbf16>, vector<319x32xf32> -> vector<319x32xf32>
    %52 = arith.addf %46, %51 : vector<319x32xf32>
    %c2 = arith.constant 2 : index
    %c0_30 = arith.constant 0 : index
    %53 = tpu.strided_load %arg32[%c2, %c0_30] {strides = array<i32: 2, 1>} : memref<639x32xf32, #tpu.memory_space<vmem>>, vector<319x32xf32>
    %54 = arith.truncf %53 : vector<319x32xf32> to vector<319x32xbf16>
    %c2_31 = arith.constant 2 : index
    %c0_32 = arith.constant 0 : index
    %c0_33 = arith.constant 0 : index
    %55 = vector.load %arg5[%c2_31, %c0_32, %c0_33] : memref<3x32x32xbf16, #tpu.memory_space<vmem>>, vector<1x32x32xbf16>
    %56 = vector.shape_cast %55 : vector<1x32x32xbf16> to vector<32x32xbf16>
    %cst_34 = arith.constant dense<0.000000e+00> : vector<319x32xf32>
    %57 = tpu.matmul %54, %56, %cst_34 {dimension_numbers = #tpu.dot_dimension_numbers<[1], [0], [0], [1], [0, 0, 1, 1], [], []>} : vector<319x32xbf16>, vector<32x32xbf16>, vector<319x32xf32> -> vector<319x32xf32>
    %58 = arith.addf %52, %57 : vector<319x32xf32>
    %59 = arith.mulf %58, %58 : vector<319x32xf32>
    %60 = arith.mulf %58, %59 : vector<319x32xf32>
    %cst_35 = arith.constant 4.471500e-02 : f32
    %61 = vector.broadcast %cst_35 : f32 to vector<319x32xf32>
    %62 = arith.mulf %61, %60 : vector<319x32xf32>
    %63 = arith.addf %58, %62 : vector<319x32xf32>
    %cst_36 = arith.constant 0.797884583 : f32
    %64 = vector.broadcast %cst_36 : f32 to vector<319x32xf32>
    %65 = arith.mulf %64, %63 : vector<319x32xf32>
    %66 = math.tanh %65 : vector<319x32xf32>
    %cst_37 = arith.constant 1.000000e+00 : f32
    %67 = vector.broadcast %cst_37 : f32 to vector<319x32xf32>
    %68 = arith.addf %67, %66 : vector<319x32xf32>
    %cst_38 = arith.constant 5.000000e-01 : f32
    %69 = vector.broadcast %cst_38 : f32 to vector<319x32xf32>
    %70 = arith.mulf %69, %68 : vector<319x32xf32>
    %71 = arith.mulf %58, %70 : vector<319x32xf32>
    %c0_39 = arith.constant 0 : index
    %c0_40 = arith.constant 0 : index
    %72 = vector.load %arg33[%c0_39, %c0_40] : memref<319x32xf32, #tpu.memory_space<vmem>>, vector<319x32xf32>
    tpu.vector_store %arg33[%c0_39, %c0_40], %71 {strides = array<i32>} : memref<319x32xf32, #tpu.memory_space<vmem>>, vector<319x32xf32>,
    %c0_41 = arith.constant 0 : index
    %c0_42 = arith.constant 0 : index
    %73 = tpu.strided_load %arg33[%c0_41, %c0_42] {strides = array<i32: 2, 1>} : memref<319x32xf32, #tpu.memory_space<vmem>>, vector<159x32xf32>
    %74 = arith.truncf %73 : vector<159x32xf32> to vector<159x32xbf16>
    %c0_43 = arith.constant 0 : index
    %c0_44 = arith.constant 0 : index
    %c0_45 = arith.constant 0 : index
    %75 = vector.load %arg6[%c0_43, %c0_44, %c0_45] : memref<3x32x32xbf16, #tpu.memory_space<vmem>>, vector<1x32x32xbf16>
    %76 = vector.shape_cast %75 : vector<1x32x32xbf16> to vector<32x32xbf16>
    %cst_46 = arith.constant dense<0.000000e+00> : vector<159x32xf32>
    %77 = tpu.matmul %74, %76, %cst_46 {dimension_numbers = #tpu.dot_dimension_numbers<[1], [0], [0], [1], [0, 0, 1, 1], [], []>} : vector<159x32xbf16>, vector<32x32xbf16>, vector<159x32xf32> -> vector<159x32xf32>
    %c1_47 = arith.constant 1 : index
    %c0_48 = arith.constant 0 : index
    %78 = tpu.strided_load %arg33[%c1_47, %c0_48] {strides = array<i32: 2, 1>} : memref<319x32xf32, #tpu.memory_space<vmem>>, vector<159x32xf32>
    %79 = arith.truncf %78 : vector<159x32xf32> to vector<159x32xbf16>
    %c1_49 = arith.constant 1 : index
    %c0_50 = arith.constant 0 : index
    %c0_51 = arith.constant 0 : index
    %80 = vector.load %arg6[%c1_49, %c0_50, %c0_51] : memref<3x32x32xbf16, #tpu.memory_space<vmem>>, vector<1x32x32xbf16>
    %81 = vector.shape_cast %80 : vector<1x32x32xbf16> to vector<32x32xbf16>
    %cst_52 = arith.constant dense<0.000000e+00> : vector<159x32xf32>
    %82 = tpu.matmul %79, %81, %cst_52 {dimension_numbers = #tpu.dot_dimension_numbers<[1], [0], [0], [1], [0, 0, 1, 1], [], []>} : vector<159x32xbf16>, vector<32x32xbf16>, vector<159x32xf32> -> vector<159x32xf32>
    %83 = arith.addf %77, %82 : vector<159x32xf32>
    %c2_53 = arith.constant 2 : index
    %c0_54 = arith.constant 0 : index
    %84 = tpu.strided_load %arg33[%c2_53, %c0_54] {strides = array<i32: 2, 1>} : memref<319x32xf32, #tpu.memory_space<vmem>>, vector<159x32xf32>
    %85 = arith.truncf %84 : vector<159x32xf32> to vector<159x32xbf16>
    %c2_55 = arith.constant 2 : index
    %c0_56 = arith.constant 0 : index
    %c0_57 = arith.constant 0 : index
    %86 = vector.load %arg6[%c2_55, %c0_56, %c0_57] : memref<3x32x32xbf16, #tpu.memory_space<vmem>>, vector<1x32x32xbf16>
    %87 = vector.shape_cast %86 : vector<1x32x32xbf16> to vector<32x32xbf16>
    %cst_58 = arith.constant dense<0.000000e+00> : vector<159x32xf32>
    %88 = tpu.matmul %85, %87, %cst_58 {dimension_numbers = #tpu.dot_dimension_numbers<[1], [0], [0], [1], [0, 0, 1, 1], [], []>} : vector<159x32xbf16>, vector<32x32xbf16>, vector<159x32xf32> -> vector<159x32xf32>
    %89 = arith.addf %83, %88 : vector<159x32xf32>
    %90 = arith.mulf %89, %89 : vector<159x32xf32>
    %91 = arith.mulf %89, %90 : vector<159x32xf32>
    %cst_59 = arith.constant 4.471500e-02 : f32
    %92 = vector.broadcast %cst_59 : f32 to vector<159x32xf32>
    %93 = arith.mulf %92, %91 : vector<159x32xf32>
    %94 = arith.addf %89, %93 : vector<159x32xf32>
    %cst_60 = arith.constant 0.797884583 : f32
    %95 = vector.broadcast %cst_60 : f32 to vector<159x32xf32>
    %96 = arith.mulf %95, %94 : vector<159x32xf32>
    %97 = math.tanh %96 : vector<159x32xf32>
    %cst_61 = arith.constant 1.000000e+00 : f32
    %98 = vector.broadcast %cst_61 : f32 to vector<159x32xf32>
    %99 = arith.addf %98, %97 : vector<159x32xf32>
    %cst_62 = arith.constant 5.000000e-01 : f32
    %100 = vector.broadcast %cst_62 : f32 to vector<159x32xf32>
    %101 = arith.mulf %100, %99 : vector<159x32xf32>
    %102 = arith.mulf %89, %101 : vector<159x32xf32>
    %c0_63 = arith.constant 0 : index
    %c0_64 = arith.constant 0 : index
    %103 = vector.load %arg34[%c0_63, %c0_64] : memref<159x32xf32, #tpu.memory_space<vmem>>, vector<159x32xf32>
    tpu.vector_store %arg34[%c0_63, %c0_64], %102 {strides = array<i32>} : memref<159x32xf32, #tpu.memory_space<vmem>>, vector<159x32xf32>,
    %c0_65 = arith.constant 0 : index
    %c0_66 = arith.constant 0 : index
    %104 = tpu.strided_load %arg34[%c0_65, %c0_66] {strides = array<i32: 2, 1>} : memref<159x32xf32, #tpu.memory_space<vmem>>, vector<79x32xf32>
    %105 = arith.truncf %104 : vector<79x32xf32> to vector<79x32xbf16>
    %c0_67 = arith.constant 0 : index
    %c0_68 = arith.constant 0 : index
    %c0_69 = arith.constant 0 : index
    %106 = vector.load %arg7[%c0_67, %c0_68, %c0_69] : memref<3x32x32xbf16, #tpu.memory_space<vmem>>, vector<1x32x32xbf16>
    %107 = vector.shape_cast %106 : vector<1x32x32xbf16> to vector<32x32xbf16>
    %cst_70 = arith.constant dense<0.000000e+00> : vector<79x32xf32>
    %108 = tpu.matmul %105, %107, %cst_70 {dimension_numbers = #tpu.dot_dimension_numbers<[1], [0], [0], [1], [0, 0, 1, 1], [], []>} : vector<79x32xbf16>, vector<32x32xbf16>, vector<79x32xf32> -> vector<79x32xf32>
    %c1_71 = arith.constant 1 : index
    %c0_72 = arith.constant 0 : index
    %109 = tpu.strided_load %arg34[%c1_71, %c0_72] {strides = array<i32: 2, 1>} : memref<159x32xf32, #tpu.memory_space<vmem>>, vector<79x32xf32>
    %110 = arith.truncf %109 : vector<79x32xf32> to vector<79x32xbf16>
    %c1_73 = arith.constant 1 : index
    %c0_74 = arith.constant 0 : index
    %c0_75 = arith.constant 0 : index
    %111 = vector.load %arg7[%c1_73, %c0_74, %c0_75] : memref<3x32x32xbf16, #tpu.memory_space<vmem>>, vector<1x32x32xbf16>
    %112 = vector.shape_cast %111 : vector<1x32x32xbf16> to vector<32x32xbf16>
    %cst_76 = arith.constant dense<0.000000e+00> : vector<79x32xf32>
    %113 = tpu.matmul %110, %112, %cst_76 {dimension_numbers = #tpu.dot_dimension_numbers<[1], [0], [0], [1], [0, 0, 1, 1], [], []>} : vector<79x32xbf16>, vector<32x32xbf16>, vector<79x32xf32> -> vector<79x32xf32>
    %114 = arith.addf %108, %113 : vector<79x32xf32>
    %c2_77 = arith.constant 2 : index
    %c0_78 = arith.constant 0 : index
    %115 = tpu.strided_load %arg34[%c2_77, %c0_78] {strides = array<i32: 2, 1>} : memref<159x32xf32, #tpu.memory_space<vmem>>, vector<79x32xf32>
    %116 = arith.truncf %115 : vector<79x32xf32> to vector<79x32xbf16>
    %c2_79 = arith.constant 2 : index
    %c0_80 = arith.constant 0 : index
    %c0_81 = arith.constant 0 : index
    %117 = vector.load %arg7[%c2_79, %c0_80, %c0_81] : memref<3x32x32xbf16, #tpu.memory_space<vmem>>, vector<1x32x32xbf16>
    %118 = vector.shape_cast %117 : vector<1x32x32xbf16> to vector<32x32xbf16>
    %cst_82 = arith.constant dense<0.000000e+00> : vector<79x32xf32>
    %119 = tpu.matmul %116, %118, %cst_82 {dimension_numbers = #tpu.dot_dimension_numbers<[1], [0], [0], [1], [0, 0, 1, 1], [], []>} : vector<79x32xbf16>, vector<32x32xbf16>, vector<79x32xf32> -> vector<79x32xf32>
    %120 = arith.addf %114, %119 : vector<79x32xf32>
    %121 = arith.mulf %120, %120 : vector<79x32xf32>
    %122 = arith.mulf %120, %121 : vector<79x32xf32>
    %cst_83 = arith.constant 4.471500e-02 : f32
    %123 = vector.broadcast %cst_83 : f32 to vector<79x32xf32>
    %124 = arith.mulf %123, %122 : vector<79x32xf32>
    %125 = arith.addf %120, %124 : vector<79x32xf32>
    %cst_84 = arith.constant 0.797884583 : f32
    %126 = vector.broadcast %cst_84 : f32 to vector<79x32xf32>
    %127 = arith.mulf %126, %125 : vector<79x32xf32>
    %128 = math.tanh %127 : vector<79x32xf32>
    %cst_85 = arith.constant 1.000000e+00 : f32
    %129 = vector.broadcast %cst_85 : f32 to vector<79x32xf32>
    %130 = arith.addf %129, %128 : vector<79x32xf32>
    %cst_86 = arith.constant 5.000000e-01 : f32
    %131 = vector.broadcast %cst_86 : f32 to vector<79x32xf32>
    %132 = arith.mulf %131, %130 : vector<79x32xf32>
    %133 = arith.mulf %120, %132 : vector<79x32xf32>
    %c0_87 = arith.constant 0 : index
    %c0_88 = arith.constant 0 : index
    %134 = vector.load %arg35[%c0_87, %c0_88] : memref<79x32xf32, #tpu.memory_space<vmem>>, vector<79x32xf32>
    tpu.vector_store %arg35[%c0_87, %c0_88], %133 {strides = array<i32>} : memref<79x32xf32, #tpu.memory_space<vmem>>, vector<79x32xf32>,
    %c0_89 = arith.constant 0 : index
    %c0_90 = arith.constant 0 : index
    %135 = tpu.strided_load %arg35[%c0_89, %c0_90] {strides = array<i32: 2, 1>} : memref<79x32xf32, #tpu.memory_space<vmem>>, vector<39x32xf32>
    %136 = arith.truncf %135 : vector<39x32xf32> to vector<39x32xbf16>
    %c0_91 = arith.constant 0 : index
    %c0_92 = arith.constant 0 : index
    %c0_93 = arith.constant 0 : index
    %137 = vector.load %arg8[%c0_91, %c0_92, %c0_93] : memref<3x32x32xbf16, #tpu.memory_space<vmem>>, vector<1x32x32xbf16>
    %138 = vector.shape_cast %137 : vector<1x32x32xbf16> to vector<32x32xbf16>
    %cst_94 = arith.constant dense<0.000000e+00> : vector<39x32xf32>
    %139 = tpu.matmul %136, %138, %cst_94 {dimension_numbers = #tpu.dot_dimension_numbers<[1], [0], [0], [1], [0, 0, 1, 1], [], []>} : vector<39x32xbf16>, vector<32x32xbf16>, vector<39x32xf32> -> vector<39x32xf32>
    %c1_95 = arith.constant 1 : index
    %c0_96 = arith.constant 0 : index
    %140 = tpu.strided_load %arg35[%c1_95, %c0_96] {strides = array<i32: 2, 1>} : memref<79x32xf32, #tpu.memory_space<vmem>>, vector<39x32xf32>
    %141 = arith.truncf %140 : vector<39x32xf32> to vector<39x32xbf16>
    %c1_97 = arith.constant 1 : index
    %c0_98 = arith.constant 0 : index
    %c0_99 = arith.constant 0 : index
    %142 = vector.load %arg8[%c1_97, %c0_98, %c0_99] : memref<3x32x32xbf16, #tpu.memory_space<vmem>>, vector<1x32x32xbf16>
    %143 = vector.shape_cast %142 : vector<1x32x32xbf16> to vector<32x32xbf16>
    %cst_100 = arith.constant dense<0.000000e+00> : vector<39x32xf32>
    %144 = tpu.matmul %141, %143, %cst_100 {dimension_numbers = #tpu.dot_dimension_numbers<[1], [0], [0], [1], [0, 0, 1, 1], [], []>} : vector<39x32xbf16>, vector<32x32xbf16>, vector<39x32xf32> -> vector<39x32xf32>
    %145 = arith.addf %139, %144 : vector<39x32xf32>
    %c2_101 = arith.constant 2 : index
    %c0_102 = arith.constant 0 : index
    %146 = tpu.strided_load %arg35[%c2_101, %c0_102] {strides = array<i32: 2, 1>} : memref<79x32xf32, #tpu.memory_space<vmem>>, vector<39x32xf32>
    %147 = arith.truncf %146 : vector<39x32xf32> to vector<39x32xbf16>
    %c2_103 = arith.constant 2 : index
    %c0_104 = arith.constant 0 : index
    %c0_105 = arith.constant 0 : index
    %148 = vector.load %arg8[%c2_103, %c0_104, %c0_105] : memref<3x32x32xbf16, #tpu.memory_space<vmem>>, vector<1x32x32xbf16>
    %149 = vector.shape_cast %148 : vector<1x32x32xbf16> to vector<32x32xbf16>
    %cst_106 = arith.constant dense<0.000000e+00> : vector<39x32xf32>
    %150 = tpu.matmul %147, %149, %cst_106 {dimension_numbers = #tpu.dot_dimension_numbers<[1], [0], [0], [1], [0, 0, 1, 1], [], []>} : vector<39x32xbf16>, vector<32x32xbf16>, vector<39x32xf32> -> vector<39x32xf32>
    %151 = arith.addf %145, %150 : vector<39x32xf32>
    %152 = arith.mulf %151, %151 : vector<39x32xf32>
    %153 = arith.mulf %151, %152 : vector<39x32xf32>
    %cst_107 = arith.constant 4.471500e-02 : f32
    %154 = vector.broadcast %cst_107 : f32 to vector<39x32xf32>
    %155 = arith.mulf %154, %153 : vector<39x32xf32>
    %156 = arith.addf %151, %155 : vector<39x32xf32>
    %cst_108 = arith.constant 0.797884583 : f32
    %157 = vector.broadcast %cst_108 : f32 to vector<39x32xf32>
    %158 = arith.mulf %157, %156 : vector<39x32xf32>
    %159 = math.tanh %158 : vector<39x32xf32>
    %cst_109 = arith.constant 1.000000e+00 : f32
    %160 = vector.broadcast %cst_109 : f32 to vector<39x32xf32>
    %161 = arith.addf %160, %159 : vector<39x32xf32>
    %cst_110 = arith.constant 5.000000e-01 : f32
    %162 = vector.broadcast %cst_110 : f32 to vector<39x32xf32>
    %163 = arith.mulf %162, %161 : vector<39x32xf32>
    %164 = arith.mulf %151, %163 : vector<39x32xf32>
    %c0_111 = arith.constant 0 : index
    %c0_112 = arith.constant 0 : index
    %165 = vector.load %arg36[%c0_111, %c0_112] : memref<39x32xf32, #tpu.memory_space<vmem>>, vector<39x32xf32>
    tpu.vector_store %arg36[%c0_111, %c0_112], %164 {strides = array<i32>} : memref<39x32xf32, #tpu.memory_space<vmem>>, vector<39x32xf32>,
    %c0_113 = arith.constant 0 : index
    %c0_114 = arith.constant 0 : index
    %166 = tpu.strided_load %arg36[%c0_113, %c0_114] {strides = array<i32: 2, 1>} : memref<39x32xf32, #tpu.memory_space<vmem>>, vector<19x32xf32>
    %167 = arith.truncf %166 : vector<19x32xf32> to vector<19x32xbf16>
    %c0_115 = arith.constant 0 : index
    %c0_116 = arith.constant 0 : index
    %c0_117 = arith.constant 0 : index
    %168 = vector.load %arg9[%c0_115, %c0_116, %c0_117] : memref<2x32x32xbf16, #tpu.memory_space<vmem>>, vector<1x32x32xbf16>
    %169 = vector.shape_cast %168 : vector<1x32x32xbf16> to vector<32x32xbf16>
    %cst_118 = arith.constant dense<0.000000e+00> : vector<19x32xf32>
    %170 = tpu.matmul %167, %169, %cst_118 {dimension_numbers = #tpu.dot_dimension_numbers<[1], [0], [0], [1], [0, 0, 1, 1], [], []>} : vector<19x32xbf16>, vector<32x32xbf16>, vector<19x32xf32> -> vector<19x32xf32>
    %c1_119 = arith.constant 1 : index
    %c0_120 = arith.constant 0 : index
    %171 = tpu.strided_load %arg36[%c1_119, %c0_120] {strides = array<i32: 2, 1>} : memref<39x32xf32, #tpu.memory_space<vmem>>, vector<19x32xf32>
    %172 = arith.truncf %171 : vector<19x32xf32> to vector<19x32xbf16>
    %c1_121 = arith.constant 1 : index
    %c0_122 = arith.constant 0 : index
    %c0_123 = arith.constant 0 : index
    %173 = vector.load %arg9[%c1_121, %c0_122, %c0_123] : memref<2x32x32xbf16, #tpu.memory_space<vmem>>, vector<1x32x32xbf16>
    %174 = vector.shape_cast %173 : vector<1x32x32xbf16> to vector<32x32xbf16>
    %cst_124 = arith.constant dense<0.000000e+00> : vector<19x32xf32>
    %175 = tpu.matmul %172, %174, %cst_124 {dimension_numbers = #tpu.dot_dimension_numbers<[1], [0], [0], [1], [0, 0, 1, 1], [], []>} : vector<19x32xbf16>, vector<32x32xbf16>, vector<19x32xf32> -> vector<19x32xf32>
    %176 = arith.addf %170, %175 : vector<19x32xf32>
    %177 = arith.mulf %176, %176 : vector<19x32xf32>
    %178 = arith.mulf %176, %177 : vector<19x32xf32>
    %cst_125 = arith.constant 4.471500e-02 : f32
    %179 = vector.broadcast %cst_125 : f32 to vector<19x32xf32>
    %180 = arith.mulf %179, %178 : vector<19x32xf32>
    %181 = arith.addf %176, %180 : vector<19x32xf32>
    %cst_126 = arith.constant 0.797884583 : f32
    %182 = vector.broadcast %cst_126 : f32 to vector<19x32xf32>
    %183 = arith.mulf %182, %181 : vector<19x32xf32>
    %184 = math.tanh %183 : vector<19x32xf32>
    %cst_127 = arith.constant 1.000000e+00 : f32
    %185 = vector.broadcast %cst_127 : f32 to vector<19x32xf32>
    %186 = arith.addf %185, %184 : vector<19x32xf32>
    %cst_128 = arith.constant 5.000000e-01 : f32
    %187 = vector.broadcast %cst_128 : f32 to vector<19x32xf32>
    %188 = arith.mulf %187, %186 : vector<19x32xf32>
    %189 = arith.mulf %176, %188 : vector<19x32xf32>
    %c0_129 = arith.constant 0 : index
    %c0_130 = arith.constant 0 : index
    %190 = vector.load %arg37[%c0_129, %c0_130] : memref<19x32xf32, #tpu.memory_space<vmem>>, vector<19x32xf32>
    tpu.vector_store %arg37[%c0_129, %c0_130], %189 {strides = array<i32>} : memref<19x32xf32, #tpu.memory_space<vmem>>, vector<19x32xf32>,
    %c0_131 = arith.constant 0 : index
    %c0_132 = arith.constant 0 : index
    %191 = tpu.strided_load %arg37[%c0_131, %c0_132] {strides = array<i32: 2, 1>} : memref<19x32xf32, #tpu.memory_space<vmem>>, vector<9x32xf32>
    %192 = arith.truncf %191 : vector<9x32xf32> to vector<9x32xbf16>
    %c0_133 = arith.constant 0 : index
    %c0_134 = arith.constant 0 : index
    %c0_135 = arith.constant 0 : index
    %193 = vector.load %arg10[%c0_133, %c0_134, %c0_135] : memref<2x32x32xbf16, #tpu.memory_space<vmem>>, vector<1x32x32xbf16>
    %194 = vector.shape_cast %193 : vector<1x32x32xbf16> to vector<32x32xbf16>
    %cst_136 = arith.constant dense<0.000000e+00> : vector<9x32xf32>
    %195 = tpu.matmul %192, %194, %cst_136 {dimension_numbers = #tpu.dot_dimension_numbers<[1], [0], [0], [1], [0, 0, 1, 1], [], []>} : vector<9x32xbf16>, vector<32x32xbf16>, vector<9x32xf32> -> vector<9x32xf32>
    %c1_137 = arith.constant 1 : index
    %c0_138 = arith.constant 0 : index
    %196 = tpu.strided_load %arg37[%c1_137, %c0_138] {strides = array<i32: 2, 1>} : memref<19x32xf32, #tpu.memory_space<vmem>>, vector<9x32xf32>
    %197 = arith.truncf %196 : vector<9x32xf32> to vector<9x32xbf16>
    %c1_139 = arith.constant 1 : index
    %c0_140 = arith.constant 0 : index
    %c0_141 = arith.constant 0 : index
    %198 = vector.load %arg10[%c1_139, %c0_140, %c0_141] : memref<2x32x32xbf16, #tpu.memory_space<vmem>>, vector<1x32x32xbf16>
    %199 = vector.shape_cast %198 : vector<1x32x32xbf16> to vector<32x32xbf16>
    %cst_142 = arith.constant dense<0.000000e+00> : vector<9x32xf32>
    %200 = tpu.matmul %197, %199, %cst_142 {dimension_numbers = #tpu.dot_dimension_numbers<[1], [0], [0], [1], [0, 0, 1, 1], [], []>} : vector<9x32xbf16>, vector<32x32xbf16>, vector<9x32xf32> -> vector<9x32xf32>
    %201 = arith.addf %195, %200 : vector<9x32xf32>
    %202 = arith.mulf %201, %201 : vector<9x32xf32>
    %203 = arith.mulf %201, %202 : vector<9x32xf32>
    %cst_143 = arith.constant 4.471500e-02 : f32
    %204 = vector.broadcast %cst_143 : f32 to vector<9x32xf32>
    %205 = arith.mulf %204, %203 : vector<9x32xf32>
    %206 = arith.addf %201, %205 : vector<9x32xf32>
    %cst_144 = arith.constant 0.797884583 : f32
    %207 = vector.broadcast %cst_144 : f32 to vector<9x32xf32>
    %208 = arith.mulf %207, %206 : vector<9x32xf32>
    %209 = math.tanh %208 : vector<9x32xf32>
    %cst_145 = arith.constant 1.000000e+00 : f32
    %210 = vector.broadcast %cst_145 : f32 to vector<9x32xf32>
    %211 = arith.addf %210, %209 : vector<9x32xf32>
    %cst_146 = arith.constant 5.000000e-01 : f32
    %212 = vector.broadcast %cst_146 : f32 to vector<9x32xf32>
    %213 = arith.mulf %212, %211 : vector<9x32xf32>
    %214 = arith.mulf %201, %213 : vector<9x32xf32>
    %c0_147 = arith.constant 0 : index
    %c0_148 = arith.constant 0 : index
    %215 = vector.load %arg11[%c0_147, %c0_148] : memref<1x32xf32, #tpu.memory_space<vmem>>, vector<1x32xf32>
    %c0_149 = arith.constant 0 : index
    %c0_150 = arith.constant 0 : index
    %216 = vector.load %arg12[%c0_149, %c0_150] : memref<1x32xf32, #tpu.memory_space<vmem>>, vector<1x32xf32>
    %cst_151 = arith.constant dense<0.000000e+00> : vector<9xf32>
    %217 = vector.multi_reduction <add>, %214, %cst_151 [1] : vector<9x32xf32> to vector<9xf32>
    %218 = vector.shape_cast %217 : vector<9xf32> to vector<9x1xf32>
    %cst_152 = arith.constant 3.200000e+01 : f32
    %219 = vector.broadcast %cst_152 : f32 to vector<9x1xf32>
    %220 = arith.divf %218, %219 : vector<9x1xf32>
    %221 = vector.broadcast %220 : vector<9x1xf32> to vector<9x32xf32>
    %222 = arith.subf %214, %221 : vector<9x32xf32>
    %223 = arith.mulf %222, %222 : vector<9x32xf32>
    %cst_153 = arith.constant dense<0.000000e+00> : vector<9xf32>
    %224 = vector.multi_reduction <add>, %223, %cst_153 [1] : vector<9x32xf32> to vector<9xf32>
    %225 = vector.shape_cast %224 : vector<9xf32> to vector<9x1xf32>
    %cst_154 = arith.constant 3.200000e+01 : f32
    %226 = vector.broadcast %cst_154 : f32 to vector<9x1xf32>
    %227 = arith.divf %225, %226 : vector<9x1xf32>
    %228 = vector.broadcast %220 : vector<9x1xf32> to vector<9x32xf32>
    %229 = arith.subf %214, %228 : vector<9x32xf32>
    %cst_155 = arith.constant 9.99999974E-6 : f32
    %230 = vector.broadcast %cst_155 : f32 to vector<9x1xf32>
    %231 = arith.addf %227, %230 : vector<9x1xf32>
    %232 = math.rsqrt %231 : vector<9x1xf32>
    %233 = vector.broadcast %232 : vector<9x1xf32> to vector<9x32xf32>
    %234 = arith.mulf %229, %233 : vector<9x32xf32>
    %235 = vector.broadcast %215 : vector<1x32xf32> to vector<9x32xf32>
    %236 = arith.mulf %234, %235 : vector<9x32xf32>
    %237 = vector.broadcast %216 : vector<1x32xf32> to vector<9x32xf32>
    %238 = arith.addf %236, %237 : vector<9x32xf32>
    %c0_156 = arith.constant 0 : index
    %c0_157 = arith.constant 0 : index
    %239 = vector.load %arg13[%c0_156, %c0_157] : memref<32x32xbf16, #tpu.memory_space<vmem>>, vector<32x32xbf16>
    %240 = arith.truncf %238 : vector<9x32xf32> to vector<9x32xbf16>
    %cst_158 = arith.constant dense<0.000000e+00> : vector<9x32xf32>
    %241 = tpu.matmul %240, %239, %cst_158 {dimension_numbers = #tpu.dot_dimension_numbers<[1], [0], [0], [1], [0, 0, 1, 1], [], []>} : vector<9x32xbf16>, vector<32x32xbf16>, vector<9x32xf32> -> vector<9x32xf32>
    %c0_159 = arith.constant 0 : index
    %c0_160 = arith.constant 0 : index
    %242 = vector.load %arg14[%c0_159, %c0_160] : memref<1x32xf32, #tpu.memory_space<vmem>>, vector<1x32xf32>
    %243 = vector.broadcast %242 : vector<1x32xf32> to vector<9x32xf32>
    %244 = arith.addf %241, %243 : vector<9x32xf32>
    %cst_161 = arith.constant 0.000000e+00 : f32
    %245 = vector.broadcast %cst_161 : f32 to vector<1x32xf32>
    %246 = vector.extract_strided_slice %244 {offsets = [0, 0], sizes = [8, 32], strides = [1, 1]} : vector<9x32xf32> to vector<8x32xf32>
    %247 = tpu.concatenate %245, %246 in 0 : vector<1x32xf32>, vector<8x32xf32> -> vector<9x32xf32>
    %248 = vector.extract_strided_slice %244 {offsets = [1, 0], sizes = [8, 32], strides = [1, 1]} : vector<9x32xf32> to vector<8x32xf32>
    %249 = tpu.concatenate %248, %245 in 0 : vector<8x32xf32>, vector<1x32xf32> -> vector<9x32xf32>
    %c0_162 = arith.constant 0 : index
    %c0_163 = arith.constant 0 : index
    %c0_164 = arith.constant 0 : index
    %250 = vector.load %arg15[%c0_162, %c0_163, %c0_164] : memref<3x32x32xbf16, #tpu.memory_space<vmem>>, vector<1x32x32xbf16>
    %251 = vector.shape_cast %250 : vector<1x32x32xbf16> to vector<32x32xbf16>
    %252 = arith.truncf %247 : vector<9x32xf32> to vector<9x32xbf16>
    %cst_165 = arith.constant dense<0.000000e+00> : vector<9x32xf32>
    %253 = tpu.matmul %252, %251, %cst_165 {dimension_numbers = #tpu.dot_dimension_numbers<[1], [0], [0], [1], [0, 0, 1, 1], [], []>} : vector<9x32xbf16>, vector<32x32xbf16>, vector<9x32xf32> -> vector<9x32xf32>
    %c1_166 = arith.constant 1 : index
    %c0_167 = arith.constant 0 : index
    %c0_168 = arith.constant 0 : index
    %254 = vector.load %arg15[%c1_166, %c0_167, %c0_168] : memref<3x32x32xbf16, #tpu.memory_space<vmem>>, vector<1x32x32xbf16>
    %255 = vector.shape_cast %254 : vector<1x32x32xbf16> to vector<32x32xbf16>
    %256 = arith.truncf %244 : vector<9x32xf32> to vector<9x32xbf16>
    %cst_169 = arith.constant dense<0.000000e+00> : vector<9x32xf32>
    %257 = tpu.matmul %256, %255, %cst_169 {dimension_numbers = #tpu.dot_dimension_numbers<[1], [0], [0], [1], [0, 0, 1, 1], [], []>} : vector<9x32xbf16>, vector<32x32xbf16>, vector<9x32xf32> -> vector<9x32xf32>
    %258 = arith.addf %253, %257 : vector<9x32xf32>
    %c2_170 = arith.constant 2 : index
    %c0_171 = arith.constant 0 : index
    %c0_172 = arith.constant 0 : index
    %259 = vector.load %arg15[%c2_170, %c0_171, %c0_172] : memref<3x32x32xbf16, #tpu.memory_space<vmem>>, vector<1x32x32xbf16>
    %260 = vector.shape_cast %259 : vector<1x32x32xbf16> to vector<32x32xbf16>
    %261 = arith.truncf %249 : vector<9x32xf32> to vector<9x32xbf16>
    %cst_173 = arith.constant dense<0.000000e+00> : vector<9x32xf32>
    %262 = tpu.matmul %261, %260, %cst_173 {dimension_numbers = #tpu.dot_dimension_numbers<[1], [0], [0], [1], [0, 0, 1, 1], [], []>} : vector<9x32xbf16>, vector<32x32xbf16>, vector<9x32xf32> -> vector<9x32xf32>
    %263 = arith.addf %258, %262 : vector<9x32xf32>
    %c0_174 = arith.constant 0 : index
    %c0_175 = arith.constant 0 : index
    %264 = vector.load %arg16[%c0_174, %c0_175] : memref<1x32xf32, #tpu.memory_space<vmem>>, vector<1x32xf32>
    %265 = vector.broadcast %264 : vector<1x32xf32> to vector<9x32xf32>
    %266 = arith.addf %263, %265 : vector<9x32xf32>
    %267 = arith.mulf %266, %266 : vector<9x32xf32>
    %268 = arith.mulf %266, %267 : vector<9x32xf32>
    %cst_176 = arith.constant 4.471500e-02 : f32
    %269 = vector.broadcast %cst_176 : f32 to vector<9x32xf32>
    %270 = arith.mulf %269, %268 : vector<9x32xf32>
    %271 = arith.addf %266, %270 : vector<9x32xf32>
    %cst_177 = arith.constant 0.797884583 : f32
    %272 = vector.broadcast %cst_177 : f32 to vector<9x32xf32>
    %273 = arith.mulf %272, %271 : vector<9x32xf32>
    %274 = math.tanh %273 : vector<9x32xf32>
    %cst_178 = arith.constant 1.000000e+00 : f32
    %275 = vector.broadcast %cst_178 : f32 to vector<9x32xf32>
    %276 = arith.addf %275, %274 : vector<9x32xf32>
    %cst_179 = arith.constant 5.000000e-01 : f32
    %277 = vector.broadcast %cst_179 : f32 to vector<9x32xf32>
    %278 = arith.mulf %277, %276 : vector<9x32xf32>
    %279 = arith.mulf %266, %278 : vector<9x32xf32>
    %280 = arith.addf %244, %279 : vector<9x32xf32>
    %c0_180 = arith.constant 0 : index
    %c0_181 = arith.constant 0 : index
    %281 = vector.load %arg17[%c0_180, %c0_181] : memref<1x32xf32, #tpu.memory_space<vmem>>, vector<1x32xf32>
    %c0_182 = arith.constant 0 : index
    %c0_183 = arith.constant 0 : index
    %282 = vector.load %arg18[%c0_182, %c0_183] : memref<1x32xf32, #tpu.memory_space<vmem>>, vector<1x32xf32>
    %cst_184 = arith.constant dense<0.000000e+00> : vector<9xf32>
    %283 = vector.multi_reduction <add>, %280, %cst_184 [1] : vector<9x32xf32> to vector<9xf32>
    %284 = vector.shape_cast %283 : vector<9xf32> to vector<9x1xf32>
    %cst_185 = arith.constant 3.200000e+01 : f32
    %285 = vector.broadcast %cst_185 : f32 to vector<9x1xf32>
    %286 = arith.divf %284, %285 : vector<9x1xf32>
    %287 = vector.broadcast %286 : vector<9x1xf32> to vector<9x32xf32>
    %288 = arith.subf %280, %287 : vector<9x32xf32>
    %289 = arith.mulf %288, %288 : vector<9x32xf32>
    %cst_186 = arith.constant dense<0.000000e+00> : vector<9xf32>
    %290 = vector.multi_reduction <add>, %289, %cst_186 [1] : vector<9x32xf32> to vector<9xf32>
    %291 = vector.shape_cast %290 : vector<9xf32> to vector<9x1xf32>
    %cst_187 = arith.constant 3.200000e+01 : f32
    %292 = vector.broadcast %cst_187 : f32 to vector<9x1xf32>
    %293 = arith.divf %291, %292 : vector<9x1xf32>
    %294 = vector.broadcast %286 : vector<9x1xf32> to vector<9x32xf32>
    %295 = arith.subf %280, %294 : vector<9x32xf32>
    %cst_188 = arith.constant 9.99999974E-6 : f32
    %296 = vector.broadcast %cst_188 : f32 to vector<9x1xf32>
    %297 = arith.addf %293, %296 : vector<9x1xf32>
    %298 = math.rsqrt %297 : vector<9x1xf32>
    %299 = vector.broadcast %298 : vector<9x1xf32> to vector<9x32xf32>
    %300 = arith.mulf %295, %299 : vector<9x32xf32>
    %301 = vector.broadcast %281 : vector<1x32xf32> to vector<9x32xf32>
    %302 = arith.mulf %300, %301 : vector<9x32xf32>
    %303 = vector.broadcast %282 : vector<1x32xf32> to vector<9x32xf32>
    %304 = arith.addf %302, %303 : vector<9x32xf32>
    %c0_189 = arith.constant 0 : index
    %c0_190 = arith.constant 0 : index
    %c0_191 = arith.constant 0 : index
    %305 = vector.load %arg19[%c0_189, %c0_190, %c0_191] : memref<2x32x96xbf16, #tpu.memory_space<vmem>>, vector<1x32x96xbf16>
    %306 = vector.shape_cast %305 : vector<1x32x96xbf16> to vector<32x96xbf16>
    %307 = arith.truncf %304 : vector<9x32xf32> to vector<9x32xbf16>
    %cst_192 = arith.constant dense<0.000000e+00> : vector<9x96xf32>
    %308 = tpu.matmul %307, %306, %cst_192 {dimension_numbers = #tpu.dot_dimension_numbers<[1], [0], [0], [1], [0, 0, 1, 1], [], []>} : vector<9x32xbf16>, vector<32x96xbf16>, vector<9x96xf32> -> vector<9x96xf32>
    %c0_193 = arith.constant 0 : index
    %c0_194 = arith.constant 0 : index
    %c0_195 = arith.constant 0 : index
    %309 = vector.load %arg20[%c0_193, %c0_194, %c0_195] : memref<2x1x96xf32, #tpu.memory_space<vmem>>, vector<1x1x96xf32>
    %310 = vector.shape_cast %309 : vector<1x1x96xf32> to vector<1x96xf32>
    %311 = vector.broadcast %310 : vector<1x96xf32> to vector<9x96xf32>
    %312 = arith.addf %308, %311 : vector<9x96xf32>
    %313 = vector.extract_strided_slice %312 {offsets = [0, 0], sizes = [9, 32], strides = [1, 1]} : vector<9x96xf32> to vector<9x32xf32>
    %314 = vector.extract_strided_slice %312 {offsets = [0, 32], sizes = [9, 32], strides = [1, 1]} : vector<9x96xf32> to vector<9x32xf32>
    %315 = vector.extract_strided_slice %312 {offsets = [0, 64], sizes = [9, 32], strides = [1, 1]} : vector<9x96xf32> to vector<9x32xf32>
    %316 = vector.extract_strided_slice %313 {offsets = [0, 0], sizes = [9, 8], strides = [1, 1]} : vector<9x32xf32> to vector<9x8xf32>
    %317 = vector.extract_strided_slice %313 {offsets = [0, 8], sizes = [9, 8], strides = [1, 1]} : vector<9x32xf32> to vector<9x8xf32>
    %318 = vector.extract_strided_slice %313 {offsets = [0, 16], sizes = [9, 8], strides = [1, 1]} : vector<9x32xf32> to vector<9x8xf32>
    %319 = vector.extract_strided_slice %313 {offsets = [0, 24], sizes = [9, 8], strides = [1, 1]} : vector<9x32xf32> to vector<9x8xf32>
    %320 = vector.shape_cast %316 : vector<9x8xf32> to vector<1x9x8xf32>
    %321 = vector.shape_cast %317 : vector<9x8xf32> to vector<1x9x8xf32>
    %322 = vector.shape_cast %318 : vector<9x8xf32> to vector<1x9x8xf32>
    %323 = vector.shape_cast %319 : vector<9x8xf32> to vector<1x9x8xf32>
    %324 = tpu.concatenate %320, %321, %322, %323 in 0 : vector<1x9x8xf32>, vector<1x9x8xf32>, vector<1x9x8xf32>, vector<1x9x8xf32> -> vector<4x9x8xf32>
    %325 = arith.truncf %324 : vector<4x9x8xf32> to vector<4x9x8xbf16>
    %326 = vector.extract_strided_slice %314 {offsets = [0, 0], sizes = [9, 8], strides = [1, 1]} : vector<9x32xf32> to vector<9x8xf32>
    %327 = vector.extract_strided_slice %314 {offsets = [0, 8], sizes = [9, 8], strides = [1, 1]} : vector<9x32xf32> to vector<9x8xf32>
    %328 = vector.extract_strided_slice %314 {offsets = [0, 16], sizes = [9, 8], strides = [1, 1]} : vector<9x32xf32> to vector<9x8xf32>
    %329 = vector.extract_strided_slice %314 {offsets = [0, 24], sizes = [9, 8], strides = [1, 1]} : vector<9x32xf32> to vector<9x8xf32>
    %330 = vector.shape_cast %326 : vector<9x8xf32> to vector<1x9x8xf32>
    %331 = vector.shape_cast %327 : vector<9x8xf32> to vector<1x9x8xf32>
    %332 = vector.shape_cast %328 : vector<9x8xf32> to vector<1x9x8xf32>
    %333 = vector.shape_cast %329 : vector<9x8xf32> to vector<1x9x8xf32>
    %334 = tpu.concatenate %330, %331, %332, %333 in 0 : vector<1x9x8xf32>, vector<1x9x8xf32>, vector<1x9x8xf32>, vector<1x9x8xf32> -> vector<4x9x8xf32>
    %335 = arith.truncf %334 : vector<4x9x8xf32> to vector<4x9x8xbf16>
    %336 = vector.extract_strided_slice %315 {offsets = [0, 0], sizes = [9, 8], strides = [1, 1]} : vector<9x32xf32> to vector<9x8xf32>
    %337 = vector.extract_strided_slice %315 {offsets = [0, 8], sizes = [9, 8], strides = [1, 1]} : vector<9x32xf32> to vector<9x8xf32>
    %338 = vector.extract_strided_slice %315 {offsets = [0, 16], sizes = [9, 8], strides = [1, 1]} : vector<9x32xf32> to vector<9x8xf32>
    %339 = vector.extract_strided_slice %315 {offsets = [0, 24], sizes = [9, 8], strides = [1, 1]} : vector<9x32xf32> to vector<9x8xf32>
    %340 = vector.shape_cast %336 : vector<9x8xf32> to vector<1x9x8xf32>
    %341 = vector.shape_cast %337 : vector<9x8xf32> to vector<1x9x8xf32>
    %342 = vector.shape_cast %338 : vector<9x8xf32> to vector<1x9x8xf32>
    %343 = vector.shape_cast %339 : vector<9x8xf32> to vector<1x9x8xf32>
    %344 = tpu.concatenate %340, %341, %342, %343 in 0 : vector<1x9x8xf32>, vector<1x9x8xf32>, vector<1x9x8xf32>, vector<1x9x8xf32> -> vector<4x9x8xf32>
    %345 = arith.truncf %344 : vector<4x9x8xf32> to vector<4x9x8xbf16>
    "tpu.trace_start"() <{level = 10 : i32, message = "nqd,nkd->nqk"}> : () -> ()
    %cst_196 = arith.constant dense<0.000000e+00> : vector<4x9x9xf32>
    %346 = tpu.matmul %325, %335, %cst_196 {dimension_numbers = #tpu.dot_dimension_numbers<[2], [2], [1], [1], [0, 0, 0, 1, 1, 1], [0], [0]>} : vector<4x9x8xbf16>, vector<4x9x8xbf16>, vector<4x9x9xf32> -> vector<4x9x9xf32>
    "tpu.trace_stop"() : () -> ()
    %cst_197 = arith.constant dense<0xFF800000> : vector<4x9xf32>
    %347 = vector.multi_reduction <maximumf>, %346, %cst_197 [2] : vector<4x9x9xf32> to vector<4x9xf32>
    %348 = vector.shape_cast %347 : vector<4x9xf32> to vector<4x9x1xf32>
    %349 = vector.broadcast %348 : vector<4x9x1xf32> to vector<4x9x9xf32>
    %350 = arith.subf %346, %349 : vector<4x9x9xf32>
    %351 = math.exp %350 : vector<4x9x9xf32>
    %cst_198 = arith.constant dense<0.000000e+00> : vector<4x9xf32>
    %352 = vector.multi_reduction <add>, %351, %cst_198 [2] : vector<4x9x9xf32> to vector<4x9xf32>
    %353 = vector.shape_cast %352 : vector<4x9xf32> to vector<4x9x1xf32>
    %354 = tpu.reciprocal %353 {approx = true} : vector<4x9x1xf32> -> vector<4x9x1xf32>
    %355 = vector.broadcast %354 : vector<4x9x1xf32> to vector<4x9x9xf32>
    %356 = arith.mulf %351, %355 : vector<4x9x9xf32>
    %357 = arith.truncf %356 : vector<4x9x9xf32> to vector<4x9x9xbf16>
    "tpu.trace_start"() <{level = 10 : i32, message = "nqk,nkd->nqd"}> : () -> ()
    %cst_199 = arith.constant dense<0.000000e+00> : vector<4x9x8xf32>
    %358 = tpu.matmul %357, %345, %cst_199 {dimension_numbers = #tpu.dot_dimension_numbers<[2], [1], [1], [2], [0, 0, 0, 1, 1, 2], [0], [0]>} : vector<4x9x9xbf16>, vector<4x9x8xbf16>, vector<4x9x8xf32> -> vector<4x9x8xf32>
    "tpu.trace_stop"() : () -> ()
    %359 = vector.extract_strided_slice %358 {offsets = [0, 0, 0], sizes = [1, 9, 8], strides = [1, 1, 1]} : vector<4x9x8xf32> to vector<1x9x8xf32>
    %360 = vector.shape_cast %359 : vector<1x9x8xf32> to vector<9x8xf32>
    %361 = vector.extract_strided_slice %358 {offsets = [1, 0, 0], sizes = [1, 9, 8], strides = [1, 1, 1]} : vector<4x9x8xf32> to vector<1x9x8xf32>
    %362 = vector.shape_cast %361 : vector<1x9x8xf32> to vector<9x8xf32>
    %363 = vector.extract_strided_slice %358 {offsets = [2, 0, 0], sizes = [1, 9, 8], strides = [1, 1, 1]} : vector<4x9x8xf32> to vector<1x9x8xf32>
    %364 = vector.shape_cast %363 : vector<1x9x8xf32> to vector<9x8xf32>
    %365 = vector.extract_strided_slice %358 {offsets = [3, 0, 0], sizes = [1, 9, 8], strides = [1, 1, 1]} : vector<4x9x8xf32> to vector<1x9x8xf32>
    %366 = vector.shape_cast %365 : vector<1x9x8xf32> to vector<9x8xf32>
    %367 = tpu.concatenate %360, %362, %364, %366 in 1 : vector<9x8xf32>, vector<9x8xf32>, vector<9x8xf32>, vector<9x8xf32> -> vector<9x32xf32>
    %c0_200 = arith.constant 0 : index
    %c0_201 = arith.constant 0 : index
    %c0_202 = arith.constant 0 : index
    %368 = vector.load %arg21[%c0_200, %c0_201, %c0_202] : memref<2x32x32xbf16, #tpu.memory_space<vmem>>, vector<1x32x32xbf16>
    %369 = vector.shape_cast %368 : vector<1x32x32xbf16> to vector<32x32xbf16>
    %370 = arith.truncf %367 : vector<9x32xf32> to vector<9x32xbf16>
    %cst_203 = arith.constant dense<0.000000e+00> : vector<9x32xf32>
    %371 = tpu.matmul %370, %369, %cst_203 {dimension_numbers = #tpu.dot_dimension_numbers<[1], [0], [0], [1], [0, 0, 1, 1], [], []>} : vector<9x32xbf16>, vector<32x32xbf16>, vector<9x32xf32> -> vector<9x32xf32>
    %c0_204 = arith.constant 0 : index
    %c0_205 = arith.constant 0 : index
    %c0_206 = arith.constant 0 : index
    %372 = vector.load %arg22[%c0_204, %c0_205, %c0_206] : memref<2x1x32xf32, #tpu.memory_space<vmem>>, vector<1x1x32xf32>
    %373 = vector.shape_cast %372 : vector<1x1x32xf32> to vector<1x32xf32>
    %374 = vector.broadcast %373 : vector<1x32xf32> to vector<9x32xf32>
    %375 = arith.addf %371, %374 : vector<9x32xf32>
    %376 = arith.addf %304, %375 : vector<9x32xf32>
    %c0_207 = arith.constant 0 : index
    %c0_208 = arith.constant 0 : index
    %c0_209 = arith.constant 0 : index
    %377 = vector.load %arg23[%c0_207, %c0_208, %c0_209] : memref<2x1x32xf32, #tpu.memory_space<vmem>>, vector<1x1x32xf32>
    %378 = vector.shape_cast %377 : vector<1x1x32xf32> to vector<1x32xf32>
    %c0_210 = arith.constant 0 : index
    %c0_211 = arith.constant 0 : index
    %c0_212 = arith.constant 0 : index
    %379 = vector.load %arg24[%c0_210, %c0_211, %c0_212] : memref<2x1x32xf32, #tpu.memory_space<vmem>>, vector<1x1x32xf32>
    %380 = vector.shape_cast %379 : vector<1x1x32xf32> to vector<1x32xf32>
    %cst_213 = arith.constant dense<0.000000e+00> : vector<9xf32>
    %381 = vector.multi_reduction <add>, %376, %cst_213 [1] : vector<9x32xf32> to vector<9xf32>
    %382 = vector.shape_cast %381 : vector<9xf32> to vector<9x1xf32>
    %cst_214 = arith.constant 3.200000e+01 : f32
    %383 = vector.broadcast %cst_214 : f32 to vector<9x1xf32>
    %384 = arith.divf %382, %383 : vector<9x1xf32>
    %385 = vector.broadcast %384 : vector<9x1xf32> to vector<9x32xf32>
    %386 = arith.subf %376, %385 : vector<9x32xf32>
    %387 = arith.mulf %386, %386 : vector<9x32xf32>
    %cst_215 = arith.constant dense<0.000000e+00> : vector<9xf32>
    %388 = vector.multi_reduction <add>, %387, %cst_215 [1] : vector<9x32xf32> to vector<9xf32>
    %389 = vector.shape_cast %388 : vector<9xf32> to vector<9x1xf32>
    %cst_216 = arith.constant 3.200000e+01 : f32
    %390 = vector.broadcast %cst_216 : f32 to vector<9x1xf32>
    %391 = arith.divf %389, %390 : vector<9x1xf32>
    %392 = vector.broadcast %384 : vector<9x1xf32> to vector<9x32xf32>
    %393 = arith.subf %376, %392 : vector<9x32xf32>
    %cst_217 = arith.constant 9.99999974E-6 : f32
    %394 = vector.broadcast %cst_217 : f32 to vector<9x1xf32>
    %395 = arith.addf %391, %394 : vector<9x1xf32>
    %396 = math.rsqrt %395 : vector<9x1xf32>
    %397 = vector.broadcast %396 : vector<9x1xf32> to vector<9x32xf32>
    %398 = arith.mulf %393, %397 : vector<9x32xf32>
    %399 = vector.broadcast %378 : vector<1x32xf32> to vector<9x32xf32>
    %400 = arith.mulf %398, %399 : vector<9x32xf32>
    %401 = vector.broadcast %380 : vector<1x32xf32> to vector<9x32xf32>
    %402 = arith.addf %400, %401 : vector<9x32xf32>
    %c0_218 = arith.constant 0 : index
    %c0_219 = arith.constant 0 : index
    %c0_220 = arith.constant 0 : index
    %403 = vector.load %arg25[%c0_218, %c0_219, %c0_220] : memref<2x32x64xbf16, #tpu.memory_space<vmem>>, vector<1x32x64xbf16>
    %404 = vector.shape_cast %403 : vector<1x32x64xbf16> to vector<32x64xbf16>
    %405 = arith.truncf %402 : vector<9x32xf32> to vector<9x32xbf16>
    %cst_221 = arith.constant dense<0.000000e+00> : vector<9x64xf32>
    %406 = tpu.matmul %405, %404, %cst_221 {dimension_numbers = #tpu.dot_dimension_numbers<[1], [0], [0], [1], [0, 0, 1, 1], [], []>} : vector<9x32xbf16>, vector<32x64xbf16>, vector<9x64xf32> -> vector<9x64xf32>
    %c0_222 = arith.constant 0 : index
    %c0_223 = arith.constant 0 : index
    %c0_224 = arith.constant 0 : index
    %407 = vector.load %arg26[%c0_222, %c0_223, %c0_224] : memref<2x1x64xf32, #tpu.memory_space<vmem>>, vector<1x1x64xf32>
    %408 = vector.shape_cast %407 : vector<1x1x64xf32> to vector<1x64xf32>
    %409 = vector.broadcast %408 : vector<1x64xf32> to vector<9x64xf32>
    %410 = arith.addf %406, %409 : vector<9x64xf32>
    %411 = arith.mulf %410, %410 : vector<9x64xf32>
    %412 = arith.mulf %410, %411 : vector<9x64xf32>
    %cst_225 = arith.constant 4.471500e-02 : f32
    %413 = vector.broadcast %cst_225 : f32 to vector<9x64xf32>
    %414 = arith.mulf %413, %412 : vector<9x64xf32>
    %415 = arith.addf %410, %414 : vector<9x64xf32>
    %cst_226 = arith.constant 0.797884583 : f32
    %416 = vector.broadcast %cst_226 : f32 to vector<9x64xf32>
    %417 = arith.mulf %416, %415 : vector<9x64xf32>
    %418 = math.tanh %417 : vector<9x64xf32>
    %cst_227 = arith.constant 1.000000e+00 : f32
    %419 = vector.broadcast %cst_227 : f32 to vector<9x64xf32>
    %420 = arith.addf %419, %418 : vector<9x64xf32>
    %cst_228 = arith.constant 5.000000e-01 : f32
    %421 = vector.broadcast %cst_228 : f32 to vector<9x64xf32>
    %422 = arith.mulf %421, %420 : vector<9x64xf32>
    %423 = arith.mulf %410, %422 : vector<9x64xf32>
    %c0_229 = arith.constant 0 : index
    %c0_230 = arith.constant 0 : index
    %c0_231 = arith.constant 0 : index
    %424 = vector.load %arg27[%c0_229, %c0_230, %c0_231] : memref<2x64x32xbf16, #tpu.memory_space<vmem>>, vector<1x64x32xbf16>
    %425 = vector.shape_cast %424 : vector<1x64x32xbf16> to vector<64x32xbf16>
    %426 = arith.truncf %423 : vector<9x64xf32> to vector<9x64xbf16>
    %cst_232 = arith.constant dense<0.000000e+00> : vector<9x32xf32>
    %427 = tpu.matmul %426, %425, %cst_232 {dimension_numbers = #tpu.dot_dimension_numbers<[1], [0], [0], [1], [0, 0, 1, 1], [], []>} : vector<9x64xbf16>, vector<64x32xbf16>, vector<9x32xf32> -> vector<9x32xf32>
    %c0_233 = arith.constant 0 : index
    %c0_234 = arith.constant 0 : index
    %c0_235 = arith.constant 0 : index
    %428 = vector.load %arg28[%c0_233, %c0_234, %c0_235] : memref<2x1x32xf32, #tpu.memory_space<vmem>>, vector<1x1x32xf32>
    %429 = vector.shape_cast %428 : vector<1x1x32xf32> to vector<1x32xf32>
    %430 = vector.broadcast %429 : vector<1x32xf32> to vector<9x32xf32>
    %431 = arith.addf %427, %430 : vector<9x32xf32>
    %432 = arith.addf %402, %431 : vector<9x32xf32>
    %c0_236 = arith.constant 0 : index
    %c0_237 = arith.constant 0 : index
    %c0_238 = arith.constant 0 : index
    %433 = vector.load %arg29[%c0_236, %c0_237, %c0_238] : memref<2x1x32xf32, #tpu.memory_space<vmem>>, vector<1x1x32xf32>
    %434 = vector.shape_cast %433 : vector<1x1x32xf32> to vector<1x32xf32>
    %c0_239 = arith.constant 0 : index
    %c0_240 = arith.constant 0 : index
    %c0_241 = arith.constant 0 : index
    %435 = vector.load %arg30[%c0_239, %c0_240, %c0_241] : memref<2x1x32xf32, #tpu.memory_space<vmem>>, vector<1x1x32xf32>
    %436 = vector.shape_cast %435 : vector<1x1x32xf32> to vector<1x32xf32>
    %cst_242 = arith.constant dense<0.000000e+00> : vector<9xf32>
    %437 = vector.multi_reduction <add>, %432, %cst_242 [1] : vector<9x32xf32> to vector<9xf32>
    %438 = vector.shape_cast %437 : vector<9xf32> to vector<9x1xf32>
    %cst_243 = arith.constant 3.200000e+01 : f32
    %439 = vector.broadcast %cst_243 : f32 to vector<9x1xf32>
    %440 = arith.divf %438, %439 : vector<9x1xf32>
    %441 = vector.broadcast %440 : vector<9x1xf32> to vector<9x32xf32>
    %442 = arith.subf %432, %441 : vector<9x32xf32>
    %443 = arith.mulf %442, %442 : vector<9x32xf32>
    %cst_244 = arith.constant dense<0.000000e+00> : vector<9xf32>
    %444 = vector.multi_reduction <add>, %443, %cst_244 [1] : vector<9x32xf32> to vector<9xf32>
    %445 = vector.shape_cast %444 : vector<9xf32> to vector<9x1xf32>
    %cst_245 = arith.constant 3.200000e+01 : f32
    %446 = vector.broadcast %cst_245 : f32 to vector<9x1xf32>
    %447 = arith.divf %445, %446 : vector<9x1xf32>
    %448 = vector.broadcast %440 : vector<9x1xf32> to vector<9x32xf32>
    %449 = arith.subf %432, %448 : vector<9x32xf32>
    %cst_246 = arith.constant 9.99999974E-6 : f32
    %450 = vector.broadcast %cst_246 : f32 to vector<9x1xf32>
    %451 = arith.addf %447, %450 : vector<9x1xf32>
    %452 = math.rsqrt %451 : vector<9x1xf32>
    %453 = vector.broadcast %452 : vector<9x1xf32> to vector<9x32xf32>
    %454 = arith.mulf %449, %453 : vector<9x32xf32>
    %455 = vector.broadcast %434 : vector<1x32xf32> to vector<9x32xf32>
    %456 = arith.mulf %454, %455 : vector<9x32xf32>
    %457 = vector.broadcast %436 : vector<1x32xf32> to vector<9x32xf32>
    %458 = arith.addf %456, %457 : vector<9x32xf32>
    %c1_247 = arith.constant 1 : index
    %c0_248 = arith.constant 0 : index
    %c0_249 = arith.constant 0 : index
    %459 = vector.load %arg19[%c1_247, %c0_248, %c0_249] : memref<2x32x96xbf16, #tpu.memory_space<vmem>>, vector<1x32x96xbf16>
    %460 = vector.shape_cast %459 : vector<1x32x96xbf16> to vector<32x96xbf16>
    %461 = arith.truncf %458 : vector<9x32xf32> to vector<9x32xbf16>
    %cst_250 = arith.constant dense<0.000000e+00> : vector<9x96xf32>
    %462 = tpu.matmul %461, %460, %cst_250 {dimension_numbers = #tpu.dot_dimension_numbers<[1], [0], [0], [1], [0, 0, 1, 1], [], []>} : vector<9x32xbf16>, vector<32x96xbf16>, vector<9x96xf32> -> vector<9x96xf32>
    %c1_251 = arith.constant 1 : index
    %c0_252 = arith.constant 0 : index
    %c0_253 = arith.constant 0 : index
    %463 = vector.load %arg20[%c1_251, %c0_252, %c0_253] : memref<2x1x96xf32, #tpu.memory_space<vmem>>, vector<1x1x96xf32>
    %464 = vector.shape_cast %463 : vector<1x1x96xf32> to vector<1x96xf32>
    %465 = vector.broadcast %464 : vector<1x96xf32> to vector<9x96xf32>
    %466 = arith.addf %462, %465 : vector<9x96xf32>
    %467 = vector.extract_strided_slice %466 {offsets = [0, 0], sizes = [9, 32], strides = [1, 1]} : vector<9x96xf32> to vector<9x32xf32>
    %468 = vector.extract_strided_slice %466 {offsets = [0, 32], sizes = [9, 32], strides = [1, 1]} : vector<9x96xf32> to vector<9x32xf32>
    %469 = vector.extract_strided_slice %466 {offsets = [0, 64], sizes = [9, 32], strides = [1, 1]} : vector<9x96xf32> to vector<9x32xf32>
    %470 = vector.extract_strided_slice %467 {offsets = [0, 0], sizes = [9, 8], strides = [1, 1]} : vector<9x32xf32> to vector<9x8xf32>
    %471 = vector.extract_strided_slice %467 {offsets = [0, 8], sizes = [9, 8], strides = [1, 1]} : vector<9x32xf32> to vector<9x8xf32>
    %472 = vector.extract_strided_slice %467 {offsets = [0, 16], sizes = [9, 8], strides = [1, 1]} : vector<9x32xf32> to vector<9x8xf32>
    %473 = vector.extract_strided_slice %467 {offsets = [0, 24], sizes = [9, 8], strides = [1, 1]} : vector<9x32xf32> to vector<9x8xf32>
    %474 = vector.shape_cast %470 : vector<9x8xf32> to vector<1x9x8xf32>
    %475 = vector.shape_cast %471 : vector<9x8xf32> to vector<1x9x8xf32>
    %476 = vector.shape_cast %472 : vector<9x8xf32> to vector<1x9x8xf32>
    %477 = vector.shape_cast %473 : vector<9x8xf32> to vector<1x9x8xf32>
    %478 = tpu.concatenate %474, %475, %476, %477 in 0 : vector<1x9x8xf32>, vector<1x9x8xf32>, vector<1x9x8xf32>, vector<1x9x8xf32> -> vector<4x9x8xf32>
    %479 = arith.truncf %478 : vector<4x9x8xf32> to vector<4x9x8xbf16>
    %480 = vector.extract_strided_slice %468 {offsets = [0, 0], sizes = [9, 8], strides = [1, 1]} : vector<9x32xf32> to vector<9x8xf32>
    %481 = vector.extract_strided_slice %468 {offsets = [0, 8], sizes = [9, 8], strides = [1, 1]} : vector<9x32xf32> to vector<9x8xf32>
    %482 = vector.extract_strided_slice %468 {offsets = [0, 16], sizes = [9, 8], strides = [1, 1]} : vector<9x32xf32> to vector<9x8xf32>
    %483 = vector.extract_strided_slice %468 {offsets = [0, 24], sizes = [9, 8], strides = [1, 1]} : vector<9x32xf32> to vector<9x8xf32>
    %484 = vector.shape_cast %480 : vector<9x8xf32> to vector<1x9x8xf32>
    %485 = vector.shape_cast %481 : vector<9x8xf32> to vector<1x9x8xf32>
    %486 = vector.shape_cast %482 : vector<9x8xf32> to vector<1x9x8xf32>
    %487 = vector.shape_cast %483 : vector<9x8xf32> to vector<1x9x8xf32>
    %488 = tpu.concatenate %484, %485, %486, %487 in 0 : vector<1x9x8xf32>, vector<1x9x8xf32>, vector<1x9x8xf32>, vector<1x9x8xf32> -> vector<4x9x8xf32>
    %489 = arith.truncf %488 : vector<4x9x8xf32> to vector<4x9x8xbf16>
    %490 = vector.extract_strided_slice %469 {offsets = [0, 0], sizes = [9, 8], strides = [1, 1]} : vector<9x32xf32> to vector<9x8xf32>
    %491 = vector.extract_strided_slice %469 {offsets = [0, 8], sizes = [9, 8], strides = [1, 1]} : vector<9x32xf32> to vector<9x8xf32>
    %492 = vector.extract_strided_slice %469 {offsets = [0, 16], sizes = [9, 8], strides = [1, 1]} : vector<9x32xf32> to vector<9x8xf32>
    %493 = vector.extract_strided_slice %469 {offsets = [0, 24], sizes = [9, 8], strides = [1, 1]} : vector<9x32xf32> to vector<9x8xf32>
    %494 = vector.shape_cast %490 : vector<9x8xf32> to vector<1x9x8xf32>
    %495 = vector.shape_cast %491 : vector<9x8xf32> to vector<1x9x8xf32>
    %496 = vector.shape_cast %492 : vector<9x8xf32> to vector<1x9x8xf32>
    %497 = vector.shape_cast %493 : vector<9x8xf32> to vector<1x9x8xf32>
    %498 = tpu.concatenate %494, %495, %496, %497 in 0 : vector<1x9x8xf32>, vector<1x9x8xf32>, vector<1x9x8xf32>, vector<1x9x8xf32> -> vector<4x9x8xf32>
    %499 = arith.truncf %498 : vector<4x9x8xf32> to vector<4x9x8xbf16>
    "tpu.trace_start"() <{level = 10 : i32, message = "nqd,nkd->nqk"}> : () -> ()
    %cst_254 = arith.constant dense<0.000000e+00> : vector<4x9x9xf32>
    %500 = tpu.matmul %479, %489, %cst_254 {dimension_numbers = #tpu.dot_dimension_numbers<[2], [2], [1], [1], [0, 0, 0, 1, 1, 1], [0], [0]>} : vector<4x9x8xbf16>, vector<4x9x8xbf16>, vector<4x9x9xf32> -> vector<4x9x9xf32>
    "tpu.trace_stop"() : () -> ()
    %cst_255 = arith.constant dense<0xFF800000> : vector<4x9xf32>
    %501 = vector.multi_reduction <maximumf>, %500, %cst_255 [2] : vector<4x9x9xf32> to vector<4x9xf32>
    %502 = vector.shape_cast %501 : vector<4x9xf32> to vector<4x9x1xf32>
    %503 = vector.broadcast %502 : vector<4x9x1xf32> to vector<4x9x9xf32>
    %504 = arith.subf %500, %503 : vector<4x9x9xf32>
    %505 = math.exp %504 : vector<4x9x9xf32>
    %cst_256 = arith.constant dense<0.000000e+00> : vector<4x9xf32>
    %506 = vector.multi_reduction <add>, %505, %cst_256 [2] : vector<4x9x9xf32> to vector<4x9xf32>
    %507 = vector.shape_cast %506 : vector<4x9xf32> to vector<4x9x1xf32>
    %508 = tpu.reciprocal %507 {approx = true} : vector<4x9x1xf32> -> vector<4x9x1xf32>
    %509 = vector.broadcast %508 : vector<4x9x1xf32> to vector<4x9x9xf32>
    %510 = arith.mulf %505, %509 : vector<4x9x9xf32>
    %511 = arith.truncf %510 : vector<4x9x9xf32> to vector<4x9x9xbf16>
    "tpu.trace_start"() <{level = 10 : i32, message = "nqk,nkd->nqd"}> : () -> ()
    %cst_257 = arith.constant dense<0.000000e+00> : vector<4x9x8xf32>
    %512 = tpu.matmul %511, %499, %cst_257 {dimension_numbers = #tpu.dot_dimension_numbers<[2], [1], [1], [2], [0, 0, 0, 1, 1, 2], [0], [0]>} : vector<4x9x9xbf16>, vector<4x9x8xbf16>, vector<4x9x8xf32> -> vector<4x9x8xf32>
    "tpu.trace_stop"() : () -> ()
    %513 = vector.extract_strided_slice %512 {offsets = [0, 0, 0], sizes = [1, 9, 8], strides = [1, 1, 1]} : vector<4x9x8xf32> to vector<1x9x8xf32>
    %514 = vector.shape_cast %513 : vector<1x9x8xf32> to vector<9x8xf32>
    %515 = vector.extract_strided_slice %512 {offsets = [1, 0, 0], sizes = [1, 9, 8], strides = [1, 1, 1]} : vector<4x9x8xf32> to vector<1x9x8xf32>
    %516 = vector.shape_cast %515 : vector<1x9x8xf32> to vector<9x8xf32>
    %517 = vector.extract_strided_slice %512 {offsets = [2, 0, 0], sizes = [1, 9, 8], strides = [1, 1, 1]} : vector<4x9x8xf32> to vector<1x9x8xf32>
    %518 = vector.shape_cast %517 : vector<1x9x8xf32> to vector<9x8xf32>
    %519 = vector.extract_strided_slice %512 {offsets = [3, 0, 0], sizes = [1, 9, 8], strides = [1, 1, 1]} : vector<4x9x8xf32> to vector<1x9x8xf32>
    %520 = vector.shape_cast %519 : vector<1x9x8xf32> to vector<9x8xf32>
    %521 = tpu.concatenate %514, %516, %518, %520 in 1 : vector<9x8xf32>, vector<9x8xf32>, vector<9x8xf32>, vector<9x8xf32> -> vector<9x32xf32>
    %c1_258 = arith.constant 1 : index
    %c0_259 = arith.constant 0 : index
    %c0_260 = arith.constant 0 : index
    %522 = vector.load %arg21[%c1_258, %c0_259, %c0_260] : memref<2x32x32xbf16, #tpu.memory_space<vmem>>, vector<1x32x32xbf16>
    %523 = vector.shape_cast %522 : vector<1x32x32xbf16> to vector<32x32xbf16>
    %524 = arith.truncf %521 : vector<9x32xf32> to vector<9x32xbf16>
    %cst_261 = arith.constant dense<0.000000e+00> : vector<9x32xf32>
    %525 = tpu.matmul %524, %523, %cst_261 {dimension_numbers = #tpu.dot_dimension_numbers<[1], [0], [0], [1], [0, 0, 1, 1], [], []>} : vector<9x32xbf16>, vector<32x32xbf16>, vector<9x32xf32> -> vector<9x32xf32>
    %c1_262 = arith.constant 1 : index
    %c0_263 = arith.constant 0 : index
    %c0_264 = arith.constant 0 : index
    %526 = vector.load %arg22[%c1_262, %c0_263, %c0_264] : memref<2x1x32xf32, #tpu.memory_space<vmem>>, vector<1x1x32xf32>
    %527 = vector.shape_cast %526 : vector<1x1x32xf32> to vector<1x32xf32>
    %528 = vector.broadcast %527 : vector<1x32xf32> to vector<9x32xf32>
    %529 = arith.addf %525, %528 : vector<9x32xf32>
    %530 = arith.addf %458, %529 : vector<9x32xf32>
    %c1_265 = arith.constant 1 : index
    %c0_266 = arith.constant 0 : index
    %c0_267 = arith.constant 0 : index
    %531 = vector.load %arg23[%c1_265, %c0_266, %c0_267] : memref<2x1x32xf32, #tpu.memory_space<vmem>>, vector<1x1x32xf32>
    %532 = vector.shape_cast %531 : vector<1x1x32xf32> to vector<1x32xf32>
    %c1_268 = arith.constant 1 : index
    %c0_269 = arith.constant 0 : index
    %c0_270 = arith.constant 0 : index
    %533 = vector.load %arg24[%c1_268, %c0_269, %c0_270] : memref<2x1x32xf32, #tpu.memory_space<vmem>>, vector<1x1x32xf32>
    %534 = vector.shape_cast %533 : vector<1x1x32xf32> to vector<1x32xf32>
    %cst_271 = arith.constant dense<0.000000e+00> : vector<9xf32>
    %535 = vector.multi_reduction <add>, %530, %cst_271 [1] : vector<9x32xf32> to vector<9xf32>
    %536 = vector.shape_cast %535 : vector<9xf32> to vector<9x1xf32>
    %cst_272 = arith.constant 3.200000e+01 : f32
    %537 = vector.broadcast %cst_272 : f32 to vector<9x1xf32>
    %538 = arith.divf %536, %537 : vector<9x1xf32>
    %539 = vector.broadcast %538 : vector<9x1xf32> to vector<9x32xf32>
    %540 = arith.subf %530, %539 : vector<9x32xf32>
    %541 = arith.mulf %540, %540 : vector<9x32xf32>
    %cst_273 = arith.constant dense<0.000000e+00> : vector<9xf32>
    %542 = vector.multi_reduction <add>, %541, %cst_273 [1] : vector<9x32xf32> to vector<9xf32>
    %543 = vector.shape_cast %542 : vector<9xf32> to vector<9x1xf32>
    %cst_274 = arith.constant 3.200000e+01 : f32
    %544 = vector.broadcast %cst_274 : f32 to vector<9x1xf32>
    %545 = arith.divf %543, %544 : vector<9x1xf32>
    %546 = vector.broadcast %538 : vector<9x1xf32> to vector<9x32xf32>
    %547 = arith.subf %530, %546 : vector<9x32xf32>
    %cst_275 = arith.constant 9.99999974E-6 : f32
    %548 = vector.broadcast %cst_275 : f32 to vector<9x1xf32>
    %549 = arith.addf %545, %548 : vector<9x1xf32>
    %550 = math.rsqrt %549 : vector<9x1xf32>
    %551 = vector.broadcast %550 : vector<9x1xf32> to vector<9x32xf32>
    %552 = arith.mulf %547, %551 : vector<9x32xf32>
    %553 = vector.broadcast %532 : vector<1x32xf32> to vector<9x32xf32>
    %554 = arith.mulf %552, %553 : vector<9x32xf32>
    %555 = vector.broadcast %534 : vector<1x32xf32> to vector<9x32xf32>
    %556 = arith.addf %554, %555 : vector<9x32xf32>
    %c1_276 = arith.constant 1 : index
    %c0_277 = arith.constant 0 : index
    %c0_278 = arith.constant 0 : index
    %557 = vector.load %arg25[%c1_276, %c0_277, %c0_278] : memref<2x32x64xbf16, #tpu.memory_space<vmem>>, vector<1x32x64xbf16>
    %558 = vector.shape_cast %557 : vector<1x32x64xbf16> to vector<32x64xbf16>
    %559 = arith.truncf %556 : vector<9x32xf32> to vector<9x32xbf16>
    %cst_279 = arith.constant dense<0.000000e+00> : vector<9x64xf32>
    %560 = tpu.matmul %559, %558, %cst_279 {dimension_numbers = #tpu.dot_dimension_numbers<[1], [0], [0], [1], [0, 0, 1, 1], [], []>} : vector<9x32xbf16>, vector<32x64xbf16>, vector<9x64xf32> -> vector<9x64xf32>
    %c1_280 = arith.constant 1 : index
    %c0_281 = arith.constant 0 : index
    %c0_282 = arith.constant 0 : index
    %561 = vector.load %arg26[%c1_280, %c0_281, %c0_282] : memref<2x1x64xf32, #tpu.memory_space<vmem>>, vector<1x1x64xf32>
    %562 = vector.shape_cast %561 : vector<1x1x64xf32> to vector<1x64xf32>
    %563 = vector.broadcast %562 : vector<1x64xf32> to vector<9x64xf32>
    %564 = arith.addf %560, %563 : vector<9x64xf32>
    %565 = arith.mulf %564, %564 : vector<9x64xf32>
    %566 = arith.mulf %564, %565 : vector<9x64xf32>
    %cst_283 = arith.constant 4.471500e-02 : f32
    %567 = vector.broadcast %cst_283 : f32 to vector<9x64xf32>
    %568 = arith.mulf %567, %566 : vector<9x64xf32>
    %569 = arith.addf %564, %568 : vector<9x64xf32>
    %cst_284 = arith.constant 0.797884583 : f32
    %570 = vector.broadcast %cst_284 : f32 to vector<9x64xf32>
    %571 = arith.mulf %570, %569 : vector<9x64xf32>
    %572 = math.tanh %571 : vector<9x64xf32>
    %cst_285 = arith.constant 1.000000e+00 : f32
    %573 = vector.broadcast %cst_285 : f32 to vector<9x64xf32>
    %574 = arith.addf %573, %572 : vector<9x64xf32>
    %cst_286 = arith.constant 5.000000e-01 : f32
    %575 = vector.broadcast %cst_286 : f32 to vector<9x64xf32>
    %576 = arith.mulf %575, %574 : vector<9x64xf32>
    %577 = arith.mulf %564, %576 : vector<9x64xf32>
    %c1_287 = arith.constant 1 : index
    %c0_288 = arith.constant 0 : index
    %c0_289 = arith.constant 0 : index
    %578 = vector.load %arg27[%c1_287, %c0_288, %c0_289] : memref<2x64x32xbf16, #tpu.memory_space<vmem>>, vector<1x64x32xbf16>
    %579 = vector.shape_cast %578 : vector<1x64x32xbf16> to vector<64x32xbf16>
    %580 = arith.truncf %577 : vector<9x64xf32> to vector<9x64xbf16>
    %cst_290 = arith.constant dense<0.000000e+00> : vector<9x32xf32>
    %581 = tpu.matmul %580, %579, %cst_290 {dimension_numbers = #tpu.dot_dimension_numbers<[1], [0], [0], [1], [0, 0, 1, 1], [], []>} : vector<9x64xbf16>, vector<64x32xbf16>, vector<9x32xf32> -> vector<9x32xf32>
    %c1_291 = arith.constant 1 : index
    %c0_292 = arith.constant 0 : index
    %c0_293 = arith.constant 0 : index
    %582 = vector.load %arg28[%c1_291, %c0_292, %c0_293] : memref<2x1x32xf32, #tpu.memory_space<vmem>>, vector<1x1x32xf32>
    %583 = vector.shape_cast %582 : vector<1x1x32xf32> to vector<1x32xf32>
    %584 = vector.broadcast %583 : vector<1x32xf32> to vector<9x32xf32>
    %585 = arith.addf %581, %584 : vector<9x32xf32>
    %586 = arith.addf %556, %585 : vector<9x32xf32>
    %c1_294 = arith.constant 1 : index
    %c0_295 = arith.constant 0 : index
    %c0_296 = arith.constant 0 : index
    %587 = vector.load %arg29[%c1_294, %c0_295, %c0_296] : memref<2x1x32xf32, #tpu.memory_space<vmem>>, vector<1x1x32xf32>
    %588 = vector.shape_cast %587 : vector<1x1x32xf32> to vector<1x32xf32>
    %c1_297 = arith.constant 1 : index
    %c0_298 = arith.constant 0 : index
    %c0_299 = arith.constant 0 : index
    %589 = vector.load %arg30[%c1_297, %c0_298, %c0_299] : memref<2x1x32xf32, #tpu.memory_space<vmem>>, vector<1x1x32xf32>
    %590 = vector.shape_cast %589 : vector<1x1x32xf32> to vector<1x32xf32>
    %cst_300 = arith.constant dense<0.000000e+00> : vector<9xf32>
    %591 = vector.multi_reduction <add>, %586, %cst_300 [1] : vector<9x32xf32> to vector<9xf32>
    %592 = vector.shape_cast %591 : vector<9xf32> to vector<9x1xf32>
    %cst_301 = arith.constant 3.200000e+01 : f32
    %593 = vector.broadcast %cst_301 : f32 to vector<9x1xf32>
    %594 = arith.divf %592, %593 : vector<9x1xf32>
    %595 = vector.broadcast %594 : vector<9x1xf32> to vector<9x32xf32>
    %596 = arith.subf %586, %595 : vector<9x32xf32>
    %597 = arith.mulf %596, %596 : vector<9x32xf32>
    %cst_302 = arith.constant dense<0.000000e+00> : vector<9xf32>
    %598 = vector.multi_reduction <add>, %597, %cst_302 [1] : vector<9x32xf32> to vector<9xf32>
    %599 = vector.shape_cast %598 : vector<9xf32> to vector<9x1xf32>
    %cst_303 = arith.constant 3.200000e+01 : f32
    %600 = vector.broadcast %cst_303 : f32 to vector<9x1xf32>
    %601 = arith.divf %599, %600 : vector<9x1xf32>
    %602 = vector.broadcast %594 : vector<9x1xf32> to vector<9x32xf32>
    %603 = arith.subf %586, %602 : vector<9x32xf32>
    %cst_304 = arith.constant 9.99999974E-6 : f32
    %604 = vector.broadcast %cst_304 : f32 to vector<9x1xf32>
    %605 = arith.addf %601, %604 : vector<9x1xf32>
    %606 = math.rsqrt %605 : vector<9x1xf32>
    %607 = vector.broadcast %606 : vector<9x1xf32> to vector<9x32xf32>
    %608 = arith.mulf %603, %607 : vector<9x32xf32>
    %609 = vector.broadcast %588 : vector<1x32xf32> to vector<9x32xf32>
    %610 = arith.mulf %608, %609 : vector<9x32xf32>
    %611 = vector.broadcast %590 : vector<1x32xf32> to vector<9x32xf32>
    %612 = arith.addf %610, %611 : vector<9x32xf32>
    %613 = tpu.iota {dimensions = array<i32: 0>} : vector<32x32xi32>
    %614 = tpu.iota {dimensions = array<i32: 1>} : vector<32x32xi32>
    %c0_i32 = arith.constant 0 : i32
    %615 = vector.broadcast %c0_i32 : i32 to vector<32x32xi32>
    %616 = arith.addi %613, %615 : vector<32x32xi32>
    %617 = arith.cmpi eq, %616, %614 : vector<32x32xi32>
    %618 = arith.extui %617 : vector<32x32xi1> to vector<32x32xi32>
    %619 = arith.sitofp %618 : vector<32x32xi32> to vector<32x32xf32>
    %cst_305 = arith.constant dense<0.000000e+00> : vector<32x9xf32>
    %620 = tpu.matmul %619, %612, %cst_305 {dimension_numbers = #tpu.dot_dimension_numbers<[1], [1], [0], [0], [0, 0, 1, 0], [], []>} : vector<32x32xf32>, vector<9x32xf32>, vector<32x9xf32> -> vector<32x9xf32>
    %c0_306 = arith.constant 0 : index
    %c0_307 = arith.constant 0 : index
    %c0_308 = arith.constant 0 : index
    %621 = vector.load %arg31[%c0_306, %c0_307, %c0_308] : memref<1x32x9xf32, #tpu.memory_space<vmem>>, vector<1x32x9xf32>
    %622 = vector.shape_cast %621 : vector<1x32x9xf32> to vector<32x9xf32>
    %623 = vector.shape_cast %620 : vector<32x9xf32> to vector<1x32x9xf32>
    tpu.vector_store %arg31[%c0_306, %c0_307, %c0_308], %623 {strides = array<i32>} : memref<1x32x9xf32, #tpu.memory_space<vmem>>, vector<1x32x9xf32>,
    return
  }
  func.func @transform_0(%arg0: i32) -> (i32, i32, i32) {
    %c0_i32 = arith.constant 0 : i32
    %c0_i32_0 = arith.constant 0 : i32
    %c0_i32_1 = arith.constant 0 : i32
    return %arg0, %c0_i32, %c0_i32_0 : i32, i32, i32
  }
  func.func @transform_1(%arg0: i32) -> (i32, i32) {
    %c0_i32 = arith.constant 0 : i32
    %c0_i32_0 = arith.constant 0 : i32
    %c0_i32_1 = arith.constant 0 : i32
    return %c0_i32, %c0_i32_0 : i32, i32
  }
  func.func @transform_2(%arg0: i32) -> (i32, i32) {
    %c0_i32 = arith.constant 0 : i32
    %c0_i32_0 = arith.constant 0 : i32
    %c0_i32_1 = arith.constant 0 : i32
    return %c0_i32, %c0_i32_0 : i32, i32
  }
  func.func @transform_3(%arg0: i32) -> (i32, i32) {
    %c0_i32 = arith.constant 0 : i32
    %c0_i32_0 = arith.constant 0 : i32
    %c0_i32_1 = arith.constant 0 : i32
    return %c0_i32, %c0_i32_0 : i32, i32
  }
  func.func @transform_4(%arg0: i32) -> (i32, i32, i32) {
    %c0_i32 = arith.constant 0 : i32
    %c0_i32_0 = arith.constant 0 : i32
    %c0_i32_1 = arith.constant 0 : i32
    %c0_i32_2 = arith.constant 0 : i32
    return %c0_i32, %c0_i32_0, %c0_i32_1 : i32, i32, i32
  }
  func.func @transform_5(%arg0: i32) -> (i32, i32, i32) {
    %c0_i32 = arith.constant 0 : i32
    %c0_i32_0 = arith.constant 0 : i32
    %c0_i32_1 = arith.constant 0 : i32
    %c0_i32_2 = arith.constant 0 : i32
    return %c0_i32, %c0_i32_0, %c0_i32_1 : i32, i32, i32
  }
  func.func @transform_6(%arg0: i32) -> (i32, i32, i32) {
    %c0_i32 = arith.constant 0 : i32
    %c0_i32_0 = arith.constant 0 : i32
    %c0_i32_1 = arith.constant 0 : i32
    %c0_i32_2 = arith.constant 0 : i32
    return %c0_i32, %c0_i32_0, %c0_i32_1 : i32, i32, i32
  }
  func.func @transform_7(%arg0: i32) -> (i32, i32, i32) {
    %c0_i32 = arith.constant 0 : i32
    %c0_i32_0 = arith.constant 0 : i32
    %c0_i32_1 = arith.constant 0 : i32
    %c0_i32_2 = arith.constant 0 : i32
    return %c0_i32, %c0_i32_0, %c0_i32_1 : i32, i32, i32
  }
  func.func @transform_8(%arg0: i32) -> (i32, i32, i32) {
    %c0_i32 = arith.constant 0 : i32
    %c0_i32_0 = arith.constant 0 : i32
    %c0_i32_1 = arith.constant 0 : i32
    %c0_i32_2 = arith.constant 0 : i32
    return %c0_i32, %c0_i32_0, %c0_i32_1 : i32, i32, i32
  }
  func.func @transform_9(%arg0: i32) -> (i32, i32, i32) {
    %c0_i32 = arith.constant 0 : i32
    %c0_i32_0 = arith.constant 0 : i32
    %c0_i32_1 = arith.constant 0 : i32
    %c0_i32_2 = arith.constant 0 : i32
    return %c0_i32, %c0_i32_0, %c0_i32_1 : i32, i32, i32
  }
  func.func @transform_10(%arg0: i32) -> (i32, i32) {
    %c0_i32 = arith.constant 0 : i32
    %c0_i32_0 = arith.constant 0 : i32
    %c0_i32_1 = arith.constant 0 : i32
    return %c0_i32, %c0_i32_0 : i32, i32
  }
  func.func @transform_11(%arg0: i32) -> (i32, i32) {
    %c0_i32 = arith.constant 0 : i32
    %c0_i32_0 = arith.constant 0 : i32
    %c0_i32_1 = arith.constant 0 : i32
    return %c0_i32, %c0_i32_0 : i32, i32
  }
  func.func @transform_12(%arg0: i32) -> (i32, i32) {
    %c0_i32 = arith.constant 0 : i32
    %c0_i32_0 = arith.constant 0 : i32
    %c0_i32_1 = arith.constant 0 : i32
    return %c0_i32, %c0_i32_0 : i32, i32
  }
  func.func @transform_13(%arg0: i32) -> (i32, i32) {
    %c0_i32 = arith.constant 0 : i32
    %c0_i32_0 = arith.constant 0 : i32
    %c0_i32_1 = arith.constant 0 : i32
    return %c0_i32, %c0_i32_0 : i32, i32
  }
  func.func @transform_14(%arg0: i32) -> (i32, i32, i32) {
    %c0_i32 = arith.constant 0 : i32
    %c0_i32_0 = arith.constant 0 : i32
    %c0_i32_1 = arith.constant 0 : i32
    %c0_i32_2 = arith.constant 0 : i32
    return %c0_i32, %c0_i32_0, %c0_i32_1 : i32, i32, i32
  }
  func.func @transform_15(%arg0: i32) -> (i32, i32) {
    %c0_i32 = arith.constant 0 : i32
    %c0_i32_0 = arith.constant 0 : i32
    %c0_i32_1 = arith.constant 0 : i32
    return %c0_i32, %c0_i32_0 : i32, i32
  }
  func.func @transform_16(%arg0: i32) -> (i32, i32) {
    %c0_i32 = arith.constant 0 : i32
    %c0_i32_0 = arith.constant 0 : i32
    %c0_i32_1 = arith.constant 0 : i32
    return %c0_i32, %c0_i32_0 : i32, i32
  }
  func.func @transform_17(%arg0: i32) -> (i32, i32) {
    %c0_i32 = arith.constant 0 : i32
    %c0_i32_0 = arith.constant 0 : i32
    %c0_i32_1 = arith.constant 0 : i32
    return %c0_i32, %c0_i32_0 : i32, i32
  }
  func.func @transform_18(%arg0: i32) -> (i32, i32, i32) {
    %c0_i32 = arith.constant 0 : i32
    %c0_i32_0 = arith.constant 0 : i32
    %c0_i32_1 = arith.constant 0 : i32
    %c0_i32_2 = arith.constant 0 : i32
    return %c0_i32, %c0_i32_0, %c0_i32_1 : i32, i32, i32
  }
  func.func @transform_19(%arg0: i32) -> (i32, i32, i32) {
    %c0_i32 = arith.constant 0 : i32
    %c0_i32_0 = arith.constant 0 : i32
    %c0_i32_1 = arith.constant 0 : i32
    %c0_i32_2 = arith.constant 0 : i32
    return %c0_i32, %c0_i32_0, %c0_i32_1 : i32, i32, i32
  }
  func.func @transform_20(%arg0: i32) -> (i32, i32, i32) {
    %c0_i32 = arith.constant 0 : i32
    %c0_i32_0 = arith.constant 0 : i32
    %c0_i32_1 = arith.constant 0 : i32
    %c0_i32_2 = arith.constant 0 : i32
    return %c0_i32, %c0_i32_0, %c0_i32_1 : i32, i32, i32
  }
  func.func @transform_21(%arg0: i32) -> (i32, i32, i32) {
    %c0_i32 = arith.constant 0 : i32
    %c0_i32_0 = arith.constant 0 : i32
    %c0_i32_1 = arith.constant 0 : i32
    %c0_i32_2 = arith.constant 0 : i32
    return %c0_i32, %c0_i32_0, %c0_i32_1 : i32, i32, i32
  }
  func.func @transform_22(%arg0: i32) -> (i32, i32, i32) {
    %c0_i32 = arith.constant 0 : i32
    %c0_i32_0 = arith.constant 0 : i32
    %c0_i32_1 = arith.constant 0 : i32
    %c0_i32_2 = arith.constant 0 : i32
    return %c0_i32, %c0_i32_0, %c0_i32_1 : i32, i32, i32
  }
  func.func @transform_23(%arg0: i32) -> (i32, i32, i32) {
    %c0_i32 = arith.constant 0 : i32
    %c0_i32_0 = arith.constant 0 : i32
    %c0_i32_1 = arith.constant 0 : i32
    %c0_i32_2 = arith.constant 0 : i32
    return %c0_i32, %c0_i32_0, %c0_i32_1 : i32, i32, i32
  }
  func.func @transform_24(%arg0: i32) -> (i32, i32, i32) {
    %c0_i32 = arith.constant 0 : i32
    %c0_i32_0 = arith.constant 0 : i32
    %c0_i32_1 = arith.constant 0 : i32
    %c0_i32_2 = arith.constant 0 : i32
    return %c0_i32, %c0_i32_0, %c0_i32_1 : i32, i32, i32
  }
  func.func @transform_25(%arg0: i32) -> (i32, i32, i32) {
    %c0_i32 = arith.constant 0 : i32
    %c0_i32_0 = arith.constant 0 : i32
    %c0_i32_1 = arith.constant 0 : i32
    %c0_i32_2 = arith.constant 0 : i32
    return %c0_i32, %c0_i32_0, %c0_i32_1 : i32, i32, i32
  }
  func.func @transform_26(%arg0: i32) -> (i32, i32, i32) {
    %c0_i32 = arith.constant 0 : i32
    %c0_i32_0 = arith.constant 0 : i32
    %c0_i32_1 = arith.constant 0 : i32
    %c0_i32_2 = arith.constant 0 : i32
    return %c0_i32, %c0_i32_0, %c0_i32_1 : i32, i32, i32
  }
  func.func @transform_27(%arg0: i32) -> (i32, i32, i32) {
    %c0_i32 = arith.constant 0 : i32
    %c0_i32_0 = arith.constant 0 : i32
    %c0_i32_1 = arith.constant 0 : i32
    %c0_i32_2 = arith.constant 0 : i32
    return %c0_i32, %c0_i32_0, %c0_i32_1 : i32, i32, i32
  }
  func.func @transform_28(%arg0: i32) -> (i32, i32, i32) {
    %c0_i32 = arith.constant 0 : i32
    %c0_i32_0 = arith.constant 0 : i32
    %c0_i32_1 = arith.constant 0 : i32
    %c0_i32_2 = arith.constant 0 : i32
    return %c0_i32, %c0_i32_0, %c0_i32_1 : i32, i32, i32
  }
  func.func @transform_29(%arg0: i32) -> (i32, i32, i32) {
    %c0_i32 = arith.constant 0 : i32
    %c0_i32_0 = arith.constant 0 : i32
    %c0_i32_1 = arith.constant 0 : i32
    %c0_i32_2 = arith.constant 0 : i32
    return %c0_i32, %c0_i32_0, %c0_i32_1 : i32, i32, i32
  }
  func.func @transform_30(%arg0: i32) -> (i32, i32, i32) {
    %c0_i32 = arith.constant 0 : i32
    %c0_i32_0 = arith.constant 0 : i32
    %c0_i32_1 = arith.constant 0 : i32
    return %arg0, %c0_i32, %c0_i32_0 : i32, i32, i32
  }
}

</mosaic_0001>

<bundles_post_ra>
// kernel: ssl_forward.1
= control target key start
LH: loop header
LB: loop body
LE: loop exit
PB: predicated region body
PF: predicated region fallthrough
CT: control target
= control target key end

     0   :  { %s11482_s6 = smov 1   ;;  %s11483_s10 = smov 2   ;;  %s16590_s0 = inlined_call_operand.smem [shape: u32[31], index: -1, kind: input, shape index: {}] }
   0x1   :  { %s11531_s5 = sld [smem:[%s16590_s0]]   ;;  %s11484_s14 = smov 3  }
   0x2   :  { %s11536_s9 = sld [smem:[%s16590_s0 + %s11482_s6]]   ;;  %s11485_s18 = smov 4  }
   0x3   :  { %s11541_s13 = sld [smem:[%s16590_s0 + %s11483_s10]]   ;;  %s11486_s22 = smov 5  }
   0x4   :  { %s11546_s17 = sld [smem:[%s16590_s0 + %s11484_s14]]   ;;  %s11487_s26 = smov 6  }
   0x5   :  { %s11551_s21 = sld [smem:[%s16590_s0 + %s11485_s18]]   ;;  %s11488_s30 = smov 7  }
   0x6   :  { %s11556_s25 = sld [smem:[%s16590_s0 + %s11486_s22]]   ;;  %s11489_s4 = smov 8  }
   0x7   :  { %16816 = sst [smem:[#allocation8_spill]] %s11531_s5  ;;  %s11490_s10 = smov 9  }
   0x8   :  { %s11561_s29 = sld [smem:[%s16590_s0 + %s11487_s26]]   ;;  %s11491_s15 = smov 10  }
   0x9   :  { %s11566_s3 = sld [smem:[%s16590_s0 + %s11488_s30]]   ;;  %s11492_s20 = smov 11  }
   0xa   :  { %s11571_s8 = sld [smem:[%s16590_s0 + %s11489_s4]]   ;;  %s11493_s26 = smov 12  }
   0xb   :  { %s11576_s14 = sld [smem:[%s16590_s0 + %s11490_s10]]   ;;  %s11494_s1 = smov 13  }
   0xc   :  { %s11581_s19 = sld [smem:[%s16590_s0 + %s11491_s15]]   ;;  %s11495_s7 = smov 14  }
   0xd   :  { %s11586_s24 = sld [smem:[%s16590_s0 + %s11492_s20]]   ;;  %s11496_s15 = smov 15  }
   0xe   :  { %s11591_s30 = sld [smem:[%s16590_s0 + %s11493_s26]]   ;;  %s11497_s22 = smov 16  }
   0xf   :  { %16817 = sst [smem:[#allocation9_spill]] %s11566_s3  ;;  %s11498_s28 = smov 17  }
  0x10   :  { %s11596_s6 = sld [smem:[%s16590_s0 + %s11494_s1]]  }
  0x11   :  { %s11601_s12 = sld [smem:[%s16590_s0 + %s11495_s7]]   ;;  %s11499_s7 = smov 18  }
  0x12   :  { %s11606_s20 = sld [smem:[%s16590_s0 + %s11496_s15]]   ;;  %s11500_s15 = smov 19  }
  0x13   :  { %s11611_s27 = sld [smem:[%s16590_s0 + %s11497_s22]]   ;;  %s11501_s22 = smov 20  }
  0x14   :  { %s11616_s4 = sld [smem:[%s16590_s0 + %s11498_s28]]   ;;  %s11502_s28 = smov 21  }
  0x16   :  { %16818 = sst [smem:[#allocation10_spill]] %s11596_s6 }
  0x17   :  { %s11621_s6 = sld [smem:[%s16590_s0 + %s11499_s7]]   ;;  %s11503_s7 = smov 22  }
  0x18   :  { %16819 = sst [smem:[#allocation11_spill]] %s11606_s20 }
  0x19   :  { %16820 = sst [smem:[#allocation12_spill]] %s11611_s27 }
  0x1a   :  { %16821 = sst [smem:[#allocation13_spill]] %s11616_s4 }
  0x1b   :  { %s11626_s20 = sld [smem:[%s16590_s0 + %s11500_s15]]   ;;  %s11504_s15 = smov 23  }
  0x1c   :  { %s11631_s27 = sld [smem:[%s16590_s0 + %s11501_s22]]   ;;  %s11505_s22 = smov 24  }
  0x1d   :  { %16822 = sst [smem:[#allocation14_spill]] %s11621_s6 }
  0x1e   :  { %s11636_s4 = sld [smem:[%s16590_s0 + %s11502_s28]]   ;;  %s11506_s28 = smov 25  }
  0x1f   :  { %s11641_s6 = sld [smem:[%s16590_s0 + %s11503_s7]]   ;;  %s11507_s7 = smov 26  }
  0x21   :  { %16823 = sst [smem:[#allocation15_spill]] %s11626_s20 }
  0x22   :  { %16824 = sst [smem:[#allocation16_spill]] %s11631_s27 }
  0x23   :  { %s11646_s20 = sld [smem:[%s16590_s0 + %s11504_s15]]   ;;  %s11508_s15 = smov 27  }
  0x24   :  { %16825 = sst [smem:[#allocation17_spill]] %s11636_s4 }
  0x25   :  { %16826 = sst [smem:[#allocation18_spill]] %s11641_s6 }
  0x26   :  { %s11651_s27 = sld [smem:[%s16590_s0 + %s11505_s22]]   ;;  %s11509_s22 = smov 28  }
  0x27   :  { %s11656_s4 = sld [smem:[%s16590_s0 + %s11506_s28]]   ;;  %s11510_s28 = smov 29  }
  0x28   :  { %s11661_s6 = sld [smem:[%s16590_s0 + %s11507_s7]]   ;;  %s11511_s7 = smov 30  }
  0x29   :  { %16827 = sst [smem:[#allocation19_spill]] %s11646_s20 }
  0x2a   :  { %s11666_s20 = sld [smem:[%s16590_s0 + %s11508_s15]]   ;;  %s11683_s15 = smov 0  }
  0x2c   :  { %16828 = sst [smem:[#allocation20_spill]] %s11651_s27 }
  0x2d   :  { %16829 = sst [smem:[#allocation21_spill]] %s11656_s4 }
  0x2e   :  { %16830 = sst [smem:[#allocation22_spill]] %s11661_s6 }
  0x2f   :  { %s11671_s27 = sld [smem:[%s16590_s0 + %s11509_s22]]  }
  0x30   :  { %s11676_s4 = sld [smem:[%s16590_s0 + %s11510_s28]]  }
  0x31   :  { %s11681_s6 = sld [smem:[%s16590_s0 + %s11511_s7]]  }
  0x32 LB: > { %s16831_s3 = sld [smem:[#allocation9_spill]]  ;;  %s9312_s16 = sadd.s32 4294967295, %s11480_s15   ;;  %s11480_s15 = sphi %s11683_s15, %s71_s15  }
  0x33   : > { %p9316_p0 = scmp.ge.s32.totalorder %s11480_s15, 1  ;;  %p843_p1 = scmp.lt.s32.totalorder %s11480_s15, 3 }
  0x35   : > { %p844_p2 = pnand %p9316_p0, %p843_p1 }
  0x37   : > { %847 = sbr.rel (%p844_p2) target bundleno = 9615 (0x258f), region = 140 }
  0x3e   : > { %s16832_s5 = sld [smem:[#allocation8_spill]]  ;;  %v10950_v0 = vld [vmem:[%s11536_s9] sm:$0x1f]   ;;  %vm1340_vm0 = vcmask 1044480   ;;  %p921_p3 = scmp.lt.s32.totalorder %s9312_s16, 1  ;;  %vm1219_vm1 = vcmask 80896  }
  0x3f   : > { %10839 = vmatprep.subr.msk.bf16.mxu0 %vm1340_vm0, %v10950_v0  ;;  %v1342_v1 = vsel %vm1340_vm0, %v10950_v0, 0  ;;  %vm1697_vm2 = vcmask 261120   ;;  %vm1855_vm3 = vcmask 260096   ;;  %vm11513_vm4 = vmmov 0   ;;  %s17658_s22 = sld [smem:[#allocation10_spill]]  ;;  %s17659_s23 = sld [smem:[#allocation11_spill]] }
  0x40   : > { %9994 = vmatpush3.bf16.msra.mxu0 %v1342_v1  ;;  %s17678_s16 = smov (!%p921_p3, %s9312_s16), 1  ;;  %vm6665_vm5 = vcmask 256000   ;;  %vm6820_vm6 = vcmask 253952   ;;  %vm6932_vm7 = vcmask 1040384   ;;  %vm6935_vm8 = vcmask 1046528   ;;  %s17660_s26 = sld [smem:[#allocation14_spill]] }
  0x41   : > { %s10840_s0 = smul.u32 320, %s17678_s16  ;;  %s17661_s28 = sld [smem:[#allocation12_spill]]  ;;  %vm7295_vm9 = vcmask 64512   ;;  %vm7493_vm10 = vcmask 72704   ;;  %vm7497_vm11 = vcmask 65536   ;;  %vm7592_vm12 = vcmask 1043456  }
  0x42   : > { %s17662_s1 = sld [smem:[#allocation13_spill]]  ;;  %s17663_s2 = sld [smem:[#allocation15_spill]]  ;;  %vm7812_vm13 = vcmask 130048   ;;  %vm7815_vm14 = vcmask 195584   ;;  %vm8058_vm15 = vcmask 523264  }
  0x43   : > { %s11514_s7 = smov 112   ;;  %s11515_s10 = smov 120  }
  0x44   : > { %s11698_s18 = scalar_lea.vmem %s16832_s5, %s10840_s0  ;;  %s16814_s11 = smov 104  }
  0x45   : > { %v10951_v2 = vld [vmem:[%s11698_s18] sm:$0xff]   ;;  %v10952_v3 = vld [vmem:[%s11698_s18 + $0x8] sm:$0xff]   ;;  %v10953_v4 = vld [vmem:[%s11698_s18 + $0x10] sm:$0xff]   ;;  %s16812_s0 = smov 96   ;;  %s17672_s5 = smov 96  }
  0x46   : > { %9995 = vmatprep.mubr.msk.bf16.mxu0 %vm1219_vm1, %v10951_v2  ;;  %v10954_v5 = vld [vmem:[%s11698_s18 + $0x18] sm:$0xff]   ;;  %v10955_v6 = vld [vmem:[%s11698_s18 + $0x20] sm:$0xff]   ;;  %v10956_v7 = vld [vmem:[%s11698_s18 + $0x28] sm:$0xff]  }
  0x47   : > { %9996 = vmatmul.mubr.msk.bf16.vlgmr.msra.gmra.mrb[0].mxu0 %vm1219_vm1, %v10952_v3  ;;  %v10957_v8 = vld [vmem:[%s11698_s18 + $0x30] sm:$0xff]   ;;  %v10958_v9 = vld [vmem:[%s11698_s18 + $0x38] sm:$0xff]   ;;  %v10959_v10 = vld [vmem:[%s11698_s18 + $0x40] sm:$0xff]  }
  0x48   : > { %9999 = vmatprep.mubr.msk.bf16.mxu0 %vm1219_vm1, %v10953_v4  ;;  %v10960_v11 = vld [vmem:[%s11698_s18 + $0x48] sm:$0xff]   ;;  %v10961_v12 = vld [vmem:[%s11698_s18 + $0x50] sm:$0xff]   ;;  %v10962_v13 = vld [vmem:[%s11698_s18 + $0x58] sm:$0xff]  }
  0x49   : > { %v10963_v14 = vld [vmem:[%s11698_s18 + $0x60] sm:$0xff]   ;;  %v10964_v15 = vld [vmem:[%s11698_s18 + $0x68] sm:$0xff]   ;;  %v10965_v16 = vld [vmem:[%s11698_s18 + $0x70] sm:$0xff]  }
  0x4a   : > { %v10966_v17 = vld [vmem:[%s11698_s18 + $0x78] sm:$0xff]   ;;  %v10967_v18 = vld [vmem:[%s11698_s18 + $0x80] sm:$0xff]   ;;  %v10968_v19 = vld [vmem:[%s11698_s18 + $0x88] sm:$0xff]  }
  0x4b   : > { %v10969_v20 = vld [vmem:[%s11698_s18 + $0x90] sm:$0xff]   ;;  %v10970_v21 = vld [vmem:[%s11698_s18 + $0x98] sm:$0xff]   ;;  %v10971_v22 = vld [vmem:[%s11698_s18 + $0xa0] sm:$0xff]  }
  0x4c   : > { %v10972_v23 = vld [vmem:[%s11698_s18 + $0xa8] sm:$0xff]   ;;  %v10973_v24 = vld [vmem:[%s11698_s18 + $0xb0] sm:$0xff]   ;;  %v10974_v25 = vld [vmem:[%s11698_s18 + $0xb8] sm:$0xff]  }
  0x4d   : > { %v10975_v26 = vld [vmem:[%s11698_s18 + $0xc0] sm:$0xff]   ;;  %v10976_v27 = vld [vmem:[%s11698_s18 + $0xc8] sm:$0xff]   ;;  %v10977_v28 = vld [vmem:[%s11698_s18 + $0xd0] sm:$0xff]  }
  0x4e   : > { %v10978_v29 = vld [vmem:[%s11698_s18 + $0xd8] sm:$0xff]   ;;  %v10979_v30 = vld [vmem:[%s11698_s18 + $0xe0] sm:$0xff]   ;;  %v10980_v31 = vld [vmem:[%s11698_s18 + $0xe8] sm:$0xff]  }
  0x4f   : > { %10000 = vmatmul.mubr.msk.bf16.gmra.mrb[4].mxu0 %vm1219_vm1, %v10954_v5  ;;  %v10981_v32 = vld [vmem:[%s11698_s18 + $0xf0] sm:$0xff]   ;;  %v10982_v33 = vld [vmem:[%s11698_s18 + $0xf8] sm:$0xff]   ;;  %v10983_v34 = vld [vmem:[%s11698_s18 + $0x100] sm:$0xff]  }
  0x50   : > { %10003 = vmatprep.mubr.msk.bf16.mxu0 %vm1219_vm1, %v10955_v6  ;;  %v10984_v35 = vld [vmem:[%s11698_s18 + $0x108] sm:$0xff]   ;;  %v10985_v36 = vld [vmem:[%s11698_s18 + $0x110] sm:$0xff]   ;;  %v10986_v37 = vld [vmem:[%s11698_s18 + $0x118] sm:$0xff]  }
  0x51   : > { %v10987_v38 = vld [vmem:[%s11698_s18 + $0x120] sm:$0xff]   ;;  %v10988_v39 = vld [vmem:[%s11698_s18 + $0x128] sm:$0xff]   ;;  %v10989_v40 = vld [vmem:[%s11698_s18 + $0x130] sm:$0xff]  }
  0x52   : > { %v10990_v41 = vld [vmem:[%s11698_s18 + $0x138] sm:$0xff]   ;;  %s16810_s18 = smov 64  }
  0x57   : > { %10004 = vmatmul.mubr.msk.bf16.gmra.mrb[8].mxu0 %vm1219_vm1, %v10956_v7 }
  0x58   : > { %10007 = vmatprep.mubr.msk.bf16.mxu0 %vm1219_vm1, %v10957_v8 }
  0x5f   : > { %10008 = vmatmul.mubr.msk.bf16.gmra.mrb[12].mxu0 %vm1219_vm1, %v10958_v9 }
  0x60   : > { %10011 = vmatprep.mubr.msk.bf16.mxu0 %vm1219_vm1, %v10959_v10 }
  0x67   : > { %10012 = vmatmul.mubr.msk.bf16.gmra.mrb[16].mxu0 %vm1219_vm1, %v10960_v11 }
  0x68   : > { %10015 = vmatprep.mubr.msk.bf16.mxu0 %vm1219_vm1, %v10961_v12 }
  0x6f   : > { %10016 = vmatmul.mubr.msk.bf16.gmra.mrb[20].mxu0 %vm1219_vm1, %v10962_v13 }
  0x70   : > { %10019 = vmatprep.mubr.msk.bf16.mxu0 %vm1219_vm1, %v10963_v14 }
  0x77   : > { %10020 = vmatmul.mubr.msk.bf16.gmra.mrb[24].mxu0 %vm1219_vm1, %v10964_v15 }
  0x78   : > { %10023 = vmatprep.mubr.msk.bf16.mxu0 %vm1219_vm1, %v10965_v16 }
  0x7f   : > { %10024 = vmatmul.mubr.msk.bf16.gmra.mrb[28].mxu0 %vm1219_vm1, %v10966_v17 }
  0x80   : > { %10027 = vmatprep.mubr.msk.bf16.mxu0 %vm1219_vm1, %v10967_v18 }
  0x87   : > { %10028 = vmatmul.mubr.msk.bf16.gmra.mrb[32].mxu0 %vm1219_vm1, %v10968_v19 }
  0x88   : > { %10031 = vmatprep.mubr.msk.bf16.mxu0 %vm1219_vm1, %v10969_v20 }
  0x8f   : > { %10032 = vmatmul.mubr.msk.bf16.gmra.mrb[36].mxu0 %vm1219_vm1, %v10970_v21 }
  0x90   : > { %10035 = vmatprep.mubr.msk.bf16.mxu0 %vm1219_vm1, %v10971_v22 }
  0x97   : > { %10036 = vmatmul.mubr.msk.bf16.gmra.mrb[40].mxu0 %vm1219_vm1, %v10972_v23 }
  0x98   : > { %10039 = vmatprep.mubr.msk.bf16.mxu0 %vm1219_vm1, %v10973_v24 }
  0x9f   : > { %10040 = vmatmul.mubr.msk.bf16.gmra.mrb[44].mxu0 %vm1219_vm1, %v10974_v25 }
  0xa0   : > { %10043 = vmatprep.mubr.msk.bf16.mxu0 %vm1219_vm1, %v10975_v26 }
  0xa7   : > { %10044 = vmatmul.mubr.msk.bf16.gmra.mrb[48].mxu0 %vm1219_vm1, %v10976_v27 }
  0xa8   : > { %10047 = vmatprep.mubr.msk.bf16.mxu0 %vm1219_vm1, %v10977_v28 }
  0xaf   : > { %10048 = vmatmul.mubr.msk.bf16.gmra.mrb[52].mxu0 %vm1219_vm1, %v10978_v29 }
  0xb0   : > { %10051 = vmatprep.mubr.msk.bf16.mxu0 %vm1219_vm1, %v10979_v30 }
  0xb7   : > { %10052 = vmatmul.mubr.msk.bf16.gmra.mrb[56].mxu0 %vm1219_vm1, %v10980_v31 }
  0xb8   : > { %10055 = vmatprep.mubr.msk.bf16.mxu0 %vm1219_vm1, %v10981_v32 }
  0xbf   : > { %10056 = vmatmul.mubr.msk.bf16.gmra.mrb[60].mxu0 %vm1219_vm1, %v10982_v33 }
  0xc0   : > { %10059 = vmatprep.mubr.msk.bf16.mxu0 %vm1219_vm1, %v10983_v34 }
  0xc7   : > { %10060 = vmatmul.mubr.msk.bf16.gmra.mrb[64].mxu0 %vm1219_vm1, %v10984_v35 }
  0xc8   : > { %10063 = vmatprep.mubr.msk.bf16.mxu0 %vm1219_vm1, %v10985_v36 }
  0xcf   : > { %10064 = vmatmul.mubr.msk.bf16.gmra.mrb[68].mxu0 %vm1219_vm1, %v10986_v37 }
  0xd0   : > { %10067 = vmatprep.mubr.msk.bf16.mxu0 %vm1219_vm1, %v10987_v38 }
  0xd7   : > { %10068 = vmatmul.mubr.msk.bf16.gmra.mrb[72].mxu0 %vm1219_vm1, %v10988_v39 }
  0xd8   : > { %10071 = vmatprep.mubr.msk.bf16.mxu0 %vm1219_vm1, %v10989_v40 }
  0xdf   : > { %10072 = vmatmul.mubr.msk.bf16.gmra.mrb[76].mxu0 %vm1219_vm1, %v10990_v41 }
 0x11a   : > { %v11780_v42 = vpop.f32.mrb[0].mxu0 }
 0x11b   : > { %v11782_v43 = vpop.f32.mrb[1].mxu0  ;;  %v1701_v49 = vsel %vm1697_vm2, %v11780_v42, 0.0 }
 0x11c   : > { %v11784_v44 = vpop.f32.mrb[2].mxu0  ;;  %v1698_v46 = vsel %vm1697_vm2, %v11782_v43, 0.0 }
 0x11d   : > { %v11786_v45 = vpop.f32.mrb[3].mxu0  ;;  %v1703_v51 = vsel %vm1697_vm2, %v11784_v44, 0.0 }
 0x11e   : > { %v1699_v47 = vsel %vm1697_vm2, %v11786_v45, 0.0 }
 0x11f   : > { %v1700_v48 = vadd.f32 %v1699_v47, %v1698_v46 }
 0x121   : > { %v1702_v50 = vadd.f32 %v1701_v49, %v1700_v48 }
 0x122   : > { %v11796_v52 = vpop.f32.mrb[4].mxu0 }
 0x123   : > { %v1704_v53 = vadd.f32 %v1703_v51, %v1702_v50  ;;  %v11798_v54 = vpop.f32.mrb[5].mxu0  ;;  %v1709_v61 = vsel %vm1697_vm2, %v11796_v52, 0.0 }
 0x124   : > { %v1705_v55 = vsel %vm1697_vm2, %v11798_v54, 0.0  ;;  %v11802_v56 = vpop.f32.mrb[6].mxu0 }
 0x125   : > { %v1706_v57 = vadd.f32 %v1705_v55, %v1704_v53  ;;  %v11804_v58 = vpop.f32.mrb[7].mxu0  ;;  %v1711_v63 = vsel %vm1697_vm2, %v11802_v56, 0.0 }
 0x126   : > { %v1707_v59 = vsel %vm1697_vm2, %v11804_v58, 0.0 }
 0x127   : > { %v1708_v60 = vadd.f32 %v1707_v59, %v1706_v57 }
 0x129   : > { %v1710_v62 = vadd.f32 %v1709_v61, %v1708_v60 }
 0x12a   : > { %v11812_v0 = vpop.f32.mrb[8].mxu0 }
 0x12b   : > { %v1712_v1 = vadd.f32 %v1711_v63, %v1710_v62  ;;  %v11814_v2 = vpop.f32.mrb[9].mxu0  ;;  %v1717_v9 = vsel %vm1697_vm2, %v11812_v0, 0.0 }
 0x12c   : > { %v1713_v3 = vsel %vm1697_vm2, %v11814_v2, 0.0  ;;  %v11818_v4 = vpop.f32.mrb[10].mxu0 }
 0x12d   : > { %v1714_v5 = vadd.f32 %v1713_v3, %v1712_v1  ;;  %v11820_v6 = vpop.f32.mrb[11].mxu0  ;;  %v1719_v11 = vsel %vm1697_vm2, %v11818_v4, 0.0 }
 0x12e   : > { %v1715_v7 = vsel %vm1697_vm2, %v11820_v6, 0.0 }
 0x12f   : > { %v1716_v8 = vadd.f32 %v1715_v7, %v1714_v5 }
 0x131   : > { %v1718_v10 = vadd.f32 %v1717_v9, %v1716_v8 }
 0x132   : > { %v11828_v12 = vpop.f32.mrb[12].mxu0 }
 0x133   : > { %v1720_v13 = vadd.f32 %v1719_v11, %v1718_v10  ;;  %v11830_v14 = vpop.f32.mrb[13].mxu0  ;;  %v1725_v21 = vsel %vm1697_vm2, %v11828_v12, 0.0 }
 0x134   : > { %v1721_v15 = vsel %vm1697_vm2, %v11830_v14, 0.0  ;;  %v11834_v16 = vpop.f32.mrb[14].mxu0 }
 0x135   : > { %v1722_v17 = vadd.f32 %v1721_v15, %v1720_v13  ;;  %v11836_v18 = vpop.f32.mrb[15].mxu0  ;;  %v1727_v23 = vsel %vm1697_vm2, %v11834_v16, 0.0 }
 0x136   : > { %v1723_v19 = vsel %vm1697_vm2, %v11836_v18, 0.0 }
 0x137   : > { %v1724_v20 = vadd.f32 %v1723_v19, %v1722_v17 }
 0x139   : > { %v1726_v22 = vadd.f32 %v1725_v21, %v1724_v20 }
 0x13a   : > { %v11844_v24 = vpop.f32.mrb[16].mxu0 }
 0x13b   : > { %v1728_v25 = vadd.f32 %v1727_v23, %v1726_v22  ;;  %v11846_v26 = vpop.f32.mrb[17].mxu0  ;;  %v1733_v33 = vsel %vm1697_vm2, %v11844_v24, 0.0 }
 0x13c   : > { %v1729_v27 = vsel %vm1697_vm2, %v11846_v26, 0.0  ;;  %v11850_v28 = vpop.f32.mrb[18].mxu0 }
 0x13d   : > { %v1730_v29 = vadd.f32 %v1729_v27, %v1728_v25  ;;  %v11852_v30 = vpop.f32.mrb[19].mxu0  ;;  %v1735_v35 = vsel %vm1697_vm2, %v11850_v28, 0.0 }
 0x13e   : > { %v1731_v31 = vsel %vm1697_vm2, %v11852_v30, 0.0 }
 0x13f   : > { %v1732_v32 = vadd.f32 %v1731_v31, %v1730_v29 }
 0x141   : > { %v1734_v34 = vadd.f32 %v1733_v33, %v1732_v32 }
 0x142   : > { %v11860_v36 = vpop.f32.mrb[20].mxu0 }
 0x143   : > { %v11862_v37 = vpop.f32.mrb[21].mxu0  ;;  %v1736_v38 = vadd.f32 %v1735_v35, %v1734_v34  ;;  %v1741_v49 = vsel %vm1697_vm2, %v11860_v36, 0.0 }
 0x144   : > { %v1737_v39 = vsel %vm1697_vm2, %v11862_v37, 0.0  ;;  %v11866_v40 = vpop.f32.mrb[22].mxu0 }
 0x145   : > { %v1738_v41 = vadd.f32 %v1737_v39, %v1736_v38  ;;  %v11868_v46 = vpop.f32.mrb[23].mxu0  ;;  %v1743_v51 = vsel %vm1697_vm2, %v11866_v40, 0.0 }
 0x146   : > { %v1739_v47 = vsel %vm1697_vm2, %v11868_v46, 0.0 }
 0x147   : > { %v1740_v48 = vadd.f32 %v1739_v47, %v1738_v41 }
 0x149   : > { %v1742_v50 = vadd.f32 %v1741_v49, %v1740_v48 }
 0x14a   : > { %v11876_v53 = vpop.f32.mrb[24].mxu0 }
 0x14b   : > { %v11878_v55 = vpop.f32.mrb[25].mxu0  ;;  %v1744_v57 = vadd.f32 %v1743_v51, %v1742_v50  ;;  %v1749_v3 = vsel %vm1697_vm2, %v11876_v53, 0.0 }
 0x14c   : > { %v1745_v59 = vsel %vm1697_vm2, %v11878_v55, 0.0  ;;  %v11882_v60 = vpop.f32.mrb[26].mxu0 }
 0x14d   : > { %v1746_v61 = vadd.f32 %v1745_v59, %v1744_v57  ;;  %v11884_v62 = vpop.f32.mrb[27].mxu0  ;;  %v1751_v7 = vsel %vm1697_vm2, %v11882_v60, 0.0 }
 0x14e   : > { %v1747_v63 = vsel %vm1697_vm2, %v11884_v62, 0.0 }
 0x14f   : > { %v1748_v1 = vadd.f32 %v1747_v63, %v1746_v61 }
 0x151   : > { %v1750_v5 = vadd.f32 %v1749_v3, %v1748_v1 }
 0x152   : > { %v11892_v8 = vpop.f32.mrb[28].mxu0 }
 0x153   : > { %v11894_v9 = vpop.f32.mrb[29].mxu0  ;;  %v1752_v10 = vadd.f32 %v1751_v7, %v1750_v5  ;;  %v1757_v21 = vsel %vm1697_vm2, %v11892_v8, 0.0 }
 0x154   : > { %v1753_v11 = vsel %vm1697_vm2, %v11894_v9, 0.0  ;;  %v11898_v13 = vpop.f32.mrb[30].mxu0 }
 0x155   : > { %v1754_v15 = vadd.f32 %v1753_v11, %v1752_v10  ;;  %v11900_v17 = vpop.f32.mrb[31].mxu0  ;;  %v1759_v23 = vsel %vm1697_vm2, %v11898_v13, 0.0 }
 0x156   : > { %v1755_v19 = vsel %vm1697_vm2, %v11900_v17, 0.0 }
 0x157   : > { %v1756_v20 = vadd.f32 %v1755_v19, %v1754_v15 }
 0x159   : > { %v1758_v22 = vadd.f32 %v1757_v21, %v1756_v20 }
 0x15a   : > { %v11908_v25 = vpop.f32.mrb[32].mxu0 }
 0x15b   : > { %v11910_v27 = vpop.f32.mrb[33].mxu0  ;;  %v1760_v29 = vadd.f32 %v1759_v23, %v1758_v22  ;;  %v1765_v39 = vsel %vm1697_vm2, %v11908_v25, 0.0 }
 0x15c   : > { %v1761_v31 = vsel %vm1697_vm2, %v11910_v27, 0.0  ;;  %v11914_v32 = vpop.f32.mrb[34].mxu0 }
 0x15d   : > { %v1762_v33 = vadd.f32 %v1761_v31, %v1760_v29  ;;  %v11916_v34 = vpop.f32.mrb[35].mxu0  ;;  %v1767_v47 = vsel %vm1697_vm2, %v11914_v32, 0.0 }
 0x15e   : > { %v1763_v35 = vsel %vm1697_vm2, %v11916_v34, 0.0 }
 0x15f   : > { %v1764_v38 = vadd.f32 %v1763_v35, %v1762_v33 }
 0x161   : > { %v1766_v41 = vadd.f32 %v1765_v39, %v1764_v38 }
 0x162   : > { %v11924_v48 = vpop.f32.mrb[36].mxu0 }
 0x163   : > { %v11926_v49 = vpop.f32.mrb[37].mxu0  ;;  %v1768_v50 = vadd.f32 %v1767_v47, %v1766_v41  ;;  %v1773_v3 = vsel %vm1697_vm2, %v11924_v48, 0.0 }
 0x164   : > { %v1769_v51 = vsel %vm1697_vm2, %v11926_v49, 0.0  ;;  %v11930_v57 = vpop.f32.mrb[38].mxu0 }
 0x165   : > { %v1770_v59 = vadd.f32 %v1769_v51, %v1768_v50  ;;  %v11932_v61 = vpop.f32.mrb[39].mxu0  ;;  %v1775_v7 = vsel %vm1697_vm2, %v11930_v57, 0.0 }
 0x166   : > { %v1771_v63 = vsel %vm1697_vm2, %v11932_v61, 0.0 }
 0x167   : > { %v1772_v1 = vadd.f32 %v1771_v63, %v1770_v59 }
 0x169   : > { %v1774_v5 = vadd.f32 %v1773_v3, %v1772_v1 }
 0x16a   : > { %v11940_v10 = vpop.f32.mrb[40].mxu0 }
 0x16b   : > { %v11942_v11 = vpop.f32.mrb[41].mxu0  ;;  %v1776_v15 = vadd.f32 %v1775_v7, %v1774_v5  ;;  %v1781_v31 = vsel %vm1697_vm2, %v11940_v10, 0.0 }
 0x16c   : > { %v1777_v19 = vsel %vm1697_vm2, %v11942_v11, 0.0  ;;  %v11946_v20 = vpop.f32.mrb[42].mxu0 }
 0x16d   : > { %v1778_v21 = vadd.f32 %v1777_v19, %v1776_v15  ;;  %v11948_v22 = vpop.f32.mrb[43].mxu0  ;;  %v1783_v35 = vsel %vm1697_vm2, %v11946_v20, 0.0 }
 0x16e   : > { %v1779_v23 = vsel %vm1697_vm2, %v11948_v22, 0.0 }
 0x16f   : > { %v1780_v29 = vadd.f32 %v1779_v23, %v1778_v21 }
 0x171   : > { %v1782_v33 = vadd.f32 %v1781_v31, %v1780_v29 }
 0x172   : > { %v11956_v38 = vpop.f32.mrb[44].mxu0 }
 0x173   : > { %v11958_v39 = vpop.f32.mrb[45].mxu0  ;;  %v1784_v41 = vadd.f32 %v1783_v35, %v1782_v33  ;;  %v1789_v3 = vsel %vm1697_vm2, %v11956_v38, 0.0 }
 0x174   : > { %v1785_v47 = vsel %vm1697_vm2, %v11958_v39, 0.0  ;;  %v11962_v50 = vpop.f32.mrb[46].mxu0 }
 0x175   : > { %16833 = vst [vmem:[#allocation23_spill] sm:$0xff] %v11962_v50  ;;  %v1786_v51 = vadd.f32 %v1785_v47, %v1784_v41  ;;  %v11964_v59 = vpop.f32.mrb[47].mxu0  ;;  %v1791_v7 = vsel %vm1697_vm2, %v11962_v50, 0.0 }
 0x176   : > { %v1787_v63 = vsel %vm1697_vm2, %v11964_v59, 0.0 }
 0x177   : > { %v1788_v1 = vadd.f32 %v1787_v63, %v1786_v51 }
 0x179   : > { %v1790_v5 = vadd.f32 %v1789_v3, %v1788_v1 }
 0x17a   : > { %v11972_v15 = vpop.f32.mrb[48].mxu0 }
 0x17b   : > { %16834 = vst [vmem:[#allocation24_spill] sm:$0xff] %v11972_v15  ;;  %v11974_v19 = vpop.f32.mrb[49].mxu0  ;;  %v1792_v21 = vadd.f32 %v1791_v7, %v1790_v5  ;;  %v1797_v47 = vsel %vm1697_vm2, %v11972_v15, 0.0 }
 0x17c   : > { %16835 = vst [vmem:[#allocation25_spill] sm:$0xff] %v11974_v19  ;;  %v1793_v23 = vsel %vm1697_vm2, %v11974_v19, 0.0  ;;  %v11978_v29 = vpop.f32.mrb[50].mxu0 }
 0x17d   : > { %16836 = vst [vmem:[#allocation26_spill] sm:$0xff] %v11978_v29  ;;  %v1794_v31 = vadd.f32 %v1793_v23, %v1792_v21  ;;  %v11980_v33 = vpop.f32.mrb[51].mxu0  ;;  %v1799_v63 = vsel %vm1697_vm2, %v11978_v29, 0.0 }
 0x17e   : > { %16837 = vst [vmem:[#allocation27_spill] sm:$0xff] %v11980_v33  ;;  %v1795_v35 = vsel %vm1697_vm2, %v11980_v33, 0.0 }
 0x17f   : > { %v1796_v41 = vadd.f32 %v1795_v35, %v1794_v31 }
 0x181   : > { %v1798_v51 = vadd.f32 %v1797_v47, %v1796_v41 }
 0x182   : > { %v11988_v1 = vpop.f32.mrb[52].mxu0 }
 0x183   : > { %16838 = vst [vmem:[#allocation28_spill] sm:$0xff] %v11988_v1  ;;  %v11990_v3 = vpop.f32.mrb[53].mxu0  ;;  %v1800_v5 = vadd.f32 %v1799_v63, %v1798_v51  ;;  %v1805_v41 = vsel %vm1697_vm2, %v11988_v1, 0.0 }
 0x184   : > { %16839 = vst [vmem:[#allocation29_spill] sm:$0xff] %v11990_v3  ;;  %v1801_v7 = vsel %vm1697_vm2, %v11990_v3, 0.0  ;;  %v11994_v21 = vpop.f32.mrb[54].mxu0 }
 0x185   : > { %16840 = vst [vmem:[#allocation30_spill] sm:$0xff] %v11994_v21  ;;  %v1802_v23 = vadd.f32 %v1801_v7, %v1800_v5  ;;  %v11996_v33 = vpop.f32.mrb[55].mxu0  ;;  %v1807_v29 = vsel %vm1697_vm2, %v11994_v21, 0.0 }
 0x186   : > { %16841 = vst [vmem:[#allocation31_spill] sm:$0xff] %v11996_v33  ;;  %v1803_v31 = vsel %vm1697_vm2, %v11996_v33, 0.0 }
 0x187   : > { %v1804_v35 = vadd.f32 %v1803_v31, %v1802_v23 }
 0x189   : > { %v1806_v47 = vadd.f32 %v1805_v41, %v1804_v35 }
 0x18a   : > { %v12004_v51 = vpop.f32.mrb[56].mxu0 }
 0x18b   : > { %16842 = vst [vmem:[#allocation32_spill] sm:$0xff] %v12004_v51  ;;  %v12006_v63 = vpop.f32.mrb[57].mxu0  ;;  %v1808_v3 = vadd.f32 %v1807_v29, %v1806_v47  ;;  %v1813_v35 = vsel %vm1697_vm2, %v12004_v51, 0.0 }
 0x18c   : > { %16843 = vst [vmem:[#allocation33_spill] sm:$0xff] %v12006_v63  ;;  %v1809_v5 = vsel %vm1697_vm2, %v12006_v63, 0.0  ;;  %v12010_v7 = vpop.f32.mrb[58].mxu0 }
 0x18d   : > { %16844 = vst [vmem:[#allocation34_spill] sm:$0xff] %v12010_v7  ;;  %v1810_v15 = vadd.f32 %v1809_v5, %v1808_v3  ;;  %v12012_v33 = vpop.f32.mrb[59].mxu0  ;;  %v1815_v21 = vsel %vm1697_vm2, %v12010_v7, 0.0 }
 0x18e   : > { %16845 = vst [vmem:[#allocation35_spill] sm:$0xff] %v12012_v33  ;;  %v1811_v23 = vsel %vm1697_vm2, %v12012_v33, 0.0 }
 0x18f   : > { %v1812_v31 = vadd.f32 %v1811_v23, %v1810_v15 }
 0x191   : > { %v1814_v41 = vadd.f32 %v1813_v35, %v1812_v31 }
 0x192   : > { %v12020_v29 = vpop.f32.mrb[60].mxu0 }
 0x193   : > { %16846 = vst [vmem:[#allocation36_spill] sm:$0xff] %v12020_v29  ;;  %v12022_v47 = vpop.f32.mrb[61].mxu0  ;;  %v1816_v63 = vadd.f32 %v1815_v21, %v1814_v41  ;;  %v1821_v31 = vsel %vm1697_vm2, %v12020_v29, 0.0 }
 0x194   : > { %16847 = vst [vmem:[#allocation37_spill] sm:$0xff] %v12022_v47  ;;  %v1817_v3 = vsel %vm1697_vm2, %v12022_v47, 0.0  ;;  %v12026_v5 = vpop.f32.mrb[62].mxu0 }
 0x195   : > { %16848 = vst [vmem:[#allocation38_spill] sm:$0xff] %v12026_v5  ;;  %v1818_v1 = vadd.f32 %v1817_v3, %v1816_v63  ;;  %v12028_v33 = vpop.f32.mrb[63].mxu0  ;;  %v1823_v7 = vsel %vm1697_vm2, %v12026_v5, 0.0 }
 0x196   : > { %16849 = vst [vmem:[#allocation39_spill] sm:$0xff] %v12028_v33  ;;  %v1819_v15 = vsel %vm1697_vm2, %v12028_v33, 0.0 }
 0x197   : > { %v1820_v23 = vadd.f32 %v1819_v15, %v1818_v1 }
 0x199   : > { %v1822_v35 = vadd.f32 %v1821_v31, %v1820_v23 }
 0x19a   : > { %v12036_v21 = vpop.f32.mrb[64].mxu0 }
 0x19b   : > { %16850 = vst [vmem:[#allocation40_spill] sm:$0xff] %v12036_v21  ;;  %v12038_v41 = vpop.f32.mrb[65].mxu0  ;;  %v1824_v47 = vadd.f32 %v1823_v7, %v1822_v35  ;;  %v1829_v23 = vsel %vm1697_vm2, %v12036_v21, 0.0 }
 0x19c   : > { %16851 = vst [vmem:[#allocation41_spill] sm:$0xff] %v12038_v41  ;;  %v1825_v63 = vsel %vm1697_vm2, %v12038_v41, 0.0  ;;  %v12042_v3 = vpop.f32.mrb[66].mxu0 }
 0x19d   : > { %16852 = vst [vmem:[#allocation42_spill] sm:$0xff] %v12042_v3  ;;  %v1826_v51 = vadd.f32 %v1825_v63, %v1824_v47  ;;  %v12044_v33 = vpop.f32.mrb[67].mxu0  ;;  %v1831_v5 = vsel %vm1697_vm2, %v12042_v3, 0.0 }
 0x19e   : > { %16853 = vst [vmem:[#allocation43_spill] sm:$0xff] %v12044_v33  ;;  %v1827_v1 = vsel %vm1697_vm2, %v12044_v33, 0.0 }
 0x19f   : > { %v1828_v15 = vadd.f32 %v1827_v1, %v1826_v51 }
 0x1a1   : > { %v1830_v31 = vadd.f32 %v1829_v23, %v1828_v15 }
 0x1a2   : > { %v12052_v7 = vpop.f32.mrb[68].mxu0 }
 0x1a3   : > { %16854 = vst [vmem:[#allocation44_spill] sm:$0xff] %v12052_v7  ;;  %v12054_v35 = vpop.f32.mrb[69].mxu0  ;;  %v1832_v41 = vadd.f32 %v1831_v5, %v1830_v31  ;;  %v1837_v15 = vsel %vm1697_vm2, %v12052_v7, 0.0 }
 0x1a4   : > { %16855 = vst [vmem:[#allocation45_spill] sm:$0xff] %v12054_v35  ;;  %v1833_v47 = vsel %vm1697_vm2, %v12054_v35, 0.0  ;;  %v12058_v63 = vpop.f32.mrb[70].mxu0 }
 0x1a5   : > { %16856 = vst [vmem:[#allocation46_spill] sm:$0xff] %v12058_v63  ;;  %v1834_v29 = vadd.f32 %v1833_v47, %v1832_v41  ;;  %v12060_v33 = vpop.f32.mrb[71].mxu0  ;;  %v1839_v3 = vsel %vm1697_vm2, %v12058_v63, 0.0 }
 0x1a6   : > { %16857 = vst [vmem:[#allocation47_spill] sm:$0xff] %v12060_v33  ;;  %v1835_v51 = vsel %vm1697_vm2, %v12060_v33, 0.0 }
 0x1a7   : > { %v1836_v1 = vadd.f32 %v1835_v51, %v1834_v29 }
 0x1a9   : > { %v1838_v23 = vadd.f32 %v1837_v15, %v1836_v1 }
 0x1aa   : > { %v12068_v5 = vpop.f32.mrb[72].mxu0 }
 0x1ab   : > { %16858 = vst [vmem:[#allocation48_spill] sm:$0xff] %v12068_v5  ;;  %v12070_v31 = vpop.f32.mrb[73].mxu0  ;;  %v1840_v35 = vadd.f32 %v1839_v3, %v1838_v23  ;;  %v1845_v1 = vsel %vm1697_vm2, %v12068_v5, 0.0 }
 0x1ac   : > { %16859 = vst [vmem:[#allocation49_spill] sm:$0xff] %v12070_v31  ;;  %v1841_v41 = vsel %vm1697_vm2, %v12070_v31, 0.0  ;;  %v12074_v47 = vpop.f32.mrb[74].mxu0 }
 0x1ad   : > { %16860 = vst [vmem:[#allocation50_spill] sm:$0xff] %v12074_v47  ;;  %v1842_v21 = vadd.f32 %v1841_v41, %v1840_v35  ;;  %v12076_v33 = vpop.f32.mrb[75].mxu0  ;;  %v1847_v63 = vsel %vm1697_vm2, %v12074_v47, 0.0 }
 0x1ae   : > { %16861 = vst [vmem:[#allocation51_spill] sm:$0xff] %v12076_v33  ;;  %v1843_v29 = vsel %vm1697_vm2, %v12076_v33, 0.0 }
 0x1af   : > { %v1844_v51 = vadd.f32 %v1843_v29, %v1842_v21 }
 0x1b1   : > { %v1846_v15 = vadd.f32 %v1845_v1, %v1844_v51 }
 0x1b2   : > { %v12084_v3 = vpop.f32.mrb[76].mxu0 }
 0x1b3   : > { %v12086_v23 = vpop.f32.mrb[77].mxu0  ;;  %v1848_v31 = vadd.f32 %v1847_v63, %v1846_v15  ;;  %v1853_v51 = vsel %vm1697_vm2, %v12084_v3, 0.0 }
 0x1b4   : > { %16862 = vst [vmem:[#allocation52_spill] sm:$0xff] %v12086_v23  ;;  %v1849_v35 = vsel %vm1697_vm2, %v12086_v23, 0.0  ;;  %v12090_v41 = vpop.f32.mrb[78].mxu0 }
 0x1b5   : > { %v1850_v7 = vadd.f32 %v1849_v35, %v1848_v31  ;;  %v12092_v33 = vpop.f32.mrb[79].mxu0  ;;  %v1856_v63 = vsel %vm1855_vm3, %v12090_v41, 0.0 }
 0x1b6   : > { %16863 = vst [vmem:[#allocation53_spill] sm:$0xff] %v12092_v33  ;;  %v1851_v21 = vsel %vm1697_vm2, %v12092_v33, 0.0 }
 0x1b7   : > { %v1852_v29 = vadd.f32 %v1851_v21, %v1850_v7 }
 0x1b9   : > { %v1854_v1 = vadd.f32 %v1853_v51, %v1852_v29  ;;  %v16872_v29 = vld [vmem:[#allocation27_spill] sm:$0xff]  ;;  %v16874_v51 = vld [vmem:[#allocation24_spill] sm:$0xff] }
 0x1bb   : > { %v1857_v15 = vadd.f32 %v1856_v63, %v1854_v1  ;;  %v16876_v1 = vld [vmem:[#allocation26_spill] sm:$0xff]  ;;  %v16878_v63 = vld [vmem:[#allocation29_spill] sm:$0xff] }
 0x1bd   : > { %v1858_v47 = vrot.slane %v1857_v15, 4 }
 0x1bf   : > { %v1859_v23 = vadd.f32 %v1858_v47, %v1857_v15 }
 0x1c1   : > { %v1860_v5 = vrot.slane %v1859_v23, 2 }
 0x1c3   : > { %v1861_v19 = vadd.f32 %v1860_v5, %v1859_v23  ;;  %v16868_v5 = vld [vmem:[#allocation23_spill] sm:$0xff]  ;;  %v16870_v23 = vld [vmem:[#allocation25_spill] sm:$0xff] }
 0x1c5   : > { %v1862_v31 = vrot.slane %v1861_v19, 1 }
 0x1c7   : > { %v1863_v35 = vadd.f32 %v1862_v31, %v1861_v19  ;;  %v16880_v31 = vld [vmem:[#allocation31_spill] sm:$0xff] }
 0x1c9   : > { %v12100_v50 = vmul.f32 0.0015649452, %v1863_v35 }
 0x1cb   : > { %v12104_v33 = vsub.f32 %v11782_v43, %v12100_v50  ;;  %v12108_v7 = vsub.f32 %v11786_v45, %v12100_v50  ;;  %v12112_v21 = vsub.f32 %v11780_v42, %v12100_v50  ;;  %v12116_v47 = vsub.f32 %v11784_v44, %v12100_v50 }
 0x1cc   : > { %v12120_v19 = vsub.f32 %v11798_v54, %v12100_v50  ;;  %v12124_v43 = vsub.f32 %v11804_v58, %v12100_v50  ;;  %v12128_v45 = vsub.f32 %v11796_v52, %v12100_v50  ;;  %v12132_v42 = vsub.f32 %v11802_v56, %v12100_v50 }
 0x1cd   : > { %16864 = vst [vmem:[#allocation54_spill] sm:$0xff] %v12104_v33  ;;  %16865 = vst [vmem:[#allocation55_spill] sm:$0xff] %v12108_v7  ;;  %v12136_v44 = vsub.f32 %v11814_v2, %v12100_v50  ;;  %v12140_v54 = vsub.f32 %v11820_v6, %v12100_v50  ;;  %v12144_v58 = vsub.f32 %v11812_v0, %v12100_v50 }
 0x1ce   : > { %16866 = vst [vmem:[#allocation56_spill] sm:$0xff] %v12112_v21  ;;  %16867 = vst [vmem:[#allocation57_spill] sm:$0xff] %v12116_v47  ;;  %v12148_v52 = vsub.f32 %v11818_v4, %v12100_v50  ;;  %v12152_v56 = vsub.f32 %v11830_v14, %v12100_v50  ;;  %v12156_v2 = vsub.f32 %v11836_v18, %v12100_v50 }
 0x1cf   : > { %v12160_v6 = vsub.f32 %v11828_v12, %v12100_v50  ;;  %v12164_v0 = vsub.f32 %v11834_v16, %v12100_v50  ;;  %v12168_v4 = vsub.f32 %v11846_v26, %v12100_v50  ;;  %v12172_v14 = vsub.f32 %v11852_v30, %v12100_v50 }
 0x1d0   : > { %v12176_v18 = vsub.f32 %v11844_v24, %v12100_v50  ;;  %v12180_v12 = vsub.f32 %v11850_v28, %v12100_v50  ;;  %v12184_v16 = vsub.f32 %v11862_v37, %v12100_v50  ;;  %v12188_v26 = vsub.f32 %v11868_v46, %v12100_v50 }
 0x1d1   : > { %v12192_v30 = vsub.f32 %v11860_v36, %v12100_v50  ;;  %v12196_v24 = vsub.f32 %v11866_v40, %v12100_v50  ;;  %v12200_v28 = vsub.f32 %v11878_v55, %v12100_v50  ;;  %v12204_v37 = vsub.f32 %v11884_v62, %v12100_v50 }
 0x1d2   : > { %v12208_v46 = vsub.f32 %v11876_v53, %v12100_v50  ;;  %v12212_v36 = vsub.f32 %v11882_v60, %v12100_v50  ;;  %v12216_v40 = vsub.f32 %v11894_v9, %v12100_v50  ;;  %v12220_v55 = vsub.f32 %v11900_v17, %v12100_v50 }
 0x1d3   : > { %v12224_v62 = vsub.f32 %v11892_v8, %v12100_v50  ;;  %v12228_v53 = vsub.f32 %v11898_v13, %v12100_v50  ;;  %v12232_v60 = vsub.f32 %v11910_v27, %v12100_v50  ;;  %v12236_v9 = vsub.f32 %v11916_v34, %v12100_v50 }
 0x1d4   : > { %v12240_v17 = vsub.f32 %v11908_v25, %v12100_v50  ;;  %v12244_v8 = vsub.f32 %v11914_v32, %v12100_v50  ;;  %v12248_v13 = vsub.f32 %v11926_v49, %v12100_v50  ;;  %v12252_v27 = vsub.f32 %v11932_v61, %v12100_v50 }
 0x1d5   : > { %v12256_v34 = vsub.f32 %v11924_v48, %v12100_v50  ;;  %v12260_v25 = vsub.f32 %v11930_v57, %v12100_v50  ;;  %v12264_v32 = vsub.f32 %v11942_v11, %v12100_v50  ;;  %v12268_v49 = vsub.f32 %v11948_v22, %v12100_v50 }
 0x1d6   : > { %v12272_v61 = vsub.f32 %v11940_v10, %v12100_v50  ;;  %v12276_v48 = vsub.f32 %v11946_v20, %v12100_v50  ;;  %v12280_v57 = vsub.f32 %v11958_v39, %v12100_v50  ;;  %v12284_v11 = vsub.f32 %v11964_v59, %v12100_v50 }
 0x1d7   : > { %v12288_v22 = vsub.f32 %v11956_v38, %v12100_v50  ;;  %v12292_v10 = vsub.f32 %v16868_v5, %v12100_v50  ;;  %v12296_v20 = vsub.f32 %v16870_v23, %v12100_v50  ;;  %v12300_v39 = vsub.f32 %v16872_v29, %v12100_v50  ;;  %v16882_v5 = vld [vmem:[#allocation28_spill] sm:$0xff]  ;;  %v16884_v29 = vld [vmem:[#allocation30_spill] sm:$0xff] }
 0x1d8   : > { %v12304_v59 = vsub.f32 %v16874_v51, %v12100_v50  ;;  %v12308_v38 = vsub.f32 %v16876_v1, %v12100_v50  ;;  %v12312_v15 = vsub.f32 %v16878_v63, %v12100_v50  ;;  %v12316_v35 = vsub.f32 %v16880_v31, %v12100_v50 }
 0x1d9   : > { %16869 = vst [vmem:[#allocation23_spill] sm:$0xff] %v12292_v10  ;;  %16871 = vst [vmem:[#allocation25_spill] sm:$0xff] %v12296_v20  ;;  %v12320_v23 = vsub.f32 %v16882_v5, %v12100_v50  ;;  %v12324_v51 = vsub.f32 %v16884_v29, %v12100_v50 }
 0x1da   : > { %16873 = vst [vmem:[#allocation27_spill] sm:$0xff] %v12300_v39  ;;  %16875 = vst [vmem:[#allocation24_spill] sm:$0xff] %v12304_v59  ;;  %v16886_v59 = vld [vmem:[#allocation33_spill] sm:$0xff] }
 0x1db   : > { %16877 = vst [vmem:[#allocation26_spill] sm:$0xff] %v12308_v38  ;;  %16879 = vst [vmem:[#allocation29_spill] sm:$0xff] %v12312_v15  ;;  %v12328_v1 = vsub.f32 %v16886_v59, %v12100_v50  ;;  %v16888_v38 = vld [vmem:[#allocation35_spill] sm:$0xff]  ;;  %v16890_v15 = vld [vmem:[#allocation32_spill] sm:$0xff] }
 0x1dc   : > { %16881 = vst [vmem:[#allocation31_spill] sm:$0xff] %v12316_v35  ;;  %16883 = vst [vmem:[#allocation28_spill] sm:$0xff] %v12320_v23  ;;  %v12332_v63 = vsub.f32 %v16888_v38, %v12100_v50  ;;  %v12336_v31 = vsub.f32 %v16890_v15, %v12100_v50  ;;  %v16892_v35 = vld [vmem:[#allocation34_spill] sm:$0xff]  ;;  %v16894_v23 = vld [vmem:[#allocation37_spill] sm:$0xff] }
 0x1dd   : > { %16885 = vst [vmem:[#allocation30_spill] sm:$0xff] %v12324_v51  ;;  %16887 = vst [vmem:[#allocation33_spill] sm:$0xff] %v12328_v1  ;;  %v12340_v5 = vsub.f32 %v16892_v35, %v12100_v50  ;;  %v12344_v29 = vsub.f32 %v16894_v23, %v12100_v50  ;;  %v16896_v51 = vld [vmem:[#allocation39_spill] sm:$0xff]  ;;  %v16898_v1 = vld [vmem:[#allocation36_spill] sm:$0xff] }
 0x1de   : > { %16889 = vst [vmem:[#allocation35_spill] sm:$0xff] %v12332_v63  ;;  %16891 = vst [vmem:[#allocation32_spill] sm:$0xff] %v12336_v31  ;;  %v12348_v59 = vsub.f32 %v16896_v51, %v12100_v50  ;;  %v12352_v38 = vsub.f32 %v16898_v1, %v12100_v50  ;;  %v16900_v63 = vld [vmem:[#allocation38_spill] sm:$0xff]  ;;  %v16902_v31 = vld [vmem:[#allocation41_spill] sm:$0xff] }
 0x1df   : > { %16893 = vst [vmem:[#allocation34_spill] sm:$0xff] %v12340_v5  ;;  %16895 = vst [vmem:[#allocation37_spill] sm:$0xff] %v12344_v29  ;;  %v12356_v15 = vsub.f32 %v16900_v63, %v12100_v50  ;;  %v12360_v35 = vsub.f32 %v16902_v31, %v12100_v50  ;;  %v16904_v5 = vld [vmem:[#allocation43_spill] sm:$0xff]  ;;  %v16906_v29 = vld [vmem:[#allocation40_spill] sm:$0xff] }
 0x1e0   : > { %16897 = vst [vmem:[#allocation39_spill] sm:$0xff] %v12348_v59  ;;  %16899 = vst [vmem:[#allocation36_spill] sm:$0xff] %v12352_v38  ;;  %v12364_v23 = vsub.f32 %v16904_v5, %v12100_v50  ;;  %v12368_v51 = vsub.f32 %v16906_v29, %v12100_v50  ;;  %v16908_v59 = vld [vmem:[#allocation42_spill] sm:$0xff]  ;;  %v16910_v38 = vld [vmem:[#allocation45_spill] sm:$0xff] }
 0x1e1   : > { %16901 = vst [vmem:[#allocation38_spill] sm:$0xff] %v12356_v15  ;;  %16903 = vst [vmem:[#allocation41_spill] sm:$0xff] %v12360_v35  ;;  %v12372_v1 = vsub.f32 %v16908_v59, %v12100_v50  ;;  %v12376_v63 = vsub.f32 %v16910_v38, %v12100_v50  ;;  %v16912_v15 = vld [vmem:[#allocation47_spill] sm:$0xff]  ;;  %v16914_v35 = vld [vmem:[#allocation44_spill] sm:$0xff] }
 0x1e2   : > { %16905 = vst [vmem:[#allocation43_spill] sm:$0xff] %v12364_v23  ;;  %16907 = vst [vmem:[#allocation40_spill] sm:$0xff] %v12368_v51  ;;  %v12380_v31 = vsub.f32 %v16912_v15, %v12100_v50  ;;  %v12384_v5 = vsub.f32 %v16914_v35, %v12100_v50  ;;  %v16916_v23 = vld [vmem:[#allocation46_spill] sm:$0xff]  ;;  %v16918_v51 = vld [vmem:[#allocation49_spill] sm:$0xff] }
 0x1e3   : > { %16909 = vst [vmem:[#allocation42_spill] sm:$0xff] %v12372_v1  ;;  %16911 = vst [vmem:[#allocation45_spill] sm:$0xff] %v12376_v63  ;;  %v12388_v29 = vsub.f32 %v16916_v23, %v12100_v50  ;;  %v12392_v59 = vsub.f32 %v16918_v51, %v12100_v50  ;;  %v16920_v1 = vld [vmem:[#allocation51_spill] sm:$0xff]  ;;  %v16922_v63 = vld [vmem:[#allocation48_spill] sm:$0xff] }
 0x1e4   : > { %16913 = vst [vmem:[#allocation47_spill] sm:$0xff] %v12380_v31  ;;  %16915 = vst [vmem:[#allocation44_spill] sm:$0xff] %v12384_v5  ;;  %v12396_v38 = vsub.f32 %v16920_v1, %v12100_v50  ;;  %v12400_v15 = vsub.f32 %v16922_v63, %v12100_v50  ;;  %v16924_v31 = vld [vmem:[#allocation50_spill] sm:$0xff]  ;;  %v16926_v5 = vld [vmem:[#allocation52_spill] sm:$0xff]  ;;  %v12416_v1 = vsub.f32 %v12084_v3, %v12100_v50 }
 0x1e5   : > { %16917 = vst [vmem:[#allocation46_spill] sm:$0xff] %v12388_v29  ;;  %16919 = vst [vmem:[#allocation49_spill] sm:$0xff] %v12392_v59  ;;  %v12404_v35 = vsub.f32 %v16924_v31, %v12100_v50  ;;  %v12408_v23 = vsub.f32 %v16926_v5, %v12100_v50  ;;  %v16928_v29 = vld [vmem:[#allocation53_spill] sm:$0xff]  ;;  %v12420_v63 = vsub.f32 %v12090_v41, %v12100_v50 }
 0x1e6   : > { %16921 = vst [vmem:[#allocation51_spill] sm:$0xff] %v12396_v38  ;;  %16923 = vst [vmem:[#allocation48_spill] sm:$0xff] %v12400_v15  ;;  %v12412_v51 = vsub.f32 %v16928_v29, %v12100_v50  ;;  %v1946_v31 = vmul.f32 %v12104_v33, %v12104_v33  ;;  %v1948_v5 = vmul.f32 %v12112_v21, %v12112_v21 }
 0x1e7   : > { %16925 = vst [vmem:[#allocation50_spill] sm:$0xff] %v12404_v35  ;;  %16927 = vst [vmem:[#allocation52_spill] sm:$0xff] %v12408_v23  ;;  %v1947_v35 = vmul.f32 %v12108_v7, %v12108_v7  ;;  %v1949_v29 = vmul.f32 %v12116_v47, %v12116_v47  ;;  %v1950_v50 = vmul.f32 %v12120_v19, %v12120_v19 }
 0x1e8   : > { %16929 = vst [vmem:[#allocation53_spill] sm:$0xff] %v12412_v51  ;;  %16930 = vst [vmem:[#allocation58_spill] sm:$0xff] %v12416_v1  ;;  %v2026_v51 = vsel %vm1697_vm2, %v1946_v31, 0.0  ;;  %v2029_v41 = vsel %vm1697_vm2, %v1948_v5, 0.0  ;;  %v1951_v7 = vmul.f32 %v12124_v43, %v12124_v43  ;;  %v1952_v47 = vmul.f32 %v12128_v45, %v12128_v45 }
 0x1e9   : > { %16931 = vst [vmem:[#allocation59_spill] sm:$0xff] %v12420_v63  ;;  %v2027_v3 = vsel %vm1697_vm2, %v1947_v35, 0.0  ;;  %v2031_v63 = vsel %vm1697_vm2, %v1949_v29, 0.0  ;;  %v2033_v31 = vsel %vm1697_vm2, %v1950_v50, 0.0  ;;  %v1953_v35 = vmul.f32 %v12132_v42, %v12132_v42 }
 0x1ea   : > { %v2028_v1 = vadd.f32 %v2027_v3, %v2026_v51  ;;  %v2035_v51 = vsel %vm1697_vm2, %v1951_v7, 0.0  ;;  %v2037_v5 = vsel %vm1697_vm2, %v1952_v47, 0.0  ;;  %v1957_v7 = vmul.f32 %v12148_v52, %v12148_v52 }
 0x1eb   : > { %v1958_v47 = vmul.f32 %v12152_v56, %v12152_v56 }
 0x1ec   : > { %v2030_v33 = vadd.f32 %v2029_v41, %v2028_v1  ;;  %v1954_v1 = vmul.f32 %v12136_v44, %v12136_v44 }
 0x1ee   : > { %v2032_v21 = vadd.f32 %v2031_v63, %v2030_v33  ;;  %v1955_v33 = vmul.f32 %v12140_v54, %v12140_v54  ;;  %v2039_v63 = vsel %vm1697_vm2, %v1953_v35, 0.0  ;;  %v2041_v50 = vsel %vm1697_vm2, %v1954_v1, 0.0 }
 0x1ef   : > { %v1959_v35 = vmul.f32 %v12156_v2, %v12156_v2  ;;  %v1960_v1 = vmul.f32 %v12160_v6, %v12160_v6 }
 0x1f0   : > { %v2034_v23 = vadd.f32 %v2033_v31, %v2032_v21  ;;  %v1956_v21 = vmul.f32 %v12144_v58, %v12144_v58 }
 0x1f2   : > { %v2036_v3 = vadd.f32 %v2035_v51, %v2034_v23  ;;  %v2043_v23 = vsel %vm1697_vm2, %v1955_v33, 0.0  ;;  %v1961_v33 = vmul.f32 %v12164_v0, %v12164_v0 }
 0x1f4   : > { %v2038_v41 = vadd.f32 %v2037_v5, %v2036_v3  ;;  %v2045_v3 = vsel %vm1697_vm2, %v1956_v21, 0.0  ;;  %v1962_v21 = vmul.f32 %v12168_v4, %v12168_v4 }
 0x1f6   : > { %v2040_v29 = vadd.f32 %v2039_v63, %v2038_v41  ;;  %v2047_v41 = vsel %vm1697_vm2, %v1957_v7, 0.0  ;;  %v1963_v7 = vmul.f32 %v12172_v14, %v12172_v14 }
 0x1f8   : > { %v2042_v31 = vadd.f32 %v2041_v50, %v2040_v29  ;;  %v2049_v29 = vsel %vm1697_vm2, %v1958_v47, 0.0  ;;  %v1964_v47 = vmul.f32 %v12176_v18, %v12176_v18 }
 0x1fa   : > { %v2044_v51 = vadd.f32 %v2043_v23, %v2042_v31  ;;  %v2051_v31 = vsel %vm1697_vm2, %v1959_v35, 0.0  ;;  %v1965_v35 = vmul.f32 %v12180_v12, %v12180_v12 }
 0x1fc   : > { %v2046_v5 = vadd.f32 %v2045_v3, %v2044_v51  ;;  %v2053_v51 = vsel %vm1697_vm2, %v1960_v1, 0.0  ;;  %v1966_v1 = vmul.f32 %v12184_v16, %v12184_v16 }
 0x1fe   : > { %v2048_v63 = vadd.f32 %v2047_v41, %v2046_v5  ;;  %v2055_v5 = vsel %vm1697_vm2, %v1961_v33, 0.0  ;;  %v1967_v33 = vmul.f32 %v12188_v26, %v12188_v26 }
 0x200   : > { %v2050_v50 = vadd.f32 %v2049_v29, %v2048_v63  ;;  %v2057_v63 = vsel %vm1697_vm2, %v1962_v21, 0.0  ;;  %v1968_v21 = vmul.f32 %v12192_v30, %v12192_v30 }
 0x202   : > { %v2052_v23 = vadd.f32 %v2051_v31, %v2050_v50  ;;  %v2059_v50 = vsel %vm1697_vm2, %v1963_v7, 0.0  ;;  %v1969_v7 = vmul.f32 %v12196_v24, %v12196_v24 }
 0x204   : > { %v2054_v3 = vadd.f32 %v2053_v51, %v2052_v23  ;;  %v2061_v23 = vsel %vm1697_vm2, %v1964_v47, 0.0  ;;  %v1970_v47 = vmul.f32 %v12200_v28, %v12200_v28 }
 0x206   : > { %v2056_v41 = vadd.f32 %v2055_v5, %v2054_v3  ;;  %v2063_v3 = vsel %vm1697_vm2, %v1965_v35, 0.0  ;;  %v1971_v35 = vmul.f32 %v12204_v37, %v12204_v37 }
 0x208   : > { %v2058_v29 = vadd.f32 %v2057_v63, %v2056_v41  ;;  %v2065_v41 = vsel %vm1697_vm2, %v1966_v1, 0.0  ;;  %v1972_v1 = vmul.f32 %v12208_v46, %v12208_v46 }
 0x20a   : > { %v2060_v31 = vadd.f32 %v2059_v50, %v2058_v29  ;;  %v2067_v29 = vsel %vm1697_vm2, %v1967_v33, 0.0  ;;  %v1973_v33 = vmul.f32 %v12212_v36, %v12212_v36 }
 0x20c   : > { %v2062_v51 = vadd.f32 %v2061_v23, %v2060_v31  ;;  %v2069_v31 = vsel %vm1697_vm2, %v1968_v21, 0.0  ;;  %v1974_v21 = vmul.f32 %v12216_v40, %v12216_v40 }
 0x20e   : > { %v2064_v5 = vadd.f32 %v2063_v3, %v2062_v51  ;;  %v2071_v51 = vsel %vm1697_vm2, %v1969_v7, 0.0  ;;  %v1975_v7 = vmul.f32 %v12220_v55, %v12220_v55 }
 0x210   : > { %v2066_v63 = vadd.f32 %v2065_v41, %v2064_v5  ;;  %v2073_v5 = vsel %vm1697_vm2, %v1970_v47, 0.0  ;;  %v1976_v47 = vmul.f32 %v12224_v62, %v12224_v62 }
 0x212   : > { %v2068_v50 = vadd.f32 %v2067_v29, %v2066_v63  ;;  %v2075_v63 = vsel %vm1697_vm2, %v1971_v35, 0.0  ;;  %v1977_v35 = vmul.f32 %v12228_v53, %v12228_v53 }
 0x214   : > { %v2070_v23 = vadd.f32 %v2069_v31, %v2068_v50  ;;  %v2077_v50 = vsel %vm1697_vm2, %v1972_v1, 0.0  ;;  %v1978_v1 = vmul.f32 %v12232_v60, %v12232_v60 }
 0x216   : > { %v2072_v3 = vadd.f32 %v2071_v51, %v2070_v23  ;;  %v2079_v23 = vsel %vm1697_vm2, %v1973_v33, 0.0  ;;  %v1979_v33 = vmul.f32 %v12236_v9, %v12236_v9 }
 0x218   : > { %v2074_v41 = vadd.f32 %v2073_v5, %v2072_v3  ;;  %v2081_v3 = vsel %vm1697_vm2, %v1974_v21, 0.0  ;;  %v1980_v21 = vmul.f32 %v12240_v17, %v12240_v17 }
 0x21a   : > { %v2076_v29 = vadd.f32 %v2075_v63, %v2074_v41  ;;  %v2083_v41 = vsel %vm1697_vm2, %v1975_v7, 0.0  ;;  %v1981_v7 = vmul.f32 %v12244_v8, %v12244_v8 }
 0x21c   : > { %v2078_v31 = vadd.f32 %v2077_v50, %v2076_v29  ;;  %v2085_v29 = vsel %vm1697_vm2, %v1976_v47, 0.0  ;;  %v1982_v47 = vmul.f32 %v12248_v13, %v12248_v13 }
 0x21e   : > { %v2080_v51 = vadd.f32 %v2079_v23, %v2078_v31  ;;  %v2087_v31 = vsel %vm1697_vm2, %v1977_v35, 0.0  ;;  %v1983_v35 = vmul.f32 %v12252_v27, %v12252_v27 }
 0x220   : > { %v2082_v5 = vadd.f32 %v2081_v3, %v2080_v51  ;;  %v2089_v51 = vsel %vm1697_vm2, %v1978_v1, 0.0  ;;  %v1984_v1 = vmul.f32 %v12256_v34, %v12256_v34 }
 0x222   : > { %v2084_v63 = vadd.f32 %v2083_v41, %v2082_v5  ;;  %v2091_v5 = vsel %vm1697_vm2, %v1979_v33, 0.0  ;;  %v1985_v33 = vmul.f32 %v12260_v25, %v12260_v25 }
 0x224   : > { %v2086_v50 = vadd.f32 %v2085_v29, %v2084_v63  ;;  %v2093_v63 = vsel %vm1697_vm2, %v1980_v21, 0.0  ;;  %v1986_v21 = vmul.f32 %v12264_v32, %v12264_v32 }
 0x226   : > { %v2088_v23 = vadd.f32 %v2087_v31, %v2086_v50  ;;  %v2095_v50 = vsel %vm1697_vm2, %v1981_v7, 0.0  ;;  %v1987_v7 = vmul.f32 %v12268_v49, %v12268_v49 }
 0x228   : > { %v2090_v3 = vadd.f32 %v2089_v51, %v2088_v23  ;;  %v2097_v23 = vsel %vm1697_vm2, %v1982_v47, 0.0  ;;  %v1988_v47 = vmul.f32 %v12272_v61, %v12272_v61 }
 0x22a   : > { %v2092_v41 = vadd.f32 %v2091_v5, %v2090_v3  ;;  %v2099_v3 = vsel %vm1697_vm2, %v1983_v35, 0.0  ;;  %v1989_v35 = vmul.f32 %v12276_v48, %v12276_v48 }
 0x22c   : > { %v2094_v29 = vadd.f32 %v2093_v63, %v2092_v41  ;;  %v2101_v41 = vsel %vm1697_vm2, %v1984_v1, 0.0  ;;  %v1990_v1 = vmul.f32 %v12280_v57, %v12280_v57 }
 0x22e   : > { %v2096_v31 = vadd.f32 %v2095_v50, %v2094_v29  ;;  %v2103_v29 = vsel %vm1697_vm2, %v1985_v33, 0.0  ;;  %v1991_v33 = vmul.f32 %v12284_v11, %v12284_v11 }
 0x230   : > { %v2098_v51 = vadd.f32 %v2097_v23, %v2096_v31  ;;  %v2105_v31 = vsel %vm1697_vm2, %v1986_v21, 0.0  ;;  %v1992_v21 = vmul.f32 %v12288_v22, %v12288_v22 }
 0x232   : > { %v2100_v5 = vadd.f32 %v2099_v3, %v2098_v51  ;;  %v2107_v51 = vsel %vm1697_vm2, %v1987_v7, 0.0  ;;  %v1993_v7 = vmul.f32 %v12292_v10, %v12292_v10 }
 0x234   : > { %v2102_v63 = vadd.f32 %v2101_v41, %v2100_v5  ;;  %v2109_v5 = vsel %vm1697_vm2, %v1988_v47, 0.0  ;;  %v1994_v47 = vmul.f32 %v12296_v20, %v12296_v20 }
 0x236   : > { %v2104_v50 = vadd.f32 %v2103_v29, %v2102_v63  ;;  %v2111_v63 = vsel %vm1697_vm2, %v1989_v35, 0.0  ;;  %v1995_v35 = vmul.f32 %v12300_v39, %v12300_v39 }
 0x238   : > { %v2106_v23 = vadd.f32 %v2105_v31, %v2104_v50  ;;  %v2113_v50 = vsel %vm1697_vm2, %v1990_v1, 0.0  ;;  %v16932_v1 = vld [vmem:[#allocation24_spill] sm:$0xff] }
 0x23a   : > { %v2108_v3 = vadd.f32 %v2107_v51, %v2106_v23  ;;  %v2115_v23 = vsel %vm1697_vm2, %v1991_v33, 0.0  ;;  %v16933_v33 = vld [vmem:[#allocation26_spill] sm:$0xff] }
 0x23c   : > { %v2110_v41 = vadd.f32 %v2109_v5, %v2108_v3  ;;  %v2117_v3 = vsel %vm1697_vm2, %v1992_v21, 0.0  ;;  %v16934_v21 = vld [vmem:[#allocation29_spill] sm:$0xff] }
 0x23e   : > { %v2112_v29 = vadd.f32 %v2111_v63, %v2110_v41  ;;  %v2119_v41 = vsel %vm1697_vm2, %v1993_v7, 0.0  ;;  %v16935_v7 = vld [vmem:[#allocation31_spill] sm:$0xff] }
 0x240   : > { %v2114_v31 = vadd.f32 %v2113_v50, %v2112_v29  ;;  %v1996_v29 = vmul.f32 %v16932_v1, %v16932_v1  ;;  %v2121_v50 = vsel %vm1697_vm2, %v1994_v47, 0.0  ;;  %v16936_v47 = vld [vmem:[#allocation28_spill] sm:$0xff] }
 0x242   : > { %v2116_v51 = vadd.f32 %v2115_v23, %v2114_v31  ;;  %v1997_v31 = vmul.f32 %v16933_v33, %v16933_v33  ;;  %v2123_v23 = vsel %vm1697_vm2, %v1995_v35, 0.0  ;;  %v16937_v35 = vld [vmem:[#allocation30_spill] sm:$0xff] }
 0x244   : > { %v2118_v5 = vadd.f32 %v2117_v3, %v2116_v51  ;;  %v1998_v51 = vmul.f32 %v16934_v21, %v16934_v21  ;;  %v2125_v3 = vsel %vm1697_vm2, %v1996_v29, 0.0  ;;  %v16938_v29 = vld [vmem:[#allocation33_spill] sm:$0xff] }
 0x246   : > { %v2120_v63 = vadd.f32 %v2119_v41, %v2118_v5  ;;  %v1999_v5 = vmul.f32 %v16935_v7, %v16935_v7  ;;  %v2127_v41 = vsel %vm1697_vm2, %v1997_v31, 0.0  ;;  %v16939_v31 = vld [vmem:[#allocation35_spill] sm:$0xff] }
 0x248   : > { %v2122_v10 = vadd.f32 %v2121_v50, %v2120_v63  ;;  %v2000_v63 = vmul.f32 %v16936_v47, %v16936_v47  ;;  %v2129_v50 = vsel %vm1697_vm2, %v1998_v51, 0.0  ;;  %v16940_v51 = vld [vmem:[#allocation32_spill] sm:$0xff] }
 0x24a   : > { %v2124_v20 = vadd.f32 %v2123_v23, %v2122_v10  ;;  %v2001_v10 = vmul.f32 %v16937_v35, %v16937_v35  ;;  %v2131_v23 = vsel %vm1697_vm2, %v1999_v5, 0.0  ;;  %v16941_v5 = vld [vmem:[#allocation34_spill] sm:$0xff] }
 0x24c   : > { %v2126_v39 = vadd.f32 %v2125_v3, %v2124_v20  ;;  %v2002_v20 = vmul.f32 %v16938_v29, %v16938_v29  ;;  %v2133_v3 = vsel %vm1697_vm2, %v2000_v63, 0.0  ;;  %v16942_v63 = vld [vmem:[#allocation37_spill] sm:$0xff] }
 0x24e   : > { %v2128_v1 = vadd.f32 %v2127_v41, %v2126_v39  ;;  %v2003_v39 = vmul.f32 %v16939_v31, %v16939_v31  ;;  %v2135_v41 = vsel %vm1697_vm2, %v2001_v10, 0.0  ;;  %v16943_v10 = vld [vmem:[#allocation39_spill] sm:$0xff] }
 0x250   : > { %v2130_v33 = vadd.f32 %v2129_v50, %v2128_v1  ;;  %v2004_v1 = vmul.f32 %v16940_v51, %v16940_v51  ;;  %v2137_v50 = vsel %vm1697_vm2, %v2002_v20, 0.0  ;;  %v16944_v20 = vld [vmem:[#allocation36_spill] sm:$0xff] }
 0x252   : > { %v2132_v21 = vadd.f32 %v2131_v23, %v2130_v33  ;;  %v2005_v33 = vmul.f32 %v16941_v5, %v16941_v5  ;;  %v2139_v23 = vsel %vm1697_vm2, %v2003_v39, 0.0  ;;  %v16945_v39 = vld [vmem:[#allocation38_spill] sm:$0xff] }
 0x254   : > { %v2134_v7 = vadd.f32 %v2133_v3, %v2132_v21  ;;  %v2006_v21 = vmul.f32 %v16942_v63, %v16942_v63  ;;  %v2141_v3 = vsel %vm1697_vm2, %v2004_v1, 0.0  ;;  %v16946_v1 = vld [vmem:[#allocation41_spill] sm:$0xff] }
 0x256   : > { %v2136_v47 = vadd.f32 %v2135_v41, %v2134_v7  ;;  %v2007_v7 = vmul.f32 %v16943_v10, %v16943_v10  ;;  %v2143_v41 = vsel %vm1697_vm2, %v2005_v33, 0.0  ;;  %v16947_v33 = vld [vmem:[#allocation43_spill] sm:$0xff] }
 0x258   : > { %v2138_v35 = vadd.f32 %v2137_v50, %v2136_v47  ;;  %v2008_v47 = vmul.f32 %v16944_v20, %v16944_v20  ;;  %v2145_v50 = vsel %vm1697_vm2, %v2006_v21, 0.0  ;;  %v16948_v21 = vld [vmem:[#allocation40_spill] sm:$0xff] }
 0x25a   : > { %v2140_v29 = vadd.f32 %v2139_v23, %v2138_v35  ;;  %v2009_v35 = vmul.f32 %v16945_v39, %v16945_v39  ;;  %v2147_v23 = vsel %vm1697_vm2, %v2007_v7, 0.0  ;;  %v16949_v7 = vld [vmem:[#allocation42_spill] sm:$0xff] }
 0x25c   : > { %v2142_v31 = vadd.f32 %v2141_v3, %v2140_v29  ;;  %v2010_v29 = vmul.f32 %v16946_v1, %v16946_v1  ;;  %v2149_v3 = vsel %vm1697_vm2, %v2008_v47, 0.0  ;;  %v16950_v47 = vld [vmem:[#allocation45_spill] sm:$0xff] }
 0x25e   : > { %v2144_v51 = vadd.f32 %v2143_v41, %v2142_v31  ;;  %v2011_v31 = vmul.f32 %v16947_v33, %v16947_v33  ;;  %v2151_v41 = vsel %vm1697_vm2, %v2009_v35, 0.0  ;;  %v16951_v35 = vld [vmem:[#allocation47_spill] sm:$0xff] }
 0x260   : > { %v2146_v5 = vadd.f32 %v2145_v50, %v2144_v51  ;;  %v2012_v51 = vmul.f32 %v16948_v21, %v16948_v21  ;;  %v2153_v50 = vsel %vm1697_vm2, %v2010_v29, 0.0  ;;  %v16952_v29 = vld [vmem:[#allocation44_spill] sm:$0xff] }
 0x262   : > { %v2148_v63 = vadd.f32 %v2147_v23, %v2146_v5  ;;  %v2013_v5 = vmul.f32 %v16949_v7, %v16949_v7  ;;  %v2155_v23 = vsel %vm1697_vm2, %v2011_v31, 0.0  ;;  %v16953_v31 = vld [vmem:[#allocation46_spill] sm:$0xff] }
 0x264   : > { %v2150_v10 = vadd.f32 %v2149_v3, %v2148_v63  ;;  %v2014_v63 = vmul.f32 %v16950_v47, %v16950_v47  ;;  %v2157_v3 = vsel %vm1697_vm2, %v2012_v51, 0.0 }
 0x266   : > { %v2152_v20 = vadd.f32 %v2151_v41, %v2150_v10  ;;  %v2015_v10 = vmul.f32 %v16951_v35, %v16951_v35  ;;  %v2159_v41 = vsel %vm1697_vm2, %v2013_v5, 0.0 }
 0x268   : > { %v2154_v39 = vadd.f32 %v2153_v50, %v2152_v20  ;;  %v2016_v20 = vmul.f32 %v16952_v29, %v16952_v29  ;;  %v2161_v50 = vsel %vm1697_vm2, %v2014_v63, 0.0 }
 0x26a   : > { %v2156_v1 = vadd.f32 %v2155_v23, %v2154_v39  ;;  %v2017_v39 = vmul.f32 %v16953_v31, %v16953_v31  ;;  %v2163_v23 = vsel %vm1697_vm2, %v2015_v10, 0.0  ;;  %v2165_v51 = vsel %vm1697_vm2, %v2016_v20, 0.0  ;;  %v16954_v10 = vld [vmem:[#allocation50_spill] sm:$0xff]  ;;  %v16955_v20 = vld [vmem:[#allocation52_spill] sm:$0xff] }
 0x26c   : > { %v2158_v33 = vadd.f32 %v2157_v3, %v2156_v1  ;;  %v2018_v1 = vmul.f32 %v12392_v59, %v12392_v59  ;;  %v2167_v5 = vsel %vm1697_vm2, %v2017_v39, 0.0  ;;  %v16956_v39 = vld [vmem:[#allocation53_spill] sm:$0xff] }
 0x26e   : > { %v2160_v21 = vadd.f32 %v2159_v41, %v2158_v33  ;;  %v2019_v33 = vmul.f32 %v12396_v38, %v12396_v38  ;;  %v2169_v63 = vsel %vm1697_vm2, %v2018_v1, 0.0  ;;  %v16957_v1 = vld [vmem:[#allocation58_spill] sm:$0xff] }
 0x270   : > { %v2162_v7 = vadd.f32 %v2161_v50, %v2160_v21  ;;  %v2020_v21 = vmul.f32 %v12400_v15, %v12400_v15 }
 0x272   : > { %v2164_v47 = vadd.f32 %v2163_v23, %v2162_v7  ;;  %v2021_v7 = vmul.f32 %v16954_v10, %v16954_v10  ;;  %v2171_v23 = vsel %vm1697_vm2, %v2019_v33, 0.0  ;;  %v16958_v33 = vld [vmem:[#allocation59_spill] sm:$0xff] }
 0x274   : > { %v2166_v3 = vadd.f32 %v2165_v51, %v2164_v47  ;;  %v2022_v47 = vmul.f32 %v16955_v20, %v16955_v20  ;;  %v2173_v51 = vsel %vm1697_vm2, %v2020_v21, 0.0 }
 0x276   : > { %v2168_v41 = vadd.f32 %v2167_v5, %v2166_v3  ;;  %v2023_v3 = vmul.f32 %v16956_v39, %v16956_v39  ;;  %v2175_v5 = vsel %vm1697_vm2, %v2021_v7, 0.0 }
 0x278   : > { %v2170_v50 = vadd.f32 %v2169_v63, %v2168_v41  ;;  %v2024_v41 = vmul.f32 %v16957_v1, %v16957_v1  ;;  %v2177_v63 = vsel %vm1697_vm2, %v2022_v47, 0.0 }
 0x27a   : > { %v2172_v59 = vadd.f32 %v2171_v23, %v2170_v50  ;;  %v2025_v50 = vmul.f32 %v16958_v33, %v16958_v33  ;;  %v2179_v23 = vsel %vm1697_vm2, %v2023_v3, 0.0  ;;  %v12665_v3 = vld [vmem:[%s11541_s13] ss:$0 sm:$0xff] }
 0x27c   : > { %v2174_v38 = vadd.f32 %v2173_v51, %v2172_v59  ;;  %v2181_v59 = vsel %vm1697_vm2, %v2024_v41, 0.0  ;;  %v2183_v20 = vsel %vm1855_vm3, %v2025_v50, 0.0  ;;  %v16959_v41 = vld [vmem:[#allocation54_spill] sm:$0xff]  ;;  %v16960_v50 = vld [vmem:[#allocation55_spill] sm:$0xff] }
 0x27e   : > { %v2176_v15 = vadd.f32 %v2175_v5, %v2174_v38 }
 0x280   : > { %v2178_v10 = vadd.f32 %v2177_v63, %v2176_v15 }
 0x282   : > { %v2180_v21 = vadd.f32 %v2179_v23, %v2178_v10 }
 0x284   : > { %v2182_v51 = vadd.f32 %v2181_v59, %v2180_v21  ;;  %v16963_v21 = vld [vmem:[#allocation57_spill] sm:$0xff] }
 0x286   : > { %v2184_v7 = vadd.f32 %v2183_v20, %v2182_v51 }
 0x288   : > { %v2185_v38 = vrot.slane %v2184_v7, 4 }
 0x28a   : > { %v2186_v5 = vadd.f32 %v2185_v38, %v2184_v7 }
 0x28c   : > { %v2187_v1 = vrot.slane %v2186_v5, 2 }
 0x28e   : > { %v2188_v31 = vadd.f32 %v2187_v1, %v2186_v5  ;;  %v16961_v1 = vld [vmem:[#allocation56_spill] sm:$0xff] }
 0x290   : > { %v2189_v47 = vrot.slane %v2188_v31, 1 }
 0x292   : > { %v2190_v15 = vadd.f32 %v2189_v47, %v2188_v31 }
 0x294   : > { %v2191_v63 = vmul.f32 0.0015649452, %v2190_v15 }
 0x296   : > { %v2192_v29 = vadd.f32 1e-05, %v2191_v63 }
 0x298   : > { %11051 = vrsqrt.f32 %v2192_v29  ;;  %v12682_v29 = vld [vmem:[%s11546_s17] ss:$0 sm:$0xff] }
 0x299   : > { %16962 = vst [vmem:[#allocation47_spill] sm:$0xff] %v12682_v29 }
 0x2a2   : > { %v12662_v33 = vpop.eup %11051 }
 0x2a3   : > { %v2271_v10 = vmul.f32 %v12662_v33, %v16956_v39  ;;  %v12671_v20 = vmul.f32 %v12662_v33, %v16959_v41  ;;  %v12675_v23 = vmul.f32 %v12662_v33, %v16960_v50  ;;  %v12679_v31 = vmul.f32 %v12662_v33, %v16961_v1  ;;  %v16964_v1 = vld [vmem:[#allocation23_spill] sm:$0xff] }
 0x2a4   : > { %v12686_v59 = vmul.f32 %v12662_v33, %v16963_v21  ;;  %v12690_v39 = vmul.f32 %v12662_v33, %v12120_v19  ;;  %v12694_v51 = vmul.f32 %v12662_v33, %v12124_v43  ;;  %v12698_v7 = vmul.f32 %v12662_v33, %v12128_v45  ;;  %v16966_v21 = vld [vmem:[#allocation25_spill] sm:$0xff] }
 0x2a5   : > { %v2358_v38 = vmul.f32 %v12665_v3, %v2271_v10  ;;  %v12703_v5 = vmul.f32 %v12662_v33, %v12132_v42  ;;  %v12707_v47 = vmul.f32 %v12662_v33, %v12136_v44  ;;  %v12711_v19 = vmul.f32 %v12662_v33, %v12140_v54 }
 0x2a6   : > { %v12715_v43 = vmul.f32 %v12662_v33, %v12144_v58  ;;  %v12719_v45 = vmul.f32 %v12662_v33, %v12148_v52  ;;  %v12723_v42 = vmul.f32 %v12662_v33, %v12152_v56  ;;  %v12727_v44 = vmul.f32 %v12662_v33, %v12156_v2 }
 0x2a7   : > { %v12730_v15 = vadd.f32 %v12682_v29, %v2358_v38  ;;  %v12734_v54 = vmul.f32 %v12662_v33, %v12160_v6  ;;  %v12738_v58 = vmul.f32 %v12662_v33, %v12164_v0  ;;  %v12742_v52 = vmul.f32 %v12662_v33, %v12168_v4  ;;  %v16973_v29 = vld [vmem:[#allocation29_spill] sm:$0xff] }
 0x2a8   : > { %v12746_v56 = vmul.f32 %v12662_v33, %v12172_v14  ;;  %v12750_v2 = vmul.f32 %v12662_v33, %v12176_v18  ;;  %v12754_v6 = vmul.f32 %v12662_v33, %v12180_v12  ;;  %v12758_v0 = vmul.f32 %v12662_v33, %v12184_v16 }
 0x2a9   : > { %v2525_v4 = vmul.f32 %v12730_v15, %v12730_v15  ;;  %v12764_v63 = vmul.f32 %v12662_v33, %v12188_v26  ;;  %v12768_v14 = vmul.f32 %v12662_v33, %v12192_v30  ;;  %v12772_v18 = vmul.f32 %v12662_v33, %v12196_v24 }
 0x2aa   : > { %v12776_v12 = vmul.f32 %v12662_v33, %v12200_v28  ;;  %v12780_v16 = vmul.f32 %v12662_v33, %v12204_v37  ;;  %v12784_v26 = vmul.f32 %v12662_v33, %v12208_v46  ;;  %v12788_v30 = vmul.f32 %v12662_v33, %v12212_v36 }
 0x2ab   : > { %v2605_v10 = vmul.f32 %v2525_v4, %v12730_v15  ;;  %v12793_v24 = vmul.f32 %v12662_v33, %v12216_v40  ;;  %v12797_v28 = vmul.f32 %v12662_v33, %v12220_v55  ;;  %v12801_v37 = vmul.f32 %v12662_v33, %v12224_v62  ;;  %v16967_v4 = vld [vmem:[#allocation27_spill] sm:$0xff] }
 0x2ac   : > { %v12805_v46 = vmul.f32 %v12662_v33, %v12228_v53  ;;  %v12809_v36 = vmul.f32 %v12662_v33, %v12232_v60  ;;  %v12813_v40 = vmul.f32 %v12662_v33, %v12236_v9  ;;  %v12817_v55 = vmul.f32 %v12662_v33, %v12240_v17 }
 0x2ad   : > { %v2685_v41 = vmul.f32 0.044715, %v2605_v10  ;;  %v12821_v62 = vmul.f32 %v12662_v33, %v12244_v8  ;;  %v12825_v53 = vmul.f32 %v12662_v33, %v12248_v13  ;;  %v12829_v60 = vmul.f32 %v12662_v33, %v12252_v27  ;;  %v16969_v10 = vld [vmem:[#allocation24_spill] sm:$0xff] }
 0x2ae   : > { %v12833_v9 = vmul.f32 %v12662_v33, %v12256_v34  ;;  %v12837_v17 = vmul.f32 %v12662_v33, %v12260_v25  ;;  %v12841_v8 = vmul.f32 %v12662_v33, %v12264_v32  ;;  %v12845_v13 = vmul.f32 %v12662_v33, %v12268_v49 }
 0x2af   : > { %v2765_v50 = vadd.f32 %v2685_v41, %v12730_v15  ;;  %v12850_v27 = vmul.f32 %v12662_v33, %v12272_v61  ;;  %v12854_v34 = vmul.f32 %v12662_v33, %v12276_v48  ;;  %v12858_v25 = vmul.f32 %v12662_v33, %v12280_v57  ;;  %v16971_v41 = vld [vmem:[#allocation26_spill] sm:$0xff] }
 0x2b0   : > { %v12862_v32 = vmul.f32 %v12662_v33, %v12284_v11  ;;  %v12866_v49 = vmul.f32 %v12662_v33, %v12288_v22  ;;  %v12870_v61 = vmul.f32 %v12662_v33, %v16964_v1  ;;  %v12874_v48 = vmul.f32 %v12662_v33, %v16966_v21 }
 0x2b1   : > { %v2845_v38 = vmul.f32 0.7978846, %v2765_v50  ;;  %v12878_v57 = vmul.f32 %v12662_v33, %v16967_v4  ;;  %v12882_v11 = vmul.f32 %v12662_v33, %v16969_v10  ;;  %v12886_v22 = vmul.f32 %v12662_v33, %v16971_v41  ;;  %v16977_v50 = vld [vmem:[#allocation28_spill] sm:$0xff] }
 0x2b2   : > { %16965 = vst [vmem:[#allocation53_spill] sm:$0xff] %v12870_v61  ;;  %v12890_v1 = vmul.f32 %v12662_v33, %v16973_v29  ;;  %v16975_v61 = vld [vmem:[#allocation31_spill] sm:$0xff]  ;;  %v12898_v4 = vmul.f32 %v12662_v33, %v16977_v50 }
 0x2b3   : > { %16968 = vst [vmem:[#allocation54_spill] sm:$0xff] %v12878_v57  ;;  %16970 = vst [vmem:[#allocation55_spill] sm:$0xff] %v12882_v11  ;;  %v12894_v21 = vmul.f32 %v12662_v33, %v16975_v61  ;;  %v16979_v57 = vld [vmem:[#allocation30_spill] sm:$0xff]  ;;  %11053 = vtanh.f32 %v2845_v38  ;;  %v16980_v11 = vld [vmem:[#allocation33_spill] sm:$0xff] }
 0x2b4   : > { %16972 = vst [vmem:[#allocation56_spill] sm:$0xff] %v12886_v22  ;;  %16974 = vst [vmem:[#allocation57_spill] sm:$0xff] %v12890_v1  ;;  %v12902_v10 = vmul.f32 %v12662_v33, %v16979_v57  ;;  %v12906_v41 = vmul.f32 %v12662_v33, %v16980_v11  ;;  %v16982_v22 = vld [vmem:[#allocation35_spill] sm:$0xff]  ;;  %v16984_v1 = vld [vmem:[#allocation32_spill] sm:$0xff] }
 0x2b5   : > { %16976 = vst [vmem:[#allocation23_spill] sm:$0xff] %v12894_v21  ;;  %16978 = vst [vmem:[#allocation25_spill] sm:$0xff] %v12898_v4  ;;  %v12910_v29 = vmul.f32 %v12662_v33, %v16982_v22  ;;  %v12914_v61 = vmul.f32 %v12662_v33, %v16984_v1  ;;  %v16986_v21 = vld [vmem:[#allocation34_spill] sm:$0xff]  ;;  %v16988_v4 = vld [vmem:[#allocation37_spill] sm:$0xff] }
 0x2b6   : > { %16981 = vst [vmem:[#allocation27_spill] sm:$0xff] %v12906_v41  ;;  %v12918_v50 = vmul.f32 %v12662_v33, %v16986_v21  ;;  %v12922_v57 = vmul.f32 %v12662_v33, %v16988_v4  ;;  %v16990_v38 = vld [vmem:[#allocation39_spill] sm:$0xff]  ;;  %v16992_v41 = vld [vmem:[#allocation36_spill] sm:$0xff] }
 0x2b7   : > { %16983 = vst [vmem:[#allocation24_spill] sm:$0xff] %v12910_v29  ;;  %16985 = vst [vmem:[#allocation26_spill] sm:$0xff] %v12914_v61  ;;  %v12926_v11 = vmul.f32 %v12662_v33, %v16990_v38  ;;  %v12930_v22 = vmul.f32 %v12662_v33, %v16992_v41  ;;  %v16994_v29 = vld [vmem:[#allocation38_spill] sm:$0xff]  ;;  %v16995_v61 = vld [vmem:[#allocation41_spill] sm:$0xff] }
 0x2b8   : > { %16987 = vst [vmem:[#allocation29_spill] sm:$0xff] %v12918_v50  ;;  %16989 = vst [vmem:[#allocation31_spill] sm:$0xff] %v12922_v57  ;;  %v12934_v1 = vmul.f32 %v12662_v33, %v16994_v29  ;;  %v12938_v21 = vmul.f32 %v12662_v33, %v16995_v61  ;;  %v16997_v50 = vld [vmem:[#allocation43_spill] sm:$0xff]  ;;  %v16999_v57 = vld [vmem:[#allocation40_spill] sm:$0xff]  ;;  %v12958_v61 = vmul.f32 %v12662_v33, %v16951_v35 }
 0x2b9   : > { %16991 = vst [vmem:[#allocation28_spill] sm:$0xff] %v12926_v11  ;;  %16993 = vst [vmem:[#allocation30_spill] sm:$0xff] %v12930_v22  ;;  %v12942_v4 = vmul.f32 %v12662_v33, %v16997_v50  ;;  %v12946_v38 = vmul.f32 %v12662_v33, %v16999_v57  ;;  %v17001_v11 = vld [vmem:[#allocation42_spill] sm:$0xff]  ;;  %v17003_v22 = vld [vmem:[#allocation45_spill] sm:$0xff] }
 0x2ba   : > { %16996 = vst [vmem:[#allocation33_spill] sm:$0xff] %v12938_v21  ;;  %v12950_v41 = vmul.f32 %v12662_v33, %v17001_v11  ;;  %v12954_v29 = vmul.f32 %v12662_v33, %v17003_v22  ;;  %17005 = vst [vmem:[#allocation39_spill] sm:$0xff] %v12958_v61  ;;  %v17006_v21 = vld [vmem:[#allocation44_spill] sm:$0xff]  ;;  %v17014_v61 = vld [vmem:[#allocation50_spill] sm:$0xff] }
 0x2bb   : > { %16998 = vst [vmem:[#allocation35_spill] sm:$0xff] %v12942_v4  ;;  %17000 = vst [vmem:[#allocation32_spill] sm:$0xff] %v12946_v38  ;;  %v12962_v50 = vmul.f32 %v12662_v33, %v17006_v21  ;;  %v17008_v4 = vld [vmem:[#allocation46_spill] sm:$0xff]  ;;  %v17010_v38 = vld [vmem:[#allocation49_spill] sm:$0xff]  ;;  %v12982_v21 = vmul.f32 %v12662_v33, %v17014_v61  ;;  %v13002_v61 = vmul.f32 %v12665_v3, %v12675_v23 }
 0x2bc   : > { %17002 = vst [vmem:[#allocation34_spill] sm:$0xff] %v12950_v41  ;;  %17004 = vst [vmem:[#allocation37_spill] sm:$0xff] %v12954_v29  ;;  %v12966_v57 = vmul.f32 %v12662_v33, %v17008_v4  ;;  %v12970_v11 = vmul.f32 %v12662_v33, %v17010_v38  ;;  %v17012_v41 = vld [vmem:[#allocation51_spill] sm:$0xff]  ;;  %v17013_v29 = vld [vmem:[#allocation48_spill] sm:$0xff]  ;;  %v13022_v23 = vmul.f32 %v12665_v3, %v12698_v7 }
 0x2bd   : > { %17007 = vst [vmem:[#allocation36_spill] sm:$0xff] %v12962_v50  ;;  %v12974_v22 = vmul.f32 %v12662_v33, %v17012_v41  ;;  %v12978_v35 = vmul.f32 %v12662_v33, %v17013_v29  ;;  %v17015_v50 = vld [vmem:[#allocation52_spill] sm:$0xff]  ;;  %v12998_v29 = vmul.f32 %v12665_v3, %v12671_v20  ;;  %v13018_v20 = vmul.f32 %v12665_v3, %v12694_v51 }
 0x2be   : > { %17009 = vst [vmem:[#allocation38_spill] sm:$0xff] %v12966_v57  ;;  %17011 = vst [vmem:[#allocation41_spill] sm:$0xff] %v12970_v11  ;;  %v12986_v4 = vmul.f32 %v12662_v33, %v17015_v50  ;;  %v17016_v57 = vld [vmem:[#allocation58_spill] sm:$0xff]  ;;  %v17017_v11 = vld [vmem:[#allocation59_spill] sm:$0xff]  ;;  %v13006_v50 = vmul.f32 %v12665_v3, %v12679_v31  ;;  %v13026_v31 = vmul.f32 %v12665_v3, %v12703_v5 }
 0x2bf   : > { %v12990_v38 = vmul.f32 %v12662_v33, %v17016_v57  ;;  %v12994_v41 = vmul.f32 %v12662_v33, %v17017_v11  ;;  %v13010_v57 = vmul.f32 %v12665_v3, %v12686_v59  ;;  %v13014_v33 = vmul.f32 %v12665_v3, %v12690_v39  ;;  %v11054_v11 = vpop.eup %11053 }
 0x2c0   : > { %v13030_v59 = vmul.f32 %v12665_v3, %v12707_v47  ;;  %v13034_v39 = vmul.f32 %v12665_v3, %v12711_v19  ;;  %v13038_v51 = vmul.f32 %v12665_v3, %v12715_v43  ;;  %v13042_v7 = vmul.f32 %v12665_v3, %v12719_v45 }
 0x2c1   : > { %v13046_v5 = vmul.f32 %v12665_v3, %v12723_v42  ;;  %v13050_v47 = vmul.f32 %v12665_v3, %v12727_v44  ;;  %v13054_v19 = vmul.f32 %v12665_v3, %v12734_v54  ;;  %v13058_v43 = vmul.f32 %v12665_v3, %v12738_v58 }
 0x2c2   : > { %v13062_v45 = vmul.f32 %v12665_v3, %v12742_v52  ;;  %v13066_v42 = vmul.f32 %v12665_v3, %v12746_v56  ;;  %v13070_v44 = vmul.f32 %v12665_v3, %v12750_v2  ;;  %v13074_v54 = vmul.f32 %v12665_v3, %v12754_v6 }
 0x2c3   : > { %17018 = vst [vmem:[#allocation43_spill] sm:$0xff] %v13054_v19  ;;  %v3005_v19 = vadd.f32 1.0, %v11054_v11  ;;  %v13078_v58 = vmul.f32 %v12665_v3, %v12758_v0  ;;  %v13082_v52 = vmul.f32 %v12665_v3, %v12764_v63  ;;  %v13086_v56 = vmul.f32 %v12665_v3, %v12768_v14 }
 0x2c4   : > { %v13090_v2 = vmul.f32 %v12665_v3, %v12772_v18  ;;  %v13094_v6 = vmul.f32 %v12665_v3, %v12776_v12  ;;  %v13098_v0 = vmul.f32 %v12665_v3, %v12780_v16  ;;  %v13102_v63 = vmul.f32 %v12665_v3, %v12784_v26 }
 0x2c5   : > { %v3085_v11 = vmul.f32 0.5, %v3005_v19  ;;  %v13106_v14 = vmul.f32 %v12665_v3, %v12788_v30  ;;  %v13110_v18 = vmul.f32 %v12665_v3, %v12793_v24  ;;  %v13114_v12 = vmul.f32 %v12665_v3, %v12797_v28 }
 0x2c6   : > { %v13118_v16 = vmul.f32 %v12665_v3, %v12801_v37  ;;  %v13122_v26 = vmul.f32 %v12665_v3, %v12805_v46  ;;  %v13126_v30 = vmul.f32 %v12665_v3, %v12809_v36  ;;  %v13130_v24 = vmul.f32 %v12665_v3, %v12813_v40 }
 0x2c7   : > { %v3165_v19 = vmul.f32 %v3085_v11, %v12730_v15  ;;  %v13135_v28 = vmul.f32 %v12665_v3, %v12817_v55  ;;  %v13139_v37 = vmul.f32 %v12665_v3, %v12821_v62  ;;  %v13143_v46 = vmul.f32 %v12665_v3, %v12825_v53  ;;  %v17024_v11 = vld [vmem:[#allocation54_spill] sm:$0xff] }
 0x2c8   : > { %v13147_v36 = vmul.f32 %v12665_v3, %v12829_v60  ;;  %v13151_v40 = vmul.f32 %v12665_v3, %v12833_v9  ;;  %v13155_v15 = vmul.f32 %v12665_v3, %v12837_v17  ;;  %v13159_v55 = vmul.f32 %v12665_v3, %v12841_v8 }
 0x2c9   : > { %3245 = vst.msk [vmem:[#allocation2 + $0x268] sm:$0xff] %vm1697_vm2, %v3165_v19  ;;  %v13164_v62 = vmul.f32 %v12665_v3, %v12845_v13  ;;  %v13168_v53 = vmul.f32 %v12665_v3, %v12850_v27  ;;  %v13172_v60 = vmul.f32 %v12665_v3, %v12854_v34  ;;  %v13176_v9 = vmul.f32 %v12665_v3, %v12858_v25  ;;  %v17021_v13 = vld [vmem:[#allocation53_spill] sm:$0xff]  ;;  %v17025_v19 = vld [vmem:[#allocation55_spill] sm:$0xff] }
 0x2ca   : > { %v13180_v17 = vmul.f32 %v12665_v3, %v12862_v32  ;;  %v13184_v8 = vmul.f32 %v12665_v3, %v12866_v49  ;;  %v13188_v27 = vmul.f32 %v12665_v3, %v17021_v13  ;;  %v13192_v34 = vmul.f32 %v12665_v3, %v12874_v48 }
 0x2cb   : > { %v13196_v25 = vmul.f32 %v12665_v3, %v17024_v11  ;;  %v13200_v32 = vmul.f32 %v12665_v3, %v17025_v19  ;;  %v13220_v19 = vmul.f32 %v12665_v3, %v12902_v10 }
 0x2cc   : > { %17019 = vst [vmem:[#allocation40_spill] sm:$0xff] %v13180_v17  ;;  %17020 = vst [vmem:[#allocation42_spill] sm:$0xff] %v13184_v8  ;;  %v17027_v17 = vld [vmem:[#allocation56_spill] sm:$0xff]  ;;  %v17029_v8 = vld [vmem:[#allocation57_spill] sm:$0xff] }
 0x2cd   : > { %17022 = vst [vmem:[#allocation45_spill] sm:$0xff] %v13188_v27  ;;  %17023 = vst [vmem:[#allocation44_spill] sm:$0xff] %v13192_v34  ;;  %v13204_v49 = vmul.f32 %v12665_v3, %v17027_v17  ;;  %v13208_v13 = vmul.f32 %v12665_v3, %v17029_v8  ;;  %v17031_v27 = vld [vmem:[#allocation23_spill] sm:$0xff]  ;;  %v17033_v34 = vld [vmem:[#allocation25_spill] sm:$0xff] }
 0x2ce   : > { %17026 = vst [vmem:[#allocation46_spill] sm:$0xff] %v13200_v32  ;;  %v13212_v48 = vmul.f32 %v12665_v3, %v17031_v27  ;;  %v13216_v11 = vmul.f32 %v12665_v3, %v17033_v34  ;;  %17035 = vst [vmem:[#allocation52_spill] sm:$0xff] %v13220_v19  ;;  %v17036_v32 = vld [vmem:[#allocation27_spill] sm:$0xff]  ;;  %v17045_v19 = vld [vmem:[#allocation28_spill] sm:$0xff] }
 0x2cf   : > { %17028 = vst [vmem:[#allocation49_spill] sm:$0xff] %v13204_v49  ;;  %17030 = vst [vmem:[#allocation51_spill] sm:$0xff] %v13208_v13  ;;  %v13224_v17 = vmul.f32 %v12665_v3, %v17036_v32  ;;  %v17038_v49 = vld [vmem:[#allocation24_spill] sm:$0xff]  ;;  %v17039_v13 = vld [vmem:[#allocation26_spill] sm:$0xff]  ;;  %v13244_v32 = vmul.f32 %v12665_v3, %v17045_v19 }
 0x2d0   : > { %17032 = vst [vmem:[#allocation48_spill] sm:$0xff] %v13212_v48  ;;  %17034 = vst [vmem:[#allocation50_spill] sm:$0xff] %v13216_v11  ;;  %v13228_v8 = vmul.f32 %v12665_v3, %v17038_v49  ;;  %v13232_v27 = vmul.f32 %v12665_v3, %v17039_v13  ;;  %v17041_v48 = vld [vmem:[#allocation29_spill] sm:$0xff]  ;;  %v17043_v11 = vld [vmem:[#allocation31_spill] sm:$0xff]  ;;  %v13252_v13 = vmul.f32 %v12665_v3, %v12934_v1 }
 0x2d1   : > { %17037 = vst [vmem:[#allocation58_spill] sm:$0xff] %v13224_v17  ;;  %v13236_v34 = vmul.f32 %v12665_v3, %v17041_v48  ;;  %v13240_v10 = vmul.f32 %v12665_v3, %v17043_v11  ;;  %17046 = vst [vmem:[#allocation55_spill] sm:$0xff] %v13244_v32  ;;  %v17047_v17 = vld [vmem:[#allocation30_spill] sm:$0xff] }
 0x2d2   : > { %17040 = vst [vmem:[#allocation59_spill] sm:$0xff] %v13232_v27  ;;  %v13248_v49 = vmul.f32 %v12665_v3, %v17047_v17  ;;  %17049 = vst [vmem:[#allocation57_spill] sm:$0xff] %v13252_v13  ;;  %v17050_v27 = vld [vmem:[#allocation33_spill] sm:$0xff]  ;;  %v17056_v32 = vld [vmem:[#allocation34_spill] sm:$0xff] }
 0x2d3   : > { %17042 = vst [vmem:[#allocation53_spill] sm:$0xff] %v13236_v34  ;;  %17044 = vst [vmem:[#allocation54_spill] sm:$0xff] %v13240_v10  ;;  %v13256_v48 = vmul.f32 %v12665_v3, %v17050_v27  ;;  %v17052_v34 = vld [vmem:[#allocation35_spill] sm:$0xff]  ;;  %v17054_v10 = vld [vmem:[#allocation32_spill] sm:$0xff]  ;;  %v13268_v17 = vmul.f32 %v12665_v3, %v17056_v32 }
 0x2d4   : > { %17048 = vst [vmem:[#allocation56_spill] sm:$0xff] %v13248_v49  ;;  %v13260_v11 = vmul.f32 %v12665_v3, %v17052_v34  ;;  %v13264_v19 = vmul.f32 %v12665_v3, %v17054_v10  ;;  %v17057_v49 = vld [vmem:[#allocation37_spill] sm:$0xff]  ;;  %v17058_v13 = vld [vmem:[#allocation39_spill] sm:$0xff] }
 0x2d5   : > { %17051 = vst [vmem:[#allocation23_spill] sm:$0xff] %v13256_v48  ;;  %v13272_v1 = vmul.f32 %v12665_v3, %v17057_v49  ;;  %v13276_v27 = vmul.f32 %v12665_v3, %v17058_v13  ;;  %v17059_v48 = vld [vmem:[#allocation36_spill] sm:$0xff]  ;;  %v13292_v49 = vmul.f32 %v12665_v3, %v12974_v22  ;;  %v13296_v13 = vmul.f32 %v12665_v3, %v12978_v35 }
 0x2d6   : > { %17053 = vst [vmem:[#allocation25_spill] sm:$0xff] %v13260_v11  ;;  %17055 = vst [vmem:[#allocation27_spill] sm:$0xff] %v13264_v19  ;;  %v13280_v34 = vmul.f32 %v12665_v3, %v17059_v48  ;;  %v17060_v11 = vld [vmem:[#allocation38_spill] sm:$0xff]  ;;  %v17061_v19 = vld [vmem:[#allocation41_spill] sm:$0xff]  ;;  %v13300_v48 = vmul.f32 %v12665_v3, %v12982_v21  ;;  %v13312_v22 = vmul.f32 %v12665_v3, %v12994_v41 }
 0x2d7   : > { %v13284_v10 = vmul.f32 %v12665_v3, %v17060_v11  ;;  %v13288_v32 = vmul.f32 %v12665_v3, %v17061_v19  ;;  %17062 = vst [vmem:[#allocation24_spill] sm:$0xff] %v13292_v49  ;;  %v13304_v11 = vmul.f32 %v12665_v3, %v12986_v4  ;;  %v13308_v19 = vmul.f32 %v12665_v3, %v12990_v38  ;;  %v17063_v49 = vld [vmem:[#allocation47_spill] sm:$0xff] }
 0x2d8   : > { %v13316_v35 = vadd.f32 %v17063_v49, %v12998_v29  ;;  %v13320_v21 = vadd.f32 %v17063_v49, %v13002_v61  ;;  %v13324_v4 = vadd.f32 %v17063_v49, %v13006_v50  ;;  %v13328_v38 = vadd.f32 %v17063_v49, %v13010_v57 }
 0x2d9   : > { %v13332_v3 = vadd.f32 %v17063_v49, %v13014_v33  ;;  %v13336_v41 = vadd.f32 %v17063_v49, %v13018_v20  ;;  %v13340_v29 = vadd.f32 %v17063_v49, %v13022_v23  ;;  %v13344_v61 = vadd.f32 %v17063_v49, %v13026_v31 }
 0x2da   : > { %17064 = vst [vmem:[#allocation26_spill] sm:$0xff] %v13316_v35  ;;  %17065 = vst [vmem:[#allocation29_spill] sm:$0xff] %v13320_v21  ;;  %v13348_v50 = vadd.f32 %v17063_v49, %v13030_v59  ;;  %v13352_v57 = vadd.f32 %v17063_v49, %v13034_v39  ;;  %v13356_v33 = vadd.f32 %v17063_v49, %v13038_v51  ;;  %v17078_v59 = vld [vmem:[#allocation43_spill] sm:$0xff] }
 0x2db   : > { %17066 = vst [vmem:[#allocation31_spill] sm:$0xff] %v13324_v4  ;;  %17067 = vst [vmem:[#allocation28_spill] sm:$0xff] %v13328_v38  ;;  %v13360_v20 = vadd.f32 %v17063_v49, %v13042_v7  ;;  %v13364_v23 = vadd.f32 %v17063_v49, %v13046_v5  ;;  %v13368_v31 = vadd.f32 %v17063_v49, %v13050_v47 }
 0x2dc   : > { %17068 = vst [vmem:[#allocation30_spill] sm:$0xff] %v13332_v3  ;;  %17069 = vst [vmem:[#allocation33_spill] sm:$0xff] %v13336_v41  ;;  %v13372_v39 = vadd.f32 %v17063_v49, %v17078_v59  ;;  %v13376_v51 = vadd.f32 %v17063_v49, %v13058_v43  ;;  %v13380_v7 = vadd.f32 %v17063_v49, %v13062_v45 }
 0x2dd   : > { %17070 = vst [vmem:[#allocation35_spill] sm:$0xff] %v13340_v29  ;;  %17071 = vst [vmem:[#allocation32_spill] sm:$0xff] %v13344_v61  ;;  %v13384_v5 = vadd.f32 %v17063_v49, %v13066_v42  ;;  %v13388_v47 = vadd.f32 %v17063_v49, %v13070_v44  ;;  %v13392_v59 = vadd.f32 %v17063_v49, %v13074_v54 }
 0x2de   : > { %17072 = vst [vmem:[#allocation34_spill] sm:$0xff] %v13348_v50  ;;  %17073 = vst [vmem:[#allocation37_spill] sm:$0xff] %v13352_v57  ;;  %v13396_v43 = vadd.f32 %v17063_v49, %v13078_v58  ;;  %v13400_v45 = vadd.f32 %v17063_v49, %v13082_v52  ;;  %v13404_v42 = vadd.f32 %v17063_v49, %v13086_v56 }
 0x2df   : > { %17074 = vst [vmem:[#allocation39_spill] sm:$0xff] %v13356_v33  ;;  %17075 = vst [vmem:[#allocation36_spill] sm:$0xff] %v13360_v20  ;;  %v13408_v44 = vadd.f32 %v17063_v49, %v13090_v2  ;;  %v13412_v54 = vadd.f32 %v17063_v49, %v13094_v6  ;;  %v13416_v58 = vadd.f32 %v17063_v49, %v13098_v0 }
 0x2e0   : > { %17076 = vst [vmem:[#allocation38_spill] sm:$0xff] %v13364_v23  ;;  %17077 = vst [vmem:[#allocation41_spill] sm:$0xff] %v13368_v31  ;;  %v13420_v52 = vadd.f32 %v17063_v49, %v13102_v63  ;;  %v13424_v56 = vadd.f32 %v17063_v49, %v13106_v14  ;;  %v13428_v2 = vadd.f32 %v17063_v49, %v13110_v18 }
 0x2e1   : > { %17079 = vst [vmem:[#allocation47_spill] sm:$0xff] %v13372_v39  ;;  %17080 = vst [vmem:[#allocation43_spill] sm:$0xff] %v13376_v51  ;;  %v13432_v6 = vadd.f32 %v17063_v49, %v13114_v12  ;;  %v13436_v0 = vadd.f32 %v17063_v49, %v13118_v16  ;;  %v13440_v63 = vadd.f32 %v17063_v49, %v13122_v26 }
 0x2e2   : > { %17081 = vst [vmem:[#allocation60_spill] sm:$0xff] %v13380_v7  ;;  %17082 = vst [vmem:[#allocation61_spill] sm:$0xff] %v13384_v5  ;;  %v13444_v14 = vadd.f32 %v17063_v49, %v13126_v30  ;;  %v13448_v18 = vadd.f32 %v17063_v49, %v13130_v24  ;;  %v13452_v12 = vadd.f32 %v17063_v49, %v13135_v28 }
 0x2e3   : > { %17083 = vst [vmem:[#allocation62_spill] sm:$0xff] %v13388_v47  ;;  %17084 = vst [vmem:[#allocation63_spill] sm:$0xff] %v13392_v59  ;;  %v13456_v16 = vadd.f32 %v17063_v49, %v13139_v37  ;;  %v13460_v26 = vadd.f32 %v17063_v49, %v13143_v46  ;;  %v13464_v30 = vadd.f32 %v17063_v49, %v13147_v36 }
 0x2e4   : > { %17085 = vst [vmem:[#allocation64_spill] sm:$0xff] %v13396_v43  ;;  %17086 = vst [vmem:[#allocation65_spill] sm:$0xff] %v13400_v45  ;;  %v13468_v24 = vadd.f32 %v17063_v49, %v13151_v40  ;;  %v13472_v28 = vadd.f32 %v17063_v49, %v13155_v15  ;;  %v13476_v37 = vadd.f32 %v17063_v49, %v13159_v55 }
 0x2e5   : > { %17087 = vst [vmem:[#allocation66_spill] sm:$0xff] %v13404_v42  ;;  %17088 = vst [vmem:[#allocation67_spill] sm:$0xff] %v13408_v44  ;;  %v13480_v46 = vadd.f32 %v17063_v49, %v13164_v62  ;;  %v13484_v36 = vadd.f32 %v17063_v49, %v13168_v53  ;;  %v13488_v40 = vadd.f32 %v17063_v49, %v13172_v60 }
 0x2e6   : > { %17089 = vst [vmem:[#allocation68_spill] sm:$0xff] %v13412_v54  ;;  %17090 = vst [vmem:[#allocation69_spill] sm:$0xff] %v13416_v58  ;;  %v13492_v15 = vadd.f32 %v17063_v49, %v13176_v9  ;;  %v13512_v9 = vadd.f32 %v17063_v49, %v13196_v25 }
 0x2e7   : > { %17091 = vst [vmem:[#allocation70_spill] sm:$0xff] %v13420_v52  ;;  %17092 = vst [vmem:[#allocation71_spill] sm:$0xff] %v13424_v56 }
 0x2e8   : > { %17093 = vst [vmem:[#allocation72_spill] sm:$0xff] %v13428_v2  ;;  %17094 = vst [vmem:[#allocation73_spill] sm:$0xff] %v13432_v6 }
 0x2e9   : > { %17095 = vst [vmem:[#allocation74_spill] sm:$0xff] %v13436_v0  ;;  %17096 = vst [vmem:[#allocation75_spill] sm:$0xff] %v13440_v63 }
 0x2ea   : > { %17097 = vst [vmem:[#allocation76_spill] sm:$0xff] %v13444_v14  ;;  %17098 = vst [vmem:[#allocation77_spill] sm:$0xff] %v13448_v18 }
 0x2eb   : > { %17099 = vst [vmem:[#allocation78_spill] sm:$0xff] %v13452_v12  ;;  %17100 = vst [vmem:[#allocation79_spill] sm:$0xff] %v13456_v16 }
 0x2ec   : > { %17101 = vst [vmem:[#allocation80_spill] sm:$0xff] %v13460_v26  ;;  %17102 = vst [vmem:[#allocation81_spill] sm:$0xff] %v13464_v30 }
 0x2ed   : > { %17103 = vst [vmem:[#allocation82_spill] sm:$0xff] %v13468_v24  ;;  %17104 = vst [vmem:[#allocation83_spill] sm:$0xff] %v13472_v28  ;;  %v17110_v28 = vld [vmem:[#allocation40_spill] sm:$0xff] }
 0x2ee   : > { %17105 = vst [vmem:[#allocation84_spill] sm:$0xff] %v13476_v37  ;;  %17106 = vst [vmem:[#allocation85_spill] sm:$0xff] %v13480_v46  ;;  %v13496_v55 = vadd.f32 %v17063_v49, %v17110_v28  ;;  %v17112_v37 = vld [vmem:[#allocation42_spill] sm:$0xff]  ;;  %v17114_v46 = vld [vmem:[#allocation45_spill] sm:$0xff] }
 0x2ef   : > { %17107 = vst [vmem:[#allocation86_spill] sm:$0xff] %v13484_v36  ;;  %17108 = vst [vmem:[#allocation87_spill] sm:$0xff] %v13488_v40  ;;  %v13500_v62 = vadd.f32 %v17063_v49, %v17112_v37  ;;  %v13504_v53 = vadd.f32 %v17063_v49, %v17114_v46  ;;  %v17116_v36 = vld [vmem:[#allocation44_spill] sm:$0xff] }
 0x2f0   : > { %17109 = vst [vmem:[#allocation88_spill] sm:$0xff] %v13492_v15  ;;  %17111 = vst [vmem:[#allocation40_spill] sm:$0xff] %v13496_v55  ;;  %v13508_v60 = vadd.f32 %v17063_v49, %v17116_v36  ;;  %v17119_v15 = vld [vmem:[#allocation46_spill] sm:$0xff]  ;;  %v17121_v55 = vld [vmem:[#allocation49_spill] sm:$0xff] }
 0x2f1   : > { %17113 = vst [vmem:[#allocation42_spill] sm:$0xff] %v13500_v62  ;;  %17115 = vst [vmem:[#allocation45_spill] sm:$0xff] %v13504_v53  ;;  %v13516_v28 = vadd.f32 %v17063_v49, %v17119_v15  ;;  %v13520_v37 = vadd.f32 %v17063_v49, %v17121_v55  ;;  %v17123_v62 = vld [vmem:[#allocation51_spill] sm:$0xff]  ;;  %v17125_v53 = vld [vmem:[#allocation48_spill] sm:$0xff] }
 0x2f2   : > { %17117 = vst [vmem:[#allocation44_spill] sm:$0xff] %v13508_v60  ;;  %17118 = vst [vmem:[#allocation89_spill] sm:$0xff] %v13512_v9  ;;  %v13524_v46 = vadd.f32 %v17063_v49, %v17123_v62  ;;  %v13528_v36 = vadd.f32 %v17063_v49, %v17125_v53  ;;  %v17127_v60 = vld [vmem:[#allocation50_spill] sm:$0xff]  ;;  %v17129_v9 = vld [vmem:[#allocation52_spill] sm:$0xff]  ;;  %v13544_v62 = vadd.f32 %v17063_v49, %v13228_v8 }
 0x2f3   : > { %17120 = vst [vmem:[#allocation46_spill] sm:$0xff] %v13516_v28  ;;  %17122 = vst [vmem:[#allocation49_spill] sm:$0xff] %v13520_v37  ;;  %v13532_v25 = vadd.f32 %v17063_v49, %v17127_v60  ;;  %v13536_v15 = vadd.f32 %v17063_v49, %v17129_v9  ;;  %v17131_v28 = vld [vmem:[#allocation58_spill] sm:$0xff] }
 0x2f4   : > { %17124 = vst [vmem:[#allocation51_spill] sm:$0xff] %v13524_v46  ;;  %17126 = vst [vmem:[#allocation48_spill] sm:$0xff] %v13528_v36  ;;  %v13540_v55 = vadd.f32 %v17063_v49, %v17131_v28  ;;  %v17134_v46 = vld [vmem:[#allocation59_spill] sm:$0xff]  ;;  %v17136_v36 = vld [vmem:[#allocation53_spill] sm:$0xff] }
 0x2f5   : > { %17128 = vst [vmem:[#allocation50_spill] sm:$0xff] %v13532_v25  ;;  %17130 = vst [vmem:[#allocation52_spill] sm:$0xff] %v13536_v15  ;;  %v13548_v53 = vadd.f32 %v17063_v49, %v17134_v46  ;;  %v13552_v60 = vadd.f32 %v17063_v49, %v17136_v36  ;;  %v17138_v25 = vld [vmem:[#allocation54_spill] sm:$0xff]  ;;  %v17140_v15 = vld [vmem:[#allocation55_spill] sm:$0xff] }
 0x2f6   : > { %17132 = vst [vmem:[#allocation58_spill] sm:$0xff] %v13540_v55  ;;  %17133 = vst [vmem:[#allocation90_spill] sm:$0xff] %v13544_v62  ;;  %v13556_v9 = vadd.f32 %v17063_v49, %v17138_v25  ;;  %v13560_v28 = vadd.f32 %v17063_v49, %v17140_v15  ;;  %v17142_v55 = vld [vmem:[#allocation56_spill] sm:$0xff]  ;;  %v17144_v62 = vld [vmem:[#allocation57_spill] sm:$0xff] }
 0x2f7   : > { %17135 = vst [vmem:[#allocation59_spill] sm:$0xff] %v13548_v53  ;;  %17137 = vst [vmem:[#allocation53_spill] sm:$0xff] %v13552_v60  ;;  %v13564_v8 = vadd.f32 %v17063_v49, %v17142_v55  ;;  %v13568_v46 = vadd.f32 %v17063_v49, %v17144_v62  ;;  %v17146_v53 = vld [vmem:[#allocation23_spill] sm:$0xff]  ;;  %v17148_v60 = vld [vmem:[#allocation25_spill] sm:$0xff]  ;;  %v13584_v55 = vadd.f32 %v17063_v49, %v13268_v17 }
 0x2f8   : > { %17139 = vst [vmem:[#allocation54_spill] sm:$0xff] %v13556_v9  ;;  %17141 = vst [vmem:[#allocation55_spill] sm:$0xff] %v13560_v28  ;;  %v13572_v36 = vadd.f32 %v17063_v49, %v17146_v53  ;;  %v13576_v25 = vadd.f32 %v17063_v49, %v17148_v60  ;;  %v17150_v9 = vld [vmem:[#allocation27_spill] sm:$0xff]  ;;  %v13588_v62 = vadd.f32 %v17063_v49, %v13272_v1 }
 0x2f9   : > { %17143 = vst [vmem:[#allocation56_spill] sm:$0xff] %v13564_v8  ;;  %17145 = vst [vmem:[#allocation57_spill] sm:$0xff] %v13568_v46  ;;  %v13580_v15 = vadd.f32 %v17063_v49, %v17150_v9  ;;  %v13592_v53 = vadd.f32 %v17063_v49, %v13276_v27  ;;  %v13596_v60 = vadd.f32 %v17063_v49, %v13280_v34 }
 0x2fa   : > { %17147 = vst [vmem:[#allocation23_spill] sm:$0xff] %v13572_v36  ;;  %17149 = vst [vmem:[#allocation25_spill] sm:$0xff] %v13576_v25  ;;  %v13600_v9 = vadd.f32 %v17063_v49, %v13284_v10  ;;  %v13604_v17 = vadd.f32 %v17063_v49, %v13288_v32  ;;  %v13612_v27 = vadd.f32 %v17063_v49, %v13296_v13 }
 0x2fb   : > { %17151 = vst [vmem:[#allocation27_spill] sm:$0xff] %v13580_v15  ;;  %17152 = vst [vmem:[#allocation91_spill] sm:$0xff] %v13584_v55  ;;  %v17158_v55 = vld [vmem:[#allocation24_spill] sm:$0xff]  ;;  %v13616_v34 = vadd.f32 %v17063_v49, %v13300_v48  ;;  %v13620_v10 = vadd.f32 %v17063_v49, %v13304_v11  ;;  %v13624_v32 = vadd.f32 %v17063_v49, %v13308_v19 }
 0x2fc   : > { %17153 = vst [vmem:[#allocation92_spill] sm:$0xff] %v13588_v62  ;;  %17154 = vst [vmem:[#allocation93_spill] sm:$0xff] %v13592_v53  ;;  %v13608_v1 = vadd.f32 %v17063_v49, %v17158_v55  ;;  %v13628_v55 = vadd.f32 %v17063_v49, %v13312_v22  ;;  %v13632_v13 = vmul.f32 %v13316_v35, %v13316_v35 }
 0x2fd   : > { %17155 = vst [vmem:[#allocation94_spill] sm:$0xff] %v13596_v60  ;;  %17156 = vst [vmem:[#allocation95_spill] sm:$0xff] %v13600_v9  ;;  %v13636_v48 = vmul.f32 %v13320_v21, %v13320_v21  ;;  %v13640_v11 = vmul.f32 %v13324_v4, %v13324_v4  ;;  %v13644_v19 = vmul.f32 %v13328_v38, %v13328_v38 }
 0x2fe   : > { %17157 = vst [vmem:[#allocation96_spill] sm:$0xff] %v13604_v17  ;;  %17159 = vst [vmem:[#allocation24_spill] sm:$0xff] %v13608_v1  ;;  %v13648_v49 = vmul.f32 %v13332_v3, %v13332_v3  ;;  %v13652_v22 = vmul.f32 %v13336_v41, %v13336_v41  ;;  %v13656_v21 = vmul.f32 %v13340_v29, %v13340_v29 }
 0x2ff   : > { %17160 = vst [vmem:[#allocation97_spill] sm:$0xff] %v13612_v27  ;;  %17161 = vst [vmem:[#allocation98_spill] sm:$0xff] %v13616_v34  ;;  %v13660_v4 = vmul.f32 %v13344_v61, %v13344_v61  ;;  %v13664_v38 = vmul.f32 %v13348_v50, %v13348_v50  ;;  %v13668_v3 = vmul.f32 %v13352_v57, %v13352_v57 }
 0x300   : > { %17162 = vst [vmem:[#allocation99_spill] sm:$0xff] %v13620_v10  ;;  %17163 = vst [vmem:[#allocation100_spill] sm:$0xff] %v13624_v32  ;;  %v13672_v41 = vmul.f32 %v13356_v33, %v13356_v33  ;;  %v13676_v29 = vmul.f32 %v13360_v20, %v13360_v20  ;;  %v13680_v61 = vmul.f32 %v13364_v23, %v13364_v23 }
 0x301   : > { %17164 = vst [vmem:[#allocation101_spill] sm:$0xff] %v13628_v55  ;;  %v13684_v50 = vmul.f32 %v13368_v31, %v13368_v31  ;;  %v13688_v57 = vmul.f32 %v13372_v39, %v13372_v39  ;;  %v13692_v33 = vmul.f32 %v13376_v51, %v13376_v51  ;;  %v13696_v20 = vmul.f32 %v13380_v7, %v13380_v7 }
 0x302   : > { %v13700_v23 = vmul.f32 %v13384_v5, %v13384_v5  ;;  %v13704_v31 = vmul.f32 %v13388_v47, %v13388_v47  ;;  %v13708_v39 = vmul.f32 %v13392_v59, %v13392_v59  ;;  %v13712_v51 = vmul.f32 %v13396_v43, %v13396_v43 }
 0x303   : > { %v13716_v7 = vmul.f32 %v13400_v45, %v13400_v45  ;;  %v13720_v5 = vmul.f32 %v13404_v42, %v13404_v42  ;;  %v13724_v47 = vmul.f32 %v13408_v44, %v13408_v44  ;;  %v13728_v59 = vmul.f32 %v13412_v54, %v13412_v54 }
 0x304   : > { %v13732_v43 = vmul.f32 %v13416_v58, %v13416_v58  ;;  %v13736_v45 = vmul.f32 %v13420_v52, %v13420_v52  ;;  %v13740_v42 = vmul.f32 %v13424_v56, %v13424_v56  ;;  %v13744_v44 = vmul.f32 %v13428_v2, %v13428_v2 }
 0x305   : > { %v13748_v54 = vmul.f32 %v13432_v6, %v13432_v6  ;;  %v13752_v58 = vmul.f32 %v13436_v0, %v13436_v0  ;;  %v13756_v52 = vmul.f32 %v13440_v63, %v13440_v63  ;;  %v13760_v56 = vmul.f32 %v13444_v14, %v13444_v14 }
 0x306   : > { %v13764_v2 = vmul.f32 %v13448_v18, %v13448_v18  ;;  %v13768_v6 = vmul.f32 %v13452_v12, %v13452_v12  ;;  %v13772_v0 = vmul.f32 %v13456_v16, %v13456_v16  ;;  %v13776_v63 = vmul.f32 %v13460_v26, %v13460_v26 }
 0x307   : > { %v13780_v14 = vmul.f32 %v13464_v30, %v13464_v30  ;;  %v13784_v18 = vmul.f32 %v13468_v24, %v13468_v24  ;;  %v13804_v24 = vmul.f32 %v13488_v40, %v13488_v40 }
 0x308   : > { %17165 = vst [vmem:[#allocation102_spill] sm:$0xff] %v13764_v2  ;;  %17166 = vst [vmem:[#allocation103_spill] sm:$0xff] %v13768_v6  ;;  %v17170_v2 = vld [vmem:[#allocation83_spill] sm:$0xff]  ;;  %v17172_v6 = vld [vmem:[#allocation84_spill] sm:$0xff] }
 0x309   : > { %17167 = vst [vmem:[#allocation104_spill] sm:$0xff] %v13772_v0  ;;  %17168 = vst [vmem:[#allocation105_spill] sm:$0xff] %v13776_v63  ;;  %v13788_v12 = vmul.f32 %v17170_v2, %v17170_v2  ;;  %v13792_v16 = vmul.f32 %v17172_v6, %v17172_v6  ;;  %v17174_v0 = vld [vmem:[#allocation85_spill] sm:$0xff]  ;;  %v17176_v63 = vld [vmem:[#allocation86_spill] sm:$0xff] }
 0x30a   : > { %17169 = vst [vmem:[#allocation106_spill] sm:$0xff] %v13784_v18  ;;  %v13796_v26 = vmul.f32 %v17174_v0, %v17174_v0  ;;  %v13800_v30 = vmul.f32 %v17176_v63, %v17176_v63  ;;  %17178 = vst [vmem:[#allocation111_spill] sm:$0xff] %v13804_v24  ;;  %v17179_v18 = vld [vmem:[#allocation88_spill] sm:$0xff]  ;;  %v17188_v24 = vld [vmem:[#allocation89_spill] sm:$0xff] }
 0x30b   : > { %17171 = vst [vmem:[#allocation107_spill] sm:$0xff] %v13788_v12  ;;  %17173 = vst [vmem:[#allocation108_spill] sm:$0xff] %v13792_v16  ;;  %v13808_v2 = vmul.f32 %v17179_v18, %v17179_v18  ;;  %v17181_v12 = vld [vmem:[#allocation40_spill] sm:$0xff]  ;;  %v17182_v16 = vld [vmem:[#allocation42_spill] sm:$0xff]  ;;  %v13828_v18 = vmul.f32 %v17188_v24, %v17188_v24 }
 0x30c   : > { %17175 = vst [vmem:[#allocation109_spill] sm:$0xff] %v13796_v26  ;;  %17177 = vst [vmem:[#allocation110_spill] sm:$0xff] %v13800_v30  ;;  %v13812_v6 = vmul.f32 %v17181_v12, %v17181_v12  ;;  %v13816_v0 = vmul.f32 %v17182_v16, %v17182_v16  ;;  %v17184_v26 = vld [vmem:[#allocation45_spill] sm:$0xff]  ;;  %v17186_v30 = vld [vmem:[#allocation44_spill] sm:$0xff]  ;;  %v13836_v16 = vmul.f32 %v13520_v37, %v13520_v37 }
 0x30d   : > { %17180 = vst [vmem:[#allocation112_spill] sm:$0xff] %v13808_v2  ;;  %v13820_v63 = vmul.f32 %v17184_v26, %v17184_v26  ;;  %v13824_v40 = vmul.f32 %v17186_v30, %v17186_v30  ;;  %17189 = vst [vmem:[#allocation116_spill] sm:$0xff] %v13828_v18  ;;  %v17190_v2 = vld [vmem:[#allocation46_spill] sm:$0xff]  ;;  %v17199_v18 = vld [vmem:[#allocation52_spill] sm:$0xff] }
 0x30e   : > { %17183 = vst [vmem:[#allocation113_spill] sm:$0xff] %v13816_v0  ;;  %v13832_v12 = vmul.f32 %v17190_v2, %v17190_v2  ;;  %17192 = vst [vmem:[#allocation118_spill] sm:$0xff] %v13836_v16  ;;  %v17193_v0 = vld [vmem:[#allocation51_spill] sm:$0xff]  ;;  %v13852_v2 = vmul.f32 %v17199_v18, %v17199_v18  ;;  %v17201_v16 = vld [vmem:[#allocation90_spill] sm:$0xff] }
 0x30f   : > { %17185 = vst [vmem:[#allocation114_spill] sm:$0xff] %v13820_v63  ;;  %17187 = vst [vmem:[#allocation115_spill] sm:$0xff] %v13824_v40  ;;  %v13840_v26 = vmul.f32 %v17193_v0, %v17193_v0  ;;  %v17195_v63 = vld [vmem:[#allocation48_spill] sm:$0xff]  ;;  %v17197_v40 = vld [vmem:[#allocation50_spill] sm:$0xff]  ;;  %v13860_v0 = vmul.f32 %v17201_v16, %v17201_v16  ;;  %v13880_v16 = vmul.f32 %v13564_v8, %v13564_v8 }
 0x310   : > { %17191 = vst [vmem:[#allocation117_spill] sm:$0xff] %v13832_v12  ;;  %v13844_v30 = vmul.f32 %v17195_v63, %v17195_v63  ;;  %v13848_v24 = vmul.f32 %v17197_v40, %v17197_v40  ;;  %v17200_v12 = vld [vmem:[#allocation58_spill] sm:$0xff] }
 0x311   : > { %17194 = vst [vmem:[#allocation119_spill] sm:$0xff] %v13840_v26  ;;  %v13856_v37 = vmul.f32 %v17200_v12, %v17200_v12  ;;  %v17202_v26 = vld [vmem:[#allocation59_spill] sm:$0xff]  ;;  %v13876_v12 = vmul.f32 %v13560_v28, %v13560_v28  ;;  %v13896_v28 = vmul.f32 %v13580_v15, %v13580_v15  ;;  %v13916_v15 = vmul.f32 %v13600_v9, %v13600_v9 }
 0x312   : > { %17196 = vst [vmem:[#allocation120_spill] sm:$0xff] %v13844_v30  ;;  %17198 = vst [vmem:[#allocation121_spill] sm:$0xff] %v13848_v24  ;;  %v13864_v63 = vmul.f32 %v17202_v26, %v17202_v26  ;;  %v17203_v30 = vld [vmem:[#allocation53_spill] sm:$0xff]  ;;  %v17204_v24 = vld [vmem:[#allocation54_spill] sm:$0xff]  ;;  %v13884_v26 = vmul.f32 %v13568_v46, %v13568_v46  ;;  %v13904_v46 = vmul.f32 %v13588_v62, %v13588_v62 }
 0x313   : > { %v13868_v40 = vmul.f32 %v17203_v30, %v17203_v30  ;;  %v13872_v18 = vmul.f32 %v17204_v24, %v17204_v24  ;;  %17205 = vst [vmem:[#allocation122_spill] sm:$0xff] %v13876_v12  ;;  %v13888_v30 = vmul.f32 %v13572_v36, %v13572_v36  ;;  %v13892_v24 = vmul.f32 %v13576_v25, %v13576_v25  ;;  %v17206_v12 = vld [vmem:[#allocation91_spill] sm:$0xff] }
 0x314   : > { %v13900_v8 = vmul.f32 %v17206_v12, %v17206_v12  ;;  %v13908_v36 = vmul.f32 %v13592_v53, %v13592_v53  ;;  %v13912_v25 = vmul.f32 %v13596_v60, %v13596_v60  ;;  %v13920_v12 = vmul.f32 %v13604_v17, %v13604_v17 }
 0x315   : > { %v13924_v62 = vmul.f32 %v13608_v1, %v13608_v1  ;;  %v13928_v53 = vmul.f32 %v13612_v27, %v13612_v27  ;;  %v13932_v60 = vmul.f32 %v13616_v34, %v13616_v34  ;;  %v13936_v9 = vmul.f32 %v13620_v10, %v13620_v10 }
 0x316   : > { %v13940_v17 = vmul.f32 %v13624_v32, %v13624_v32  ;;  %v13944_v1 = vmul.f32 %v13628_v55, %v13628_v55  ;;  %v13948_v27 = vmul.f32 %v13632_v13, %v13316_v35  ;;  %v17217_v35 = vld [vmem:[#allocation35_spill] sm:$0xff] }
 0x317   : > { %17207 = vst [vmem:[#allocation123_spill] sm:$0xff] %v13928_v53  ;;  %17208 = vst [vmem:[#allocation124_spill] sm:$0xff] %v13932_v60  ;;  %v17212_v53 = vld [vmem:[#allocation29_spill] sm:$0xff]  ;;  %v17213_v60 = vld [vmem:[#allocation31_spill] sm:$0xff] }
 0x318   : > { %17209 = vst [vmem:[#allocation125_spill] sm:$0xff] %v13936_v9  ;;  %17210 = vst [vmem:[#allocation126_spill] sm:$0xff] %v13940_v17  ;;  %v13952_v34 = vmul.f32 %v13636_v48, %v17212_v53  ;;  %v13956_v10 = vmul.f32 %v13640_v11, %v17213_v60  ;;  %v17214_v9 = vld [vmem:[#allocation28_spill] sm:$0xff]  ;;  %v17215_v17 = vld [vmem:[#allocation30_spill] sm:$0xff]  ;;  %v13972_v48 = vmul.f32 %v13656_v21, %v17217_v35 }
 0x319   : > { %17211 = vst [vmem:[#allocation127_spill] sm:$0xff] %v13944_v1  ;;  %v13960_v32 = vmul.f32 %v13644_v19, %v17214_v9  ;;  %v13964_v55 = vmul.f32 %v13648_v49, %v17215_v17  ;;  %v17216_v1 = vld [vmem:[#allocation33_spill] sm:$0xff]  ;;  %v17218_v53 = vld [vmem:[#allocation32_spill] sm:$0xff]  ;;  %v17219_v60 = vld [vmem:[#allocation34_spill] sm:$0xff] }
 0x31a   : > { %v13968_v13 = vmul.f32 %v13652_v22, %v17216_v1  ;;  %v13976_v11 = vmul.f32 %v13660_v4, %v17218_v53  ;;  %v13980_v19 = vmul.f32 %v13664_v38, %v17219_v60  ;;  %v17220_v9 = vld [vmem:[#allocation37_spill] sm:$0xff]  ;;  %v17221_v17 = vld [vmem:[#allocation39_spill] sm:$0xff]  ;;  %v17222_v1 = vld [vmem:[#allocation36_spill] sm:$0xff] }
 0x31b   : > { %v13984_v49 = vmul.f32 %v13668_v3, %v17220_v9  ;;  %v13988_v22 = vmul.f32 %v13672_v41, %v17221_v17  ;;  %v13992_v21 = vmul.f32 %v13676_v29, %v17222_v1  ;;  %v17223_v35 = vld [vmem:[#allocation38_spill] sm:$0xff]  ;;  %v17224_v53 = vld [vmem:[#allocation41_spill] sm:$0xff]  ;;  %v17225_v60 = vld [vmem:[#allocation47_spill] sm:$0xff] }
 0x31c   : > { %v13996_v4 = vmul.f32 %v13680_v61, %v17223_v35  ;;  %v14000_v38 = vmul.f32 %v13684_v50, %v17224_v53  ;;  %v14004_v3 = vmul.f32 %v13688_v57, %v17225_v60  ;;  %v17226_v9 = vld [vmem:[#allocation43_spill] sm:$0xff]  ;;  %v17227_v17 = vld [vmem:[#allocation60_spill] sm:$0xff]  ;;  %v17228_v1 = vld [vmem:[#allocation61_spill] sm:$0xff] }
 0x31d   : > { %v14008_v41 = vmul.f32 %v13692_v33, %v17226_v9  ;;  %v14012_v29 = vmul.f32 %v13696_v20, %v17227_v17  ;;  %v14016_v61 = vmul.f32 %v13700_v23, %v17228_v1  ;;  %v17229_v35 = vld [vmem:[#allocation62_spill] sm:$0xff]  ;;  %v17230_v53 = vld [vmem:[#allocation63_spill] sm:$0xff]  ;;  %v17231_v60 = vld [vmem:[#allocation64_spill] sm:$0xff] }
 0x31e   : > { %v14020_v50 = vmul.f32 %v13704_v31, %v17229_v35  ;;  %v14024_v57 = vmul.f32 %v13708_v39, %v17230_v53  ;;  %v14028_v33 = vmul.f32 %v13712_v51, %v17231_v60  ;;  %v17232_v9 = vld [vmem:[#allocation65_spill] sm:$0xff]  ;;  %v17233_v17 = vld [vmem:[#allocation66_spill] sm:$0xff]  ;;  %v17234_v1 = vld [vmem:[#allocation67_spill] sm:$0xff] }
 0x31f   : > { %v14032_v20 = vmul.f32 %v13716_v7, %v17232_v9  ;;  %v14036_v23 = vmul.f32 %v13720_v5, %v17233_v17  ;;  %v14040_v31 = vmul.f32 %v13724_v47, %v17234_v1  ;;  %v17235_v35 = vld [vmem:[#allocation68_spill] sm:$0xff]  ;;  %v17236_v53 = vld [vmem:[#allocation69_spill] sm:$0xff]  ;;  %v17237_v60 = vld [vmem:[#allocation70_spill] sm:$0xff] }
 0x320   : > { %v14044_v39 = vmul.f32 %v13728_v59, %v17235_v35  ;;  %v14048_v51 = vmul.f32 %v13732_v43, %v17236_v53  ;;  %v14052_v7 = vmul.f32 %v13736_v45, %v17237_v60  ;;  %v17238_v9 = vld [vmem:[#allocation71_spill] sm:$0xff]  ;;  %v17240_v17 = vld [vmem:[#allocation72_spill] sm:$0xff]  ;;  %v17242_v1 = vld [vmem:[#allocation73_spill] sm:$0xff] }
 0x321   : > { %v14056_v5 = vmul.f32 %v13740_v42, %v17238_v9  ;;  %v14060_v47 = vmul.f32 %v13744_v44, %v17240_v17  ;;  %v14064_v59 = vmul.f32 %v13748_v54, %v17242_v1  ;;  %v17244_v35 = vld [vmem:[#allocation74_spill] sm:$0xff]  ;;  %v17246_v53 = vld [vmem:[#allocation75_spill] sm:$0xff]  ;;  %v17247_v60 = vld [vmem:[#allocation76_spill] sm:$0xff] }
 0x322   : > { %v14068_v43 = vmul.f32 %v13752_v58, %v17244_v35  ;;  %v14072_v45 = vmul.f32 %v13756_v52, %v17246_v53  ;;  %v14076_v42 = vmul.f32 %v13760_v56, %v17247_v60  ;;  %v17249_v9 = vld [vmem:[#allocation77_spill] sm:$0xff]  ;;  %v17252_v17 = vld [vmem:[#allocation78_spill] sm:$0xff]  ;;  %v17255_v1 = vld [vmem:[#allocation79_spill] sm:$0xff] }
 0x323   : > { %17239 = vst [vmem:[#allocation128_spill] sm:$0xff] %v14056_v5  ;;  %17241 = vst [vmem:[#allocation129_spill] sm:$0xff] %v14060_v47  ;;  %v17250_v5 = vld [vmem:[#allocation102_spill] sm:$0xff]  ;;  %v17253_v47 = vld [vmem:[#allocation103_spill] sm:$0xff] }
 0x324   : > { %17243 = vst [vmem:[#allocation130_spill] sm:$0xff] %v14064_v59  ;;  %17245 = vst [vmem:[#allocation131_spill] sm:$0xff] %v14068_v43  ;;  %v14080_v44 = vmul.f32 %v17250_v5, %v17249_v9  ;;  %v14084_v54 = vmul.f32 %v17253_v47, %v17252_v17  ;;  %v17256_v59 = vld [vmem:[#allocation104_spill] sm:$0xff]  ;;  %v17259_v43 = vld [vmem:[#allocation105_spill] sm:$0xff] }
 0x325   : > { %17248 = vst [vmem:[#allocation132_spill] sm:$0xff] %v14076_v42  ;;  %v14088_v58 = vmul.f32 %v17256_v59, %v17255_v1  ;;  %v17258_v35 = vld [vmem:[#allocation80_spill] sm:$0xff]  ;;  %v17261_v53 = vld [vmem:[#allocation81_spill] sm:$0xff]  ;;  %v17263_v60 = vld [vmem:[#allocation82_spill] sm:$0xff] }
 0x326   : > { %17251 = vst [vmem:[#allocation102_spill] sm:$0xff] %v14080_v44  ;;  %17254 = vst [vmem:[#allocation103_spill] sm:$0xff] %v14084_v54  ;;  %v14092_v52 = vmul.f32 %v17259_v43, %v17258_v35  ;;  %v14096_v56 = vmul.f32 %v13780_v14, %v17261_v53  ;;  %v17264_v42 = vld [vmem:[#allocation106_spill] sm:$0xff]  ;;  %v17266_v9 = vld [vmem:[#allocation83_spill] sm:$0xff] }
 0x327   : > { %17257 = vst [vmem:[#allocation104_spill] sm:$0xff] %v14088_v58  ;;  %v14100_v5 = vmul.f32 %v17264_v42, %v17263_v60  ;;  %v17267_v44 = vld [vmem:[#allocation107_spill] sm:$0xff]  ;;  %v17268_v17 = vld [vmem:[#allocation84_spill] sm:$0xff]  ;;  %v17271_v1 = vld [vmem:[#allocation85_spill] sm:$0xff] }
 0x328   : > { %17260 = vst [vmem:[#allocation105_spill] sm:$0xff] %v14092_v52  ;;  %17262 = vst [vmem:[#allocation133_spill] sm:$0xff] %v14096_v56  ;;  %v14104_v47 = vmul.f32 %v17267_v44, %v17266_v9  ;;  %v17269_v54 = vld [vmem:[#allocation108_spill] sm:$0xff]  ;;  %v17272_v58 = vld [vmem:[#allocation109_spill] sm:$0xff] }
 0x329   : > { %17265 = vst [vmem:[#allocation106_spill] sm:$0xff] %v14100_v5  ;;  %v14108_v59 = vmul.f32 %v17269_v54, %v17268_v17  ;;  %v14112_v43 = vmul.f32 %v17272_v58, %v17271_v1  ;;  %v17274_v35 = vld [vmem:[#allocation86_spill] sm:$0xff]  ;;  %v17277_v53 = vld [vmem:[#allocation87_spill] sm:$0xff]  ;;  %v17280_v60 = vld [vmem:[#allocation88_spill] sm:$0xff] }
 0x32a   : > { %v17275_v52 = vld [vmem:[#allocation110_spill] sm:$0xff]  ;;  %v17278_v56 = vld [vmem:[#allocation111_spill] sm:$0xff]  ;;  %v17281_v5 = vld [vmem:[#allocation112_spill] sm:$0xff] }
 0x32b   : > { %17270 = vst [vmem:[#allocation107_spill] sm:$0xff] %v14108_v59  ;;  %17273 = vst [vmem:[#allocation108_spill] sm:$0xff] %v14112_v43  ;;  %v14116_v14 = vmul.f32 %v17275_v52, %v17274_v35  ;;  %v14120_v42 = vmul.f32 %v17278_v56, %v17277_v53  ;;  %v14124_v44 = vmul.f32 %v17281_v5, %v17280_v60  ;;  %v17283_v9 = vld [vmem:[#allocation40_spill] sm:$0xff]  ;;  %v17285_v17 = vld [vmem:[#allocation42_spill] sm:$0xff] }
 0x32c   : > { %v14128_v54 = vmul.f32 %v13812_v6, %v17283_v9  ;;  %v17286_v59 = vld [vmem:[#allocation113_spill] sm:$0xff]  ;;  %v17289_v43 = vld [vmem:[#allocation114_spill] sm:$0xff]  ;;  %v17291_v35 = vld [vmem:[#allocation44_spill] sm:$0xff] }
 0x32d   : > { %17276 = vst [vmem:[#allocation109_spill] sm:$0xff] %v14116_v14  ;;  %17279 = vst [vmem:[#allocation110_spill] sm:$0xff] %v14120_v42  ;;  %v14132_v58 = vmul.f32 %v17286_v59, %v17285_v17  ;;  %v17288_v1 = vld [vmem:[#allocation45_spill] sm:$0xff]  ;;  %v17292_v14 = vld [vmem:[#allocation115_spill] sm:$0xff] }
 0x32e   : > { %17282 = vst [vmem:[#allocation111_spill] sm:$0xff] %v14124_v44  ;;  %17284 = vst [vmem:[#allocation112_spill] sm:$0xff] %v14128_v54  ;;  %v14136_v52 = vmul.f32 %v17289_v43, %v17288_v1  ;;  %v14140_v56 = vmul.f32 %v17292_v14, %v17291_v35  ;;  %v17294_v53 = vld [vmem:[#allocation89_spill] sm:$0xff]  ;;  %v17295_v42 = vld [vmem:[#allocation116_spill] sm:$0xff] }
 0x32f   : > { %17287 = vst [vmem:[#allocation113_spill] sm:$0xff] %v14132_v58  ;;  %v14144_v5 = vmul.f32 %v17295_v42, %v17294_v53  ;;  %v17296_v60 = vld [vmem:[#allocation46_spill] sm:$0xff]  ;;  %v17297_v44 = vld [vmem:[#allocation117_spill] sm:$0xff]  ;;  %v17300_v17 = vld [vmem:[#allocation51_spill] sm:$0xff] }
 0x330   : > { %17290 = vst [vmem:[#allocation114_spill] sm:$0xff] %v14136_v52  ;;  %17293 = vst [vmem:[#allocation115_spill] sm:$0xff] %v14140_v56  ;;  %v14148_v6 = vmul.f32 %v17297_v44, %v17296_v60  ;;  %v17298_v9 = vld [vmem:[#allocation49_spill] sm:$0xff]  ;;  %v17299_v54 = vld [vmem:[#allocation118_spill] sm:$0xff] }
 0x331   : > { %v14152_v59 = vmul.f32 %v17299_v54, %v17298_v9  ;;  %v17301_v58 = vld [vmem:[#allocation119_spill] sm:$0xff]  ;;  %v17302_v1 = vld [vmem:[#allocation48_spill] sm:$0xff]  ;;  %v17304_v35 = vld [vmem:[#allocation50_spill] sm:$0xff] }
 0x332   : > { %v14156_v43 = vmul.f32 %v17301_v58, %v17300_v17  ;;  %v17303_v52 = vld [vmem:[#allocation120_spill] sm:$0xff]  ;;  %v17305_v56 = vld [vmem:[#allocation121_spill] sm:$0xff]  ;;  %v17308_v60 = vld [vmem:[#allocation58_spill] sm:$0xff] }
 0x333   : > { %v14160_v14 = vmul.f32 %v17303_v52, %v17302_v1  ;;  %v14164_v42 = vmul.f32 %v17305_v56, %v17304_v35  ;;  %v17306_v53 = vld [vmem:[#allocation52_spill] sm:$0xff]  ;;  %v14172_v54 = vmul.f32 %v13856_v37, %v17308_v60  ;;  %v17309_v9 = vld [vmem:[#allocation90_spill] sm:$0xff]  ;;  %v17310_v17 = vld [vmem:[#allocation59_spill] sm:$0xff] }
 0x334   : > { %v14168_v44 = vmul.f32 %v13852_v2, %v17306_v53  ;;  %v14176_v58 = vmul.f32 %v13860_v0, %v17309_v9  ;;  %v14180_v52 = vmul.f32 %v13864_v63, %v17310_v17  ;;  %v17311_v1 = vld [vmem:[#allocation53_spill] sm:$0xff]  ;;  %v17312_v35 = vld [vmem:[#allocation54_spill] sm:$0xff]  ;;  %v17313_v53 = vld [vmem:[#allocation55_spill] sm:$0xff] }
 0x335   : > { %v14184_v56 = vmul.f32 %v13868_v40, %v17311_v1  ;;  %v14188_v2 = vmul.f32 %v13872_v18, %v17312_v35  ;;  %v17315_v60 = vld [vmem:[#allocation56_spill] sm:$0xff]  ;;  %v17316_v9 = vld [vmem:[#allocation57_spill] sm:$0xff]  ;;  %v17317_v17 = vld [vmem:[#allocation23_spill] sm:$0xff] }
 0x336   : > { %17307 = vst [vmem:[#allocation116_spill] sm:$0xff] %v14168_v44  ;;  %v17314_v44 = vld [vmem:[#allocation122_spill] sm:$0xff]  ;;  %v14196_v0 = vmul.f32 %v13880_v16, %v17315_v60  ;;  %v14200_v63 = vmul.f32 %v13884_v26, %v17316_v9  ;;  %v14204_v40 = vmul.f32 %v13888_v30, %v17317_v17  ;;  %v17318_v1 = vld [vmem:[#allocation25_spill] sm:$0xff]  ;;  %v17319_v35 = vld [vmem:[#allocation27_spill] sm:$0xff] }
 0x337   : > { %v14192_v37 = vmul.f32 %v17314_v44, %v17313_v53  ;;  %v14208_v18 = vmul.f32 %v13892_v24, %v17318_v1  ;;  %v14212_v44 = vmul.f32 %v13896_v28, %v17319_v35  ;;  %v17320_v53 = vld [vmem:[#allocation91_spill] sm:$0xff]  ;;  %v17321_v60 = vld [vmem:[#allocation92_spill] sm:$0xff]  ;;  %v17323_v9 = vld [vmem:[#allocation93_spill] sm:$0xff] }
 0x338   : > { %v14216_v16 = vmul.f32 %v13900_v8, %v17320_v53  ;;  %v14220_v26 = vmul.f32 %v13904_v46, %v17321_v60  ;;  %v14224_v30 = vmul.f32 %v13908_v36, %v17323_v9  ;;  %v17325_v17 = vld [vmem:[#allocation94_spill] sm:$0xff]  ;;  %v17327_v1 = vld [vmem:[#allocation95_spill] sm:$0xff]  ;;  %v17328_v35 = vld [vmem:[#allocation96_spill] sm:$0xff] }
 0x339   : > { %v14228_v24 = vmul.f32 %v13912_v25, %v17325_v17  ;;  %v14232_v28 = vmul.f32 %v13916_v15, %v17327_v1  ;;  %v14236_v8 = vmul.f32 %v13920_v12, %v17328_v35  ;;  %v17330_v53 = vld [vmem:[#allocation24_spill] sm:$0xff]  ;;  %v17331_v60 = vld [vmem:[#allocation97_spill] sm:$0xff]  ;;  %v17334_v9 = vld [vmem:[#allocation98_spill] sm:$0xff]  ;;  %v2608_v1 = vmul.f32 0.044715, %v13948_v27 }
 0x33a   : > { %17322 = vst [vmem:[#allocation117_spill] sm:$0xff] %v14220_v26  ;;  %17324 = vst [vmem:[#allocation118_spill] sm:$0xff] %v14224_v30  ;;  %v14240_v46 = vmul.f32 %v13924_v62, %v17330_v53  ;;  %v17332_v26 = vld [vmem:[#allocation123_spill] sm:$0xff]  ;;  %v17335_v30 = vld [vmem:[#allocation124_spill] sm:$0xff]  ;;  %v2609_v62 = vmul.f32 0.044715, %v13952_v34 }
 0x33b   : > { %17326 = vst [vmem:[#allocation119_spill] sm:$0xff] %v14228_v24  ;;  %17329 = vst [vmem:[#allocation120_spill] sm:$0xff] %v14236_v8  ;;  %v14244_v36 = vmul.f32 %v17332_v26, %v17331_v60  ;;  %v14248_v25 = vmul.f32 %v17335_v30, %v17334_v9  ;;  %v17336_v17 = vld [vmem:[#allocation99_spill] sm:$0xff]  ;;  %v17337_v24 = vld [vmem:[#allocation125_spill] sm:$0xff]  ;;  %v2610_v53 = vmul.f32 0.044715, %v13956_v10 }
 0x33c   : > { %v14252_v15 = vmul.f32 %v17337_v24, %v17336_v17  ;;  %v17338_v12 = vld [vmem:[#allocation100_spill] sm:$0xff]  ;;  %v17339_v35 = vld [vmem:[#allocation126_spill] sm:$0xff]  ;;  %v2611_v26 = vmul.f32 0.044715, %v13960_v32  ;;  %v17340_v60 = vld [vmem:[#allocation101_spill] sm:$0xff] }
 0x33d   : > { %17333 = vst [vmem:[#allocation121_spill] sm:$0xff] %v14244_v36  ;;  %v14257_v8 = vmul.f32 %v17339_v35, %v17338_v12  ;;  %v17341_v36 = vld [vmem:[#allocation127_spill] sm:$0xff]  ;;  %v2612_v9 = vmul.f32 0.044715, %v13964_v55  ;;  %v2613_v24 = vmul.f32 0.044715, %v13968_v13 }
 0x33e   : > { %v14264_v30 = vmul.f32 %v17341_v36, %v17340_v60  ;;  %v2614_v27 = vmul.f32 0.044715, %v13972_v48  ;;  %v2615_v17 = vmul.f32 0.044715, %v13976_v11  ;;  %v2616_v35 = vmul.f32 0.044715, %v13980_v19 }
 0x33f   : > { %v2617_v34 = vmul.f32 0.044715, %v13984_v49  ;;  %v17343_v12 = vld [vmem:[#allocation26_spill] sm:$0xff]  ;;  %v2618_v32 = vmul.f32 0.044715, %v13988_v22  ;;  %v17345_v55 = vld [vmem:[#allocation29_spill] sm:$0xff] }
 0x340   : > { %17342 = vst [vmem:[#allocation122_spill] sm:$0xff] %v14264_v30  ;;  %v14273_v10 = vadd.f32 %v2608_v1, %v17343_v12  ;;  %v2619_v36 = vmul.f32 0.044715, %v13992_v21  ;;  %v2620_v60 = vmul.f32 0.044715, %v13996_v4  ;;  %v14279_v30 = vadd.f32 %v2609_v62, %v17345_v55  ;;  %v17347_v19 = vld [vmem:[#allocation31_spill] sm:$0xff] }
 0x341   : > { %v2621_v13 = vmul.f32 0.044715, %v14000_v38  ;;  %v2622_v48 = vmul.f32 0.044715, %v14004_v3  ;;  %v2623_v11 = vmul.f32 0.044715, %v14008_v41  ;;  %v14285_v49 = vadd.f32 %v2610_v53, %v17347_v19 }
 0x342   : > { %17344 = vst [vmem:[#allocation123_spill] sm:$0xff] %v14273_v10  ;;  %17346 = vst [vmem:[#allocation124_spill] sm:$0xff] %v14279_v30  ;;  %v2624_v1 = vmul.f32 0.044715, %v14012_v29  ;;  %v2625_v22 = vmul.f32 0.044715, %v14016_v61 }
 0x343   : > { %17348 = vst [vmem:[#allocation125_spill] sm:$0xff] %v14285_v49  ;;  %v2626_v21 = vmul.f32 0.044715, %v14020_v50  ;;  %v17349_v12 = vld [vmem:[#allocation28_spill] sm:$0xff]  ;;  %v14294_v62 = vmul.f32 0.044715, %v14024_v57 }
 0x344   : > { %v14291_v4 = vadd.f32 %v2611_v26, %v17349_v12  ;;  %v14297_v38 = vmul.f32 0.044715, %v14028_v33  ;;  %v14300_v3 = vmul.f32 0.044715, %v14032_v20  ;;  %v17351_v53 = vld [vmem:[#allocation30_spill] sm:$0xff]  ;;  %v17353_v57 = vld [vmem:[#allocation33_spill] sm:$0xff] }
 0x345   : > { %v14303_v41 = vadd.f32 %v2612_v9, %v17351_v53  ;;  %v14306_v29 = vmul.f32 0.044715, %v14036_v23  ;;  %v14309_v61 = vmul.f32 0.044715, %v14040_v31  ;;  %v14312_v50 = vmul.f32 0.044715, %v14044_v39 }
 0x346   : > { %17350 = vst [vmem:[#allocation126_spill] sm:$0xff] %v14291_v4  ;;  %v14315_v26 = vadd.f32 %v2613_v24, %v17353_v57  ;;  %v14318_v33 = vmul.f32 0.044715, %v14048_v51  ;;  %v14321_v20 = vmul.f32 0.044715, %v14052_v7  ;;  %v17355_v9 = vld [vmem:[#allocation128_spill] sm:$0xff] }
 0x347   : > { %17352 = vst [vmem:[#allocation127_spill] sm:$0xff] %v14303_v41  ;;  %v14324_v53 = vmul.f32 0.044715, %v17355_v9  ;;  %v17356_v23 = vld [vmem:[#allocation35_spill] sm:$0xff]  ;;  %v17358_v31 = vld [vmem:[#allocation129_spill] sm:$0xff]  ;;  %v17359_v39 = vld [vmem:[#allocation130_spill] sm:$0xff] }
 0x348   : > { %17354 = vst [vmem:[#allocation134_spill] sm:$0xff] %v14315_v26  ;;  %v14327_v12 = vadd.f32 %v2614_v27, %v17356_v23  ;;  %v14330_v19 = vmul.f32 0.044715, %v17358_v31  ;;  %v14333_v55 = vmul.f32 0.044715, %v17359_v39  ;;  %v17360_v24 = vld [vmem:[#allocation131_spill] sm:$0xff] }
 0x349   : > { %v14336_v57 = vmul.f32 0.044715, %v17360_v24  ;;  %v17361_v51 = vld [vmem:[#allocation32_spill] sm:$0xff]  ;;  %v14342_v7 = vmul.f32 0.044715, %v14072_v45  ;;  %v17364_v27 = vld [vmem:[#allocation102_spill] sm:$0xff] }
 0x34a   : > { %17357 = vst [vmem:[#allocation128_spill] sm:$0xff] %v14327_v12  ;;  %v14339_v26 = vadd.f32 %v2615_v17, %v17361_v51  ;;  %v17363_v9 = vld [vmem:[#allocation132_spill] sm:$0xff]  ;;  %v14348_v23 = vmul.f32 0.044715, %v17364_v27  ;;  %v17365_v31 = vld [vmem:[#allocation34_spill] sm:$0xff]  ;;  %v17367_v39 = vld [vmem:[#allocation103_spill] sm:$0xff] }
 0x34b   : > { %v14345_v41 = vmul.f32 0.044715, %v17363_v9  ;;  %v14351_v12 = vadd.f32 %v2616_v35, %v17365_v31  ;;  %v14354_v4 = vmul.f32 0.044715, %v17367_v39  ;;  %v17368_v24 = vld [vmem:[#allocation104_spill] sm:$0xff]  ;;  %v17369_v17 = vld [vmem:[#allocation105_spill] sm:$0xff] }
 0x34c   : > { %17362 = vst [vmem:[#allocation129_spill] sm:$0xff] %v14339_v26  ;;  %v14357_v49 = vmul.f32 0.044715, %v17368_v24  ;;  %v14360_v51 = vmul.f32 0.044715, %v17369_v17  ;;  %v17371_v45 = vld [vmem:[#allocation37_spill] sm:$0xff] }
 0x34d   : > { %17366 = vst [vmem:[#allocation130_spill] sm:$0xff] %v14351_v12  ;;  %v14363_v26 = vadd.f32 %v2617_v34, %v17371_v45  ;;  %v17373_v9 = vld [vmem:[#allocation133_spill] sm:$0xff]  ;;  %v17374_v27 = vld [vmem:[#allocation106_spill] sm:$0xff]  ;;  %v14372_v35 = vmul.f32 0.044715, %v14104_v47  ;;  %v17377_v39 = vld [vmem:[#allocation39_spill] sm:$0xff] }
 0x34e   : > { %17370 = vst [vmem:[#allocation131_spill] sm:$0xff] %v14360_v51  ;;  %v14366_v30 = vmul.f32 0.044715, %v17373_v9  ;;  %v14369_v10 = vmul.f32 0.044715, %v17374_v27  ;;  %v14375_v31 = vadd.f32 %v2618_v32, %v17377_v39  ;;  %v17379_v24 = vld [vmem:[#allocation107_spill] sm:$0xff] }
 0x34f   : > { %17372 = vst [vmem:[#allocation132_spill] sm:$0xff] %v14363_v26  ;;  %17376 = vst [vmem:[#allocation103_spill] sm:$0xff] %v14372_v35  ;;  %v14378_v12 = vmul.f32 0.044715, %v17379_v24  ;;  %v17380_v17 = vld [vmem:[#allocation108_spill] sm:$0xff]  ;;  %v17382_v34 = vld [vmem:[#allocation109_spill] sm:$0xff] }
 0x350   : > { %17375 = vst [vmem:[#allocation102_spill] sm:$0xff] %v14369_v10  ;;  %17378 = vst [vmem:[#allocation104_spill] sm:$0xff] %v14375_v31  ;;  %v14381_v51 = vmul.f32 0.044715, %v17380_v17  ;;  %v14384_v45 = vmul.f32 0.044715, %v17382_v34 }
 0x351   : > { %v17384_v9 = vld [vmem:[#allocation36_spill] sm:$0xff]  ;;  %v17386_v27 = vld [vmem:[#allocation110_spill] sm:$0xff]  ;;  %v17387_v47 = vld [vmem:[#allocation111_spill] sm:$0xff] }
 0x352   : > { %17381 = vst [vmem:[#allocation105_spill] sm:$0xff] %v14381_v51  ;;  %17383 = vst [vmem:[#allocation133_spill] sm:$0xff] %v14384_v45  ;;  %v14387_v26 = vadd.f32 %v2619_v36, %v17384_v9  ;;  %v14390_v10 = vmul.f32 0.044715, %v17386_v27  ;;  %v14393_v35 = vmul.f32 0.044715, %v17387_v47 }
 0x353   : > { %v17388_v32 = vld [vmem:[#allocation112_spill] sm:$0xff]  ;;  %v17389_v24 = vld [vmem:[#allocation38_spill] sm:$0xff]  ;;  %v17390_v17 = vld [vmem:[#allocation113_spill] sm:$0xff]  ;;  %v14414_v47 = vmul.f32 0.044715, %v14144_v5 }
 0x354   : > { %17385 = vst [vmem:[#allocation106_spill] sm:$0xff] %v14387_v26  ;;  %v14396_v39 = vmul.f32 0.044715, %v17388_v32  ;;  %v14399_v31 = vadd.f32 %v2620_v60, %v17389_v24  ;;  %v14402_v51 = vmul.f32 0.044715, %v17390_v17  ;;  %v17391_v34 = vld [vmem:[#allocation114_spill] sm:$0xff] }
 0x355   : > { %v14405_v45 = vmul.f32 0.044715, %v17391_v34  ;;  %v17392_v36 = vld [vmem:[#allocation115_spill] sm:$0xff]  ;;  %v17393_v27 = vld [vmem:[#allocation41_spill] sm:$0xff]  ;;  %v14417_v32 = vmul.f32 0.044715, %v14148_v6 }
 0x356   : > { %v14408_v9 = vmul.f32 0.044715, %v17392_v36  ;;  %v14411_v26 = vadd.f32 %v2621_v13, %v17393_v27  ;;  %v14420_v60 = vmul.f32 0.044715, %v14152_v59  ;;  %v17395_v17 = vld [vmem:[#allocation47_spill] sm:$0xff]  ;;  %v17399_v6 = vld [vmem:[#allocation116_spill] sm:$0xff] }
 0x357   : > { %v14423_v24 = vadd.f32 %v2622_v48, %v17395_v17  ;;  %v14426_v34 = vmul.f32 0.044715, %v14156_v43  ;;  %v14429_v36 = vmul.f32 0.044715, %v14160_v14  ;;  %v14432_v13 = vmul.f32 0.044715, %v14164_v42 }
 0x358   : > { %17394 = vst [vmem:[#allocation107_spill] sm:$0xff] %v14411_v26  ;;  %v17397_v5 = vld [vmem:[#allocation43_spill] sm:$0xff]  ;;  %v14438_v26 = vmul.f32 0.044715, %v17399_v6  ;;  %v14441_v59 = vmul.f32 0.044715, %v14172_v54 }
 0x359   : > { %17396 = vst [vmem:[#allocation108_spill] sm:$0xff] %v14423_v24  ;;  %v14435_v27 = vadd.f32 %v2623_v11, %v17397_v5  ;;  %v14444_v48 = vmul.f32 0.044715, %v14176_v58  ;;  %v17400_v43 = vld [vmem:[#allocation60_spill] sm:$0xff]  ;;  %v14450_v14 = vmul.f32 0.044715, %v14180_v52 }
 0x35a   : > { %v14447_v17 = vadd.f32 %v2624_v1, %v17400_v43  ;;  %v14453_v42 = vmul.f32 0.044715, %v14184_v56  ;;  %v14456_v11 = vmul.f32 0.044715, %v14188_v2  ;;  %v17402_v6 = vld [vmem:[#allocation61_spill] sm:$0xff]  ;;  %v17404_v52 = vld [vmem:[#allocation62_spill] sm:$0xff] }
 0x35b   : > { %17398 = vst [vmem:[#allocation109_spill] sm:$0xff] %v14435_v27  ;;  %v14459_v5 = vadd.f32 %v2625_v22, %v17402_v6  ;;  %v14462_v54 = vmul.f32 0.044715, %v14192_v37  ;;  %v14465_v58 = vmul.f32 0.044715, %v14196_v0  ;;  %v14471_v43 = vadd.f32 %v2626_v21, %v17404_v52  ;;  %v17406_v37 = vld [vmem:[#allocation63_spill] sm:$0xff] }
 0x35c   : > { %17401 = vst [vmem:[#allocation110_spill] sm:$0xff] %v14447_v17  ;;  %v14468_v1 = vmul.f32 0.044715, %v14200_v63  ;;  %v14474_v56 = vmul.f32 0.044715, %v14204_v40  ;;  %v14484_v6 = vadd.f32 %v14294_v62, %v17406_v37  ;;  %v17408_v63 = vld [vmem:[#allocation117_spill] sm:$0xff] }
 0x35d   : > { %17403 = vst [vmem:[#allocation111_spill] sm:$0xff] %v14459_v5  ;;  %17405 = vst [vmem:[#allocation112_spill] sm:$0xff] %v14471_v43  ;;  %v14477_v2 = vmul.f32 0.044715, %v14208_v18  ;;  %v14480_v22 = vmul.f32 0.044715, %v14212_v44 }
 0x35e   : > { %17407 = vst [vmem:[#allocation113_spill] sm:$0xff] %v14484_v6  ;;  %v14487_v0 = vmul.f32 0.044715, %v14216_v16  ;;  %v14490_v5 = vmul.f32 0.044715, %v17408_v63  ;;  %v17409_v21 = vld [vmem:[#allocation118_spill] sm:$0xff] }
 0x35f   : > { %v14493_v52 = vmul.f32 0.044715, %v17409_v21  ;;  %v17410_v40 = vld [vmem:[#allocation64_spill] sm:$0xff]  ;;  %v17412_v43 = vld [vmem:[#allocation119_spill] sm:$0xff]  ;;  %v14503_v62 = vmul.f32 0.044715, %v14232_v28 }
 0x360   : > { %v14497_v18 = vadd.f32 %v14297_v38, %v17410_v40  ;;  %v14500_v44 = vmul.f32 0.044715, %v17412_v43  ;;  %v17413_v37 = vld [vmem:[#allocation120_spill] sm:$0xff]  ;;  %v17414_v63 = vld [vmem:[#allocation65_spill] sm:$0xff]  ;;  %v14513_v21 = vmul.f32 0.044715, %v14240_v46 }
 0x361   : > { %v14506_v16 = vmul.f32 0.044715, %v17413_v37  ;;  %v14510_v6 = vadd.f32 %v14300_v3, %v17414_v63  ;;  %v17416_v38 = vld [vmem:[#allocation121_spill] sm:$0xff]  ;;  %v14519_v43 = vmul.f32 0.044715, %v14248_v25  ;;  %v17419_v3 = vld [vmem:[#allocation122_spill] sm:$0xff] }
 0x362   : > { %17411 = vst [vmem:[#allocation114_spill] sm:$0xff] %v14497_v18  ;;  %v14516_v40 = vmul.f32 0.044715, %v17416_v38  ;;  %v17417_v18 = vld [vmem:[#allocation66_spill] sm:$0xff]  ;;  %v14526_v37 = vmul.f32 0.044715, %v14252_v15 }
 0x363   : > { %17415 = vst [vmem:[#allocation115_spill] sm:$0xff] %v14510_v6  ;;  %v14523_v28 = vadd.f32 %v14306_v29, %v17417_v18  ;;  %v14529_v17 = vmul.f32 0.044715, %v14257_v8  ;;  %v14532_v63 = vmul.f32 0.044715, %v17419_v3  ;;  %v17420_v46 = vld [vmem:[#allocation67_spill] sm:$0xff] }
 0x364   : > { %v14536_v38 = vadd.f32 %v14309_v61, %v17420_v46  ;;  %v17421_v6 = vld [vmem:[#allocation68_spill] sm:$0xff]  ;;  %v17422_v27 = vld [vmem:[#allocation69_spill] sm:$0xff]  ;;  %v17423_v15 = vld [vmem:[#allocation70_spill] sm:$0xff] }
 0x365   : > { %17418 = vst [vmem:[#allocation116_spill] sm:$0xff] %v14523_v28  ;;  %v14540_v25 = vadd.f32 %v14312_v50, %v17421_v6  ;;  %v14544_v29 = vadd.f32 %v14318_v33, %v17422_v27  ;;  %v14548_v18 = vadd.f32 %v14321_v20, %v17423_v15  ;;  %v17424_v8 = vld [vmem:[#allocation71_spill] sm:$0xff]  ;;  %v10992_v24 = vld [vmem:[%s11551_s21 + $0x18] sm:$0xff]   ;;  %v17427_v50 = vld [vmem:[#allocation73_spill] sm:$0xff] }
 0x366   : > { %v14552_v3 = vadd.f32 %v14324_v53, %v17424_v8  ;;  %v10991_v28 = vld [vmem:[%s11551_s21 + $0x10] sm:$0xff]   ;;  %v17426_v61 = vld [vmem:[#allocation72_spill] sm:$0xff]  ;;  %v14562_v6 = vadd.f32 %v14333_v55, %v17427_v50  ;;  %v17428_v33 = vld [vmem:[#allocation74_spill] sm:$0xff] }
 0x367   : > { %v14558_v46 = vadd.f32 %v14330_v19, %v17426_v61  ;;  %v14566_v27 = vadd.f32 %v14336_v57, %v17428_v33  ;;  %v17429_v20 = vld [vmem:[#allocation75_spill] sm:$0xff]  ;;  %v17431_v53 = vld [vmem:[#allocation76_spill] sm:$0xff]  ;;  %v17434_v61 = vld [vmem:[#allocation78_spill] sm:$0xff]  ;;  %10075 = vmatprep.subr.bf16.mxu1 %v10991_v28 }
 0x368   : > { %17425 = vst [vmem:[#allocation117_spill] sm:$0xff] %v14552_v3  ;;  %v14570_v15 = vadd.f32 %v14342_v7, %v17429_v20  ;;  %v14574_v8 = vadd.f32 %v14345_v41, %v17431_v53  ;;  %v17432_v3 = vld [vmem:[#allocation77_spill] sm:$0xff]  ;;  %v14582_v55 = vadd.f32 %v14354_v4, %v17434_v61  ;;  %v17435_v50 = vld [vmem:[#allocation79_spill] sm:$0xff]  ;;  %v17437_v7 = vld [vmem:[#allocation80_spill] sm:$0xff]  ;;  %10076 = vmatpush3.bf16.msra.mxu1 %v10991_v28 }
 0x369   : > { %v14578_v19 = vadd.f32 %v14348_v23, %v17432_v3  ;;  %v14586_v57 = vadd.f32 %v14357_v49, %v17435_v50  ;;  %v17438_v20 = vld [vmem:[#allocation131_spill] sm:$0xff]  ;;  %v17442_v53 = vld [vmem:[#allocation82_spill] sm:$0xff]  ;;  %v17446_v49 = vld [vmem:[#allocation84_spill] sm:$0xff]  ;;  %10077 = vmatprep.subr.bf16.mxu1 %v10992_v24 }
 0x36a   : > { %17430 = vst [vmem:[#allocation118_spill] sm:$0xff] %v14570_v15  ;;  %v14590_v33 = vadd.f32 %v17438_v20, %v17437_v7  ;;  %v17440_v15 = vld [vmem:[#allocation81_spill] sm:$0xff]  ;;  %v17443_v23 = vld [vmem:[#allocation102_spill] sm:$0xff]  ;;  %v17445_v4 = vld [vmem:[#allocation103_spill] sm:$0xff]  ;;  %v14606_v50 = vadd.f32 %v14378_v12, %v17446_v49 }
 0x36b   : > { %17433 = vst [vmem:[#allocation119_spill] sm:$0xff] %v14578_v19  ;;  %17436 = vst [vmem:[#allocation120_spill] sm:$0xff] %v14586_v57  ;;  %v14594_v41 = vadd.f32 %v14366_v30, %v17440_v15  ;;  %v14598_v3 = vadd.f32 %v17443_v23, %v17442_v53  ;;  %v17444_v19 = vld [vmem:[#allocation83_spill] sm:$0xff]  ;;  %v17447_v57 = vld [vmem:[#allocation85_spill] sm:$0xff] }
 0x36c   : > { %17439 = vst [vmem:[#allocation121_spill] sm:$0xff] %v14590_v33  ;;  %v14602_v61 = vadd.f32 %v17445_v4, %v17444_v19  ;;  %v17448_v20 = vld [vmem:[#allocation105_spill] sm:$0xff]  ;;  %v17449_v33 = vld [vmem:[#allocation86_spill] sm:$0xff]  ;;  %v17452_v19 = vld [vmem:[#allocation88_spill] sm:$0xff]  ;;  %10078 = vmatpush3.bf16.msra.mxu1 %v10992_v24 }
 0x36d   : > { %17441 = vst [vmem:[#allocation122_spill] sm:$0xff] %v14594_v41  ;;  %v14610_v7 = vadd.f32 %v17448_v20, %v17447_v57  ;;  %v17450_v30 = vld [vmem:[#allocation133_spill] sm:$0xff]  ;;  %v17451_v41 = vld [vmem:[#allocation87_spill] sm:$0xff]  ;;  %v14623_v28 = vadd.f32 %v14393_v35, %v17452_v19  ;;  %v17453_v12 = vld [vmem:[#allocation40_spill] sm:$0xff] }
 0x36e   : > { %v14614_v15 = vadd.f32 %v17450_v30, %v17449_v33  ;;  %v14618_v23 = vadd.f32 %v14390_v10, %v17451_v41  ;;  %v10993_v4 = vld [vmem:[%s11551_s21] sm:$0xff]   ;;  %v14627_v49 = vadd.f32 %v14396_v39, %v17453_v12  ;;  %v17454_v20 = vld [vmem:[#allocation42_spill] sm:$0xff]  ;;  %v17456_v10 = vld [vmem:[#allocation44_spill] sm:$0xff] }
 0x36f   : > { %v14631_v57 = vadd.f32 %v14402_v51, %v17454_v20  ;;  %v17455_v30 = vld [vmem:[#allocation45_spill] sm:$0xff]  ;;  %v14639_v41 = vadd.f32 %v14408_v9, %v17456_v10  ;;  %v17458_v19 = vld [vmem:[#allocation46_spill] sm:$0xff]  ;;  %v17460_v20 = vld [vmem:[#allocation51_spill] sm:$0xff]  ;;  %10119 = vmatprep.subr.bf16.mxu1 %v10993_v4 }
 0x370   : > { %v14635_v33 = vadd.f32 %v14405_v45, %v17455_v30  ;;  %v17457_v53 = vld [vmem:[#allocation89_spill] sm:$0xff]  ;;  %v14647_v39 = vadd.f32 %v14417_v32, %v17458_v19  ;;  %v14655_v45 = vadd.f32 %v14426_v34, %v17460_v20  ;;  %v17461_v30 = vld [vmem:[#allocation48_spill] sm:$0xff]  ;;  %v17462_v10 = vld [vmem:[#allocation50_spill] sm:$0xff] }
 0x371   : > { %v14643_v35 = vadd.f32 %v14414_v47, %v17457_v53  ;;  %v17459_v12 = vld [vmem:[#allocation49_spill] sm:$0xff]  ;;  %v14659_v9 = vadd.f32 %v14429_v36, %v17461_v30  ;;  %v14663_v47 = vadd.f32 %v14432_v13, %v17462_v10  ;;  %v17463_v53 = vld [vmem:[#allocation52_spill] sm:$0xff]  ;;  %v17464_v19 = vld [vmem:[#allocation58_spill] sm:$0xff] }
 0x372   : > { %v14651_v51 = vadd.f32 %v14420_v60, %v17459_v12  ;;  %v14667_v32 = vadd.f32 %v14438_v26, %v17463_v53  ;;  %v14671_v60 = vadd.f32 %v14441_v59, %v17464_v19  ;;  %v17465_v12 = vld [vmem:[#allocation90_spill] sm:$0xff]  ;;  %v17466_v20 = vld [vmem:[#allocation59_spill] sm:$0xff]  ;;  %v17467_v30 = vld [vmem:[#allocation53_spill] sm:$0xff] }
 0x373   : > { %v14675_v34 = vadd.f32 %v14444_v48, %v17465_v12  ;;  %v14679_v36 = vadd.f32 %v14450_v14, %v17466_v20  ;;  %v14683_v13 = vadd.f32 %v14453_v42, %v17467_v30  ;;  %v17468_v26 = vld [vmem:[#allocation54_spill] sm:$0xff]  ;;  %v17469_v53 = vld [vmem:[#allocation55_spill] sm:$0xff]  ;;  %v17470_v19 = vld [vmem:[#allocation56_spill] sm:$0xff] }
 0x374   : > { %v14687_v24 = vadd.f32 %v14456_v11, %v17468_v26  ;;  %v14691_v59 = vadd.f32 %v14462_v54, %v17469_v53  ;;  %v14695_v48 = vadd.f32 %v14465_v58, %v17470_v19  ;;  %v17471_v12 = vld [vmem:[#allocation57_spill] sm:$0xff]  ;;  %v17472_v20 = vld [vmem:[#allocation23_spill] sm:$0xff]  ;;  %v17478_v19 = vld [vmem:[#allocation92_spill] sm:$0xff] }
 0x375   : > { %v14699_v14 = vadd.f32 %v14468_v1, %v17471_v12  ;;  %v14703_v42 = vadd.f32 %v14474_v56, %v17472_v20  ;;  %v17473_v4 = vld [vmem:[#allocation25_spill] sm:$0xff]  ;;  %v17474_v26 = vld [vmem:[#allocation27_spill] sm:$0xff]  ;;  %v14719_v1 = vadd.f32 %v14490_v5, %v17478_v19  ;;  %v17482_v20 = vld [vmem:[#allocation94_spill] sm:$0xff] }
 0x376   : > { %v14707_v11 = vadd.f32 %v14477_v2, %v17473_v4  ;;  %v14711_v54 = vadd.f32 %v14480_v22, %v17474_v26  ;;  %v17476_v53 = vld [vmem:[#allocation91_spill] sm:$0xff]  ;;  %v17480_v12 = vld [vmem:[#allocation93_spill] sm:$0xff]  ;;  %v14727_v2 = vadd.f32 %v14500_v44, %v17482_v20  ;;  %v17486_v26 = vld [vmem:[#allocation96_spill] sm:$0xff] }
 0x377   : > { %v14715_v58 = vadd.f32 %v14487_v0, %v17476_v53  ;;  %17479 = vst [vmem:[#allocation103_spill] sm:$0xff] %v14719_v1  ;;  %v14723_v56 = vadd.f32 %v14493_v52, %v17480_v12  ;;  %v17484_v4 = vld [vmem:[#allocation95_spill] sm:$0xff]  ;;  %v14735_v0 = vadd.f32 %v14506_v16, %v17486_v26  ;;  %v17488_v53 = vld [vmem:[#allocation24_spill] sm:$0xff]  ;;  %v17490_v19 = vld [vmem:[#allocation97_spill] sm:$0xff] }
 0x378   : > { %17475 = vst [vmem:[#allocation131_spill] sm:$0xff] %v14711_v54  ;;  %17483 = vst [vmem:[#allocation133_spill] sm:$0xff] %v14727_v2  ;;  %v14731_v22 = vadd.f32 %v14503_v62, %v17484_v4  ;;  %v14739_v5 = vadd.f32 %v14513_v21, %v17488_v53  ;;  %v14743_v52 = vadd.f32 %v14516_v40, %v17490_v19  ;;  %v17492_v12 = vld [vmem:[#allocation98_spill] sm:$0xff]  ;;  %v17494_v20 = vld [vmem:[#allocation99_spill] sm:$0xff] }
 0x379   : > { %17477 = vst [vmem:[#allocation102_spill] sm:$0xff] %v14715_v58  ;;  %17481 = vst [vmem:[#allocation105_spill] sm:$0xff] %v14723_v56  ;;  %v14747_v44 = vadd.f32 %v14519_v43, %v17492_v12  ;;  %v14751_v62 = vadd.f32 %v14526_v37, %v17494_v20  ;;  %v17496_v4 = vld [vmem:[#allocation100_spill] sm:$0xff]  ;;  %v17498_v26 = vld [vmem:[#allocation123_spill] sm:$0xff] }
 0x37a   : > { %17485 = vst [vmem:[#allocation135_spill] sm:$0xff] %v14731_v22  ;;  %17487 = vst [vmem:[#allocation136_spill] sm:$0xff] %v14735_v0  ;;  %v14755_v16 = vadd.f32 %v14529_v17, %v17496_v4  ;;  %v2768_v30 = vmul.f32 0.7978846, %v17498_v26  ;;  %v17499_v21 = vld [vmem:[#allocation124_spill] sm:$0xff]  ;;  %v17500_v10 = vld [vmem:[#allocation101_spill] sm:$0xff] }
 0x37b   : > { %17489 = vst [vmem:[#allocation137_spill] sm:$0xff] %v14739_v5  ;;  %17491 = vst [vmem:[#allocation138_spill] sm:$0xff] %v14743_v52  ;;  %v2769_v53 = vmul.f32 0.7978846, %v17499_v21  ;;  %v14761_v40 = vadd.f32 %v14532_v63, %v17500_v10  ;;  %v17502_v19 = vld [vmem:[#allocation125_spill] sm:$0xff]  ;;  %v17503_v43 = vld [vmem:[#allocation126_spill] sm:$0xff] }
 0x37c   : > { %17493 = vst [vmem:[#allocation139_spill] sm:$0xff] %v14747_v44  ;;  %17495 = vst [vmem:[#allocation140_spill] sm:$0xff] %v14751_v62  ;;  %v2770_v52 = vmul.f32 0.7978846, %v17502_v19  ;;  %v2771_v12 = vmul.f32 0.7978846, %v17503_v43  ;;  %11055 = vtanh.f32 %v2768_v30 }
 0x37d   : > { %17497 = vst [vmem:[#allocation141_spill] sm:$0xff] %v14755_v16  ;;  %17501 = vst [vmem:[#allocation123_spill] sm:$0xff] %v14761_v40  ;;  %v17504_v44 = vld [vmem:[#allocation127_spill] sm:$0xff]  ;;  %v17505_v37 = vld [vmem:[#allocation134_spill] sm:$0xff]  ;;  %11057 = vtanh.f32 %v2769_v53  ;;  %v2780_v43 = vmul.f32 0.7978846, %v14399_v31 }
 0x37e   : > { %v2772_v5 = vmul.f32 0.7978846, %v17504_v44  ;;  %v2773_v20 = vmul.f32 0.7978846, %v17505_v37  ;;  %v17506_v62 = vld [vmem:[#allocation128_spill] sm:$0xff]  ;;  %v17507_v17 = vld [vmem:[#allocation129_spill] sm:$0xff]  ;;  %11059 = vtanh.f32 %v2770_v52 }
 0x37f   : > { %v2774_v0 = vmul.f32 0.7978846, %v17506_v62  ;;  %v2775_v4 = vmul.f32 0.7978846, %v17507_v17  ;;  %v17508_v26 = vld [vmem:[#allocation130_spill] sm:$0xff]  ;;  %v17509_v21 = vld [vmem:[#allocation132_spill] sm:$0xff]  ;;  %11061 = vtanh.f32 %v2771_v12 }
 0x380   : > { %v2776_v16 = vmul.f32 0.7978846, %v17508_v26  ;;  %v2777_v22 = vmul.f32 0.7978846, %v17509_v21  ;;  %v17510_v2 = vld [vmem:[#allocation104_spill] sm:$0xff]  ;;  %v17511_v10 = vld [vmem:[#allocation106_spill] sm:$0xff]  ;;  %11063 = vtanh.f32 %v2772_v5 }
 0x381   : > { %v2778_v63 = vmul.f32 0.7978846, %v17510_v2  ;;  %v2779_v19 = vmul.f32 0.7978846, %v17511_v10  ;;  %v17512_v40 = vld [vmem:[#allocation107_spill] sm:$0xff]  ;;  %v17513_v37 = vld [vmem:[#allocation108_spill] sm:$0xff]  ;;  %11065 = vtanh.f32 %v2773_v20 }
 0x382   : > { %v2781_v44 = vmul.f32 0.7978846, %v17512_v40  ;;  %v2782_v56 = vmul.f32 0.7978846, %v17513_v37  ;;  %v17514_v62 = vld [vmem:[#allocation109_spill] sm:$0xff]  ;;  %v17515_v17 = vld [vmem:[#allocation110_spill] sm:$0xff]  ;;  %11067 = vtanh.f32 %v2774_v0 }
 0x383   : > { %v2783_v1 = vmul.f32 0.7978846, %v17514_v62  ;;  %v2784_v30 = vmul.f32 0.7978846, %v17515_v17  ;;  %v17516_v26 = vld [vmem:[#allocation111_spill] sm:$0xff]  ;;  %v17517_v21 = vld [vmem:[#allocation112_spill] sm:$0xff]  ;;  %11069 = vtanh.f32 %v2775_v4 }
 0x384   : > { %v2785_v58 = vmul.f32 0.7978846, %v17516_v26  ;;  %v14780_v54 = vmul.f32 0.7978846, %v17517_v21  ;;  %v17518_v53 = vld [vmem:[#allocation113_spill] sm:$0xff]  ;;  %v17519_v31 = vld [vmem:[#allocation114_spill] sm:$0xff]  ;;  %11071 = vtanh.f32 %v2776_v16 }
 0x385   : > { %v14783_v2 = vmul.f32 0.7978846, %v17518_v53  ;;  %v14786_v10 = vmul.f32 0.7978846, %v17519_v31  ;;  %v17520_v52 = vld [vmem:[#allocation115_spill] sm:$0xff]  ;;  %v17521_v37 = vld [vmem:[#allocation116_spill] sm:$0xff]  ;;  %11073 = vtanh.f32 %v2777_v22 }
 0x386   : > { %v14789_v40 = vmul.f32 0.7978846, %v17520_v52  ;;  %v14792_v62 = vmul.f32 0.7978846, %v17521_v37  ;;  %v14795_v12 = vmul.f32 0.7978846, %v14536_v38  ;;  %v14830_v4 = vpop.eup %11055  ;;  %11075 = vtanh.f32 %v2778_v63 }
 0x387   : > { %v14798_v17 = vmul.f32 0.7978846, %v14540_v25  ;;  %v14801_v26 = vmul.f32 0.7978846, %v14544_v29  ;;  %v14804_v5 = vmul.f32 0.7978846, %v14548_v18  ;;  %11077 = vtanh.f32 %v2779_v19 }
 0x388   : > { %v17522_v21 = vld [vmem:[#allocation117_spill] sm:$0xff]  ;;  %v14810_v31 = vmul.f32 0.7978846, %v14558_v46  ;;  %v14813_v38 = vmul.f32 0.7978846, %v14562_v6  ;;  %v17523_v20 = vld [vmem:[#allocation118_spill] sm:$0xff]  ;;  %11079 = vtanh.f32 %v2780_v43 }
 0x389   : > { %v14807_v53 = vmul.f32 0.7978846, %v17522_v21  ;;  %v14816_v25 = vmul.f32 0.7978846, %v14566_v27  ;;  %v14819_v29 = vmul.f32 0.7978846, %v17523_v20  ;;  %11081 = vtanh.f32 %v2781_v44 }
 0x38a   : > { %v14822_v18 = vmul.f32 0.7978846, %v14574_v8  ;;  %v17524_v0 = vld [vmem:[#allocation119_spill] sm:$0xff]  ;;  %v14828_v46 = vmul.f32 0.7978846, %v14582_v55  ;;  %v17525_v6 = vld [vmem:[#allocation120_spill] sm:$0xff]  ;;  %v14841_v8 = vpop.eup %11057  ;;  %11083 = vtanh.f32 %v2782_v56 }
 0x38b   : > { %v14825_v52 = vmul.f32 0.7978846, %v17524_v0  ;;  %v14833_v37 = vmul.f32 0.7978846, %v17525_v6  ;;  %v17526_v27 = vld [vmem:[#allocation121_spill] sm:$0xff]  ;;  %v17527_v20 = vld [vmem:[#allocation122_spill] sm:$0xff]  ;;  %v14852_v6 = vpop.eup %11059  ;;  %11085 = vtanh.f32 %v2783_v1 }
 0x38c   : > { %v14836_v21 = vmul.f32 0.7978846, %v17526_v27  ;;  %v14839_v16 = vmul.f32 0.7978846, %v17527_v20  ;;  %v14844_v0 = vmul.f32 0.7978846, %v14598_v3  ;;  %v14863_v3 = vpop.eup %11061  ;;  %11087 = vtanh.f32 %v2784_v30 }
 0x38d   : > { %v14847_v55 = vmul.f32 0.7978846, %v14602_v61  ;;  %v14850_v22 = vmul.f32 0.7978846, %v14606_v50  ;;  %v14855_v27 = vmul.f32 0.7978846, %v14610_v7  ;;  %v11064_v7 = vpop.eup %11063  ;;  %11089 = vtanh.f32 %v2785_v58 }
 0x38e   : > { %v14858_v20 = vmul.f32 0.7978846, %v14614_v15  ;;  %v14861_v63 = vmul.f32 0.7978846, %v14618_v23  ;;  %v14866_v61 = vmul.f32 0.7978846, %v14623_v28  ;;  %v11066_v28 = vpop.eup %11065  ;;  %11091 = vtanh.f32 %v14780_v54 }
 0x38f   : > { %v14869_v50 = vmul.f32 0.7978846, %v14627_v49  ;;  %v14872_v19 = vmul.f32 0.7978846, %v14631_v57  ;;  %v14875_v15 = vmul.f32 0.7978846, %v14635_v33  ;;  %v11068_v33 = vpop.eup %11067  ;;  %11093 = vtanh.f32 %v14783_v2 }
 0x390   : > { %17528 = vst [vmem:[#allocation124_spill] sm:$0xff] %v14866_v61  ;;  %v14878_v23 = vmul.f32 0.7978846, %v14639_v41  ;;  %v14881_v43 = vmul.f32 0.7978846, %v14643_v35  ;;  %v17536_v54 = vld [vmem:[#allocation102_spill] sm:$0xff]  ;;  %11095 = vtanh.f32 %v14786_v10 }
 0x391   : > { %v14884_v61 = vmul.f32 0.7978846, %v14647_v39  ;;  %v14887_v49 = vmul.f32 0.7978846, %v14651_v51  ;;  %v14890_v57 = vmul.f32 0.7978846, %v14655_v45  ;;  %v11070_v39 = vpop.eup %11069  ;;  %11097 = vtanh.f32 %v14789_v40 }
 0x392   : > { %v14893_v44 = vmul.f32 0.7978846, %v14659_v9  ;;  %v14896_v41 = vmul.f32 0.7978846, %v14663_v47  ;;  %v14899_v35 = vmul.f32 0.7978846, %v14667_v32  ;;  %v11072_v9 = vpop.eup %11071  ;;  %11099 = vtanh.f32 %v14792_v62 }
 0x393   : > { %v14902_v56 = vmul.f32 0.7978846, %v14671_v60  ;;  %v14905_v51 = vmul.f32 0.7978846, %v14675_v34  ;;  %v14908_v45 = vmul.f32 0.7978846, %v14679_v36  ;;  %v11074_v60 = vpop.eup %11073  ;;  %11101 = vtanh.f32 %v14795_v12 }
 0x394   : > { %v14911_v1 = vmul.f32 0.7978846, %v14683_v13  ;;  %v14914_v47 = vmul.f32 0.7978846, %v14687_v24  ;;  %v14917_v32 = vmul.f32 0.7978846, %v14691_v59  ;;  %v11076_v13 = vpop.eup %11075  ;;  %11103 = vtanh.f32 %v14798_v17 }
 0x395   : > { %v14921_v34 = vmul.f32 0.7978846, %v14695_v48  ;;  %v14924_v36 = vmul.f32 0.7978846, %v14699_v14  ;;  %v14927_v58 = vmul.f32 0.7978846, %v14703_v42  ;;  %v11078_v48 = vpop.eup %11077  ;;  %11105 = vtanh.f32 %v14801_v26 }
 0x396   : > { %17529 = vst [vmem:[#allocation125_spill] sm:$0xff] %v14917_v32  ;;  %v14931_v24 = vmul.f32 0.7978846, %v14707_v11  ;;  %v17534_v59 = vld [vmem:[#allocation131_spill] sm:$0xff]  ;;  %v14937_v32 = vmul.f32 0.7978846, %v17536_v54  ;;  %v11080_v11 = vpop.eup %11079  ;;  %11107 = vtanh.f32 %v14804_v5 }
 0x397   : > { %17530 = vst [vmem:[#allocation126_spill] sm:$0xff] %v14921_v34  ;;  %17531 = vst [vmem:[#allocation127_spill] sm:$0xff] %v14924_v36  ;;  %v14934_v30 = vmul.f32 0.7978846, %v17534_v59  ;;  %v17538_v14 = vld [vmem:[#allocation103_spill] sm:$0xff]  ;;  %v17540_v42 = vld [vmem:[#allocation105_spill] sm:$0xff]  ;;  %11109 = vtanh.f32 %v14807_v53 }
 0x398   : > { %17532 = vst [vmem:[#allocation134_spill] sm:$0xff] %v14927_v58  ;;  %17533 = vst [vmem:[#allocation128_spill] sm:$0xff] %v14931_v24  ;;  %v14941_v36 = vmul.f32 0.7978846, %v17538_v14  ;;  %v14944_v58 = vmul.f32 0.7978846, %v17540_v42  ;;  %v11082_v14 = vpop.eup %11081  ;;  %11111 = vtanh.f32 %v14810_v31 }
 0x399   : > { %17535 = vst [vmem:[#allocation129_spill] sm:$0xff] %v14934_v30  ;;  %17537 = vst [vmem:[#allocation130_spill] sm:$0xff] %v14937_v32  ;;  %v17542_v2 = vld [vmem:[#allocation133_spill] sm:$0xff]  ;;  %v17544_v59 = vld [vmem:[#allocation135_spill] sm:$0xff]  ;;  %v2928_v62 = vadd.f32 1.0, %v14830_v4  ;;  %v2931_v12 = vadd.f32 1.0, %v14863_v3  ;;  %11113 = vtanh.f32 %v14813_v38 }
 0x39a   : > { %17539 = vst [vmem:[#allocation132_spill] sm:$0xff] %v14941_v36  ;;  %17541 = vst [vmem:[#allocation104_spill] sm:$0xff] %v14944_v58  ;;  %v14947_v34 = vmul.f32 0.7978846, %v17542_v2  ;;  %v14951_v30 = vmul.f32 0.7978846, %v17544_v59  ;;  %v11084_v59 = vpop.eup %11083  ;;  %11115 = vtanh.f32 %v14816_v25 }
 0x39b   : > { %v17546_v54 = vld [vmem:[#allocation136_spill] sm:$0xff]  ;;  %v17548_v10 = vld [vmem:[#allocation137_spill] sm:$0xff]  ;;  %v17550_v42 = vld [vmem:[#allocation138_spill] sm:$0xff]  ;;  %v2935_v17 = vadd.f32 1.0, %v11070_v39  ;;  %v2936_v4 = vadd.f32 1.0, %v11072_v9  ;;  %v2938_v26 = vadd.f32 1.0, %v11076_v13 }
 0x39c   : > { %17543 = vst [vmem:[#allocation106_spill] sm:$0xff] %v14947_v34  ;;  %17545 = vst [vmem:[#allocation107_spill] sm:$0xff] %v14951_v30  ;;  %v14954_v32 = vmul.f32 0.7978846, %v17546_v54  ;;  %v14957_v24 = vmul.f32 0.7978846, %v17548_v10 }
 0x39d   : > { %v14961_v58 = vmul.f32 0.7978846, %v17550_v42  ;;  %v17552_v2 = vld [vmem:[#allocation139_spill] sm:$0xff]  ;;  %v17554_v40 = vld [vmem:[#allocation140_spill] sm:$0xff]  ;;  %v17556_v54 = vld [vmem:[#allocation141_spill] sm:$0xff]  ;;  %v11086_v42 = vpop.eup %11085  ;;  %v2941_v3 = vadd.f32 1.0, %v11082_v14  ;;  %11117 = vtanh.f32 %v14819_v29 }
 0x39e   : > { %17547 = vst [vmem:[#allocation108_spill] sm:$0xff] %v14954_v32  ;;  %17549 = vst [vmem:[#allocation109_spill] sm:$0xff] %v14957_v24  ;;  %v14964_v34 = vmul.f32 0.7978846, %v17552_v2  ;;  %v14967_v36 = vmul.f32 0.7978846, %v17554_v40 }
 0x39f   : > { %17551 = vst [vmem:[#allocation110_spill] sm:$0xff] %v14961_v58  ;;  %v14971_v32 = vmul.f32 0.7978846, %v17556_v54  ;;  %v17558_v10 = vld [vmem:[#allocation123_spill] sm:$0xff]  ;;  %v2929_v2 = vadd.f32 1.0, %v14841_v8  ;;  %v2930_v40 = vadd.f32 1.0, %v14852_v6 }
 0x3a0   : > { %17553 = vst [vmem:[#allocation111_spill] sm:$0xff] %v14964_v34  ;;  %17555 = vst [vmem:[#allocation112_spill] sm:$0xff] %v14967_v36  ;;  %v14974_v24 = vmul.f32 0.7978846, %v17558_v10  ;;  %v11088_v36 = vpop.eup %11087  ;;  %v2932_v54 = vadd.f32 1.0, %v11064_v7  ;;  %v2934_v10 = vadd.f32 1.0, %v11068_v33  ;;  %11119 = vtanh.f32 %v14822_v18 }
 0x3a1   : > { %17557 = vst [vmem:[#allocation113_spill] sm:$0xff] %v14971_v32  ;;  %v2933_v32 = vadd.f32 1.0, %v11066_v28  ;;  %v2937_v34 = vadd.f32 1.0, %v11074_v60  ;;  %v2939_v8 = vadd.f32 1.0, %v11078_v48  ;;  %v2940_v6 = vadd.f32 1.0, %v11080_v11 }
 0x3a2   : > { %17559 = vst [vmem:[#allocation114_spill] sm:$0xff] %v14974_v24  ;;  %v11090_v24 = vpop.eup %11089  ;;  %v2942_v5 = vadd.f32 1.0, %v11084_v59  ;;  %v2943_v7 = vadd.f32 1.0, %v11086_v42  ;;  %v2944_v33 = vadd.f32 1.0, %v11088_v36  ;;  %v14988_v13 = vmul.f32 0.5, %v2928_v62 }
 0x3a3   : > { %v11092_v58 = vpop.eup %11091  ;;  %v2945_v53 = vadd.f32 1.0, %v11090_v24  ;;  %v14991_v11 = vmul.f32 0.5, %v2929_v2  ;;  %v14993_v14 = vmul.f32 0.5, %v2930_v40  ;;  %11121 = vtanh.f32 %v14825_v52 }
 0x3a4   : > { %v11094_v30 = vpop.eup %11093  ;;  %v2946_v39 = vadd.f32 1.0, %v11092_v58  ;;  %v14996_v36 = vmul.f32 0.5, %v2931_v12  ;;  %v14998_v58 = vmul.f32 0.5, %v2932_v54  ;;  %11123 = vtanh.f32 %v14828_v46 }
 0x3a5   : > { %v11096_v28 = vpop.eup %11095  ;;  %v2947_v60 = vadd.f32 1.0, %v11094_v30  ;;  %v15001_v30 = vmul.f32 0.5, %v2933_v32  ;;  %v15003_v18 = vmul.f32 0.5, %v2934_v10  ;;  %11125 = vtanh.f32 %v14833_v37 }
 0x3a6   : > { %v11098_v9 = vpop.eup %11097  ;;  %v2948_v31 = vadd.f32 1.0, %v11096_v28  ;;  %v15006_v2 = vmul.f32 0.5, %v2935_v17  ;;  %v15008_v52 = vmul.f32 0.5, %v2936_v4  ;;  %11127 = vtanh.f32 %v14836_v21 }
 0x3a7   : > { %v11100_v48 = vpop.eup %11099  ;;  %v2949_v38 = vadd.f32 1.0, %v11098_v9  ;;  %v15011_v54 = vmul.f32 0.5, %v2937_v34  ;;  %v15013_v46 = vmul.f32 0.5, %v2938_v26  ;;  %11129 = vtanh.f32 %v14839_v16 }
 0x3a8   : > { %v11102_v59 = vpop.eup %11101  ;;  %v2950_v25 = vadd.f32 1.0, %v11100_v48  ;;  %v15016_v28 = vmul.f32 0.5, %v2939_v8  ;;  %v15018_v37 = vmul.f32 0.5, %v2940_v6  ;;  %11131 = vtanh.f32 %v14844_v0 }
 0x3a9   : > { %v11104_v29 = vpop.eup %11103  ;;  %v2951_v24 = vadd.f32 1.0, %v11102_v59  ;;  %v15021_v9 = vmul.f32 0.5, %v2941_v3  ;;  %v15023_v21 = vmul.f32 0.5, %v2942_v5  ;;  %11133 = vtanh.f32 %v14847_v55 }
 0x3aa   : > { %v11106_v62 = vpop.eup %11105  ;;  %v2952_v42 = vadd.f32 1.0, %v11104_v29  ;;  %v15026_v48 = vmul.f32 0.5, %v2943_v7  ;;  %v15028_v16 = vmul.f32 0.5, %v2944_v33  ;;  %11135 = vtanh.f32 %v14850_v22 }
 0x3ab   : > { %v11108_v40 = vpop.eup %11107  ;;  %v2953_v12 = vadd.f32 1.0, %v11106_v62  ;;  %v15031_v59 = vmul.f32 0.5, %v2945_v53  ;;  %v15033_v0 = vmul.f32 0.5, %v2946_v39  ;;  %11137 = vtanh.f32 %v14855_v27 }
 0x3ac   : > { %v11110_v32 = vpop.eup %11109  ;;  %v2954_v10 = vadd.f32 1.0, %v11108_v40  ;;  %v15036_v29 = vmul.f32 0.5, %v2947_v60  ;;  %v15038_v55 = vmul.f32 0.5, %v2948_v31  ;;  %11139 = vtanh.f32 %v14858_v20 }
 0x3ad   : > { %v11112_v17 = vpop.eup %11111  ;;  %v2955_v4 = vadd.f32 1.0, %v11110_v32  ;;  %v15041_v62 = vmul.f32 0.5, %v2949_v38  ;;  %v15043_v22 = vmul.f32 0.5, %v2950_v25  ;;  %11141 = vtanh.f32 %v14861_v63  ;;  %v17560_v32 = vld [vmem:[#allocation124_spill] sm:$0xff] }
 0x3ae   : > { %v11114_v34 = vpop.eup %11113  ;;  %v2956_v26 = vadd.f32 1.0, %v11112_v17  ;;  %v15046_v40 = vmul.f32 0.5, %v2951_v24  ;;  %v15048_v27 = vmul.f32 0.5, %v2952_v42  ;;  %11143 = vtanh.f32 %v17560_v32 }
 0x3af   : > { %v11116_v8 = vpop.eup %11115  ;;  %v2957_v6 = vadd.f32 1.0, %v11114_v34  ;;  %v15051_v17 = vmul.f32 0.5, %v2953_v12  ;;  %v15053_v20 = vmul.f32 0.5, %v2954_v10  ;;  %11145 = vtanh.f32 %v14869_v50 }
 0x3b0   : > { %v11118_v3 = vpop.eup %11117  ;;  %v2958_v5 = vadd.f32 1.0, %v11116_v8  ;;  %v15056_v34 = vmul.f32 0.5, %v2955_v4  ;;  %v15058_v63 = vmul.f32 0.5, %v2956_v26  ;;  %11147 = vtanh.f32 %v14872_v19 }
 0x3b1   : > { %v11120_v7 = vpop.eup %11119  ;;  %v2959_v33 = vadd.f32 1.0, %v11118_v3  ;;  %v15061_v8 = vmul.f32 0.5, %v2957_v6  ;;  %11149 = vtanh.f32 %v14875_v15 }
 0x3b2   : > { %v11122_v53 = vpop.eup %11121  ;;  %v2960_v39 = vadd.f32 1.0, %v11120_v7  ;;  %v15063_v3 = vmul.f32 0.5, %v2958_v5  ;;  %11151 = vtanh.f32 %v14878_v23  ;;  %v17561_v23 = vld [vmem:[#allocation26_spill] sm:$0xff] }
 0x3b3   : > { %v11124_v60 = vpop.eup %11123  ;;  %v2961_v31 = vadd.f32 1.0, %v11122_v53  ;;  %v15066_v7 = vmul.f32 0.5, %v2959_v33  ;;  %11153 = vtanh.f32 %v14881_v43  ;;  %v17562_v43 = vld [vmem:[#allocation29_spill] sm:$0xff] }
 0x3b4   : > { %v11126_v38 = vpop.eup %11125  ;;  %v2962_v25 = vadd.f32 1.0, %v11124_v60  ;;  %v15068_v50 = vmul.f32 0.5, %v2960_v39  ;;  %11155 = vtanh.f32 %v14884_v61 }
 0x3b5   : > { %v11128_v24 = vpop.eup %11127  ;;  %v2963_v42 = vadd.f32 1.0, %v11126_v38  ;;  %v15071_v53 = vmul.f32 0.5, %v2961_v31  ;;  %v3088_v31 = vmul.f32 %v14988_v13, %v17561_v23  ;;  %11157 = vtanh.f32 %v14887_v49 }
 0x3b6   : > { %v11130_v12 = vpop.eup %11129  ;;  %v2964_v10 = vadd.f32 1.0, %v11128_v24  ;;  %v15073_v19 = vmul.f32 0.5, %v2962_v25  ;;  %11159 = vtanh.f32 %v14890_v57 }
 0x3b7   : > { %v11132_v4 = vpop.eup %11131  ;;  %v2965_v26 = vadd.f32 1.0, %v11130_v12  ;;  %v15076_v60 = vmul.f32 0.5, %v2963_v42  ;;  %v3089_v42 = vmul.f32 %v14991_v11, %v17562_v43  ;;  %3168 = vst.msk [vmem:[#allocation2] sm:$0xff] %vm1697_vm2, %v3088_v31  ;;  %11161 = vtanh.f32 %v14893_v44 }
 0x3b8   : > { %v11134_v6 = vpop.eup %11133  ;;  %v2966_v5 = vadd.f32 1.0, %v11132_v4  ;;  %v15078_v15 = vmul.f32 0.5, %v2964_v10  ;;  %v17563_v4 = vld [vmem:[#allocation31_spill] sm:$0xff]  ;;  %11163 = vtanh.f32 %v14896_v41 }
 0x3b9   : > { %v11136_v33 = vpop.eup %11135  ;;  %v2967_v39 = vadd.f32 1.0, %v11134_v6  ;;  %v15081_v32 = vmul.f32 0.5, %v2965_v26  ;;  %v3090_v26 = vmul.f32 %v14993_v14, %v17563_v4  ;;  %3169 = vst.msk [vmem:[#allocation2 + $0x8] sm:$0xff] %vm1697_vm2, %v3089_v42  ;;  %v17565_v14 = vld [vmem:[#allocation30_spill] sm:$0xff]  ;;  %11165 = vtanh.f32 %v14899_v35 }
 0x3ba   : > { %v11138_v38 = vpop.eup %11137  ;;  %v2968_v25 = vadd.f32 1.0, %v11136_v33  ;;  %v15086_v24 = vmul.f32 0.5, %v2966_v5  ;;  %v17564_v5 = vld [vmem:[#allocation28_spill] sm:$0xff]  ;;  %v3092_v23 = vmul.f32 %v14998_v58, %v17565_v14  ;;  %11167 = vtanh.f32 %v14902_v56  ;;  %v17567_v58 = vld [vmem:[#allocation35_spill] sm:$0xff] }
 0x3bb   : > { %v11140_v12 = vpop.eup %11139  ;;  %v2969_v10 = vadd.f32 1.0, %v11138_v38  ;;  %v15091_v61 = vmul.f32 0.5, %v2967_v39  ;;  %v3091_v11 = vmul.f32 %v14996_v36, %v17564_v5  ;;  %3170 = vst.msk [vmem:[#allocation2 + $0x10] sm:$0xff] %vm1697_vm2, %v3090_v26  ;;  %v17566_v36 = vld [vmem:[#allocation33_spill] sm:$0xff]  ;;  %11169 = vtanh.f32 %v14905_v51 }
 0x3bc   : > { %v11142_v13 = vpop.eup %11141  ;;  %v2970_v49 = vadd.f32 1.0, %v11140_v12  ;;  %v15097_v6 = vmul.f32 0.5, %v2968_v25  ;;  %v3093_v25 = vmul.f32 %v15001_v30, %v17566_v36  ;;  %v3094_v12 = vmul.f32 %v15003_v18, %v17567_v58  ;;  %3172 = vst.msk [vmem:[#allocation2 + $0x20] sm:$0xff] %vm1697_vm2, %v3092_v23  ;;  %v17568_v30 = vld [vmem:[#allocation32_spill] sm:$0xff]  ;;  %v17569_v18 = vld [vmem:[#allocation34_spill] sm:$0xff] }
 0x3bd   : > { %v11144_v57 = vpop.eup %11143  ;;  %v2971_v33 = vadd.f32 1.0, %v11142_v13  ;;  %v15103_v39 = vmul.f32 0.5, %v2969_v10  ;;  %3171 = vst.msk [vmem:[#allocation2 + $0x18] sm:$0xff] %vm1697_vm2, %v3091_v11  ;;  %v3095_v26 = vmul.f32 %v15006_v2, %v17568_v30  ;;  %11171 = vtanh.f32 %v14908_v45  ;;  %v17570_v2 = vld [vmem:[#allocation37_spill] sm:$0xff]  ;;  %v17576_v30 = vld [vmem:[#allocation127_spill] sm:$0xff] }
 0x3be   : > { %v11146_v44 = vpop.eup %11145  ;;  %v2972_v31 = vadd.f32 1.0, %v11144_v57  ;;  %v15109_v38 = vmul.f32 0.5, %v2970_v49  ;;  %3173 = vst.msk [vmem:[#allocation2 + $0x28] sm:$0xff] %vm1697_vm2, %v3093_v25  ;;  %v3096_v5 = vmul.f32 %v15008_v52, %v17569_v18  ;;  %3174 = vst.msk [vmem:[#allocation2 + $0x30] sm:$0xff] %vm1697_vm2, %v3094_v12  ;;  %11173 = vtanh.f32 %v14911_v1  ;;  %v17571_v52 = vld [vmem:[#allocation39_spill] sm:$0xff] }
 0x3bf   : > { %v11148_v41 = vpop.eup %11147  ;;  %v2973_v43 = vadd.f32 1.0, %v11146_v44  ;;  %v15115_v42 = vmul.f32 0.5, %v2971_v33  ;;  %v3097_v33 = vmul.f32 %v15011_v54, %v17570_v2  ;;  %3175 = vst.msk [vmem:[#allocation2 + $0x38] sm:$0xff] %vm1697_vm2, %v3095_v26  ;;  %11175 = vtanh.f32 %v14914_v47  ;;  %v17573_v54 = vld [vmem:[#allocation36_spill] sm:$0xff] }
 0x3c0   : > { %v11150_v35 = vpop.eup %11149  ;;  %v2974_v10 = vadd.f32 1.0, %v11148_v41  ;;  %v15121_v4 = vmul.f32 0.5, %v2972_v31  ;;  %v3098_v44 = vmul.f32 %v15013_v46, %v17571_v52  ;;  %3176 = vst.msk [vmem:[#allocation2 + $0x40] sm:$0xff] %vm1697_vm2, %v3096_v5  ;;  %v17572_v31 = vld [vmem:[#allocation125_spill] sm:$0xff]  ;;  %v3099_v41 = vmul.f32 %v15016_v28, %v17573_v54  ;;  %v17575_v46 = vld [vmem:[#allocation38_spill] sm:$0xff] }
 0x3c1   : > { %v11152_v56 = vpop.eup %11151  ;;  %v2975_v13 = vadd.f32 1.0, %v11150_v35  ;;  %v15127_v49 = vmul.f32 0.5, %v2973_v43  ;;  %11177 = vtanh.f32 %v17572_v31  ;;  %3177 = vst.msk [vmem:[#allocation2 + $0x48] sm:$0xff] %vm1697_vm2, %v3097_v33  ;;  %v17574_v43 = vld [vmem:[#allocation126_spill] sm:$0xff]  ;;  %v3100_v35 = vmul.f32 %v15018_v37, %v17575_v46  ;;  %v17577_v28 = vld [vmem:[#allocation41_spill] sm:$0xff]  ;;  %v17579_v37 = vld [vmem:[#allocation47_spill] sm:$0xff] }
 0x3c2   : > { %v11154_v51 = vpop.eup %11153  ;;  %v2976_v11 = vadd.f32 1.0, %v11152_v56  ;;  %v15133_v57 = vmul.f32 0.5, %v2974_v10  ;;  %11179 = vtanh.f32 %v17574_v43  ;;  %3178 = vst.msk [vmem:[#allocation2 + $0x50] sm:$0xff] %vm1697_vm2, %v3098_v44  ;;  %3179 = vst.msk [vmem:[#allocation2 + $0x58] sm:$0xff] %vm1697_vm2, %v3099_v41  ;;  %v17578_v5 = vld [vmem:[#allocation134_spill] sm:$0xff]  ;;  %v3102_v2 = vmul.f32 %v15023_v21, %v17579_v37  ;;  %v17582_v31 = vld [vmem:[#allocation129_spill] sm:$0xff] }
 0x3c3   : > { %v11156_v45 = vpop.eup %11155  ;;  %v2977_v14 = vadd.f32 1.0, %v11154_v51  ;;  %v15139_v23 = vmul.f32 0.5, %v2975_v13  ;;  %11181 = vtanh.f32 %v17576_v30  ;;  %v3101_v13 = vmul.f32 %v15021_v9, %v17577_v28  ;;  %3180 = vst.msk [vmem:[#allocation2 + $0x60] sm:$0xff] %vm1697_vm2, %v3100_v35  ;;  %v17581_v9 = vld [vmem:[#allocation43_spill] sm:$0xff]  ;;  %v17583_v21 = vld [vmem:[#allocation60_spill] sm:$0xff]  ;;  %v17584_v43 = vld [vmem:[#allocation130_spill] sm:$0xff] }
 0x3c4   : > { %v11158_v1 = vpop.eup %11157  ;;  %v2978_v36 = vadd.f32 1.0, %v11156_v45  ;;  %v15145_v25 = vmul.f32 0.5, %v2976_v11  ;;  %11183 = vtanh.f32 %v17578_v5  ;;  %v17580_v45 = vld [vmem:[#allocation128_spill] sm:$0xff]  ;;  %v3103_v44 = vmul.f32 %v15026_v48, %v17581_v9  ;;  %3182 = vst.msk [vmem:[#allocation2 + $0x70] sm:$0xff] %vm1697_vm2, %v3102_v2  ;;  %v17585_v48 = vld [vmem:[#allocation61_spill] sm:$0xff] }
 0x3c5   : > { %v11160_v47 = vpop.eup %11159  ;;  %v2979_v58 = vadd.f32 1.0, %v11158_v1  ;;  %v15151_v12 = vmul.f32 0.5, %v2977_v14  ;;  %11185 = vtanh.f32 %v17580_v45  ;;  %3181 = vst.msk [vmem:[#allocation2 + $0x68] sm:$0xff] %vm1697_vm2, %v3101_v13  ;;  %v3104_v41 = vmul.f32 %v15028_v16, %v17583_v21  ;;  %v17586_v30 = vld [vmem:[#allocation132_spill] sm:$0xff]  ;;  %v17587_v16 = vld [vmem:[#allocation62_spill] sm:$0xff] }
 0x3c6   : > { %v11162_v10 = vpop.eup %11161  ;;  %v2980_v26 = vadd.f32 1.0, %v11160_v47  ;;  %v15157_v56 = vmul.f32 0.5, %v2978_v36  ;;  %11187 = vtanh.f32 %v17582_v31  ;;  %v3105_v35 = vmul.f32 %v15031_v59, %v17585_v48  ;;  %3183 = vst.msk [vmem:[#allocation2 + $0x78] sm:$0xff] %vm1697_vm2, %v3103_v44  ;;  %v17588_v5 = vld [vmem:[#allocation104_spill] sm:$0xff]  ;;  %v17589_v59 = vld [vmem:[#allocation63_spill] sm:$0xff]  ;;  %v17590_v45 = vld [vmem:[#allocation106_spill] sm:$0xff] }
 0x3c7   : > { %v11164_v18 = vpop.eup %11163  ;;  %v2981_v51 = vadd.f32 1.0, %v11162_v10  ;;  %v15163_v11 = vmul.f32 0.5, %v2979_v58  ;;  %11189 = vtanh.f32 %v17584_v43  ;;  %v3106_v13 = vmul.f32 %v15033_v0, %v17587_v16  ;;  %3184 = vst.msk [vmem:[#allocation2 + $0x80] sm:$0xff] %vm1697_vm2, %v3104_v41  ;;  %v17591_v0 = vld [vmem:[#allocation64_spill] sm:$0xff]  ;;  %v17592_v31 = vld [vmem:[#allocation107_spill] sm:$0xff] }
 0x3c8   : > { %v11166_v33 = vpop.eup %11165  ;;  %v2982_v14 = vadd.f32 1.0, %v11164_v18  ;;  %v15169_v52 = vmul.f32 0.5, %v2980_v26  ;;  %11191 = vtanh.f32 %v17586_v30  ;;  %v3107_v2 = vmul.f32 %v15036_v29, %v17589_v59  ;;  %3185 = vst.msk [vmem:[#allocation2 + $0x88] sm:$0xff] %vm1697_vm2, %v3105_v35  ;;  %v17593_v29 = vld [vmem:[#allocation65_spill] sm:$0xff]  ;;  %v17594_v43 = vld [vmem:[#allocation108_spill] sm:$0xff] }
 0x3c9   : > { %v11168_v1 = vpop.eup %11167  ;;  %v2983_v36 = vadd.f32 1.0, %v11166_v33  ;;  %v15175_v54 = vmul.f32 0.5, %v2981_v51  ;;  %11193 = vtanh.f32 %v17588_v5  ;;  %v3108_v44 = vmul.f32 %v15038_v55, %v17591_v0  ;;  %3186 = vst.msk [vmem:[#allocation2 + $0x90] sm:$0xff] %vm1697_vm2, %v3106_v13  ;;  %v17595_v55 = vld [vmem:[#allocation66_spill] sm:$0xff]  ;;  %v17596_v30 = vld [vmem:[#allocation109_spill] sm:$0xff] }
 0x3ca   : > { %v11170_v47 = vpop.eup %11169  ;;  %v2984_v58 = vadd.f32 1.0, %v11168_v1  ;;  %v15181_v46 = vmul.f32 0.5, %v2982_v14  ;;  %11195 = vtanh.f32 %v17590_v45  ;;  %v3109_v41 = vmul.f32 %v15041_v62, %v17593_v29  ;;  %3187 = vst.msk [vmem:[#allocation2 + $0x98] sm:$0xff] %vm1697_vm2, %v3107_v2  ;;  %v17597_v62 = vld [vmem:[#allocation67_spill] sm:$0xff]  ;;  %v17598_v5 = vld [vmem:[#allocation110_spill] sm:$0xff] }
 0x3cb   : > { %v11172_v10 = vpop.eup %11171  ;;  %v2985_v26 = vadd.f32 1.0, %v11170_v47  ;;  %v15187_v28 = vmul.f32 0.5, %v2983_v36  ;;  %11197 = vtanh.f32 %v17592_v31  ;;  %v3110_v35 = vmul.f32 %v15043_v22, %v17595_v55  ;;  %3188 = vst.msk [vmem:[#allocation2 + $0xa0] sm:$0xff] %vm1697_vm2, %v3108_v44  ;;  %v17599_v22 = vld [vmem:[#allocation68_spill] sm:$0xff]  ;;  %v17600_v45 = vld [vmem:[#allocation111_spill] sm:$0xff] }
 0x3cc   : > { %v11174_v18 = vpop.eup %11173  ;;  %v2986_v51 = vadd.f32 1.0, %v11172_v10  ;;  %v15193_v37 = vmul.f32 0.5, %v2984_v58  ;;  %11199 = vtanh.f32 %v17594_v43  ;;  %v3111_v13 = vmul.f32 %v15046_v40, %v17597_v62  ;;  %3189 = vst.msk [vmem:[#allocation2 + $0xa8] sm:$0xff] %vm1697_vm2, %v3109_v41  ;;  %v17601_v40 = vld [vmem:[#allocation69_spill] sm:$0xff]  ;;  %v17602_v31 = vld [vmem:[#allocation112_spill] sm:$0xff] }
 0x3cd   : > { %v11176_v33 = vpop.eup %11175  ;;  %v2987_v14 = vadd.f32 1.0, %v11174_v18  ;;  %v15199_v9 = vmul.f32 0.5, %v2985_v26  ;;  %11201 = vtanh.f32 %v17596_v30  ;;  %v3112_v2 = vmul.f32 %v15048_v27, %v17599_v22  ;;  %3190 = vst.msk [vmem:[#allocation2 + $0xb0] sm:$0xff] %vm1697_vm2, %v3110_v35  ;;  %v17603_v27 = vld [vmem:[#allocation70_spill] sm:$0xff]  ;;  %v17604_v43 = vld [vmem:[#allocation113_spill] sm:$0xff] }
 0x3ce   : > { %v11178_v1 = vpop.eup %11177  ;;  %v2988_v36 = vadd.f32 1.0, %v11176_v33  ;;  %v15205_v21 = vmul.f32 0.5, %v2986_v51  ;;  %11203 = vtanh.f32 %v17598_v5  ;;  %v3113_v44 = vmul.f32 %v15051_v17, %v17601_v40  ;;  %3191 = vst.msk [vmem:[#allocation2 + $0xb8] sm:$0xff] %vm1697_vm2, %v3111_v13  ;;  %v17605_v17 = vld [vmem:[#allocation71_spill] sm:$0xff]  ;;  %v17606_v30 = vld [vmem:[#allocation114_spill] sm:$0xff]  ;;  %v17608_v22 = vld [vmem:[#allocation73_spill] sm:$0xff] }
 0x3cf   : > { %v11180_v47 = vpop.eup %11179  ;;  %v2989_v58 = vadd.f32 1.0, %v11178_v1  ;;  %v15211_v48 = vmul.f32 0.5, %v2987_v14  ;;  %11205 = vtanh.f32 %v17600_v45  ;;  %v3114_v41 = vmul.f32 %v15053_v20, %v17603_v27  ;;  %3192 = vst.msk [vmem:[#allocation2 + $0xc0] sm:$0xff] %vm1697_vm2, %v3112_v2  ;;  %v17607_v20 = vld [vmem:[#allocation72_spill] sm:$0xff]  ;;  %v17609_v2 = vld [vmem:[#allocation74_spill] sm:$0xff] }
 0x3d0   : > { %v11182_v10 = vpop.eup %11181  ;;  %v2990_v26 = vadd.f32 1.0, %v11180_v47  ;;  %v15217_v16 = vmul.f32 0.5, %v2988_v36  ;;  %11207 = vtanh.f32 %v17602_v31  ;;  %v3115_v35 = vmul.f32 %v15056_v34, %v17605_v17  ;;  %3193 = vst.msk [vmem:[#allocation2 + $0xc8] sm:$0xff] %vm1697_vm2, %v3113_v44  ;;  %v17610_v44 = vld [vmem:[#allocation75_spill] sm:$0xff] }
 0x3d1   : > { %v11184_v18 = vpop.eup %11183  ;;  %v2991_v51 = vadd.f32 1.0, %v11182_v10  ;;  %v15223_v59 = vmul.f32 0.5, %v2989_v58  ;;  %11209 = vtanh.f32 %v17604_v43  ;;  %v3116_v13 = vmul.f32 %v15058_v63, %v17607_v20  ;;  %3194 = vst.msk [vmem:[#allocation2 + $0xd0] sm:$0xff] %vm1697_vm2, %v3114_v41  ;;  %v17612_v41 = vld [vmem:[#allocation77_spill] sm:$0xff] }
 0x3d2   : > { %v11186_v33 = vpop.eup %11185  ;;  %v2992_v14 = vadd.f32 1.0, %v11184_v18  ;;  %v15229_v0 = vmul.f32 0.5, %v2990_v26  ;;  %11211 = vtanh.f32 %v17606_v30  ;;  %v3117_v34 = vmul.f32 %v15061_v8, %v17608_v22  ;;  %3195 = vst.msk [vmem:[#allocation2 + $0xd8] sm:$0xff] %vm1697_vm2, %v3115_v35  ;;  %v17616_v20 = vld [vmem:[#allocation81_spill] sm:$0xff] }
 0x3d3   : > { %v11188_v1 = vpop.eup %11187  ;;  %v2993_v36 = vadd.f32 1.0, %v11186_v33  ;;  %v15235_v29 = vmul.f32 0.5, %v2991_v51  ;;  %v3118_v33 = vmul.f32 %v15063_v3, %v17609_v2  ;;  %v3119_v63 = vmul.f32 %v15066_v7, %v17610_v44  ;;  %3196 = vst.msk [vmem:[#allocation2 + $0xe0] sm:$0xff] %vm1697_vm2, %v3116_v13  ;;  %v17620_v44 = vld [vmem:[#allocation85_spill] sm:$0xff] }
 0x3d4   : > { %v11190_v47 = vpop.eup %11189  ;;  %v2994_v58 = vadd.f32 1.0, %v11188_v1  ;;  %v15241_v55 = vmul.f32 0.5, %v2992_v14  ;;  %v17611_v1 = vld [vmem:[#allocation76_spill] sm:$0xff]  ;;  %v3121_v3 = vmul.f32 %v15071_v53, %v17612_v41  ;;  %3197 = vst.msk [vmem:[#allocation2 + $0xe8] sm:$0xff] %vm1697_vm2, %v3117_v34  ;;  %v3125_v13 = vmul.f32 %v15081_v32, %v17616_v20  ;;  %v17618_v34 = vld [vmem:[#allocation83_spill] sm:$0xff] }
 0x3d5   : > { %v11192_v10 = vpop.eup %11191  ;;  %v2995_v26 = vadd.f32 1.0, %v11190_v47  ;;  %v15247_v62 = vmul.f32 0.5, %v2993_v36  ;;  %v3120_v31 = vmul.f32 %v15068_v50, %v17611_v1  ;;  %v17613_v47 = vld [vmem:[#allocation78_spill] sm:$0xff]  ;;  %3198 = vst.msk [vmem:[#allocation2 + $0xf0] sm:$0xff] %vm1697_vm2, %v3118_v33  ;;  %v17614_v50 = vld [vmem:[#allocation79_spill] sm:$0xff]  ;;  %3199 = vst.msk [vmem:[#allocation2 + $0xf8] sm:$0xff] %vm1697_vm2, %v3119_v63  ;;  %v3127_v2 = vmul.f32 %v15091_v61, %v17618_v34 }
 0x3d6   : > { %v11194_v18 = vpop.eup %11193  ;;  %v2996_v5 = vadd.f32 1.0, %v11192_v10  ;;  %v15252_v51 = vmul.f32 0.5, %v2994_v58  ;;  %v3122_v43 = vmul.f32 %v15073_v19, %v17613_v47  ;;  %v3123_v35 = vmul.f32 %v15076_v60, %v17614_v50  ;;  %v17615_v10 = vld [vmem:[#allocation80_spill] sm:$0xff]  ;;  %3201 = vst.msk [vmem:[#allocation2 + $0x108] sm:$0xff] %vm1697_vm2, %v3121_v3  ;;  %v17621_v1 = vld [vmem:[#allocation86_spill] sm:$0xff]  ;;  %3205 = vst.msk [vmem:[#allocation2 + $0x128] sm:$0xff] %vm1697_vm2, %v3125_v13 }
 0x3d7   : > { %v11196_v45 = vpop.eup %11195  ;;  %v2997_v14 = vadd.f32 1.0, %v11194_v18  ;;  %v15259_v40 = vmul.f32 0.5, %v2995_v26  ;;  %v3124_v30 = vmul.f32 %v15078_v15, %v17615_v10  ;;  %3200 = vst.msk [vmem:[#allocation2 + $0x100] sm:$0xff] %vm1697_vm2, %v3120_v31  ;;  %v17617_v18 = vld [vmem:[#allocation82_spill] sm:$0xff]  ;;  %v17619_v33 = vld [vmem:[#allocation84_spill] sm:$0xff]  ;;  %v3129_v63 = vmul.f32 %v15103_v39, %v17620_v44  ;;  %3207 = vst.msk [vmem:[#allocation2 + $0x138] sm:$0xff] %vm1697_vm2, %v3127_v2 }
 0x3d8   : > { %v11198_v36 = vpop.eup %11197  ;;  %v2998_v27 = vadd.f32 1.0, %v11196_v45  ;;  %v15266_v8 = vmul.f32 0.5, %v2996_v5  ;;  %v3126_v5 = vmul.f32 %v15086_v24, %v17617_v18  ;;  %3202 = vst.msk [vmem:[#allocation2 + $0x110] sm:$0xff] %vm1697_vm2, %v3122_v43  ;;  %v3128_v45 = vmul.f32 %v15097_v6, %v17619_v33  ;;  %3203 = vst.msk [vmem:[#allocation2 + $0x118] sm:$0xff] %vm1697_vm2, %v3123_v35  ;;  %v17623_v3 = vld [vmem:[#allocation88_spill] sm:$0xff]  ;;  %v17625_v50 = vld [vmem:[#allocation42_spill] sm:$0xff] }
 0x3d9   : > { %v11200_v7 = vpop.eup %11199  ;;  %v2999_v58 = vadd.f32 1.0, %v11198_v36  ;;  %v15274_v17 = vmul.f32 0.5, %v2997_v14  ;;  %3204 = vst.msk [vmem:[#allocation2 + $0x120] sm:$0xff] %vm1697_vm2, %v3124_v30  ;;  %v3130_v31 = vmul.f32 %v15109_v38, %v17621_v1  ;;  %v3132_v47 = vmul.f32 %v15121_v4, %v17623_v3  ;;  %3209 = vst.msk [vmem:[#allocation2 + $0x148] sm:$0xff] %vm1697_vm2, %v3129_v63  ;;  %v17626_v30 = vld [vmem:[#allocation45_spill] sm:$0xff]  ;;  %v17631_v34 = vld [vmem:[#allocation51_spill] sm:$0xff] }
 0x3da   : > { %v11202_v53 = vpop.eup %11201  ;;  %v3000_v19 = vadd.f32 1.0, %v11200_v7  ;;  %v15282_v26 = vmul.f32 0.5, %v2998_v27  ;;  %3206 = vst.msk [vmem:[#allocation2 + $0x130] sm:$0xff] %vm1697_vm2, %v3126_v5  ;;  %v17622_v27 = vld [vmem:[#allocation87_spill] sm:$0xff]  ;;  %3208 = vst.msk [vmem:[#allocation2 + $0x140] sm:$0xff] %vm1697_vm2, %v3128_v45  ;;  %v17624_v7 = vld [vmem:[#allocation40_spill] sm:$0xff]  ;;  %v3134_v35 = vmul.f32 %v15133_v57, %v17625_v50  ;;  %v3140_v2 = vmul.f32 %v15169_v52, %v17631_v34 }
 0x3db   : > { %v11204_v60 = vpop.eup %11203  ;;  %v3001_v15 = vadd.f32 1.0, %v11202_v53  ;;  %v15290_v22 = vmul.f32 0.5, %v2999_v58  ;;  %v3131_v41 = vmul.f32 %v15115_v42, %v17622_v27  ;;  %v3133_v58 = vmul.f32 %v15127_v49, %v17624_v7  ;;  %3210 = vst.msk [vmem:[#allocation2 + $0x150] sm:$0xff] %vm1697_vm2, %v3130_v31  ;;  %3212 = vst.msk [vmem:[#allocation2 + $0x160] sm:$0xff] %vm1697_vm2, %v3132_v47  ;;  %v17628_v57 = vld [vmem:[#allocation89_spill] sm:$0xff]  ;;  %v17629_v5 = vld [vmem:[#allocation46_spill] sm:$0xff] }
 0x3dc   : > { %v11206_v32 = vpop.eup %11205  ;;  %v3002_v24 = vadd.f32 1.0, %v11204_v60  ;;  %v15298_v14 = vmul.f32 0.5, %v3000_v19  ;;  %v3135_v53 = vmul.f32 %v15139_v23, %v17626_v30  ;;  %v17627_v19 = vld [vmem:[#allocation44_spill] sm:$0xff]  ;;  %v3137_v18 = vmul.f32 %v15151_v12, %v17628_v57  ;;  %3214 = vst.msk [vmem:[#allocation2 + $0x170] sm:$0xff] %vm1697_vm2, %v3134_v35  ;;  %v17635_v63 = vld [vmem:[#allocation58_spill] sm:$0xff]  ;;  %v17637_v1 = vld [vmem:[#allocation59_spill] sm:$0xff] }
 0x3dd   : > { %v11208_v61 = vpop.eup %11207  ;;  %v3003_v6 = vadd.f32 1.0, %v11206_v32  ;;  %v15306_v36 = vmul.f32 0.5, %v3001_v15  ;;  %v3136_v20 = vmul.f32 %v15145_v25, %v17627_v19  ;;  %3211 = vst.msk [vmem:[#allocation2 + $0x158] sm:$0xff] %vm1697_vm2, %v3131_v41  ;;  %v3138_v60 = vmul.f32 %v15157_v56, %v17629_v5  ;;  %3213 = vst.msk [vmem:[#allocation2 + $0x168] sm:$0xff] %vm1697_vm2, %v3133_v58  ;;  %v17630_v15 = vld [vmem:[#allocation49_spill] sm:$0xff]  ;;  %v17632_v33 = vld [vmem:[#allocation48_spill] sm:$0xff] }
 0x3de   : > { %v11210_v39 = vpop.eup %11209  ;;  %v3004_v38 = vadd.f32 1.0, %v11208_v61  ;;  %v15314_v43 = vmul.f32 0.5, %v3002_v24  ;;  %v3139_v25 = vmul.f32 %v15163_v11, %v17630_v15  ;;  %v3141_v45 = vmul.f32 %v15175_v54, %v17632_v33  ;;  %3215 = vst.msk [vmem:[#allocation2 + $0x178] sm:$0xff] %vm1697_vm2, %v3135_v53  ;;  %v17633_v56 = vld [vmem:[#allocation50_spill] sm:$0xff]  ;;  %v17634_v24 = vld [vmem:[#allocation52_spill] sm:$0xff]  ;;  %3217 = vst.msk [vmem:[#allocation2 + $0x188] sm:$0xff] %vm1697_vm2, %v3137_v18 }
 0x3df   : > { %v11212_v42 = vpop.eup %11211  ;;  %v3006_v4 = vadd.f32 1.0, %v11210_v39  ;;  %v3083_v10 = vmul.f32 0.5, %v3003_v6  ;;  %3216 = vst.msk [vmem:[#allocation2 + $0x180] sm:$0xff] %vm1697_vm2, %v3136_v20  ;;  %v3142_v32 = vmul.f32 %v15181_v46, %v17633_v56  ;;  %v3143_v44 = vmul.f32 %v15187_v28, %v17634_v24  ;;  %3218 = vst.msk [vmem:[#allocation2 + $0x190] sm:$0xff] %vm1697_vm2, %v3138_v60  ;;  %v17636_v52 = vld [vmem:[#allocation90_spill] sm:$0xff]  ;;  %v17638_v61 = vld [vmem:[#allocation53_spill] sm:$0xff] }
 0x3e0   : > { %v3007_v49 = vadd.f32 1.0, %v11212_v42  ;;  %v3084_v13 = vmul.f32 0.5, %v3004_v38  ;;  %v3144_v11 = vmul.f32 %v15193_v37, %v17635_v63  ;;  %v3145_v54 = vmul.f32 %v15199_v9, %v17636_v52  ;;  %v17639_v46 = vld [vmem:[#allocation54_spill] sm:$0xff]  ;;  %3219 = vst.msk [vmem:[#allocation2 + $0x198] sm:$0xff] %vm1697_vm2, %v3139_v25  ;;  %3220 = vst.msk [vmem:[#allocation2 + $0x1a0] sm:$0xff] %vm1697_vm2, %v3140_v2  ;;  %v17640_v28 = vld [vmem:[#allocation55_spill] sm:$0xff] }
 0x3e1   : > { %v3086_v23 = vmul.f32 0.5, %v3006_v4  ;;  %v3146_v31 = vmul.f32 %v15205_v21, %v17637_v1  ;;  %v3147_v6 = vmul.f32 %v15211_v48, %v17638_v61  ;;  %v3148_v27 = vmul.f32 %v15217_v16, %v17639_v46  ;;  %3221 = vst.msk [vmem:[#allocation2 + $0x1a8] sm:$0xff] %vm1697_vm2, %v3141_v45  ;;  %v17641_v41 = vld [vmem:[#allocation56_spill] sm:$0xff]  ;;  %v17642_v3 = vld [vmem:[#allocation57_spill] sm:$0xff]  ;;  %v17643_v47 = vld [vmem:[#allocation23_spill] sm:$0xff] }
 0x3e2   : > { %v3087_v12 = vmul.f32 0.5, %v3007_v49  ;;  %v3149_v37 = vmul.f32 %v15223_v59, %v17640_v28  ;;  %v3150_v9 = vmul.f32 %v15229_v0, %v17641_v41  ;;  %v3151_v21 = vmul.f32 %v15235_v29, %v17642_v3  ;;  %3222 = vst.msk [vmem:[#allocation2 + $0x1b0] sm:$0xff] %vm1697_vm2, %v3142_v32  ;;  %3223 = vst.msk [vmem:[#allocation2 + $0x1b8] sm:$0xff] %vm1697_vm2, %v3143_v44  ;;  %v3352_v16 = vld [vmem:[#allocation2 + $0x1] ss:$2 sm:$0xff]  ;;  %v17645_v59 = vld [vmem:[#allocation27_spill] sm:$0xff] }
 0x3e3   : > { %v3152_v48 = vmul.f32 %v15241_v55, %v17643_v47  ;;  %3224 = vst.msk [vmem:[#allocation2 + $0x1c0] sm:$0xff] %vm1697_vm2, %v3144_v11  ;;  %v17644_v39 = vld [vmem:[#allocation25_spill] sm:$0xff]  ;;  %v3154_v7 = vmul.f32 %v15252_v51, %v17645_v59  ;;  %v17646_v0 = vld [vmem:[#allocation91_spill] sm:$0xff]  ;;  %v17647_v29 = vld [vmem:[#allocation92_spill] sm:$0xff] }
 0x3e4   : > { %v3153_v38 = vmul.f32 %v15247_v62, %v17644_v39  ;;  %v3155_v58 = vmul.f32 %v15259_v40, %v17646_v0  ;;  %v3156_v50 = vmul.f32 %v15266_v8, %v17647_v29  ;;  %3225 = vst.msk [vmem:[#allocation2 + $0x1c8] sm:$0xff] %vm1697_vm2, %v3145_v54  ;;  %3226 = vst.msk [vmem:[#allocation2 + $0x1d0] sm:$0xff] %vm1697_vm2, %v3146_v31  ;;  %v3354_v55 = vld [vmem:[#allocation2 + $0x11] ss:$2 sm:$0xff]  ;;  %v3356_v35 = vld [vmem:[#allocation2 + $0x21] ss:$2 sm:$0xff] }
 0x3e5   : > { %3227 = vst.msk [vmem:[#allocation2 + $0x1d8] sm:$0xff] %vm1697_vm2, %v3147_v6  ;;  %3228 = vst.msk [vmem:[#allocation2 + $0x1e0] sm:$0xff] %vm1697_vm2, %v3148_v27  ;;  %v3358_v62 = vld [vmem:[#allocation2 + $0x31] ss:$2 sm:$0xff]  ;;  %v17648_v42 = vld [vmem:[#allocation93_spill] sm:$0xff] }
 0x3e6   : > { %v3157_v51 = vmul.f32 %v15274_v17, %v17648_v42  ;;  %v17649_v4 = vld [vmem:[#allocation94_spill] sm:$0xff]  ;;  %v17650_v30 = vld [vmem:[#allocation95_spill] sm:$0xff]  ;;  %v17651_v53 = vld [vmem:[#allocation96_spill] sm:$0xff]  ;;  %3229 = vst.msk [vmem:[#allocation2 + $0x1e8] sm:$0xff] %vm1697_vm2, %v3149_v37 }
 0x3e7   : > { %v3158_v40 = vmul.f32 %v15282_v26, %v17649_v4  ;;  %v3159_v8 = vmul.f32 %v15290_v22, %v17650_v30  ;;  %v3160_v19 = vmul.f32 %v15298_v14, %v17651_v53  ;;  %3230 = vst.msk [vmem:[#allocation2 + $0x1f0] sm:$0xff] %vm1697_vm2, %v3150_v9  ;;  %3231 = vst.msk [vmem:[#allocation2 + $0x1f8] sm:$0xff] %vm1697_vm2, %v3151_v21  ;;  %v17652_v20 = vld [vmem:[#allocation24_spill] sm:$0xff]  ;;  %v17653_v49 = vld [vmem:[#allocation97_spill] sm:$0xff] }
 0x3e8   : > { %3232 = vst.msk [vmem:[#allocation2 + $0x200] sm:$0xff] %vm1697_vm2, %v3152_v48  ;;  %v3161_v17 = vmul.f32 %v15306_v36, %v17652_v20  ;;  %v3162_v26 = vmul.f32 %v15314_v43, %v17653_v49  ;;  %v17654_v57 = vld [vmem:[#allocation98_spill] sm:$0xff]  ;;  %v17655_v22 = vld [vmem:[#allocation99_spill] sm:$0xff]  ;;  %3233 = vst.msk [vmem:[#allocation2 + $0x208] sm:$0xff] %vm1697_vm2, %v3153_v38  ;;  %v3431_v43 = vpack.c.bf16 %v3354_v55, %v3352_v16 }
 0x3e9   : > { %v3163_v18 = vmul.f32 %v3083_v10, %v17654_v57  ;;  %v3164_v5 = vmul.f32 %v3084_v13, %v17655_v22  ;;  %3234 = vst.msk [vmem:[#allocation2 + $0x210] sm:$0xff] %vm1697_vm2, %v3154_v7  ;;  %3235 = vst.msk [vmem:[#allocation2 + $0x218] sm:$0xff] %vm1697_vm2, %v3155_v58  ;;  %v3360_v14 = vld [vmem:[#allocation2 + $0x41] ss:$2 sm:$0xff]  ;;  %v3362_v60 = vld [vmem:[#allocation2 + $0x51] ss:$2 sm:$0xff]  ;;  %v3432_v10 = vpack.c.bf16 %v3358_v62, %v3356_v35 }
 0x3ea   : > { %3236 = vst.msk [vmem:[#allocation2 + $0x220] sm:$0xff] %vm1697_vm2, %v3156_v50  ;;  %v17656_v15 = vld [vmem:[#allocation100_spill] sm:$0xff]  ;;  %v17657_v25 = vld [vmem:[#allocation101_spill] sm:$0xff]  ;;  %3237 = vst.msk [vmem:[#allocation2 + $0x228] sm:$0xff] %vm1697_vm2, %v3157_v51  ;;  %10079 = vmatprep.mubr.msk.bf16.mxu1 %vm1697_vm2, %v3431_v43 }
 0x3eb   : > { %v3166_v36 = vmul.f32 %v3086_v23, %v17656_v15  ;;  %v3167_v34 = vmul.f32 %v3087_v12, %v17657_v25  ;;  %3238 = vst.msk [vmem:[#allocation2 + $0x230] sm:$0xff] %vm1697_vm2, %v3158_v40  ;;  %3239 = vst.msk [vmem:[#allocation2 + $0x238] sm:$0xff] %vm1697_vm2, %v3159_v8  ;;  %v10994_v13 = vld [vmem:[%s11551_s21 + $0x8] sm:$0xff]   ;;  %v3433_v23 = vpack.c.bf16 %v3362_v60, %v3360_v14  ;;  %10080 = vmatmul.mubr.msk.bf16.vlgmr.msra.gmra.mrb[0].mxu1 %vm1697_vm2, %v3432_v10  ;;  %v11473_v2 = vld [vmem:[%s11551_s21] sm:$0xff]  }
 0x3ec   : > { %3240 = vst.msk [vmem:[#allocation2 + $0x240] sm:$0xff] %vm1697_vm2, %v3160_v19  ;;  %3241 = vst.msk [vmem:[#allocation2 + $0x248] sm:$0xff] %vm1697_vm2, %v3161_v17  ;;  %10120 = vmatpush3.bf16.msra.mxu1 %v11473_v2  ;;  %v15424_v33 = vld [vmem:[%s11551_s21 + $0x20] sm:$0xff]   ;;  %v3366_v12 = vld [vmem:[#allocation2 + $0x71] ss:$2 sm:$0xff] }
 0x3ed   : > { %3242 = vst.msk [vmem:[#allocation2 + $0x250] sm:$0xff] %vm1697_vm2, %v3162_v26  ;;  %3243 = vst.msk [vmem:[#allocation2 + $0x258] sm:$0xff] %vm1697_vm2, %v3163_v18  ;;  %10083 = vmatprep.mubr.msk.bf16.mxu1 %vm1697_vm2, %v3433_v23  ;;  %10121 = vmatprep.subr.bf16.mxu1 %v10994_v13  ;;  %v3364_v45 = vld [vmem:[#allocation2 + $0x61] ss:$2 sm:$0xff]  ;;  %v3370_v32 = vld [vmem:[#allocation2 + $0x91] ss:$2 sm:$0xff] }
 0x3ee   : > { %3244 = vst.msk [vmem:[#allocation2 + $0x260] sm:$0xff] %vm1697_vm2, %v3164_v5  ;;  %3246 = vst.msk [vmem:[#allocation2 + $0x270] sm:$0xff] %vm1697_vm2, %v3166_v36  ;;  %v3368_v56 = vld [vmem:[#allocation2 + $0x81] ss:$2 sm:$0xff]  ;;  %v3434_v24 = vpack.c.bf16 %v3366_v12, %v3364_v45  ;;  %v3374_v11 = vld [vmem:[#allocation2 + $0xb1] ss:$2 sm:$0xff] }
 0x3ef   : > { %3247 = vst.msk [vmem:[#allocation2 + $0x278] sm:$0x7f] %vm1855_vm3, %v3167_v34  ;;  %v3435_v44 = vpack.c.bf16 %v3370_v32, %v3368_v56  ;;  %v3372_v63 = vld [vmem:[#allocation2 + $0xa1] ss:$2 sm:$0xff]  ;;  %v3378_v54 = vld [vmem:[#allocation2 + $0xd1] ss:$2 sm:$0xff] }
 0x3f0   : > { %10122 = vmatpush3.bf16.msra.mxu1 %v10994_v13  ;;  %v3376_v52 = vld [vmem:[#allocation2 + $0xc1] ss:$2 sm:$0xff]  ;;  %v3436_v1 = vpack.c.bf16 %v3374_v11, %v3372_v63  ;;  %v3382_v6 = vld [vmem:[#allocation2 + $0xf1] ss:$2 sm:$0xff]  ;;  %v3248_v22 = vld [vmem:[#allocation2] ss:$2 sm:$0xff] }
 0x3f1   : > { %10163 = vmatprep.subr.bf16.mxu1 %v15424_v33  ;;  %v3437_v31 = vpack.c.bf16 %v3378_v54, %v3376_v52  ;;  %v3380_v61 = vld [vmem:[#allocation2 + $0xe1] ss:$2 sm:$0xff]  ;;  %v3386_v27 = vld [vmem:[#allocation2 + $0x111] ss:$2 sm:$0xff]  ;;  %v3250_v5 = vld [vmem:[#allocation2 + $0x10] ss:$2 sm:$0xff] }
 0x3f2   : > { %v3384_v46 = vld [vmem:[#allocation2 + $0x101] ss:$2 sm:$0xff]  ;;  %v3438_v28 = vpack.c.bf16 %v3382_v6, %v3380_v61  ;;  %v3390_v9 = vld [vmem:[#allocation2 + $0x131] ss:$2 sm:$0xff]  ;;  %v3327_v60 = vpack.c.bf16 %v3250_v5, %v3248_v22  ;;  %v3252_v15 = vld [vmem:[#allocation2 + $0x20] ss:$2 sm:$0xff] }
 0x3f3   : > { %10084 = vmatmul.mubr.msk.bf16.gmra.mrb[4].mxu1 %vm1697_vm2, %v3434_v24  ;;  %v3439_v37 = vpack.c.bf16 %v3386_v27, %v3384_v46  ;;  %v3388_v41 = vld [vmem:[#allocation2 + $0x121] ss:$2 sm:$0xff]  ;;  %v3394_v21 = vld [vmem:[#allocation2 + $0x151] ss:$2 sm:$0xff]  ;;  %v3254_v36 = vld [vmem:[#allocation2 + $0x30] ss:$2 sm:$0xff] }
 0x3f4   : > { %10087 = vmatprep.mubr.msk.bf16.mxu1 %vm1697_vm2, %v3435_v44  ;;  %v3392_v3 = vld [vmem:[#allocation2 + $0x141] ss:$2 sm:$0xff]  ;;  %v3440_v47 = vpack.c.bf16 %v3390_v9, %v3388_v41  ;;  %v3398_v39 = vld [vmem:[#allocation2 + $0x171] ss:$2 sm:$0xff]  ;;  %v3256_v25 = vld [vmem:[#allocation2 + $0x40] ss:$2 sm:$0xff]  ;;  %v3328_v43 = vpack.c.bf16 %v3254_v36, %v3252_v15 }
 0x3f5   : > { %v3441_v48 = vpack.c.bf16 %v3394_v21, %v3392_v3  ;;  %v3396_v16 = vld [vmem:[#allocation2 + $0x161] ss:$2 sm:$0xff]  ;;  %v3402_v59 = vld [vmem:[#allocation2 + $0x191] ss:$2 sm:$0xff]  ;;  %v3258_v34 = vld [vmem:[#allocation2 + $0x50] ss:$2 sm:$0xff] }
 0x3f6   : > { %v3400_v38 = vld [vmem:[#allocation2 + $0x181] ss:$2 sm:$0xff]  ;;  %v3442_v7 = vpack.c.bf16 %v3398_v39, %v3396_v16  ;;  %v3406_v29 = vld [vmem:[#allocation2 + $0x1b1] ss:$2 sm:$0xff]  ;;  %v3329_v13 = vpack.c.bf16 %v3258_v34, %v3256_v25  ;;  %v3260_v23 = vld [vmem:[#allocation2 + $0x60] ss:$2 sm:$0xff] }
 0x3f7   : > { %v3443_v0 = vpack.c.bf16 %v3402_v59, %v3400_v38  ;;  %v3404_v58 = vld [vmem:[#allocation2 + $0x1a1] ss:$2 sm:$0xff]  ;;  %v3410_v55 = vld [vmem:[#allocation2 + $0x1d1] ss:$2 sm:$0xff]  ;;  %v3262_v2 = vld [vmem:[#allocation2 + $0x70] ss:$2 sm:$0xff] }
 0x3f8   : > { %v3408_v50 = vld [vmem:[#allocation2 + $0x1c1] ss:$2 sm:$0xff]  ;;  %v3444_v35 = vpack.c.bf16 %v3406_v29, %v3404_v58  ;;  %v3414_v51 = vld [vmem:[#allocation2 + $0x1f1] ss:$2 sm:$0xff]  ;;  %v3264_v45 = vld [vmem:[#allocation2 + $0x80] ss:$2 sm:$0xff]  ;;  %v3330_v56 = vpack.c.bf16 %v3262_v2, %v3260_v23 }
 0x3f9   : > { %v3445_v62 = vpack.c.bf16 %v3410_v55, %v3408_v50  ;;  %v3412_v42 = vld [vmem:[#allocation2 + $0x1e1] ss:$2 sm:$0xff]  ;;  %v3418_v40 = vld [vmem:[#allocation2 + $0x211] ss:$2 sm:$0xff]  ;;  %v3266_v12 = vld [vmem:[#allocation2 + $0x90] ss:$2 sm:$0xff] }
 0x3fa   : > { %v3416_v4 = vld [vmem:[#allocation2 + $0x201] ss:$2 sm:$0xff]  ;;  %v3446_v30 = vpack.c.bf16 %v3414_v51, %v3412_v42  ;;  %v3422_v19 = vld [vmem:[#allocation2 + $0x231] ss:$2 sm:$0xff]  ;;  %v3331_v32 = vpack.c.bf16 %v3266_v12, %v3264_v45  ;;  %v3268_v24 = vld [vmem:[#allocation2 + $0xa0] ss:$2 sm:$0xff] }
 0x3fb   : > { %10088 = vmatmul.mubr.msk.bf16.gmra.mrb[8].mxu1 %vm1697_vm2, %v3436_v1  ;;  %v3447_v8 = vpack.c.bf16 %v3418_v40, %v3416_v4  ;;  %v3420_v53 = vld [vmem:[#allocation2 + $0x221] ss:$2 sm:$0xff]  ;;  %v3426_v17 = vld [vmem:[#allocation2 + $0x251] ss:$2 sm:$0xff]  ;;  %v3270_v44 = vld [vmem:[#allocation2 + $0xb0] ss:$2 sm:$0xff] }
 0x3fc   : > { %10091 = vmatprep.mubr.msk.bf16.mxu1 %vm1697_vm2, %v3437_v31  ;;  %v3424_v20 = vld [vmem:[#allocation2 + $0x241] ss:$2 sm:$0xff]  ;;  %v3448_v49 = vpack.c.bf16 %v3422_v19, %v3420_v53  ;;  %v3430_v18 = vld [vmem:[#allocation2 + $0x271] ss:$2 sm:$0x7f]  ;;  %v3332_v52 = vpack.c.bf16 %v3270_v44, %v3268_v24 }
 0x3fd   : > { %v3449_v26 = vpack.c.bf16 %v3426_v17, %v3424_v20  ;;  %v3428_v57 = vld [vmem:[#allocation2 + $0x261] ss:$2 sm:$0xff]  ;;  %v3272_v63 = vld [vmem:[#allocation2 + $0xc0] ss:$2 sm:$0xff]  ;;  %v3274_v11 = vld [vmem:[#allocation2 + $0xd0] ss:$2 sm:$0xff] }
 0x3fe   : > { %v3450_v14 = vpack.c.bf16 %v3430_v18, %v3428_v57  ;;  %v10996_v10 = vld [vmem:[%s11551_s21 + $0x28] sm:$0xff]   ;;  %v3333_v54 = vpack.c.bf16 %v3274_v11, %v3272_v63  ;;  %v3278_v1 = vld [vmem:[#allocation2 + $0xf0] ss:$2 sm:$0xff] }
 0x3ff   : > { %v3280_v31 = vld [vmem:[#allocation2 + $0x100] ss:$2 sm:$0xff]  ;;  %v3282_v61 = vld [vmem:[#allocation2 + $0x110] ss:$2 sm:$0xff] }
 0x400   : > { %v3335_v46 = vpack.c.bf16 %v3282_v61, %v3280_v31  ;;  %v10997_v27 = vld [vmem:[%s11556_s25 + $0x10] sm:$0xff]   ;;  %v3288_v41 = vld [vmem:[#allocation2 + $0x140] ss:$2 sm:$0xff] }
 0x401   : > { %10207 = vmatprep.subr.bf16.mxu0 %v10997_v27  ;;  %v3290_v9 = vld [vmem:[#allocation2 + $0x150] ss:$2 sm:$0xff]  ;;  %v3296_v16 = vld [vmem:[#allocation2 + $0x180] ss:$2 sm:$0xff] }
 0x402   : > { %10208 = vmatpush3.bf16.msra.mxu0 %v10997_v27  ;;  %v3337_v21 = vpack.c.bf16 %v3290_v9, %v3288_v41  ;;  %v3298_v39 = vld [vmem:[#allocation2 + $0x190] ss:$2 sm:$0xff]  ;;  %v3304_v58 = vld [vmem:[#allocation2 + $0x1c0] ss:$2 sm:$0xff] }
 0x403   : > { %10092 = vmatmul.mubr.msk.bf16.gmra.mrb[12].mxu1 %vm1697_vm2, %v3438_v28  ;;  %v3284_v28 = vld [vmem:[#allocation2 + $0x120] ss:$2 sm:$0xff]  ;;  %v3339_v59 = vpack.c.bf16 %v3298_v39, %v3296_v16  ;;  %v3306_v29 = vld [vmem:[#allocation2 + $0x1d0] ss:$2 sm:$0xff] }
 0x404   : > { %10095 = vmatprep.mubr.msk.bf16.mxu1 %vm1697_vm2, %v3439_v37  ;;  %v3286_v37 = vld [vmem:[#allocation2 + $0x130] ss:$2 sm:$0xff]  ;;  %v3341_v55 = vpack.c.bf16 %v3306_v29, %v3304_v58  ;;  %v3312_v42 = vld [vmem:[#allocation2 + $0x200] ss:$2 sm:$0xff] }
 0x405   : > { %v3336_v3 = vpack.c.bf16 %v3286_v37, %v3284_v28  ;;  %v3314_v51 = vld [vmem:[#allocation2 + $0x210] ss:$2 sm:$0xff]  ;;  %v3320_v53 = vld [vmem:[#allocation2 + $0x240] ss:$2 sm:$0xff] }
 0x406   : > { %v3343_v40 = vpack.c.bf16 %v3314_v51, %v3312_v42  ;;  %v3322_v19 = vld [vmem:[#allocation2 + $0x250] ss:$2 sm:$0xff] }
 0x407   : > { %v3345_v17 = vpack.c.bf16 %v3322_v19, %v3320_v53  ;;  %v3987_v57 = vld [vmem:[#allocation2 + $0x2] ss:$2 sm:$0xff]  ;;  %v3989_v18 = vld [vmem:[#allocation2 + $0x12] ss:$2 sm:$0xff] }
 0x408   : > { %v4066_v5 = vpack.c.bf16 %v3989_v18, %v3987_v57  ;;  %v3995_v15 = vld [vmem:[#allocation2 + $0x42] ss:$2 sm:$0xff]  ;;  %v3997_v36 = vld [vmem:[#allocation2 + $0x52] ss:$2 sm:$0xff] }
 0x409   : > { %v4068_v34 = vpack.c.bf16 %v3997_v36, %v3995_v15  ;;  %v4005_v23 = vld [vmem:[#allocation2 + $0x92] ss:$2 sm:$0xff]  ;;  %v4007_v12 = vld [vmem:[#allocation2 + $0xa2] ss:$2 sm:$0xff] }
 0x40a   : > { %v4013_v24 = vld [vmem:[#allocation2 + $0xd2] ss:$2 sm:$0xff]  ;;  %v4015_v11 = vld [vmem:[#allocation2 + $0xe2] ss:$2 sm:$0xff] }
 0x40b   : > { %10096 = vmatmul.mubr.msk.bf16.gmra.mrb[16].mxu1 %vm1697_vm2, %v3440_v47  ;;  %v3292_v47 = vld [vmem:[#allocation2 + $0x160] ss:$2 sm:$0xff]  ;;  %v4065_v19 = vld [vmem:[#allocation2 + $0x272] ss:$2 sm:$0x7f] }
 0x40c   : > { %10099 = vmatprep.mubr.msk.bf16.mxu1 %vm1697_vm2, %v3441_v48  ;;  %v3294_v48 = vld [vmem:[#allocation2 + $0x170] ss:$2 sm:$0xff] }
 0x40d   : > { %v3338_v38 = vpack.c.bf16 %v3294_v48, %v3292_v47  ;;  %v4023_v61 = vld [vmem:[#allocation2 + $0x122] ss:$2 sm:$0xff]  ;;  %v4029_v27 = vld [vmem:[#allocation2 + $0x152] ss:$2 sm:$0xff] }
 0x40e   : > { %v4031_v41 = vld [vmem:[#allocation2 + $0x162] ss:$2 sm:$0xff]  ;;  %v4033_v9 = vld [vmem:[#allocation2 + $0x172] ss:$2 sm:$0xff] }
 0x40f   : > { %v4077_v47 = vpack.c.bf16 %v4033_v9, %v4031_v41  ;;  %v4039_v16 = vld [vmem:[#allocation2 + $0x1a2] ss:$2 sm:$0xff]  ;;  %v4041_v39 = vld [vmem:[#allocation2 + $0x1b2] ss:$2 sm:$0xff] }
 0x410   : > { %v4047_v58 = vld [vmem:[#allocation2 + $0x1e2] ss:$2 sm:$0xff]  ;;  %v4049_v29 = vld [vmem:[#allocation2 + $0x1f2] ss:$2 sm:$0xff] }
 0x411   : > { %v4055_v42 = vld [vmem:[#allocation2 + $0x222] ss:$2 sm:$0xff]  ;;  %v4057_v51 = vld [vmem:[#allocation2 + $0x232] ss:$2 sm:$0xff] }
 0x412   : > { %v4063_v53 = vld [vmem:[#allocation2 + $0x262] ss:$2 sm:$0xff] }
 0x413   : > { %10100 = vmatmul.mubr.msk.bf16.gmra.mrb[20].mxu1 %vm1697_vm2, %v3442_v7  ;;  %v3300_v7 = vld [vmem:[#allocation2 + $0x1a0] ss:$2 sm:$0xff] }
 0x414   : > { %10103 = vmatprep.mubr.msk.bf16.mxu1 %vm1697_vm2, %v3443_v0  ;;  %v3302_v0 = vld [vmem:[#allocation2 + $0x1b0] ss:$2 sm:$0xff] }
 0x415   : > { %v3340_v50 = vpack.c.bf16 %v3302_v0, %v3300_v7  ;;  %v4079_v7 = vpack.c.bf16 %v4041_v39, %v4039_v16 }
 0x41b   : > { %10104 = vmatmul.mubr.msk.bf16.gmra.mrb[24].mxu1 %vm1697_vm2, %v3444_v35  ;;  %v3308_v35 = vld [vmem:[#allocation2 + $0x1e0] ss:$2 sm:$0xff] }
 0x41c   : > { %10107 = vmatprep.mubr.msk.bf16.mxu1 %vm1697_vm2, %v3445_v62  ;;  %v3310_v62 = vld [vmem:[#allocation2 + $0x1f0] ss:$2 sm:$0xff] }
 0x41d   : > { %v3342_v4 = vpack.c.bf16 %v3310_v62, %v3308_v35  ;;  %v4081_v35 = vpack.c.bf16 %v4049_v29, %v4047_v58 }
 0x423   : > { %10108 = vmatmul.mubr.msk.bf16.gmra.mrb[28].mxu1 %vm1697_vm2, %v3446_v30  ;;  %v3316_v30 = vld [vmem:[#allocation2 + $0x220] ss:$2 sm:$0xff] }
 0x424   : > { %10111 = vmatprep.mubr.msk.bf16.mxu1 %vm1697_vm2, %v3447_v8  ;;  %v3318_v8 = vld [vmem:[#allocation2 + $0x230] ss:$2 sm:$0xff] }
 0x425   : > { %v3344_v20 = vpack.c.bf16 %v3318_v8, %v3316_v30  ;;  %v4083_v30 = vpack.c.bf16 %v4057_v51, %v4055_v42 }
 0x42b   : > { %10112 = vmatmul.mubr.msk.bf16.gmra.mrb[32].mxu1 %vm1697_vm2, %v3448_v49  ;;  %v3324_v49 = vld [vmem:[#allocation2 + $0x260] ss:$2 sm:$0xff] }
 0x42c   : > { %10115 = vmatprep.mubr.msk.bf16.mxu1 %vm1697_vm2, %v3449_v26  ;;  %v3326_v26 = vld [vmem:[#allocation2 + $0x270] ss:$2 sm:$0x7f] }
 0x42d   : > { %v3346_v22 = vpack.c.bf16 %v3326_v26, %v3324_v49  ;;  %v15489_v49 = vld [vmem:[%s11556_s25] sm:$0xff]  }
 0x433   : > { %10116 = vmatmul.mubr.msk.bf16.gmra.mrb[36].mxu1 %vm1697_vm2, %v3450_v14  ;;  %v3991_v14 = vld [vmem:[#allocation2 + $0x22] ss:$2 sm:$0xff] }
 0x434   : > { %10123 = vmatprep.mubr.msk.bf16.mxu1 %vm1697_vm2, %v3327_v60  ;;  %v3993_v60 = vld [vmem:[#allocation2 + $0x32] ss:$2 sm:$0xff] }
 0x435   : > { %v4067_v25 = vpack.c.bf16 %v3993_v60, %v3991_v14 }
 0x43b   : > { %10124 = vmatmul.mubr.msk.bf16.vlgmr.msra.gmra.mrb[0].mxu1 %vm1697_vm2, %v3328_v43  ;;  %v3999_v43 = vld [vmem:[#allocation2 + $0x62] ss:$2 sm:$0xff] }
 0x43c   : > { %10127 = vmatprep.mubr.msk.bf16.mxu1 %vm1697_vm2, %v3329_v13  ;;  %10164 = vmatpush3.bf16.msra.mxu1 %v15424_v33  ;;  %v3276_v33 = vld [vmem:[#allocation2 + $0xe0] ss:$2 sm:$0xff] }
 0x43d   : > { %10165 = vmatprep.subr.bf16.mxu1 %v10996_v10  ;;  %v3334_v6 = vpack.c.bf16 %v3278_v1, %v3276_v33  ;;  %v4003_v13 = vld [vmem:[#allocation2 + $0x82] ss:$2 sm:$0xff]  ;;  %v4021_v33 = vld [vmem:[#allocation2 + $0x112] ss:$2 sm:$0xff] }
 0x43e   : > { %v4070_v45 = vpack.c.bf16 %v4005_v23, %v4003_v13 }
 0x440   : > { %10166 = vmatpush3.bf16.msra.mxu1 %v10996_v10  ;;  %v4001_v10 = vld [vmem:[#allocation2 + $0x72] ss:$2 sm:$0xff] }
 0x441   : > { %v4069_v2 = vpack.c.bf16 %v4001_v10, %v3999_v43 }
 0x443   : > { %10128 = vmatmul.mubr.msk.bf16.gmra.mrb[4].mxu1 %vm1697_vm2, %v3330_v56  ;;  %v4009_v56 = vld [vmem:[#allocation2 + $0xb2] ss:$2 sm:$0xff] }
 0x444   : > { %10131 = vmatprep.mubr.msk.bf16.mxu1 %vm1697_vm2, %v3331_v32  ;;  %v4011_v32 = vld [vmem:[#allocation2 + $0xc2] ss:$2 sm:$0xff]  ;;  %v4071_v44 = vpack.c.bf16 %v4009_v56, %v4007_v12 }
 0x445   : > { %v4072_v63 = vpack.c.bf16 %v4013_v24, %v4011_v32 }
 0x44b   : > { %10132 = vmatmul.mubr.msk.bf16.gmra.mrb[8].mxu1 %vm1697_vm2, %v3332_v52  ;;  %v4017_v52 = vld [vmem:[#allocation2 + $0xf2] ss:$2 sm:$0xff] }
 0x44c   : > { %10135 = vmatprep.mubr.msk.bf16.mxu1 %vm1697_vm2, %v3333_v54  ;;  %v4019_v54 = vld [vmem:[#allocation2 + $0x102] ss:$2 sm:$0xff]  ;;  %v4073_v1 = vpack.c.bf16 %v4017_v52, %v4015_v11 }
 0x44d   : > { %v4074_v31 = vpack.c.bf16 %v4021_v33, %v4019_v54 }
 0x453   : > { %10136 = vmatmul.mubr.msk.bf16.gmra.mrb[12].mxu1 %vm1697_vm2, %v3334_v6  ;;  %v4025_v6 = vld [vmem:[#allocation2 + $0x132] ss:$2 sm:$0xff] }
 0x454   : > { %10139 = vmatprep.mubr.msk.bf16.mxu1 %vm1697_vm2, %v3335_v46  ;;  %v4027_v46 = vld [vmem:[#allocation2 + $0x142] ss:$2 sm:$0xff]  ;;  %v4075_v28 = vpack.c.bf16 %v4025_v6, %v4023_v61 }
 0x455   : > { %v4076_v37 = vpack.c.bf16 %v4029_v27, %v4027_v46 }
 0x45b   : > { %10140 = vmatmul.mubr.msk.bf16.gmra.mrb[16].mxu1 %vm1697_vm2, %v3336_v3  ;;  %v4035_v3 = vld [vmem:[#allocation2 + $0x182] ss:$2 sm:$0xff] }
 0x45c   : > { %10143 = vmatprep.mubr.msk.bf16.mxu1 %vm1697_vm2, %v3337_v21  ;;  %v4037_v21 = vld [vmem:[#allocation2 + $0x192] ss:$2 sm:$0xff] }
 0x45d   : > { %v4078_v48 = vpack.c.bf16 %v4037_v21, %v4035_v3 }
 0x463   : > { %10144 = vmatmul.mubr.msk.bf16.gmra.mrb[20].mxu1 %vm1697_vm2, %v3338_v38  ;;  %v4043_v38 = vld [vmem:[#allocation2 + $0x1c2] ss:$2 sm:$0xff] }
 0x464   : > { %10147 = vmatprep.mubr.msk.bf16.mxu1 %vm1697_vm2, %v3339_v59  ;;  %v4045_v59 = vld [vmem:[#allocation2 + $0x1d2] ss:$2 sm:$0xff] }
 0x465   : > { %v4080_v0 = vpack.c.bf16 %v4045_v59, %v4043_v38 }
 0x46b   : > { %10148 = vmatmul.mubr.msk.bf16.gmra.mrb[24].mxu1 %vm1697_vm2, %v3340_v50  ;;  %v4051_v50 = vld [vmem:[#allocation2 + $0x202] ss:$2 sm:$0xff] }
 0x46c   : > { %10151 = vmatprep.mubr.msk.bf16.mxu1 %vm1697_vm2, %v3341_v55  ;;  %v4053_v55 = vld [vmem:[#allocation2 + $0x212] ss:$2 sm:$0xff] }
 0x46d   : > { %v4082_v62 = vpack.c.bf16 %v4053_v55, %v4051_v50 }
 0x473   : > { %10152 = vmatmul.mubr.msk.bf16.gmra.mrb[28].mxu1 %vm1697_vm2, %v3342_v4  ;;  %v4059_v4 = vld [vmem:[#allocation2 + $0x242] ss:$2 sm:$0xff] }
 0x474   : > { %10155 = vmatprep.mubr.msk.bf16.mxu1 %vm1697_vm2, %v3343_v40  ;;  %v4061_v40 = vld [vmem:[#allocation2 + $0x252] ss:$2 sm:$0xff] }
 0x475   : > { %v4084_v8 = vpack.c.bf16 %v4061_v40, %v4059_v4 }
 0x47b   : > { %10156 = vmatmul.mubr.msk.bf16.gmra.mrb[32].mxu1 %vm1697_vm2, %v3344_v20  ;;  %v4085_v20 = vpack.c.bf16 %v4065_v19, %v4063_v53 }
 0x47c   : > { %10159 = vmatprep.mubr.msk.bf16.mxu1 %vm1697_vm2, %v3345_v17  ;;  %v10998_v17 = vld [vmem:[%s11556_s25 + $0x18] sm:$0xff]  }
 0x47d   : > { %10209 = vmatprep.subr.bf16.mxu0 %v10998_v17 }
 0x47e   : > { %10210 = vmatpush3.bf16.msra.mxu0 %v10998_v17 }
 0x47f   : > { %10231 = vmatprep.subr.bf16.mxu0 %v15489_v49 }
 0x483   : > { %10160 = vmatmul.mubr.msk.bf16.gmra.mrb[36].mxu1 %vm1697_vm2, %v3346_v22 }
 0x484   : > { %10167 = vmatprep.mubr.msk.bf16.mxu1 %vm1697_vm2, %v4066_v5 }
 0x48b   : > { %10168 = vmatmul.mubr.msk.bf16.vlgmr.msra.gmra.mrb[0].mxu1 %vm1697_vm2, %v4067_v25 }
 0x48c   : > { %10171 = vmatprep.mubr.msk.bf16.mxu1 %vm1697_vm2, %v4068_v34 }
 0x493   : > { %10172 = vmatmul.mubr.msk.bf16.gmra.mrb[4].mxu1 %vm1697_vm2, %v4069_v2 }
 0x494   : > { %10175 = vmatprep.mubr.msk.bf16.mxu1 %vm1697_vm2, %v4070_v45 }
 0x49b   : > { %10176 = vmatmul.mubr.msk.bf16.gmra.mrb[8].mxu1 %vm1697_vm2, %v4071_v44 }
 0x49c   : > { %10179 = vmatprep.mubr.msk.bf16.mxu1 %vm1697_vm2, %v4072_v63 }
 0x4a3   : > { %10180 = vmatmul.mubr.msk.bf16.gmra.mrb[12].mxu1 %vm1697_vm2, %v4073_v1 }
 0x4a4   : > { %10183 = vmatprep.mubr.msk.bf16.mxu1 %vm1697_vm2, %v4074_v31 }
 0x4ab   : > { %10184 = vmatmul.mubr.msk.bf16.gmra.mrb[16].mxu1 %vm1697_vm2, %v4075_v28 }
 0x4ac   : > { %10187 = vmatprep.mubr.msk.bf16.mxu1 %vm1697_vm2, %v4076_v37 }
 0x4b3   : > { %10188 = vmatmul.mubr.msk.bf16.gmra.mrb[20].mxu1 %vm1697_vm2, %v4077_v47 }
 0x4b4   : > { %10191 = vmatprep.mubr.msk.bf16.mxu1 %vm1697_vm2, %v4078_v48 }
 0x4bb   : > { %10192 = vmatmul.mubr.msk.bf16.gmra.mrb[24].mxu1 %vm1697_vm2, %v4079_v7 }
 0x4bc   : > { %10195 = vmatprep.mubr.msk.bf16.mxu1 %vm1697_vm2, %v4080_v0 }
 0x4c3   : > { %10196 = vmatmul.mubr.msk.bf16.gmra.mrb[28].mxu1 %vm1697_vm2, %v4081_v35 }
 0x4c4   : > { %10199 = vmatprep.mubr.msk.bf16.mxu1 %vm1697_vm2, %v4082_v62 }
 0x4cb   : > { %10200 = vmatmul.mubr.msk.bf16.gmra.mrb[32].mxu1 %vm1697_vm2, %v4083_v30 }
 0x4cc   : > { %10203 = vmatprep.mubr.msk.bf16.mxu1 %vm1697_vm2, %v4084_v8 }
 0x4d3   : > { %10204 = vmatmul.mubr.msk.bf16.gmra.mrb[36].mxu1 %vm1697_vm2, %v4085_v20 }
 0x55e   : > { %v15492_v26 = vpop.f32.mrb[0].mxu1 }
 0x55f   : > { %v4398_v57 = vmul.f32 %v15492_v26, %v15492_v26  ;;  %v15496_v18 = vpop.f32.mrb[1].mxu1 }
 0x560   : > { %v4396_v22 = vmul.f32 %v15496_v18, %v15496_v18  ;;  %v15500_v5 = vpop.f32.mrb[2].mxu1 }
 0x561   : > { %v4438_v14 = vmul.f32 %v15492_v26, %v4398_v57  ;;  %v4399_v60 = vmul.f32 %v15500_v5, %v15500_v5  ;;  %v15505_v15 = vpop.f32.mrb[3].mxu1 }
 0x562   : > { %v4436_v36 = vmul.f32 %v4396_v22, %v15496_v18  ;;  %v4397_v25 = vmul.f32 %v15505_v15, %v15505_v15 }
 0x563   : > { %v4478_v34 = vmul.f32 0.044715, %v4438_v14  ;;  %v4439_v43 = vmul.f32 %v15500_v5, %v4399_v60 }
 0x564   : > { %v4476_v10 = vmul.f32 0.044715, %v4436_v36  ;;  %v4437_v13 = vmul.f32 %v4397_v25, %v15505_v15 }
 0x565   : > { %v4518_v23 = vadd.f32 %v15492_v26, %v4478_v34  ;;  %v4479_v2 = vmul.f32 0.044715, %v4439_v43 }
 0x566   : > { %v4516_v45 = vadd.f32 %v4476_v10, %v15496_v18  ;;  %v4477_v12 = vmul.f32 0.044715, %v4437_v13  ;;  %v15514_v56 = vpop.f32.mrb[4].mxu1 }
 0x567   : > { %v4558_v32 = vmul.f32 0.7978846, %v4518_v23  ;;  %v4519_v24 = vadd.f32 %v15500_v5, %v4479_v2  ;;  %v4402_v44 = vmul.f32 %v15514_v56, %v15514_v56  ;;  %v15519_v63 = vpop.f32.mrb[5].mxu1 }
 0x568   : > { %v4556_v11 = vmul.f32 0.7978846, %v4516_v45  ;;  %v4517_v52 = vadd.f32 %v4477_v12, %v15505_v15  ;;  %v4400_v54 = vmul.f32 %v15519_v63, %v15519_v63  ;;  %v15524_v33 = vpop.f32.mrb[6].mxu1 }
 0x569   : > { %11213 = vtanh.f32 %v4558_v32  ;;  %v4559_v1 = vmul.f32 0.7978846, %v4519_v24  ;;  %v4442_v31 = vmul.f32 %v15514_v56, %v4402_v44  ;;  %v4403_v61 = vmul.f32 %v15524_v33, %v15524_v33  ;;  %v15529_v6 = vpop.f32.mrb[7].mxu1 }
 0x56a   : > { %11215 = vtanh.f32 %v4556_v11  ;;  %v4557_v46 = vmul.f32 0.7978846, %v4517_v52  ;;  %v4440_v27 = vmul.f32 %v4400_v54, %v15519_v63  ;;  %v4401_v28 = vmul.f32 %v15529_v6, %v15529_v6 }
 0x56b   : > { %11217 = vtanh.f32 %v4559_v1  ;;  %v4482_v37 = vmul.f32 0.044715, %v4442_v31  ;;  %v4443_v41 = vmul.f32 %v15524_v33, %v4403_v61 }
 0x56c   : > { %11219 = vtanh.f32 %v4557_v46  ;;  %v4480_v9 = vmul.f32 0.044715, %v4440_v27  ;;  %v4441_v3 = vmul.f32 %v4401_v28, %v15529_v6 }
 0x56d   : > { %v4522_v21 = vadd.f32 %v15514_v56, %v4482_v37  ;;  %v4483_v47 = vmul.f32 0.044715, %v4443_v41 }
 0x56e   : > { %v4520_v48 = vadd.f32 %v4480_v9, %v15519_v63  ;;  %v4481_v16 = vmul.f32 0.044715, %v4441_v3  ;;  %v15538_v39 = vpop.f32.mrb[8].mxu1 }
 0x56f   : > { %v4562_v38 = vmul.f32 0.7978846, %v4522_v21  ;;  %v4523_v59 = vadd.f32 %v15524_v33, %v4483_v47  ;;  %v4406_v7 = vmul.f32 %v15538_v39, %v15538_v39  ;;  %v15543_v0 = vpop.f32.mrb[9].mxu1 }
 0x570   : > { %v4560_v58 = vmul.f32 0.7978846, %v4520_v48  ;;  %v4521_v29 = vadd.f32 %v4481_v16, %v15529_v6  ;;  %v4404_v50 = vmul.f32 %v15543_v0, %v15543_v0  ;;  %v15548_v55 = vpop.f32.mrb[10].mxu1 }
 0x571   : > { %11221 = vtanh.f32 %v4562_v38  ;;  %v4563_v35 = vmul.f32 0.7978846, %v4523_v59  ;;  %v4446_v62 = vmul.f32 %v15538_v39, %v4406_v7  ;;  %v4407_v42 = vmul.f32 %v15548_v55, %v15548_v55  ;;  %v15553_v51 = vpop.f32.mrb[11].mxu1 }
 0x572   : > { %11223 = vtanh.f32 %v4560_v58  ;;  %v4561_v4 = vmul.f32 0.7978846, %v4521_v29  ;;  %v4444_v40 = vmul.f32 %v4404_v50, %v15543_v0  ;;  %v4405_v30 = vmul.f32 %v15553_v51, %v15553_v51 }
 0x573   : > { %v11214_v8 = vpop.eup %11213  ;;  %11225 = vtanh.f32 %v4563_v35  ;;  %v4486_v53 = vmul.f32 0.044715, %v4446_v62  ;;  %v4447_v19 = vmul.f32 %v15548_v55, %v4407_v42 }
 0x574   : > { %v11216_v20 = vpop.eup %11215  ;;  %v4638_v17 = vadd.f32 1.0, %v11214_v8  ;;  %11227 = vtanh.f32 %v4561_v4  ;;  %v4484_v57 = vmul.f32 0.044715, %v4444_v40  ;;  %v4445_v22 = vmul.f32 %v4405_v30, %v15553_v51 }
 0x575   : > { %v11218_v14 = vpop.eup %11217  ;;  %v4636_v60 = vadd.f32 1.0, %v11216_v20  ;;  %v4526_v36 = vadd.f32 %v15538_v39, %v4486_v53  ;;  %v4487_v25 = vmul.f32 0.044715, %v4447_v19 }
 0x576   : > { %v11220_v34 = vpop.eup %11219  ;;  %v4678_v43 = vmul.f32 0.5, %v4638_v17  ;;  %v4639_v10 = vadd.f32 1.0, %v11218_v14  ;;  %v4524_v13 = vadd.f32 %v4484_v57, %v15543_v0  ;;  %v4485_v23 = vmul.f32 0.044715, %v4445_v22  ;;  %v15562_v2 = vpop.f32.mrb[12].mxu1 }
 0x577   : > { %v4676_v45 = vmul.f32 0.5, %v4636_v60  ;;  %v4637_v12 = vadd.f32 1.0, %v11220_v34  ;;  %v4566_v32 = vmul.f32 0.7978846, %v4526_v36  ;;  %v4527_v24 = vadd.f32 %v15548_v55, %v4487_v25  ;;  %v15565_v44 = vpop.f32.mrb[13].mxu1 }
 0x578   : > { %v4718_v11 = vmul.f32 %v15492_v26, %v4678_v43  ;;  %v4679_v52 = vmul.f32 0.5, %v4639_v10  ;;  %v4564_v54 = vmul.f32 0.7978846, %v4524_v13  ;;  %v4525_v1 = vadd.f32 %v4485_v23, %v15553_v51  ;;  %v15569_v31 = vpop.f32.mrb[14].mxu1 }
 0x579   : > { %v4716_v61 = vmul.f32 %v4676_v45, %v15496_v18  ;;  %v4677_v46 = vmul.f32 0.5, %v4637_v12  ;;  %11229 = vtanh.f32 %v4566_v32  ;;  %v4567_v27 = vmul.f32 0.7978846, %v4527_v24  ;;  %v15572_v28 = vpop.f32.mrb[15].mxu1 }
 0x57a   : > { %4758 = vst.msk [vmem:[#allocation3 + $0x10] sm:$0xff] %vm1697_vm2, %v4718_v11  ;;  %v4719_v37 = vmul.f32 %v15500_v5, %v4679_v52  ;;  %11231 = vtanh.f32 %v4564_v54  ;;  %v4565_v41 = vmul.f32 0.7978846, %v4525_v1  ;;  %v4410_v26 = vmul.f32 %v15562_v2, %v15562_v2 }
 0x57b   : > { %v11222_v9 = vpop.eup %11221  ;;  %4756 = vst.msk [vmem:[#allocation3] sm:$0xff] %vm1697_vm2, %v4716_v61  ;;  %v4717_v3 = vmul.f32 %v4677_v46, %v15505_v15  ;;  %11233 = vtanh.f32 %v4567_v27  ;;  %v4408_v18 = vmul.f32 %v15565_v44, %v15565_v44  ;;  %v4411_v21 = vmul.f32 %v15569_v31, %v15569_v31 }
 0x57c   : > { %v11224_v47 = vpop.eup %11223  ;;  %4759 = vst.msk [vmem:[#allocation3 + $0x18] sm:$0xff] %vm1697_vm2, %v4719_v37  ;;  %v4642_v5 = vadd.f32 1.0, %v11222_v9  ;;  %11235 = vtanh.f32 %v4565_v41  ;;  %v4450_v48 = vmul.f32 %v15562_v2, %v4410_v26  ;;  %v4409_v16 = vmul.f32 %v15572_v28, %v15572_v28 }
 0x57d   : > { %v11226_v38 = vpop.eup %11225  ;;  %4757 = vst.msk [vmem:[#allocation3 + $0x8] sm:$0xff] %vm1697_vm2, %v4717_v3  ;;  %v4640_v15 = vadd.f32 1.0, %v11224_v47  ;;  %v4448_v59 = vmul.f32 %v4408_v18, %v15565_v44  ;;  %v4451_v7 = vmul.f32 %v15569_v31, %v4411_v21 }
 0x57e   : > { %v11228_v58 = vpop.eup %11227  ;;  %v4682_v29 = vmul.f32 0.5, %v4642_v5  ;;  %v4643_v50 = vadd.f32 1.0, %v11226_v38  ;;  %v4490_v35 = vmul.f32 0.044715, %v4450_v48  ;;  %v4449_v62 = vmul.f32 %v4409_v16, %v15572_v28  ;;  %v15592_v42 = vpop.f32.mrb[16].mxu1 }
 0x57f   : > { %v4680_v4 = vmul.f32 0.5, %v4640_v15  ;;  %v4641_v40 = vadd.f32 1.0, %v11228_v58  ;;  %v4488_v30 = vmul.f32 0.044715, %v4448_v59  ;;  %v4491_v8 = vmul.f32 0.044715, %v4451_v7 }
 0x580   : > { %v4722_v53 = vmul.f32 %v15514_v56, %v4682_v29  ;;  %v4683_v19 = vmul.f32 0.5, %v4643_v50  ;;  %v4530_v20 = vadd.f32 %v15562_v2, %v4490_v35  ;;  %v4489_v17 = vmul.f32 0.044715, %v4449_v62  ;;  %v15596_v57 = vpop.f32.mrb[17].mxu1 }
 0x581   : > { %v4720_v22 = vmul.f32 %v4680_v4, %v15519_v63  ;;  %v4681_v14 = vmul.f32 0.5, %v4641_v40  ;;  %v4528_v60 = vadd.f32 %v4488_v30, %v15565_v44  ;;  %v4531_v36 = vadd.f32 %v15569_v31, %v4491_v8  ;;  %v15601_v25 = vpop.f32.mrb[18].mxu1 }
 0x582   : > { %4762 = vst.msk [vmem:[#allocation3 + $0x30] sm:$0xff] %vm1697_vm2, %v4722_v53  ;;  %v4723_v34 = vmul.f32 %v15524_v33, %v4683_v19  ;;  %v4570_v56 = vmul.f32 0.7978846, %v4530_v20  ;;  %v4529_v43 = vadd.f32 %v4489_v17, %v15572_v28  ;;  %v4414_v10 = vmul.f32 %v15592_v42, %v15592_v42  ;;  %v15608_v13 = vpop.f32.mrb[19].mxu1 }
 0x583   : > { %v11230_v63 = vpop.eup %11229  ;;  %4760 = vst.msk [vmem:[#allocation3 + $0x20] sm:$0xff] %vm1697_vm2, %v4720_v22  ;;  %v4721_v23 = vmul.f32 %v4681_v14, %v15529_v6  ;;  %v4568_v45 = vmul.f32 0.7978846, %v4528_v60  ;;  %v4571_v12 = vmul.f32 0.7978846, %v4531_v36  ;;  %v4412_v32 = vmul.f32 %v15596_v57, %v15596_v57 }
 0x584   : > { %v11232_v24 = vpop.eup %11231  ;;  %4763 = vst.msk [vmem:[#allocation3 + $0x38] sm:$0xff] %vm1697_vm2, %v4723_v34  ;;  %v4646_v33 = vadd.f32 1.0, %v11230_v63  ;;  %11237 = vtanh.f32 %v4570_v56  ;;  %v4569_v11 = vmul.f32 0.7978846, %v4529_v43  ;;  %v4454_v52 = vmul.f32 %v15592_v42, %v4414_v10  ;;  %v4850_v29 = vld [vmem:[#allocation3 + $0x1] ss:$2 sm:$0xff] }
 0x585   : > { %v11234_v54 = vpop.eup %11233  ;;  %4761 = vst.msk [vmem:[#allocation3 + $0x28] sm:$0xff] %vm1697_vm2, %v4721_v23  ;;  %v4644_v1 = vadd.f32 1.0, %v11232_v24  ;;  %11239 = vtanh.f32 %v4568_v45  ;;  %v4452_v6 = vmul.f32 %v4412_v32, %v15596_v57  ;;  %v4415_v61 = vmul.f32 %v15601_v25, %v15601_v25  ;;  %v4852_v50 = vld [vmem:[#allocation3 + $0x11] ss:$2 sm:$0xff]  ;;  %v11000_v23 = vld [vmem:[%s11556_s25 + $0x8] sm:$0xff]  }
 0x586   : > { %v11236_v46 = vpop.eup %11235  ;;  %v4686_v27 = vmul.f32 0.5, %v4646_v33  ;;  %v4647_v37 = vadd.f32 1.0, %v11234_v54  ;;  %11241 = vtanh.f32 %v4571_v12  ;;  %v4494_v41 = vmul.f32 0.044715, %v4454_v52  ;;  %v15620_v26 = vpop.f32.mrb[20].mxu1 }
 0x587   : > { %v4684_v9 = vmul.f32 0.5, %v4644_v1  ;;  %v4645_v3 = vadd.f32 1.0, %v11236_v46  ;;  %11243 = vtanh.f32 %v4569_v11  ;;  %v4492_v18 = vmul.f32 0.044715, %v4452_v6  ;;  %v15622_v21 = vpop.f32.mrb[21].mxu1 }
 0x588   : > { %v4726_v47 = vmul.f32 %v15538_v39, %v4686_v27  ;;  %v4687_v5 = vmul.f32 0.5, %v4647_v37  ;;  %v4534_v48 = vadd.f32 %v15592_v42, %v4494_v41  ;;  %v4455_v16 = vmul.f32 %v15601_v25, %v4415_v61  ;;  %v15627_v38 = vpop.f32.mrb[22].mxu1 }
 0x589   : > { %v4724_v15 = vmul.f32 %v4684_v9, %v15543_v0  ;;  %v4685_v59 = vmul.f32 0.5, %v4645_v3  ;;  %v4532_v7 = vadd.f32 %v4492_v18, %v15596_v57  ;;  %v4413_v58 = vmul.f32 %v15608_v13, %v15608_v13  ;;  %v15633_v35 = vpop.f32.mrb[23].mxu1  ;;  %v15671_v18 = vld [vmem:[%s11556_s25 + $0x20] sm:$0xff]  }
 0x58a   : > { %4766 = vst.msk [vmem:[#allocation3 + $0x50] sm:$0xff] %vm1697_vm2, %v4726_v47  ;;  %v4727_v39 = vmul.f32 %v15548_v55, %v4687_v5  ;;  %v4574_v62 = vmul.f32 0.7978846, %v4534_v48  ;;  %v4495_v4 = vmul.f32 0.044715, %v4455_v16  ;;  %v4418_v40 = vmul.f32 %v15620_v26, %v15620_v26 }
 0x58b   : > { %4764 = vst.msk [vmem:[#allocation3 + $0x40] sm:$0xff] %vm1697_vm2, %v4724_v15  ;;  %v4725_v0 = vmul.f32 %v4685_v59, %v15553_v51  ;;  %v4572_v30 = vmul.f32 0.7978846, %v4532_v7  ;;  %v4453_v8 = vmul.f32 %v4413_v58, %v15608_v13  ;;  %v4416_v53 = vmul.f32 %v15622_v21, %v15622_v21  ;;  %v4856_v19 = vld [vmem:[#allocation3 + $0x31] ss:$2 sm:$0xff] }
 0x58c   : > { %4767 = vst.msk [vmem:[#allocation3 + $0x58] sm:$0xff] %vm1697_vm2, %v4727_v39  ;;  %11245 = vtanh.f32 %v4574_v62  ;;  %v4535_v55 = vadd.f32 %v15601_v25, %v4495_v4  ;;  %v4458_v20 = vmul.f32 %v15620_v26, %v4418_v40  ;;  %v4889_v17 = vpack.c.bf16 %v4852_v50, %v4850_v29  ;;  %v4854_v22 = vld [vmem:[#allocation3 + $0x21] ss:$2 sm:$0xff] }
 0x58d   : > { %4765 = vst.msk [vmem:[#allocation3 + $0x48] sm:$0xff] %vm1697_vm2, %v4725_v0  ;;  %11247 = vtanh.f32 %v4572_v30  ;;  %v4493_v51 = vmul.f32 0.044715, %v4453_v8  ;;  %v4456_v14 = vmul.f32 %v4416_v53, %v15622_v21  ;;  %v4419_v60 = vmul.f32 %v15627_v38, %v15627_v38 }
 0x58e   : > { %v11238_v36 = vpop.eup %11237  ;;  %v4575_v34 = vmul.f32 0.7978846, %v4535_v55  ;;  %v4498_v56 = vmul.f32 0.044715, %v4458_v20  ;;  %10211 = vmatprep.mubr.msk.bf16.mxu0 %vm1697_vm2, %v4889_v17  ;;  %v4417_v43 = vmul.f32 %v15633_v35, %v15633_v35  ;;  %v15654_v10 = vpop.f32.mrb[24].mxu1  ;;  %v4890_v63 = vpack.c.bf16 %v4856_v19, %v4854_v22 }
 0x58f   : > { %v11240_v45 = vpop.eup %11239  ;;  %v4650_v12 = vadd.f32 1.0, %v11238_v36  ;;  %v4533_v32 = vadd.f32 %v4493_v51, %v15608_v13  ;;  %v4496_v24 = vmul.f32 0.044715, %v4456_v14  ;;  %v4459_v33 = vmul.f32 %v15627_v38, %v4419_v60  ;;  %v15659_v11 = vpop.f32.mrb[25].mxu1 }
 0x590   : > { %v11242_v52 = vpop.eup %11241  ;;  %v4648_v54 = vadd.f32 1.0, %v11240_v45  ;;  %11249 = vtanh.f32 %v4575_v34  ;;  %v4538_v1 = vadd.f32 %v15620_v26, %v4498_v56  ;;  %v4457_v6 = vmul.f32 %v4417_v43, %v15633_v35  ;;  %10212 = vmatmul.mubr.msk.bf16.vlgmr.msra.gmra.mrb[80].mxu0 %vm1697_vm2, %v4890_v63  ;;  %v15664_v61 = vpop.f32.mrb[26].mxu1 }
 0x591   : > { %v11244_v46 = vpop.eup %11243  ;;  %v4690_v27 = vmul.f32 0.5, %v4650_v12  ;;  %v4651_v37 = vadd.f32 1.0, %v11242_v52  ;;  %v4573_v41 = vmul.f32 0.7978846, %v4533_v32  ;;  %v4536_v9 = vadd.f32 %v4496_v24, %v15622_v21  ;;  %v15667_v3 = vpop.f32.mrb[27].mxu1  ;;  %10232 = vmatpush3.bf16.msra.mxu0 %v15489_v49 }
 0x592   : > { %v4688_v47 = vmul.f32 0.5, %v4648_v54  ;;  %v4649_v5 = vadd.f32 1.0, %v11244_v46  ;;  %v4578_v48 = vmul.f32 0.7978846, %v4538_v1  ;;  %v4499_v16 = vmul.f32 0.044715, %v4459_v33  ;;  %10233 = vmatprep.subr.bf16.mxu0 %v11000_v23 }
 0x593   : > { %v4730_v15 = vmul.f32 %v15562_v2, %v4690_v27  ;;  %v4691_v59 = vmul.f32 0.5, %v4651_v37  ;;  %11251 = vtanh.f32 %v4573_v41  ;;  %v4576_v7 = vmul.f32 0.7978846, %v4536_v9  ;;  %v4860_v9 = vld [vmem:[#allocation3 + $0x51] ss:$2 sm:$0xff] }
 0x594   : > { %v4728_v58 = vmul.f32 %v4688_v47, %v15565_v44  ;;  %v4689_v29 = vmul.f32 0.5, %v4649_v5  ;;  %11253 = vtanh.f32 %v4578_v48  ;;  %v4539_v50 = vadd.f32 %v15627_v38, %v4499_v16 }
 0x595   : > { %4770 = vst.msk [vmem:[#allocation3 + $0x70] sm:$0xff] %vm1697_vm2, %v4730_v15  ;;  %v4731_v49 = vmul.f32 %v15569_v31, %v4691_v59  ;;  %11255 = vtanh.f32 %v4576_v7  ;;  %v4497_v39 = vmul.f32 0.044715, %v4457_v6  ;;  %v4422_v62 = vmul.f32 %v15654_v10, %v15654_v10  ;;  %10234 = vmatpush3.bf16.msra.mxu0 %v11000_v23 }
 0x596   : > { %v11246_v2 = vpop.eup %11245  ;;  %4768 = vst.msk [vmem:[#allocation3 + $0x60] sm:$0xff] %vm1697_vm2, %v4728_v58  ;;  %v4729_v4 = vmul.f32 %v4689_v29, %v15572_v28  ;;  %v4579_v44 = vmul.f32 0.7978846, %v4539_v50  ;;  %v4420_v40 = vmul.f32 %v15659_v11, %v15659_v11  ;;  %v4423_v0 = vmul.f32 %v15664_v61, %v15664_v61  ;;  %v15686_v30 = vpop.f32.mrb[28].mxu1  ;;  %10255 = vmatprep.subr.bf16.mxu0 %v15671_v18  ;;  %v4858_v50 = vld [vmem:[#allocation3 + $0x41] ss:$2 sm:$0xff] }
 0x597   : > { %v11248_v31 = vpop.eup %11247  ;;  %4771 = vst.msk [vmem:[#allocation3 + $0x78] sm:$0xff] %vm1697_vm2, %v4731_v49  ;;  %v4654_v8 = vadd.f32 1.0, %v11246_v2  ;;  %v4537_v53 = vadd.f32 %v4497_v39, %v15633_v35  ;;  %v4462_v19 = vmul.f32 %v15654_v10, %v4422_v62  ;;  %v4421_v28 = vmul.f32 %v15667_v3, %v15667_v3  ;;  %v15694_v55 = vpop.f32.mrb[29].mxu1 }
 0x598   : > { %4769 = vst.msk [vmem:[#allocation3 + $0x68] sm:$0xff] %vm1697_vm2, %v4729_v4  ;;  %v4652_v20 = vadd.f32 1.0, %v11248_v31  ;;  %11257 = vtanh.f32 %v4579_v44  ;;  %v4460_v17 = vmul.f32 %v4420_v40, %v15659_v11  ;;  %v4463_v22 = vmul.f32 %v15664_v61, %v4423_v0  ;;  %v15699_v51 = vpop.f32.mrb[30].mxu1 }
 0x599   : > { %v4694_v14 = vmul.f32 0.5, %v4654_v8  ;;  %v4577_v60 = vmul.f32 0.7978846, %v4537_v53  ;;  %v4502_v36 = vmul.f32 0.044715, %v4462_v19  ;;  %v4461_v34 = vmul.f32 %v4421_v28, %v15667_v3  ;;  %v15702_v56 = vpop.f32.mrb[31].mxu1 }
 0x59a   : > { %v11250_v43 = vpop.eup %11249  ;;  %v4692_v63 = vmul.f32 0.5, %v4652_v20  ;;  %v4500_v23 = vmul.f32 0.044715, %v4460_v17  ;;  %v4503_v45 = vmul.f32 0.044715, %v4463_v22  ;;  %v4426_v12 = vmul.f32 %v15686_v30, %v15686_v30 }
 0x59b   : > { %v4734_v32 = vmul.f32 %v15592_v42, %v4694_v14  ;;  %v4655_v24 = vadd.f32 1.0, %v11250_v43  ;;  %11259 = vtanh.f32 %v4577_v60  ;;  %v4542_v33 = vadd.f32 %v15654_v10, %v4502_v36 }
 0x59c   : > { %v4732_v52 = vmul.f32 %v4692_v63, %v15596_v57  ;;  %v4540_v54 = vadd.f32 %v4500_v23, %v15659_v11  ;;  %v4543_v1 = vadd.f32 %v15664_v61, %v4503_v45  ;;  %v4501_v6 = vmul.f32 0.044715, %v4461_v34 }
 0x59d   : > { %v11252_v46 = vpop.eup %11251  ;;  %4774 = vst.msk [vmem:[#allocation3 + $0x90] sm:$0xff] %vm1697_vm2, %v4734_v32  ;;  %v4695_v27 = vmul.f32 0.5, %v4655_v24  ;;  %v4582_v37 = vmul.f32 0.7978846, %v4542_v33  ;;  %v4466_v41 = vmul.f32 %v15686_v30, %v4426_v12  ;;  %v4424_v42 = vmul.f32 %v15694_v55, %v15694_v55 }
 0x59e   : > { %v11254_v47 = vpop.eup %11253  ;;  %4772 = vst.msk [vmem:[#allocation3 + $0x80] sm:$0xff] %vm1697_vm2, %v4732_v52  ;;  %v4653_v57 = vadd.f32 1.0, %v11252_v46  ;;  %v4580_v5 = vmul.f32 0.7978846, %v4540_v54  ;;  %v4583_v48 = vmul.f32 0.7978846, %v4543_v1  ;;  %v4541_v16 = vadd.f32 %v4501_v6, %v15667_v3 }
 0x59f   : > { %v15717_v15 = vpop.f32.mrb[32].mxu1  ;;  %v11256_v59 = vpop.eup %11255  ;;  %v4735_v7 = vmul.f32 %v15601_v25, %v4695_v27  ;;  %v4658_v58 = vadd.f32 1.0, %v11254_v47  ;;  %11261 = vtanh.f32 %v4582_v37  ;;  %v4506_v29 = vmul.f32 0.044715, %v4466_v41  ;;  %v4862_v34 = vld [vmem:[#allocation3 + $0x61] ss:$2 sm:$0xff] }
 0x5a0   : > { %v15720_v49 = vpop.f32.mrb[33].mxu1  ;;  %v4693_v39 = vmul.f32 0.5, %v4653_v57  ;;  %v4656_v62 = vadd.f32 1.0, %v11256_v59  ;;  %11263 = vtanh.f32 %v4580_v5  ;;  %v4581_v2 = vmul.f32 0.7978846, %v4541_v16 }
 0x5a1   : > { %4775 = vst.msk [vmem:[#allocation3 + $0x98] sm:$0xff] %vm1697_vm2, %v4735_v7  ;;  %v4698_v4 = vmul.f32 0.5, %v4658_v58  ;;  %11265 = vtanh.f32 %v4583_v48  ;;  %v4546_v44 = vadd.f32 %v15686_v30, %v4506_v29  ;;  %v4464_v40 = vmul.f32 %v4424_v42, %v15694_v55  ;;  %v15725_v0 = vpop.f32.mrb[34].mxu1 }
 0x5a2   : > { %v11258_v25 = vpop.eup %11257  ;;  %v4733_v31 = vmul.f32 %v4693_v39, %v15608_v13  ;;  %v4696_v8 = vmul.f32 0.5, %v4656_v62  ;;  %11267 = vtanh.f32 %v4581_v2  ;;  %v4891_v53 = vpack.c.bf16 %v4860_v9, %v4858_v50  ;;  %v15728_v19 = vpop.f32.mrb[35].mxu1 }
 0x5a3   : > { %v4738_v28 = vmul.f32 %v15620_v26, %v4698_v4  ;;  %v4659_v20 = vadd.f32 1.0, %v11258_v25  ;;  %v4586_v17 = vmul.f32 0.7978846, %v4546_v44  ;;  %v4504_v22 = vmul.f32 0.044715, %v4464_v40 }
 0x5a4   : > { %4773 = vst.msk [vmem:[#allocation3 + $0x88] sm:$0xff] %vm1697_vm2, %v4733_v31  ;;  %v4736_v14 = vmul.f32 %v4696_v8, %v15622_v21  ;;  %10215 = vmatprep.mubr.msk.bf16.mxu0 %vm1697_vm2, %v4891_v53  ;;  %v4427_v60 = vmul.f32 %v15699_v51, %v15699_v51  ;;  %v4425_v13 = vmul.f32 %v15702_v56, %v15702_v56  ;;  %v4864_v26 = vld [vmem:[#allocation3 + $0x71] ss:$2 sm:$0xff] }
 0x5a5   : > { %v4430_v36 = vmul.f32 %v15717_v15, %v15717_v15  ;;  %v11260_v43 = vpop.eup %11259  ;;  %4778 = vst.msk [vmem:[#allocation3 + $0xb0] sm:$0xff] %vm1697_vm2, %v4738_v28  ;;  %v4699_v63 = vmul.f32 0.5, %v4659_v20  ;;  %11269 = vtanh.f32 %v4586_v17  ;;  %v4544_v21 = vadd.f32 %v4504_v22, %v15694_v55 }
 0x5a6   : > { %v4428_v23 = vmul.f32 %v15720_v49, %v15720_v49  ;;  %4776 = vst.msk [vmem:[#allocation3 + $0xa0] sm:$0xff] %vm1697_vm2, %v4736_v14  ;;  %v4657_v45 = vadd.f32 1.0, %v11260_v43  ;;  %v4467_v12 = vmul.f32 %v15699_v51, %v4427_v60  ;;  %v4465_v32 = vmul.f32 %v4425_v13, %v15702_v56  ;;  %v15748_v33 = vpop.f32.mrb[36].mxu1 }
 0x5a7   : > { %v4470_v24 = vmul.f32 %v15717_v15, %v4430_v36  ;;  %v4739_v52 = vmul.f32 %v15627_v38, %v4699_v63  ;;  %v4584_v54 = vmul.f32 0.7978846, %v4544_v21  ;;  %v4892_v6 = vpack.c.bf16 %v4864_v26, %v4862_v34  ;;  %v15752_v46 = vpop.f32.mrb[37].mxu1 }
 0x5a8   : > { %v4468_v1 = vmul.f32 %v4428_v23, %v15720_v49  ;;  %v4697_v27 = vmul.f32 0.5, %v4657_v45  ;;  %v4507_v37 = vmul.f32 0.044715, %v4467_v12  ;;  %v4505_v41 = vmul.f32 0.044715, %v4465_v32  ;;  %v15756_v9 = vpop.f32.mrb[38].mxu1 }
 0x5a9   : > { %v4431_v42 = vmul.f32 %v15725_v0, %v15725_v0  ;;  %v11262_v47 = vpop.eup %11261  ;;  %4779 = vst.msk [vmem:[#allocation3 + $0xb8] sm:$0xff] %vm1697_vm2, %v4739_v52  ;;  %11271 = vtanh.f32 %v4584_v54  ;;  %v4510_v57 = vmul.f32 0.044715, %v4470_v24  ;;  %10216 = vmatmul.mubr.msk.bf16.gmra.mrb[84].mxu0 %vm1697_vm2, %v4892_v6  ;;  %v4429_v5 = vmul.f32 %v15728_v19, %v15728_v19  ;;  %v15765_v29 = vpop.f32.mrb[39].mxu1  ;;  %v4868_v43 = vld [vmem:[#allocation3 + $0x91] ss:$2 sm:$0xff] }
 0x5aa   : > { %v4508_v38 = vmul.f32 0.044715, %v4468_v1  ;;  %v11264_v48 = vpop.eup %11263  ;;  %v4737_v16 = vmul.f32 %v4697_v27, %v15633_v35  ;;  %v4662_v59 = vadd.f32 1.0, %v11262_v47  ;;  %v4547_v7 = vadd.f32 %v15699_v51, %v4507_v37 }
 0x5ab   : > { %v4545_v58 = vadd.f32 %v4505_v41, %v15702_v56  ;;  %v11266_v50 = vpop.eup %11265  ;;  %v4660_v39 = vadd.f32 1.0, %v11264_v48  ;;  %v4550_v62 = vadd.f32 %v15717_v15, %v4510_v57  ;;  %v4471_v4 = vmul.f32 %v15725_v0, %v4431_v42  ;;  %v4866_v26 = vld [vmem:[#allocation3 + $0x81] ss:$2 sm:$0xff] }
 0x5ac   : > { %v4548_v2 = vadd.f32 %v4508_v38, %v15720_v49  ;;  %v11268_v44 = vpop.eup %11267  ;;  %4777 = vst.msk [vmem:[#allocation3 + $0xa8] sm:$0xff] %vm1697_vm2, %v4737_v16  ;;  %v4702_v40 = vmul.f32 0.5, %v4662_v59  ;;  %v4663_v35 = vadd.f32 1.0, %v11266_v50  ;;  %v4587_v25 = vmul.f32 0.7978846, %v4547_v7 }
 0x5ad   : > { %v4585_v31 = vmul.f32 0.7978846, %v4545_v58  ;;  %v4700_v8 = vmul.f32 0.5, %v4660_v39  ;;  %v4661_v53 = vadd.f32 1.0, %v11268_v44  ;;  %v4590_v28 = vmul.f32 0.7978846, %v4550_v62 }
 0x5ae   : > { %v4588_v20 = vmul.f32 0.7978846, %v4548_v2  ;;  %v4742_v17 = vmul.f32 %v15654_v10, %v4702_v40  ;;  %v4703_v22 = vmul.f32 0.5, %v4663_v35  ;;  %11273 = vtanh.f32 %v4587_v25 }
 0x5af   : > { %v4511_v14 = vmul.f32 0.044715, %v4471_v4  ;;  %v11270_v60 = vpop.eup %11269  ;;  %v4740_v13 = vmul.f32 %v4700_v8, %v15659_v11  ;;  %v4701_v36 = vmul.f32 0.5, %v4661_v53  ;;  %11275 = vtanh.f32 %v4585_v31 }
 0x5b0   : > { %v4469_v34 = vmul.f32 %v4429_v5, %v15728_v19  ;;  %4782 = vst.msk [vmem:[#allocation3 + $0xd0] sm:$0xff] %vm1697_vm2, %v4742_v17  ;;  %v4743_v63 = vmul.f32 %v15664_v61, %v4703_v22  ;;  %v4666_v21 = vadd.f32 1.0, %v11270_v60  ;;  %11277 = vtanh.f32 %v4590_v28  ;;  %v4872_v37 = vld [vmem:[#allocation3 + $0xb1] ss:$2 sm:$0xff] }
 0x5b1   : > { %v4551_v10 = vadd.f32 %v15725_v0, %v4511_v14  ;;  %4780 = vst.msk [vmem:[#allocation3 + $0xc0] sm:$0xff] %vm1697_vm2, %v4740_v13  ;;  %v4741_v23 = vmul.f32 %v4701_v36, %v15667_v3  ;;  %11279 = vtanh.f32 %v4588_v20  ;;  %v4434_v45 = vmul.f32 %v15748_v33, %v15748_v33 }
 0x5b2   : > { %v4509_v11 = vmul.f32 0.044715, %v4469_v34  ;;  %4783 = vst.msk [vmem:[#allocation3 + $0xd8] sm:$0xff] %vm1697_vm2, %v4743_v63  ;;  %v4706_v12 = vmul.f32 0.5, %v4666_v21  ;;  %v4432_v61 = vmul.f32 %v15752_v46, %v15752_v46  ;;  %v4893_v24 = vpack.c.bf16 %v4868_v43, %v4866_v26 }
 0x5b3   : > { %v4591_v32 = vmul.f32 0.7978846, %v4551_v10  ;;  %v11272_v52 = vpop.eup %11271  ;;  %4781 = vst.msk [vmem:[#allocation3 + $0xc8] sm:$0xff] %vm1697_vm2, %v4741_v23  ;;  %v4474_v3 = vmul.f32 %v15748_v33, %v4434_v45  ;;  %v4435_v1 = vmul.f32 %v15756_v9, %v15756_v9  ;;  %v4433_v6 = vmul.f32 %v15765_v29, %v15765_v29  ;;  %v4870_v27 = vld [vmem:[#allocation3 + $0xa1] ss:$2 sm:$0xff]  ;;  %v11003_v45 = vld [vmem:[%s11561_s29 + $0x10] sm:$0xff]  }
 0x5b4   : > { %v4549_v54 = vadd.f32 %v4509_v11, %v15728_v19  ;;  %v4746_v41 = vmul.f32 %v15686_v30, %v4706_v12  ;;  %v4664_v42 = vadd.f32 1.0, %v11272_v52  ;;  %v4472_v47 = vmul.f32 %v4432_v61, %v15752_v46  ;;  %10219 = vmatprep.mubr.msk.bf16.mxu0 %vm1697_vm2, %v4893_v24 }
 0x5b5   : > { %11281 = vtanh.f32 %v4591_v32  ;;  %v4514_v38 = vmul.f32 0.044715, %v4474_v3  ;;  %v4475_v5 = vmul.f32 %v15756_v9, %v4435_v1  ;;  %v4473_v48 = vmul.f32 %v4433_v6, %v15765_v29 }
 0x5b6   : > { %v4589_v57 = vmul.f32 0.7978846, %v4549_v54  ;;  %4786 = vst.msk [vmem:[#allocation3 + $0xf0] sm:$0xff] %vm1697_vm2, %v4746_v41  ;;  %v4704_v16 = vmul.f32 0.5, %v4664_v42  ;;  %v4512_v59 = vmul.f32 0.044715, %v4472_v47  ;;  %v4894_v7 = vpack.c.bf16 %v4872_v37, %v4870_v27 }
 0x5b7   : > { %v4554_v30 = vadd.f32 %v15748_v33, %v4514_v38  ;;  %v4515_v58 = vmul.f32 0.044715, %v4475_v5  ;;  %v4513_v50 = vmul.f32 0.044715, %v4473_v48  ;;  %v11512_v61 = vmov 0.0  }
 0x5b8   : > { %11283 = vtanh.f32 %v4589_v57  ;;  %v11274_v39 = vpop.eup %11273  ;;  %v4744_v62 = vmul.f32 %v4704_v16, %v15694_v55  ;;  %v4552_v2 = vadd.f32 %v4512_v59, %v15752_v46  ;;  %10220 = vmatmul.mubr.msk.bf16.gmra.mrb[88].mxu0 %vm1697_vm2, %v4894_v7  ;;  %10279 = vmatprep.subr.bf16.mxu1 %v11512_v61 }
 0x5b9   : > { %v11276_v4 = vpop.eup %11275  ;;  %v4667_v44 = vadd.f32 1.0, %v11274_v39  ;;  %v4594_v40 = vmul.f32 0.7978846, %v4554_v30  ;;  %v4555_v35 = vadd.f32 %v15756_v9, %v4515_v58  ;;  %v4553_v25 = vadd.f32 %v4513_v50, %v15765_v29  ;;  %v4876_v31 = vld [vmem:[#allocation3 + $0xd1] ss:$2 sm:$0xff]  ;;  %10280 = vmatpush3.bf16.msra.mxu1 %v11003_v45  ;;  %10283 = vmatprep.mubr.msk.bf16.mxu1 %vm11513_vm4, %v11512_v61 }
 0x5ba   : > { %v11278_v8 = vpop.eup %11277  ;;  %4784 = vst.msk [vmem:[#allocation3 + $0xe0] sm:$0xff] %vm1697_vm2, %v4744_v62  ;;  %v4665_v53 = vadd.f32 1.0, %v11276_v4  ;;  %v4592_v28 = vmul.f32 0.7978846, %v4552_v2  ;;  %v4874_v20 = vld [vmem:[#allocation3 + $0xc1] ss:$2 sm:$0xff]  ;;  %10281 = vmatprep.subr.bf16.mxu1 %v11512_v61 }
 0x5bb   : > { %v11280_v17 = vpop.eup %11279  ;;  %v4707_v55 = vmul.f32 0.5, %v4667_v44  ;;  %v4670_v22 = vadd.f32 1.0, %v11278_v8  ;;  %11285 = vtanh.f32 %v4594_v40  ;;  %v4595_v14 = vmul.f32 0.7978846, %v4555_v35  ;;  %v4798_v39 = vld [vmem:[#allocation3 + $0x10] ss:$2 sm:$0xff] }
 0x5bc   : > { %v4705_v60 = vmul.f32 0.5, %v4665_v53  ;;  %v4668_v13 = vadd.f32 1.0, %v11280_v17  ;;  %11287 = vtanh.f32 %v4592_v28  ;;  %v4593_v36 = vmul.f32 0.7978846, %v4553_v25  ;;  %v4802_v4 = vld [vmem:[#allocation3 + $0x30] ss:$2 sm:$0xff] }
 0x5bd   : > { %v4747_v34 = vmul.f32 %v15699_v51, %v4707_v55  ;;  %v4710_v26 = vmul.f32 0.5, %v4670_v22  ;;  %11289 = vtanh.f32 %v4595_v14  ;;  %v4895_v43 = vpack.c.bf16 %v4876_v31, %v4874_v20  ;;  %v4804_v44 = vld [vmem:[#allocation3 + $0x40] ss:$2 sm:$0xff]  ;;  %v4806_v40 = vld [vmem:[#allocation3 + $0x50] ss:$2 sm:$0xff] }
 0x5be   : > { %v4745_v21 = vmul.f32 %v4705_v60, %v15702_v56  ;;  %v4708_v10 = vmul.f32 0.5, %v4668_v13  ;;  %11291 = vtanh.f32 %v4593_v36  ;;  %v11002_v25 = vld [vmem:[%s11556_s25 + $0x28] sm:$0xff]   ;;  %v4837_v31 = vpack.c.bf16 %v4806_v40, %v4804_v44  ;;  %v4810_v53 = vld [vmem:[#allocation3 + $0x70] ss:$2 sm:$0xff] }
 0x5bf   : > { %v11282_v63 = vpop.eup %11281  ;;  %4787 = vst.msk [vmem:[#allocation3 + $0xf8] sm:$0xff] %vm1697_vm2, %v4747_v34  ;;  %v4750_v23 = vmul.f32 %v15717_v15, %v4710_v26  ;;  %10223 = vmatprep.mubr.msk.bf16.mxu0 %vm1697_vm2, %v4895_v43  ;;  %v4808_v8 = vld [vmem:[#allocation3 + $0x60] ss:$2 sm:$0xff]  ;;  %v4814_v20 = vld [vmem:[#allocation3 + $0x90] ss:$2 sm:$0xff] }
 0x5c0   : > { %v4671_v11 = vadd.f32 1.0, %v11282_v63  ;;  %4785 = vst.msk [vmem:[#allocation3 + $0xe8] sm:$0xff] %vm1697_vm2, %v4745_v21  ;;  %v4748_v51 = vmul.f32 %v4708_v10, %v15720_v49  ;;  %v4812_v28 = vld [vmem:[#allocation3 + $0x80] ss:$2 sm:$0xff]  ;;  %v4838_v17 = vpack.c.bf16 %v4810_v53, %v4808_v8  ;;  %v4818_v14 = vld [vmem:[#allocation3 + $0xb0] ss:$2 sm:$0xff] }
 0x5c1   : > { %4790 = vst.msk [vmem:[#allocation3 + $0x110] sm:$0xff] %vm1697_vm2, %v4750_v23  ;;  %v4839_v55 = vpack.c.bf16 %v4814_v20, %v4812_v28  ;;  %v4816_v22 = vld [vmem:[#allocation3 + $0xa0] ss:$2 sm:$0xff]  ;;  %v4822_v13 = vld [vmem:[#allocation3 + $0xd0] ss:$2 sm:$0xff] }
 0x5c2   : > { %v11284_v12 = vpop.eup %11283  ;;  %v4711_v32 = vmul.f32 0.5, %v4671_v11  ;;  %4788 = vst.msk [vmem:[#allocation3 + $0x100] sm:$0xff] %vm1697_vm2, %v4748_v51  ;;  %v4820_v60 = vld [vmem:[#allocation3 + $0xc0] ss:$2 sm:$0xff]  ;;  %v4840_v36 = vpack.c.bf16 %v4818_v14, %v4816_v22 }
 0x5c3   : > { %v4669_v56 = vadd.f32 1.0, %v11284_v12  ;;  %v5217_v45 = vld [vmem:[#allocation3 + $0x12] ss:$2 sm:$0xff]  ;;  %v5215_v12 = vld [vmem:[#allocation3 + $0x2] ss:$2 sm:$0xff] }
 0x5c4   : > { %v4751_v15 = vmul.f32 %v15725_v0, %v4711_v32  ;;  %v5254_v32 = vpack.c.bf16 %v5217_v45, %v5215_v12 }
 0x5c5   : > { %v4709_v24 = vmul.f32 0.5, %v4669_v56  ;;  %v11286_v52 = vpop.eup %11285  ;;  %v5221_v56 = vld [vmem:[#allocation3 + $0x32] ss:$2 sm:$0xff] }
 0x5c6   : > { %4791 = vst.msk [vmem:[#allocation3 + $0x118] sm:$0xff] %vm1697_vm2, %v4751_v15  ;;  %v11288_v49 = vpop.eup %11287  ;;  %v4674_v3 = vadd.f32 1.0, %v11286_v52  ;;  %v4880_v1 = vld [vmem:[#allocation3 + $0xf1] ss:$2 sm:$0xff]  ;;  %v4826_v26 = vld [vmem:[#allocation3 + $0xf0] ss:$2 sm:$0xff] }
 0x5c7   : > { %v4749_v54 = vmul.f32 %v4709_v24, %v15728_v19  ;;  %v11290_v6 = vpop.eup %11289  ;;  %v4672_v27 = vadd.f32 1.0, %v11288_v49  ;;  %v4878_v37 = vld [vmem:[#allocation3 + $0xe1] ss:$2 sm:$0xff]  ;;  %v4824_v34 = vld [vmem:[#allocation3 + $0xe0] ss:$2 sm:$0xff] }
 0x5c8   : > { %v11292_v41 = vpop.eup %11291  ;;  %v4714_v42 = vmul.f32 0.5, %v4674_v3  ;;  %v4675_v0 = vadd.f32 1.0, %v11290_v6  ;;  %v4896_v47 = vpack.c.bf16 %v4880_v1, %v4878_v37  ;;  %v4842_v21 = vpack.c.bf16 %v4826_v26, %v4824_v34  ;;  %v5225_v15 = vld [vmem:[#allocation3 + $0x52] ss:$2 sm:$0xff]  ;;  %v5219_v24 = vld [vmem:[#allocation3 + $0x22] ss:$2 sm:$0xff] }
 0x5c9   : > { %4789 = vst.msk [vmem:[#allocation3 + $0x108] sm:$0xff] %vm1697_vm2, %v4749_v54  ;;  %v4712_v57 = vmul.f32 0.5, %v4672_v27  ;;  %v4673_v38 = vadd.f32 1.0, %v11292_v41  ;;  %v5255_v52 = vpack.c.bf16 %v5221_v56, %v5219_v24  ;;  %v5223_v49 = vld [vmem:[#allocation3 + $0x42] ss:$2 sm:$0xff] }
 0x5ca   : > { %v4754_v5 = vmul.f32 %v15748_v33, %v4714_v42  ;;  %v4715_v48 = vmul.f32 0.5, %v4675_v0  ;;  %10224 = vmatmul.mubr.msk.bf16.gmra.mrb[92].mxu0 %vm1697_vm2, %v4896_v47  ;;  %v5256_v54 = vpack.c.bf16 %v5225_v15, %v5223_v49  ;;  %v5229_v3 = vld [vmem:[#allocation3 + $0x72] ss:$2 sm:$0xff]  ;;  %v5227_v6 = vld [vmem:[#allocation3 + $0x62] ss:$2 sm:$0xff] }
 0x5cb   : > { %v4752_v19 = vmul.f32 %v4712_v57, %v15752_v46  ;;  %v4713_v16 = vmul.f32 0.5, %v4673_v38  ;;  %v4796_v46 = vld [vmem:[#allocation3] ss:$2 sm:$0xff]  ;;  %v5257_v27 = vpack.c.bf16 %v5229_v3, %v5227_v6 }
 0x5cc   : > { %4794 = vst.msk [vmem:[#allocation3 + $0x130] sm:$0xff] %vm1697_vm2, %v4754_v5  ;;  %v4755_v59 = vmul.f32 %v15756_v9, %v4715_v48  ;;  %v4835_v9 = vpack.c.bf16 %v4798_v39, %v4796_v46  ;;  %v5233_v1 = vld [vmem:[#allocation3 + $0x92] ss:$2 sm:$0xff]  ;;  %v5231_v37 = vld [vmem:[#allocation3 + $0x82] ss:$2 sm:$0xff] }
 0x5cd   : > { %4792 = vst.msk [vmem:[#allocation3 + $0x120] sm:$0xff] %vm1697_vm2, %v4752_v19  ;;  %v4753_v7 = vmul.f32 %v4713_v16, %v15765_v29  ;;  %v4884_v30 = vld [vmem:[#allocation3 + $0x111] ss:$2 sm:$0xff]  ;;  %v4800_v29 = vld [vmem:[#allocation3 + $0x20] ss:$2 sm:$0xff]  ;;  %v5258_v41 = vpack.c.bf16 %v5233_v1, %v5231_v37 }
 0x5ce   : > { %4795 = vst.msk [vmem:[#allocation3 + $0x138] sm:$0x7f] %vm1855_vm3, %v4755_v59  ;;  %v4836_v35 = vpack.c.bf16 %v4802_v4, %v4800_v29  ;;  %v4830_v63 = vld [vmem:[#allocation3 + $0x110] ss:$2 sm:$0xff] }
 0x5cf   : > { %4793 = vst.msk [vmem:[#allocation3 + $0x128] sm:$0xff] %vm1697_vm2, %v4753_v7  ;;  %v5237_v42 = vld [vmem:[#allocation3 + $0xb2] ss:$2 sm:$0xff]  ;;  %v5235_v47 = vld [vmem:[#allocation3 + $0xa2] ss:$2 sm:$0xff] }
 0x5d0   : > { %v4882_v33 = vld [vmem:[#allocation3 + $0x101] ss:$2 sm:$0xff]  ;;  %v4828_v43 = vld [vmem:[#allocation3 + $0x100] ss:$2 sm:$0xff]  ;;  %v5259_v57 = vpack.c.bf16 %v5237_v42, %v5235_v47 }
 0x5d1   : > { %v4897_v58 = vpack.c.bf16 %v4884_v30, %v4882_v33  ;;  %v4843_v10 = vpack.c.bf16 %v4830_v63, %v4828_v43  ;;  %v5241_v0 = vld [vmem:[#allocation3 + $0xd2] ss:$2 sm:$0xff]  ;;  %v5239_v38 = vld [vmem:[#allocation3 + $0xc2] ss:$2 sm:$0xff] }
 0x5d2   : > { %v5260_v5 = vpack.c.bf16 %v5241_v0, %v5239_v38  ;;  %v5245_v48 = vld [vmem:[#allocation3 + $0xf2] ss:$2 sm:$0xff]  ;;  %v5243_v16 = vld [vmem:[#allocation3 + $0xe2] ss:$2 sm:$0xff] }
 0x5d3   : > { %10227 = vmatprep.mubr.msk.bf16.mxu0 %vm1697_vm2, %v4897_v58  ;;  %v5261_v59 = vpack.c.bf16 %v5245_v48, %v5243_v16  ;;  %v5247_v7 = vld [vmem:[#allocation3 + $0x102] ss:$2 sm:$0xff] }
 0x5d4   : > { %v5249_v19 = vld [vmem:[#allocation3 + $0x112] ss:$2 sm:$0xff] }
 0x5d5   : > { %v4888_v50 = vld [vmem:[#allocation3 + $0x131] ss:$2 sm:$0x7f]  ;;  %v4834_v11 = vld [vmem:[#allocation3 + $0x130] ss:$2 sm:$0x7f]  ;;  %v5262_v30 = vpack.c.bf16 %v5249_v19, %v5247_v7 }
 0x5d6   : > { %v4886_v62 = vld [vmem:[#allocation3 + $0x121] ss:$2 sm:$0xff]  ;;  %v4832_v23 = vld [vmem:[#allocation3 + $0x120] ss:$2 sm:$0xff] }
 0x5d7   : > { %v4898_v2 = vpack.c.bf16 %v4888_v50, %v4886_v62  ;;  %v4844_v51 = vpack.c.bf16 %v4834_v11, %v4832_v23  ;;  %v5251_v33 = vld [vmem:[#allocation3 + $0x122] ss:$2 sm:$0xff]  ;;  %v5253_v58 = vld [vmem:[#allocation3 + $0x132] ss:$2 sm:$0x7f] }
 0x5d8   : > { %v5263_v46 = vpack.c.bf16 %v5253_v58, %v5251_v33  ;;  %v11004_v50 = vld [vmem:[%s11561_s29 + $0x18] sm:$0xff]  }
 0x5d9   : > { %10228 = vmatmul.mubr.msk.bf16.gmra.mrb[96].mxu0 %vm1697_vm2, %v4898_v2  ;;  %10282 = vmatpush3.bf16.msra.mxu1 %v11004_v50 }
 0x5da   : > { %10235 = vmatprep.mubr.msk.bf16.mxu0 %vm1697_vm2, %v4835_v9  ;;  %10303 = vmatprep.subr.bf16.mxu1 %v11512_v61 }
 0x5e1   : > { %10236 = vmatmul.mubr.msk.bf16.vlgmr.msra.gmra.mrb[80].mxu0 %vm1697_vm2, %v4836_v35 }
 0x5e2   : > { %10239 = vmatprep.mubr.msk.bf16.mxu0 %vm1697_vm2, %v4837_v31  ;;  %10256 = vmatpush3.bf16.msra.mxu0 %v15671_v18  ;;  %v4841_v18 = vpack.c.bf16 %v4822_v13, %v4820_v60 }
 0x5e3   : > { %10257 = vmatprep.subr.bf16.mxu0 %v11002_v25 }
 0x5e6   : > { %10258 = vmatpush3.bf16.msra.mxu0 %v11002_v25 }
 0x5e7   : > { %10351 = vmatprep.subr.bf16.mxu0 %v11512_v61 }
 0x5e9   : > { %10240 = vmatmul.mubr.msk.bf16.gmra.mrb[84].mxu0 %vm1697_vm2, %v4838_v17 }
 0x5ea   : > { %10243 = vmatprep.mubr.msk.bf16.mxu0 %vm1697_vm2, %v4839_v55 }
 0x5f1   : > { %10244 = vmatmul.mubr.msk.bf16.gmra.mrb[88].mxu0 %vm1697_vm2, %v4840_v36 }
 0x5f2   : > { %10247 = vmatprep.mubr.msk.bf16.mxu0 %vm1697_vm2, %v4841_v18 }
 0x5f9   : > { %10248 = vmatmul.mubr.msk.bf16.gmra.mrb[92].mxu0 %vm1697_vm2, %v4842_v21 }
 0x5fa   : > { %10251 = vmatprep.mubr.msk.bf16.mxu0 %vm1697_vm2, %v4843_v10 }
 0x601   : > { %10252 = vmatmul.mubr.msk.bf16.gmra.mrb[96].mxu0 %vm1697_vm2, %v4844_v51 }
 0x602   : > { %10259 = vmatprep.mubr.msk.bf16.mxu0 %vm1697_vm2, %v5254_v32 }
 0x609   : > { %10260 = vmatmul.mubr.msk.bf16.vlgmr.msra.gmra.mrb[80].mxu0 %vm1697_vm2, %v5255_v52 }
 0x60a   : > { %10263 = vmatprep.mubr.msk.bf16.mxu0 %vm1697_vm2, %v5256_v54 }
 0x611   : > { %10264 = vmatmul.mubr.msk.bf16.gmra.mrb[84].mxu0 %vm1697_vm2, %v5257_v27 }
 0x612   : > { %10267 = vmatprep.mubr.msk.bf16.mxu0 %vm1697_vm2, %v5258_v41 }
 0x619   : > { %10268 = vmatmul.mubr.msk.bf16.gmra.mrb[88].mxu0 %vm1697_vm2, %v5259_v57 }
 0x61a   : > { %10271 = vmatprep.mubr.msk.bf16.mxu0 %vm1697_vm2, %v5260_v5 }
 0x621   : > { %10272 = vmatmul.mubr.msk.bf16.gmra.mrb[92].mxu0 %vm1697_vm2, %v5261_v59 }
 0x622   : > { %10275 = vmatprep.mubr.msk.bf16.mxu0 %vm1697_vm2, %v5262_v30 }
 0x629   : > { %10276 = vmatmul.mubr.msk.bf16.gmra.mrb[96].mxu0 %vm1697_vm2, %v5263_v46 }
 0x62a   : > { %10355 = vmatprep.mubr.msk.bf16.mxu0 %vm11513_vm4, %v11512_v61 }
 0x6dc   : > { %v15860_v39 = vpop.f32.mrb[80].mxu0 }
 0x6dd   : > { %v5446_v62 = vmul.f32 %v15860_v39, %v15860_v39  ;;  %v15864_v2 = vpop.f32.mrb[81].mxu0 }
 0x6de   : > { %v5444_v9 = vmul.f32 %v15864_v2, %v15864_v2  ;;  %v15868_v29 = vpop.f32.mrb[82].mxu0 }
 0x6df   : > { %v5466_v4 = vmul.f32 %v15860_v39, %v5446_v62  ;;  %v5447_v44 = vmul.f32 %v15868_v29, %v15868_v29  ;;  %v15873_v40 = vpop.f32.mrb[83].mxu0 }
 0x6e0   : > { %v5464_v35 = vmul.f32 %v5444_v9, %v15864_v2  ;;  %v5445_v25 = vmul.f32 %v15873_v40, %v15873_v40 }
 0x6e1   : > { %v5486_v31 = vmul.f32 0.044715, %v5466_v4  ;;  %v5467_v8 = vmul.f32 %v15868_v29, %v5447_v44 }
 0x6e2   : > { %v5484_v53 = vmul.f32 0.044715, %v5464_v35  ;;  %v5465_v28 = vmul.f32 %v5445_v25, %v15873_v40 }
 0x6e3   : > { %v5506_v20 = vadd.f32 %v15860_v39, %v5486_v31  ;;  %v5487_v17 = vmul.f32 0.044715, %v5467_v8 }
 0x6e4   : > { %v5504_v55 = vadd.f32 %v5484_v53, %v15864_v2  ;;  %v5485_v22 = vmul.f32 0.044715, %v5465_v28  ;;  %v15882_v14 = vpop.f32.mrb[84].mxu0 }
 0x6e5   : > { %v5526_v60 = vmul.f32 0.7978846, %v5506_v20  ;;  %v5507_v13 = vadd.f32 %v15868_v29, %v5487_v17  ;;  %v5450_v36 = vmul.f32 %v15882_v14, %v15882_v14  ;;  %v15887_v18 = vpop.f32.mrb[85].mxu0 }
 0x6e6   : > { %v5524_v34 = vmul.f32 0.7978846, %v5504_v55  ;;  %v5505_v26 = vadd.f32 %v5485_v22, %v15873_v40  ;;  %v5448_v43 = vmul.f32 %v15887_v18, %v15887_v18  ;;  %v15892_v63 = vpop.f32.mrb[86].mxu0 }
 0x6e7   : > { %11293 = vtanh.f32 %v5526_v60  ;;  %v5527_v21 = vmul.f32 0.7978846, %v5507_v13  ;;  %v5470_v10 = vmul.f32 %v15882_v14, %v5450_v36  ;;  %v5451_v23 = vmul.f32 %v15892_v63, %v15892_v63  ;;  %v15897_v11 = vpop.f32.mrb[87].mxu0 }
 0x6e8   : > { %11295 = vtanh.f32 %v5524_v34  ;;  %v5525_v45 = vmul.f32 0.7978846, %v5505_v26  ;;  %v5468_v51 = vmul.f32 %v5448_v43, %v15887_v18  ;;  %v5449_v12 = vmul.f32 %v15897_v11, %v15897_v11 }
 0x6e9   : > { %11297 = vtanh.f32 %v5527_v21  ;;  %v5490_v32 = vmul.f32 0.044715, %v5470_v10  ;;  %v5471_v56 = vmul.f32 %v15892_v63, %v5451_v23 }
 0x6ea   : > { %11299 = vtanh.f32 %v5525_v45  ;;  %v5488_v15 = vmul.f32 0.044715, %v5468_v51  ;;  %v5469_v24 = vmul.f32 %v5449_v12, %v15897_v11 }
 0x6eb   : > { %v5510_v52 = vadd.f32 %v15882_v14, %v5490_v32  ;;  %v5491_v49 = vmul.f32 0.044715, %v5471_v56 }
 0x6ec   : > { %v5508_v54 = vadd.f32 %v5488_v15, %v15887_v18  ;;  %v5489_v3 = vmul.f32 0.044715, %v5469_v24  ;;  %v15906_v1 = vpop.f32.mrb[88].mxu0 }
 0x6ed   : > { %v5530_v6 = vmul.f32 0.7978846, %v5510_v52  ;;  %v5511_v27 = vadd.f32 %v15892_v63, %v5491_v49  ;;  %v5454_v37 = vmul.f32 %v15906_v1, %v15906_v1  ;;  %v15911_v41 = vpop.f32.mrb[89].mxu0 }
 0x6ee   : > { %v5528_v42 = vmul.f32 0.7978846, %v5508_v54  ;;  %v5509_v0 = vadd.f32 %v5489_v3, %v15897_v11  ;;  %v5452_v47 = vmul.f32 %v15911_v41, %v15911_v41  ;;  %v15916_v57 = vpop.f32.mrb[90].mxu0 }
 0x6ef   : > { %11301 = vtanh.f32 %v5530_v6  ;;  %v5531_v38 = vmul.f32 0.7978846, %v5511_v27  ;;  %v5474_v5 = vmul.f32 %v15906_v1, %v5454_v37  ;;  %v5455_v48 = vmul.f32 %v15916_v57, %v15916_v57  ;;  %v15921_v19 = vpop.f32.mrb[91].mxu0 }
 0x6f0   : > { %11303 = vtanh.f32 %v5528_v42  ;;  %v5529_v16 = vmul.f32 0.7978846, %v5509_v0  ;;  %v5472_v59 = vmul.f32 %v5452_v47, %v15911_v41  ;;  %v5453_v7 = vmul.f32 %v15921_v19, %v15921_v19 }
 0x6f1   : > { %v11294_v30 = vpop.eup %11293  ;;  %11305 = vtanh.f32 %v5531_v38  ;;  %v5494_v33 = vmul.f32 0.044715, %v5474_v5  ;;  %v5475_v58 = vmul.f32 %v15916_v57, %v5455_v48 }
 0x6f2   : > { %v11296_v46 = vpop.eup %11295  ;;  %v5566_v50 = vadd.f32 1.0, %v11294_v30  ;;  %11307 = vtanh.f32 %v5529_v16  ;;  %v5492_v62 = vmul.f32 0.044715, %v5472_v59  ;;  %v5473_v9 = vmul.f32 %v5453_v7, %v15921_v19 }
 0x6f3   : > { %v11298_v4 = vpop.eup %11297  ;;  %v5564_v44 = vadd.f32 1.0, %v11296_v46  ;;  %v5514_v35 = vadd.f32 %v15906_v1, %v5494_v33  ;;  %v5495_v25 = vmul.f32 0.044715, %v5475_v58 }
 0x6f4   : > { %v11300_v31 = vpop.eup %11299  ;;  %v5586_v8 = vmul.f32 0.5, %v5566_v50  ;;  %v5567_v53 = vadd.f32 1.0, %v11298_v4  ;;  %v5512_v28 = vadd.f32 %v5492_v62, %v15911_v41  ;;  %v5493_v20 = vmul.f32 0.044715, %v5473_v9  ;;  %v15930_v17 = vpop.f32.mrb[92].mxu0 }
 0x6f5   : > { %v5584_v55 = vmul.f32 0.5, %v5564_v44  ;;  %v5565_v22 = vadd.f32 1.0, %v11300_v31  ;;  %v5534_v60 = vmul.f32 0.7978846, %v5514_v35  ;;  %v5515_v13 = vadd.f32 %v15916_v57, %v5495_v25  ;;  %v15933_v36 = vpop.f32.mrb[93].mxu0 }
 0x6f6   : > { %v5606_v34 = vmul.f32 %v15860_v39, %v5586_v8  ;;  %v5587_v26 = vmul.f32 0.5, %v5567_v53  ;;  %v5532_v43 = vmul.f32 0.7978846, %v5512_v28  ;;  %v5513_v21 = vadd.f32 %v5493_v20, %v15921_v19  ;;  %v15937_v10 = vpop.f32.mrb[94].mxu0 }
 0x6f7   : > { %v5604_v23 = vmul.f32 %v5584_v55, %v15864_v2  ;;  %v5585_v45 = vmul.f32 0.5, %v5565_v22  ;;  %11309 = vtanh.f32 %v5534_v60  ;;  %v5535_v51 = vmul.f32 0.7978846, %v5515_v13  ;;  %v15940_v12 = vpop.f32.mrb[95].mxu0 }
 0x6f8   : > { %5626 = vst.msk [vmem:[#allocation4 + $0x10] sm:$0xff] %vm1697_vm2, %v5606_v34  ;;  %v5607_v32 = vmul.f32 %v15868_v29, %v5587_v26  ;;  %11311 = vtanh.f32 %v5532_v43  ;;  %v5533_v56 = vmul.f32 0.7978846, %v5513_v21  ;;  %v5458_v39 = vmul.f32 %v15930_v17, %v15930_v17 }
 0x6f9   : > { %v11302_v15 = vpop.eup %11301  ;;  %5624 = vst.msk [vmem:[#allocation4] sm:$0xff] %vm1697_vm2, %v5604_v23  ;;  %v5605_v24 = vmul.f32 %v5585_v45, %v15873_v40  ;;  %11313 = vtanh.f32 %v5535_v51  ;;  %v5456_v2 = vmul.f32 %v15933_v36, %v15933_v36  ;;  %v5459_v52 = vmul.f32 %v15937_v10, %v15937_v10 }
 0x6fa   : > { %v11304_v49 = vpop.eup %11303  ;;  %5627 = vst.msk [vmem:[#allocation4 + $0x18] sm:$0xff] %vm1697_vm2, %v5607_v32  ;;  %v5570_v29 = vadd.f32 1.0, %v11302_v15  ;;  %11315 = vtanh.f32 %v5533_v56  ;;  %v5478_v54 = vmul.f32 %v15930_v17, %v5458_v39  ;;  %v5457_v3 = vmul.f32 %v15940_v12, %v15940_v12 }
 0x6fb   : > { %v11306_v6 = vpop.eup %11305  ;;  %5625 = vst.msk [vmem:[#allocation4 + $0x8] sm:$0xff] %vm1697_vm2, %v5605_v24  ;;  %v5568_v40 = vadd.f32 1.0, %v11304_v49  ;;  %v5476_v27 = vmul.f32 %v5456_v2, %v15933_v36  ;;  %v5479_v37 = vmul.f32 %v15937_v10, %v5459_v52 }
 0x6fc   : > { %v11308_v42 = vpop.eup %11307  ;;  %v5590_v0 = vmul.f32 0.5, %v5570_v29  ;;  %v5571_v47 = vadd.f32 1.0, %v11306_v6  ;;  %v5498_v38 = vmul.f32 0.044715, %v5478_v54  ;;  %v5477_v5 = vmul.f32 %v5457_v3, %v15940_v12  ;;  %v15960_v48 = vpop.f32.mrb[96].mxu0 }
 0x6fd   : > { %v5588_v16 = vmul.f32 0.5, %v5568_v40  ;;  %v5569_v59 = vadd.f32 1.0, %v11308_v42  ;;  %v5496_v7 = vmul.f32 0.044715, %v5476_v27  ;;  %v5499_v30 = vmul.f32 0.044715, %v5479_v37 }
 0x6fe   : > { %v5610_v33 = vmul.f32 %v15882_v14, %v5590_v0  ;;  %v5591_v58 = vmul.f32 0.5, %v5571_v47  ;;  %v5518_v46 = vadd.f32 %v15930_v17, %v5498_v38  ;;  %v5497_v50 = vmul.f32 0.044715, %v5477_v5  ;;  %v15964_v62 = vpop.f32.mrb[97].mxu0  ;;  %v11005_v42 = vld [vmem:[%s11561_s29] sm:$0xff]  }
 0x6ff   : > { %v5608_v9 = vmul.f32 %v5588_v16, %v15887_v18  ;;  %v5589_v4 = vmul.f32 0.5, %v5569_v59  ;;  %v5516_v44 = vadd.f32 %v5496_v7, %v15933_v36  ;;  %v5519_v35 = vadd.f32 %v15937_v10, %v5499_v30  ;;  %v15969_v25 = vpop.f32.mrb[98].mxu0  ;;  %v11006_v7 = vld [vmem:[%s11561_s29 + $0x8] sm:$0xff]  }
 0x700   : > { %5630 = vst.msk [vmem:[#allocation4 + $0x30] sm:$0xff] %vm1697_vm2, %v5610_v33  ;;  %v5611_v31 = vmul.f32 %v15892_v63, %v5591_v58  ;;  %v5538_v14 = vmul.f32 0.7978846, %v5518_v46  ;;  %v5517_v8 = vadd.f32 %v5497_v50, %v15940_v12  ;;  %v5462_v53 = vmul.f32 %v15960_v48, %v15960_v48  ;;  %v15976_v28 = vpop.f32.mrb[99].mxu0 }
 0x701   : > { %v11310_v18 = vpop.eup %11309  ;;  %5628 = vst.msk [vmem:[#allocation4 + $0x20] sm:$0xff] %vm1697_vm2, %v5608_v9  ;;  %v5609_v20 = vmul.f32 %v5589_v4, %v15897_v11  ;;  %v5536_v55 = vmul.f32 0.7978846, %v5516_v44  ;;  %v5539_v22 = vmul.f32 0.7978846, %v5519_v35  ;;  %v5460_v60 = vmul.f32 %v15964_v62, %v15964_v62 }
 0x702   : > { %v11312_v13 = vpop.eup %11311  ;;  %5631 = vst.msk [vmem:[#allocation4 + $0x38] sm:$0xff] %vm1697_vm2, %v5611_v31  ;;  %v5574_v63 = vadd.f32 1.0, %v11310_v18  ;;  %11317 = vtanh.f32 %v5538_v14  ;;  %v5537_v34 = vmul.f32 0.7978846, %v5517_v8  ;;  %v5482_v26 = vmul.f32 %v15960_v48, %v5462_v53  ;;  %v5675_v39 = vld [vmem:[#allocation4 + $0x11] ss:$2 sm:$0xff] }
 0x703   : > { %v11314_v43 = vpop.eup %11313  ;;  %5629 = vst.msk [vmem:[#allocation4 + $0x28] sm:$0xff] %vm1697_vm2, %v5609_v20  ;;  %v5572_v21 = vadd.f32 1.0, %v11312_v13  ;;  %11319 = vtanh.f32 %v5536_v55  ;;  %v5480_v11 = vmul.f32 %v5460_v60, %v15964_v62  ;;  %v5463_v23 = vmul.f32 %v15969_v25, %v15969_v25  ;;  %v5673_v52 = vld [vmem:[#allocation4 + $0x1] ss:$2 sm:$0xff] }
 0x704   : > { %v11316_v45 = vpop.eup %11315  ;;  %v5594_v51 = vmul.f32 0.5, %v5574_v63  ;;  %v5575_v32 = vadd.f32 1.0, %v11314_v43  ;;  %11321 = vtanh.f32 %v5539_v22  ;;  %v5502_v56 = vmul.f32 0.044715, %v5482_v26 }
 0x705   : > { %v5592_v15 = vmul.f32 0.5, %v5572_v21  ;;  %v5573_v24 = vadd.f32 1.0, %v11316_v45  ;;  %11323 = vtanh.f32 %v5537_v34  ;;  %v5500_v2 = vmul.f32 0.044715, %v5480_v11 }
 0x706   : > { %v5614_v49 = vmul.f32 %v15906_v1, %v5594_v51  ;;  %v5595_v29 = vmul.f32 0.5, %v5575_v32  ;;  %v5522_v54 = vadd.f32 %v15960_v48, %v5502_v56  ;;  %v5483_v3 = vmul.f32 %v15969_v25, %v5463_v23 }
 0x707   : > { %v5612_v6 = vmul.f32 %v5592_v15, %v15911_v41  ;;  %v5593_v40 = vmul.f32 0.5, %v5573_v24  ;;  %v5520_v27 = vadd.f32 %v5500_v2, %v15964_v62  ;;  %v5461_v37 = vmul.f32 %v15976_v28, %v15976_v28 }
 0x708   : > { %5634 = vst.msk [vmem:[#allocation4 + $0x50] sm:$0xff] %vm1697_vm2, %v5614_v49  ;;  %v5615_v0 = vmul.f32 %v15916_v57, %v5595_v29  ;;  %v5542_v1 = vmul.f32 0.7978846, %v5522_v54  ;;  %v5503_v47 = vmul.f32 0.044715, %v5483_v3  ;;  %v5692_v38 = vpack.c.bf16 %v5675_v39, %v5673_v52 }
 0x709   : > { %5632 = vst.msk [vmem:[#allocation4 + $0x40] sm:$0xff] %vm1697_vm2, %v5612_v6  ;;  %v5613_v5 = vmul.f32 %v5593_v40, %v15921_v19  ;;  %v5540_v41 = vmul.f32 0.7978846, %v5520_v27  ;;  %v5481_v16 = vmul.f32 %v5461_v37, %v15976_v28  ;;  %v5679_v30 = vld [vmem:[#allocation4 + $0x31] ss:$2 sm:$0xff]  ;;  %v11007_v27 = vld [vmem:[%s11561_s29 + $0x20] sm:$0xff]  }
 0x70a   : > { %5635 = vst.msk [vmem:[#allocation4 + $0x58] sm:$0xff] %vm1697_vm2, %v5615_v0  ;;  %11325 = vtanh.f32 %v5542_v1  ;;  %v5523_v59 = vadd.f32 %v15969_v25, %v5503_v47  ;;  %10284 = vmatmul.mubr.msk.bf16.vlgmr.msra.gmra.mrb[40].mxu1 %vm1697_vm2, %v5692_v38  ;;  %v5677_v19 = vld [vmem:[#allocation4 + $0x21] ss:$2 sm:$0xff]  ;;  %v5646_v40 = vld [vmem:[#allocation4 + $0x10] ss:$2 sm:$0xff] }
 0x70b   : > { %5633 = vst.msk [vmem:[#allocation4 + $0x48] sm:$0xff] %vm1697_vm2, %v5613_v5  ;;  %11327 = vtanh.f32 %v5540_v41  ;;  %v5501_v57 = vmul.f32 0.044715, %v5481_v16  ;;  %10304 = vmatpush3.bf16.msra.mxu1 %v11005_v42  ;;  %10287 = vmatprep.mubr.msk.bf16.mxu1 %vm11513_vm4, %v11512_v61  ;;  %v5693_v35 = vpack.c.bf16 %v5679_v30, %v5677_v19  ;;  %v11008_v37 = vld [vmem:[%s11561_s29 + $0x28] sm:$0xff]   ;;  %v5650_v0 = vld [vmem:[#allocation4 + $0x30] ss:$2 sm:$0xff] }
 0x70c   : > { %v11318_v33 = vpop.eup %11317  ;;  %v5543_v58 = vmul.f32 0.7978846, %v5523_v59  ;;  %10305 = vmatprep.subr.bf16.mxu1 %v11512_v61  ;;  %v5648_v42 = vld [vmem:[#allocation4 + $0x20] ss:$2 sm:$0xff] }
 0x70d   : > { %v11320_v46 = vpop.eup %11319  ;;  %v5578_v50 = vadd.f32 1.0, %v11318_v33  ;;  %v5521_v9 = vadd.f32 %v5501_v57, %v15976_v28  ;;  %v5664_v1 = vpack.c.bf16 %v5650_v0, %v5648_v42  ;;  %v5905_v30 = vld [vmem:[#allocation4 + $0x12] ss:$2 sm:$0xff]  ;;  %v5903_v33 = vld [vmem:[#allocation4 + $0x2] ss:$2 sm:$0xff] }
 0x70e   : > { %v11322_v4 = vpop.eup %11321  ;;  %v5576_v44 = vadd.f32 1.0, %v11320_v46  ;;  %11329 = vtanh.f32 %v5543_v58  ;;  %v5922_v58 = vpack.c.bf16 %v5905_v30, %v5903_v33 }
 0x70f   : > { %v11324_v31 = vpop.eup %11323  ;;  %v5598_v14 = vmul.f32 0.5, %v5578_v50  ;;  %v5579_v8 = vadd.f32 1.0, %v11322_v4  ;;  %v5541_v53 = vmul.f32 0.7978846, %v5521_v9  ;;  %10306 = vmatpush3.bf16.msra.mxu1 %v11006_v7  ;;  %v5907_v50 = vld [vmem:[#allocation4 + $0x22] ss:$2 sm:$0xff] }
 0x710   : > { %v5596_v18 = vmul.f32 0.5, %v5576_v44  ;;  %v5577_v20 = vadd.f32 1.0, %v11324_v31  ;;  %10327 = vmatprep.subr.bf16.mxu1 %v11512_v61  ;;  %v5909_v46 = vld [vmem:[#allocation4 + $0x32] ss:$2 sm:$0xff] }
 0x711   : > { %v5618_v55 = vmul.f32 %v15930_v17, %v5598_v14  ;;  %v5599_v22 = vmul.f32 0.5, %v5579_v8  ;;  %11331 = vtanh.f32 %v5541_v53  ;;  %v5683_v26 = vld [vmem:[#allocation4 + $0x51] ss:$2 sm:$0xff]  ;;  %v5654_v38 = vld [vmem:[#allocation4 + $0x50] ss:$2 sm:$0xff]  ;;  %v5923_v9 = vpack.c.bf16 %v5909_v46, %v5907_v50 }
 0x712   : > { %v5616_v60 = vmul.f32 %v5596_v18, %v15933_v36  ;;  %v5597_v13 = vmul.f32 0.5, %v5577_v20  ;;  %10288 = vmatmul.mubr.msk.bf16.gmra.mrb[44].mxu1 %vm1697_vm2, %v5693_v35  ;;  %v5681_v34 = vld [vmem:[#allocation4 + $0x41] ss:$2 sm:$0xff]  ;;  %v5652_v47 = vld [vmem:[#allocation4 + $0x40] ss:$2 sm:$0xff] }
 0x713   : > { %5638 = vst.msk [vmem:[#allocation4 + $0x70] sm:$0xff] %vm1697_vm2, %v5618_v55  ;;  %v5619_v63 = vmul.f32 %v15937_v10, %v5599_v22  ;;  %10291 = vmatprep.mubr.msk.bf16.mxu1 %vm11513_vm4, %v11512_v61  ;;  %v5694_v23 = vpack.c.bf16 %v5683_v26, %v5681_v34  ;;  %v5665_v5 = vpack.c.bf16 %v5654_v38, %v5652_v47  ;;  %v5911_v44 = vld [vmem:[#allocation4 + $0x42] ss:$2 sm:$0xff]  ;;  %v11010_v22 = vld [vmem:[%s16831_s3 + $0x18] sm:$0xff]  }
 0x714   : > { %v11326_v43 = vpop.eup %11325  ;;  %5636 = vst.msk [vmem:[#allocation4 + $0x60] sm:$0xff] %vm1697_vm2, %v5616_v60  ;;  %v5617_v17 = vmul.f32 %v5597_v13, %v15940_v12  ;;  %v11009_v55 = vld [vmem:[%s16831_s3 + $0x10] sm:$0xff]  }
 0x715   : > { %v11328_v21 = vpop.eup %11327  ;;  %5639 = vst.msk [vmem:[#allocation4 + $0x78] sm:$0xff] %vm1697_vm2, %v5619_v63  ;;  %v5582_v36 = vadd.f32 1.0, %v11326_v43  ;;  %10352 = vmatpush3.bf16.msra.mxu0 %v11009_v55 }
 0x716   : > { %5637 = vst.msk [vmem:[#allocation4 + $0x68] sm:$0xff] %vm1697_vm2, %v5617_v17  ;;  %v5580_v11 = vadd.f32 1.0, %v11328_v21  ;;  %10353 = vmatprep.subr.bf16.mxu0 %v11512_v61 }
 0x717   : > { %v5602_v45 = vmul.f32 0.5, %v5582_v36 }
 0x718   : > { %v11330_v10 = vpop.eup %11329  ;;  %v5600_v51 = vmul.f32 0.5, %v5580_v11 }
 0x719   : > { %v5622_v32 = vmul.f32 %v15960_v48, %v5602_v45  ;;  %v5583_v56 = vadd.f32 1.0, %v11330_v10  ;;  %10354 = vmatpush3.bf16.msra.mxu0 %v11010_v22 }
 0x71a   : > { %v5620_v39 = vmul.f32 %v5600_v51, %v15964_v62  ;;  %10292 = vmatmul.mubr.msk.bf16.gmra.mrb[48].mxu1 %vm1697_vm2, %v5694_v23  ;;  %10367 = vmatprep.subr.bf16.mxu0 %v11512_v61 }
 0x71b   : > { %v11332_v15 = vpop.eup %11331  ;;  %5642 = vst.msk [vmem:[#allocation4 + $0x90] sm:$0xff] %vm1697_vm2, %v5622_v32  ;;  %v5603_v12 = vmul.f32 0.5, %v5583_v56  ;;  %10295 = vmatprep.mubr.msk.bf16.mxu1 %vm11513_vm4, %v11512_v61  ;;  %v5913_v4 = vld [vmem:[#allocation4 + $0x52] ss:$2 sm:$0xff] }
 0x71c   : > { %5640 = vst.msk [vmem:[#allocation4 + $0x80] sm:$0xff] %vm1697_vm2, %v5620_v39  ;;  %v5581_v24 = vadd.f32 1.0, %v11332_v15  ;;  %v5687_v2 = vld [vmem:[#allocation4 + $0x71] ss:$2 sm:$0xff]  ;;  %v5658_v16 = vld [vmem:[#allocation4 + $0x70] ss:$2 sm:$0xff]  ;;  %v5924_v35 = vpack.c.bf16 %v5913_v4, %v5911_v44 }
 0x71d   : > { %v5623_v52 = vmul.f32 %v15969_v25, %v5603_v12  ;;  %v5685_v48 = vld [vmem:[#allocation4 + $0x61] ss:$2 sm:$0xff]  ;;  %v5644_v25 = vld [vmem:[#allocation4] ss:$2 sm:$0xff] }
 0x71e   : > { %v5601_v49 = vmul.f32 0.5, %v5581_v24  ;;  %v5695_v29 = vpack.c.bf16 %v5687_v2, %v5685_v48  ;;  %v5656_v41 = vld [vmem:[#allocation4 + $0x60] ss:$2 sm:$0xff] }
 0x71f   : > { %5643 = vst.msk [vmem:[#allocation4 + $0x98] sm:$0x7f] %vm1855_vm3, %v5623_v52  ;;  %v5666_v59 = vpack.c.bf16 %v5658_v16, %v5656_v41  ;;  %v5915_v14 = vld [vmem:[#allocation4 + $0x62] ss:$2 sm:$0xff] }
 0x720   : > { %v5621_v62 = vmul.f32 %v5601_v49, %v15976_v28  ;;  %v5663_v28 = vpack.c.bf16 %v5646_v40, %v5644_v25 }
 0x722   : > { %5641 = vst.msk [vmem:[#allocation4 + $0x88] sm:$0xff] %vm1697_vm2, %v5621_v62  ;;  %10296 = vmatmul.mubr.msk.bf16.gmra.mrb[52].mxu1 %vm1697_vm2, %v5695_v29 }
 0x723   : > { %10299 = vmatprep.mubr.msk.bf16.mxu1 %vm11513_vm4, %v11512_v61  ;;  %v5917_v31 = vld [vmem:[#allocation4 + $0x72] ss:$2 sm:$0xff] }
 0x724   : > { %v5925_v8 = vpack.c.bf16 %v5917_v31, %v5915_v14 }
 0x726   : > { %v5691_v54 = vld [vmem:[#allocation4 + $0x91] ss:$2 sm:$0x7f]  ;;  %v5662_v57 = vld [vmem:[#allocation4 + $0x90] ss:$2 sm:$0x7f] }
 0x727   : > { %v5921_v18 = vld [vmem:[#allocation4 + $0x92] ss:$2 sm:$0x7f] }
 0x729   : > { %v5689_v3 = vld [vmem:[#allocation4 + $0x81] ss:$2 sm:$0xff]  ;;  %v5660_v7 = vld [vmem:[#allocation4 + $0x80] ss:$2 sm:$0xff] }
 0x72a   : > { %v5696_v6 = vpack.c.bf16 %v5691_v54, %v5689_v3  ;;  %v5667_v19 = vpack.c.bf16 %v5662_v57, %v5660_v7  ;;  %v5919_v53 = vld [vmem:[#allocation4 + $0x82] ss:$2 sm:$0xff] }
 0x72b   : > { %v5926_v20 = vpack.c.bf16 %v5921_v18, %v5919_v53 }
 0x72c   : > { %10300 = vmatmul.mubr.msk.bf16.gmra.mrb[56].mxu1 %vm1697_vm2, %v5696_v6 }
 0x72d   : > { %10307 = vmatprep.mubr.msk.bf16.mxu1 %vm11513_vm4, %v11512_v61 }
 0x734   : > { %10308 = vmatmul.mubr.msk.bf16.vlgmr.msra.gmra.mrb[40].mxu1 %vm1697_vm2, %v5663_v28 }
 0x735   : > { %10328 = vmatpush3.bf16.msra.mxu1 %v11007_v27  ;;  %10311 = vmatprep.mubr.msk.bf16.mxu1 %vm11513_vm4, %v11512_v61 }
 0x736   : > { %10329 = vmatprep.subr.bf16.mxu1 %v11512_v61 }
 0x739   : > { %10330 = vmatpush3.bf16.msra.mxu1 %v11008_v37 }
 0x73a   : > { %10415 = vmatprep.subr.bf16.mxu1 %v11512_v61 }
 0x73c   : > { %10312 = vmatmul.mubr.msk.bf16.gmra.mrb[44].mxu1 %vm1697_vm2, %v5664_v1 }
 0x73d   : > { %10315 = vmatprep.mubr.msk.bf16.mxu1 %vm11513_vm4, %v11512_v61 }
 0x744   : > { %10316 = vmatmul.mubr.msk.bf16.gmra.mrb[48].mxu1 %vm1697_vm2, %v5665_v5 }
 0x745   : > { %10319 = vmatprep.mubr.msk.bf16.mxu1 %vm11513_vm4, %v11512_v61 }
 0x74c   : > { %10320 = vmatmul.mubr.msk.bf16.gmra.mrb[52].mxu1 %vm1697_vm2, %v5666_v59 }
 0x74d   : > { %10323 = vmatprep.mubr.msk.bf16.mxu1 %vm11513_vm4, %v11512_v61 }
 0x754   : > { %10324 = vmatmul.mubr.msk.bf16.gmra.mrb[56].mxu1 %vm1697_vm2, %v5667_v19 }
 0x755   : > { %10331 = vmatprep.mubr.msk.bf16.mxu1 %vm11513_vm4, %v11512_v61 }
 0x75c   : > { %10332 = vmatmul.mubr.msk.bf16.vlgmr.msra.gmra.mrb[40].mxu1 %vm1697_vm2, %v5922_v58 }
 0x75d   : > { %10335 = vmatprep.mubr.msk.bf16.mxu1 %vm11513_vm4, %v11512_v61 }
 0x764   : > { %10336 = vmatmul.mubr.msk.bf16.gmra.mrb[44].mxu1 %vm1697_vm2, %v5923_v9 }
 0x765   : > { %10339 = vmatprep.mubr.msk.bf16.mxu1 %vm11513_vm4, %v11512_v61 }
 0x76c   : > { %10340 = vmatmul.mubr.msk.bf16.gmra.mrb[48].mxu1 %vm1697_vm2, %v5924_v35 }
 0x76d   : > { %10343 = vmatprep.mubr.msk.bf16.mxu1 %vm11513_vm4, %v11512_v61 }
 0x774   : > { %10344 = vmatmul.mubr.msk.bf16.gmra.mrb[52].mxu1 %vm1697_vm2, %v5925_v8 }
 0x775   : > { %10347 = vmatprep.mubr.msk.bf16.mxu1 %vm11513_vm4, %v11512_v61 }
 0x77c   : > { %10348 = vmatmul.mubr.msk.bf16.gmra.mrb[56].mxu1 %vm1697_vm2, %v5926_v20 }
 0x77d   : > { %10419 = vmatprep.mubr.msk.bf16.mxu1 %vm11513_vm4, %v11512_v61 }
 0x82f   : > { %v5993_v60 = vpop.f32.mrb[40].mxu1 }
 0x830   : > { %v6042_v13 = vmul.f32 %v5993_v60, %v5993_v60  ;;  %v10333_v63 = vpop.f32.mrb[41].mxu1 }
 0x831   : > { %v5996_v34 = vpop.f32.mrb[42].mxu1 }
 0x832   : > { %v6052_v26 = vmul.f32 %v6042_v13, %v5993_v60  ;;  %v6043_v43 = vmul.f32 %v5996_v34, %v5996_v34  ;;  %v10334_v17 = vpop.f32.mrb[43].mxu1 }
 0x834   : > { %v6062_v21 = vmul.f32 0.044715, %v6052_v26  ;;  %v6053_v36 = vmul.f32 %v6043_v43, %v5996_v34 }
 0x836   : > { %v6072_v11 = vadd.f32 %v6062_v21, %v5993_v60  ;;  %v6063_v23 = vmul.f32 0.044715, %v6053_v36 }
 0x837   : > { %v16077_v45 = vpop.f32.mrb[44].mxu1 }
 0x838   : > { %v6082_v10 = vmul.f32 0.7978846, %v6072_v11  ;;  %v6073_v51 = vadd.f32 %v6063_v23, %v5996_v34  ;;  %v6044_v32 = vmul.f32 %v16077_v45, %v16077_v45  ;;  %v10337_v56 = vpop.f32.mrb[45].mxu1 }
 0x839   : > { %v16081_v39 = vpop.f32.mrb[46].mxu1 }
 0x83a   : > { %11333 = vtanh.f32 %v6082_v10  ;;  %v6083_v15 = vmul.f32 0.7978846, %v6073_v51  ;;  %v6054_v12 = vmul.f32 %v6044_v32, %v16077_v45  ;;  %v6045_v24 = vmul.f32 %v16081_v39, %v16081_v39  ;;  %v10338_v2 = vpop.f32.mrb[47].mxu1 }
 0x83c   : > { %11335 = vtanh.f32 %v6083_v15  ;;  %v6064_v52 = vmul.f32 0.044715, %v6054_v12  ;;  %v6055_v48 = vmul.f32 %v6045_v24, %v16081_v39 }
 0x83e   : > { %v6074_v49 = vadd.f32 %v6064_v52, %v16077_v45  ;;  %v6065_v29 = vmul.f32 0.044715, %v6055_v48 }
 0x83f   : > { %v16088_v62 = vpop.f32.mrb[48].mxu1 }
 0x840   : > { %v6084_v54 = vmul.f32 0.7978846, %v6074_v49  ;;  %v6075_v3 = vadd.f32 %v6065_v29, %v16081_v39  ;;  %v6046_v6 = vmul.f32 %v16088_v62, %v16088_v62  ;;  %v10341_v25 = vpop.f32.mrb[49].mxu1 }
 0x841   : > { %v16093_v40 = vpop.f32.mrb[50].mxu1 }
 0x842   : > { %11337 = vtanh.f32 %v6084_v54  ;;  %v6085_v27 = vmul.f32 0.7978846, %v6075_v3  ;;  %v6056_v28 = vmul.f32 %v6046_v6, %v16088_v62  ;;  %v6047_v37 = vmul.f32 %v16093_v40, %v16093_v40  ;;  %v10342_v42 = vpop.f32.mrb[51].mxu1 }
 0x844   : > { %v11334_v0 = vpop.eup %11333  ;;  %11339 = vtanh.f32 %v6085_v27  ;;  %v6066_v1 = vmul.f32 0.044715, %v6056_v28  ;;  %v6057_v47 = vmul.f32 %v6047_v37, %v16093_v40 }
 0x845   : > { %v6102_v38 = vadd.f32 1.0, %v11334_v0 }
 0x846   : > { %v11336_v5 = vpop.eup %11335  ;;  %v6076_v41 = vadd.f32 %v6066_v1, %v16088_v62  ;;  %v6067_v16 = vmul.f32 0.044715, %v6057_v47  ;;  %v11011_v1 = vld [vmem:[%s16831_s3] sm:$0xff]  }
 0x847   : > { %v6112_v59 = vmul.f32 0.5, %v6102_v38  ;;  %v6103_v7 = vadd.f32 1.0, %v11336_v5  ;;  %v16100_v57 = vpop.f32.mrb[52].mxu1 }
 0x848   : > { %v6086_v19 = vmul.f32 0.7978846, %v6076_v41  ;;  %v6077_v30 = vadd.f32 %v6067_v16, %v16093_v40  ;;  %v6048_v33 = vmul.f32 %v16100_v57, %v16100_v57  ;;  %v10345_v58 = vpop.f32.mrb[53].mxu1  ;;  %v11012_v16 = vld [vmem:[%s16831_s3 + $0x8] sm:$0xff]  }
 0x849   : > { %v6122_v46 = vmul.f32 %v6112_v59, %v5993_v60  ;;  %v6113_v50 = vmul.f32 0.5, %v6103_v7  ;;  %v16105_v9 = vpop.f32.mrb[54].mxu1 }
 0x84a   : > { %11341 = vtanh.f32 %v6086_v19  ;;  %v6087_v4 = vmul.f32 0.7978846, %v6077_v30  ;;  %v6058_v44 = vmul.f32 %v6048_v33, %v16100_v57  ;;  %v6049_v35 = vmul.f32 %v16105_v9, %v16105_v9  ;;  %v10346_v31 = vpop.f32.mrb[55].mxu1 }
 0x84b   : > { %6132 = vst.msk [vmem:[#allocation5] sm:$0xff] %vm1697_vm2, %v6122_v46  ;;  %v6123_v14 = vmul.f32 %v6113_v50, %v5996_v34 }
 0x84c   : > { %v11338_v8 = vpop.eup %11337  ;;  %11343 = vtanh.f32 %v6087_v4  ;;  %v6068_v53 = vmul.f32 0.044715, %v6058_v44  ;;  %v6059_v18 = vmul.f32 %v6049_v35, %v16105_v9 }
 0x84d   : > { %6133 = vst.msk [vmem:[#allocation5 + $0x8] sm:$0xff] %vm1697_vm2, %v6123_v14  ;;  %v6104_v20 = vadd.f32 1.0, %v11338_v8 }
 0x84e   : > { %v11340_v55 = vpop.eup %11339  ;;  %v6078_v22 = vadd.f32 %v6068_v53, %v16100_v57  ;;  %v6069_v60 = vmul.f32 0.044715, %v6059_v18  ;;  %v11013_v18 = vld [vmem:[%s16831_s3 + $0x20] sm:$0xff]  }
 0x84f   : > { %v6114_v13 = vmul.f32 0.5, %v6104_v20  ;;  %v6105_v63 = vadd.f32 1.0, %v11340_v55  ;;  %v6025_v26 = vpop.f32.mrb[56].mxu1  ;;  %v11014_v55 = vld [vmem:[%s16831_s3 + $0x28] sm:$0xff]   ;;  %s17671_s3 = smov 104  }
 0x850   : > { %v6088_v43 = vmul.f32 0.7978846, %v6078_v22  ;;  %v6079_v17 = vadd.f32 %v6069_v60, %v16105_v9  ;;  %v6050_v21 = vmul.f32 %v6025_v26, %v6025_v26  ;;  %v10349_v34 = vpop.f32.mrb[57].mxu1 }
 0x851   : > { %v6124_v36 = vmul.f32 %v6114_v13, %v16077_v45  ;;  %v6115_v11 = vmul.f32 0.5, %v6105_v63  ;;  %v6028_v23 = vpop.f32.mrb[58].mxu1 }
 0x852   : > { %11345 = vtanh.f32 %v6088_v43  ;;  %v6089_v10 = vmul.f32 0.7978846, %v6079_v17  ;;  %v6060_v51 = vmul.f32 %v6050_v21, %v6025_v26  ;;  %v6051_v32 = vmul.f32 %v6028_v23, %v6028_v23  ;;  %v10350_v56 = vpop.f32.mrb[59].mxu1 }
 0x853   : > { %6134 = vst.msk [vmem:[#allocation5 + $0x10] sm:$0xff] %vm1697_vm2, %v6124_v36  ;;  %v6125_v15 = vmul.f32 %v6115_v11, %v16081_v39  ;;  %v16164_v56 = vld [vmem:[%s11571_s8] sm:$0xff]  }
 0x854   : > { %v11342_v12 = vpop.eup %11341  ;;  %11347 = vtanh.f32 %v6089_v10  ;;  %v6070_v24 = vmul.f32 0.044715, %v6060_v51  ;;  %v6061_v2 = vmul.f32 %v6051_v32, %v6028_v23  ;;  %v6159_v42 = vld [vmem:[#allocation5 + $0x1] ss:$2 sm:$0xff]  ;;  %v6142_v53 = vld [vmem:[#allocation5] ss:$2 sm:$0xff] }
 0x855   : > { %6135 = vst.msk [vmem:[#allocation5 + $0x18] sm:$0xff] %vm1697_vm2, %v6125_v15  ;;  %v6106_v52 = vadd.f32 1.0, %v11342_v12  ;;  %v11015_v51 = vld [vmem:[%s11571_s8 + $0x10] sm:$0xff]   ;;  %v11016_v32 = vld [vmem:[%s11571_s8 + $0x18] sm:$0xff]  }
 0x856   : > { %v11344_v48 = vpop.eup %11343  ;;  %v6080_v45 = vadd.f32 %v6070_v24, %v6025_v26  ;;  %v6071_v49 = vmul.f32 0.044715, %v6061_v2 }
 0x857   : > { %v6116_v29 = vmul.f32 0.5, %v6106_v52  ;;  %v6107_v54 = vadd.f32 1.0, %v11344_v48 }
 0x858   : > { %v6090_v3 = vmul.f32 0.7978846, %v6080_v45  ;;  %v6081_v6 = vadd.f32 %v6071_v49, %v6028_v23 }
 0x859   : > { %v6126_v25 = vmul.f32 %v6116_v29, %v16088_v62  ;;  %v6117_v27 = vmul.f32 0.5, %v6107_v54 }
 0x85a   : > { %11349 = vtanh.f32 %v6090_v3  ;;  %v6091_v39 = vmul.f32 0.7978846, %v6081_v6  ;;  %v6331_v17 = vld [vmem:[#allocation5 + $0x2] ss:$2 sm:$0xff] }
 0x85b   : > { %6136 = vst.msk [vmem:[#allocation5 + $0x20] sm:$0xff] %vm1697_vm2, %v6126_v25  ;;  %v6127_v28 = vmul.f32 %v6117_v27, %v16093_v40 }
 0x85c   : > { %v11346_v37 = vpop.eup %11345  ;;  %11351 = vtanh.f32 %v6091_v39  ;;  %v6161_v0 = vld [vmem:[#allocation5 + $0x11] ss:$2 sm:$0xff]  ;;  %v6144_v8 = vld [vmem:[#allocation5 + $0x10] ss:$2 sm:$0xff] }
 0x85d   : > { %6137 = vst.msk [vmem:[#allocation5 + $0x28] sm:$0xff] %vm1697_vm2, %v6127_v28  ;;  %v6108_v47 = vadd.f32 1.0, %v11346_v37  ;;  %v6168_v38 = vpack.c.bf16 %v6161_v0, %v6159_v42  ;;  %v6151_v20 = vpack.c.bf16 %v6144_v8, %v6142_v53 }
 0x85e   : > { %v11348_v5 = vpop.eup %11347 }
 0x85f   : > { %v6118_v41 = vmul.f32 0.5, %v6108_v47  ;;  %v6109_v62 = vadd.f32 1.0, %v11348_v5  ;;  %10356 = vmatmul.mubr.msk.bf16.vlgmr.msra.gmra.mrb[100].mxu0 %vm1697_vm2, %v6168_v38 }
 0x860   : > { %10368 = vmatpush3.bf16.msra.mxu0 %v11011_v1  ;;  %10359 = vmatprep.mubr.msk.bf16.mxu0 %vm11513_vm4, %v11512_v61 }
 0x861   : > { %v6128_v40 = vmul.f32 %v6118_v41, %v16100_v57  ;;  %v6119_v59 = vmul.f32 0.5, %v6109_v62  ;;  %10369 = vmatprep.subr.bf16.mxu0 %v11512_v61 }
 0x862   : > { %v6333_v43 = vld [vmem:[#allocation5 + $0x12] ss:$2 sm:$0xff] }
 0x863   : > { %6138 = vst.msk [vmem:[#allocation5 + $0x30] sm:$0xff] %vm1697_vm2, %v6128_v40  ;;  %v6129_v7 = vmul.f32 %v6119_v59, %v16105_v9  ;;  %v6340_v21 = vpack.c.bf16 %v6333_v43, %v6331_v17 }
 0x864   : > { %v11350_v19 = vpop.eup %11349  ;;  %10370 = vmatpush3.bf16.msra.mxu0 %v11012_v16  ;;  %v6163_v44 = vld [vmem:[#allocation5 + $0x21] ss:$2 sm:$0xff]  ;;  %v6146_v60 = vld [vmem:[#allocation5 + $0x20] ss:$2 sm:$0xff] }
 0x865   : > { %6139 = vst.msk [vmem:[#allocation5 + $0x38] sm:$0xff] %vm1697_vm2, %v6129_v7  ;;  %v6110_v30 = vadd.f32 1.0, %v11350_v19  ;;  %10383 = vmatprep.subr.bf16.mxu0 %v11512_v61 }
 0x866   : > { %v11352_v33 = vpop.eup %11351 }
 0x867   : > { %v6120_v58 = vmul.f32 0.5, %v6110_v30  ;;  %v6111_v46 = vadd.f32 1.0, %v11352_v33 }
 0x869   : > { %v6130_v50 = vmul.f32 %v6120_v58, %v6025_v26  ;;  %v6121_v57 = vmul.f32 0.5, %v6111_v46 }
 0x86a   : > { %v6335_v36 = vld [vmem:[#allocation5 + $0x22] ss:$2 sm:$0xff] }
 0x86b   : > { %6140 = vst.msk [vmem:[#allocation5 + $0x40] sm:$0xff] %vm1697_vm2, %v6130_v50  ;;  %v6131_v4 = vmul.f32 %v6121_v57, %v6028_v23 }
 0x86c   : > { %v6165_v35 = vld [vmem:[#allocation5 + $0x31] ss:$2 sm:$0xff]  ;;  %v6148_v22 = vld [vmem:[#allocation5 + $0x30] ss:$2 sm:$0xff] }
 0x86d   : > { %6141 = vst.msk [vmem:[#allocation5 + $0x48] sm:$0x7f] %vm1855_vm3, %v6131_v4  ;;  %v6169_v9 = vpack.c.bf16 %v6165_v35, %v6163_v44  ;;  %v6152_v13 = vpack.c.bf16 %v6148_v22, %v6146_v60 }
 0x86f   : > { %10360 = vmatmul.mubr.msk.bf16.gmra.mrb[104].mxu0 %vm1697_vm2, %v6169_v9 }
 0x870   : > { %10363 = vmatprep.mubr.msk.bf16.mxu0 %vm11513_vm4, %v11512_v61 }
 0x872   : > { %v6337_v34 = vld [vmem:[#allocation5 + $0x32] ss:$2 sm:$0xff] }
 0x873   : > { %v6341_v11 = vpack.c.bf16 %v6337_v34, %v6335_v36 }
 0x874   : > { %v6167_v31 = vld [vmem:[#allocation5 + $0x41] ss:$2 sm:$0x7f]  ;;  %v6150_v63 = vld [vmem:[#allocation5 + $0x40] ss:$2 sm:$0x7f] }
 0x875   : > { %v6170_v14 = vpack.c.bf16 %v6167_v31, %v6167_v31  ;;  %v6153_v26 = vpack.c.bf16 %v6150_v63, %v6150_v63  ;;  %v6339_v23 = vld [vmem:[#allocation5 + $0x42] ss:$2 sm:$0x7f] }
 0x876   : > { %v6342_v10 = vpack.c.bf16 %v6339_v23, %v6339_v23 }
 0x877   : > { %10364 = vmatmul.mubr.msk.bf16.gmra.mrb[108].mxu0 %vm1697_vm2, %v6170_v14 }
 0x878   : > { %10371 = vmatprep.mubr.msk.bf16.mxu0 %vm11513_vm4, %v11512_v61 }
 0x87f   : > { %10372 = vmatmul.mubr.msk.bf16.vlgmr.msra.gmra.mrb[100].mxu0 %vm1697_vm2, %v6151_v20 }
 0x880   : > { %10384 = vmatpush3.bf16.msra.mxu0 %v11013_v18  ;;  %10375 = vmatprep.mubr.msk.bf16.mxu0 %vm11513_vm4, %v11512_v61 }
 0x881   : > { %10385 = vmatprep.subr.bf16.mxu0 %v11512_v61 }
 0x884   : > { %10386 = vmatpush3.bf16.msra.mxu0 %v11014_v55 }
 0x885   : > { %10399 = vmatprep.subr.bf16.mxu0 %v11015_v51 }
 0x887   : > { %10376 = vmatmul.mubr.msk.bf16.gmra.mrb[104].mxu0 %vm1697_vm2, %v6152_v13 }
 0x888   : > { %10379 = vmatprep.mubr.msk.bf16.mxu0 %vm11513_vm4, %v11512_v61 }
 0x88f   : > { %10380 = vmatmul.mubr.msk.bf16.gmra.mrb[108].mxu0 %vm1697_vm2, %v6153_v26 }
 0x890   : > { %10387 = vmatprep.mubr.msk.bf16.mxu0 %vm11513_vm4, %v11512_v61 }
 0x897   : > { %10388 = vmatmul.mubr.msk.bf16.vlgmr.msra.gmra.mrb[100].mxu0 %vm1697_vm2, %v6340_v21 }
 0x898   : > { %10391 = vmatprep.mubr.msk.bf16.mxu0 %vm11513_vm4, %v11512_v61  ;;  %10400 = vmatpush3.bf16.msra.mxu0 %v11015_v51 }
 0x899   : > { %10401 = vmatprep.subr.bf16.mxu0 %v11016_v32 }
 0x89c   : > { %10402 = vmatpush3.bf16.msra.mxu0 %v11016_v32 }
 0x89d   : > { %10407 = vmatprep.subr.bf16.mxu0 %v16164_v56 }
 0x89f   : > { %10392 = vmatmul.mubr.msk.bf16.gmra.mrb[104].mxu0 %vm1697_vm2, %v6341_v11 }
 0x8a0   : > { %10395 = vmatprep.mubr.msk.bf16.mxu0 %vm11513_vm4, %v11512_v61 }
 0x8a7   : > { %10396 = vmatmul.mubr.msk.bf16.gmra.mrb[108].mxu0 %vm1697_vm2, %v6342_v10 }
 0x96a   : > { %v6403_v15 = vpop.f32.mrb[100].mxu0 }
 0x96b   : > { %v6430_v12 = vmul.f32 %v6403_v15, %v6403_v15  ;;  %v10389_v24 = vpop.f32.mrb[101].mxu0 }
 0x96c   : > { %v6406_v2 = vpop.f32.mrb[102].mxu0  ;;  %v11018_v24 = vld [vmem:[%s11571_s8 + $0x8] sm:$0xff]  }
 0x96d   : > { %v6435_v52 = vmul.f32 %v6430_v12, %v6403_v15  ;;  %v6431_v48 = vmul.f32 %v6406_v2, %v6406_v2  ;;  %v10390_v45 = vpop.f32.mrb[103].mxu0 }
 0x96e   : > { %v11019_v45 = vld [vmem:[%s11576_s14 + $0x10] sm:$0xff]  }
 0x96f   : > { %v6440_v49 = vmul.f32 0.044715, %v6435_v52  ;;  %v6436_v29 = vmul.f32 %v6431_v48, %v6406_v2  ;;  %10416 = vmatpush3.bf16.msra.mxu1 %v11019_v45 }
 0x970   : > { %10417 = vmatprep.subr.bf16.mxu1 %v11512_v61 }
 0x971   : > { %v6445_v54 = vadd.f32 %v6440_v49, %v6403_v15  ;;  %v6441_v3 = vmul.f32 0.044715, %v6436_v29  ;;  %v11020_v49 = vld [vmem:[%s11576_s14 + $0x18] sm:$0xff]  }
 0x972   : > { %v6411_v6 = vpop.f32.mrb[104].mxu0 }
 0x973   : > { %v6450_v25 = vmul.f32 0.7978846, %v6445_v54  ;;  %v6446_v27 = vadd.f32 %v6441_v3, %v6406_v2  ;;  %v6432_v39 = vmul.f32 %v6411_v6, %v6411_v6  ;;  %v10393_v28 = vpop.f32.mrb[105].mxu0  ;;  %10418 = vmatpush3.bf16.msra.mxu1 %v11020_v49 }
 0x974   : > { %v6414_v37 = vpop.f32.mrb[106].mxu0  ;;  %10423 = vmatprep.subr.bf16.mxu1 %v11512_v61 }
 0x975   : > { %11353 = vtanh.f32 %v6450_v25  ;;  %v6451_v42 = vmul.f32 0.7978846, %v6446_v27  ;;  %v6437_v0 = vmul.f32 %v6432_v39, %v6411_v6  ;;  %v6433_v1 = vmul.f32 %v6414_v37, %v6414_v37  ;;  %v10394_v47 = vpop.f32.mrb[107].mxu0 }
 0x977   : > { %11355 = vtanh.f32 %v6451_v42  ;;  %v6442_v38 = vmul.f32 0.044715, %v6437_v0  ;;  %v6438_v5 = vmul.f32 %v6433_v1, %v6414_v37 }
 0x979   : > { %v6447_v41 = vadd.f32 %v6442_v38, %v6411_v6  ;;  %v6443_v62 = vmul.f32 0.044715, %v6438_v5 }
 0x97a   : > { %v6419_v16 = vpop.f32.mrb[108].mxu0 }
 0x97b   : > { %v6452_v40 = vmul.f32 0.7978846, %v6447_v41  ;;  %v6448_v59 = vadd.f32 %v6443_v62, %v6414_v37  ;;  %v6434_v7 = vmul.f32 %v6419_v16, %v6419_v16  ;;  %v10397_v19 = vpop.f32.mrb[109].mxu0 }
 0x97c   : > { %v6422_v30 = vpop.f32.mrb[110].mxu0 }
 0x97d   : > { %11357 = vtanh.f32 %v6452_v40  ;;  %v6453_v33 = vmul.f32 0.7978846, %v6448_v59  ;;  %v6439_v58 = vmul.f32 %v6434_v7, %v6419_v16  ;;  %v10398_v46 = vpop.f32.mrb[111].mxu0 }
 0x97f   : > { %v11354_v50 = vpop.eup %11353  ;;  %11359 = vtanh.f32 %v6453_v33  ;;  %v6444_v57 = vmul.f32 0.044715, %v6439_v58 }
 0x980   : > { %v6460_v4 = vadd.f32 1.0, %v11354_v50 }
 0x981   : > { %v11356_v44 = vpop.eup %11355  ;;  %v6449_v35 = vadd.f32 %v6444_v57, %v6419_v16 }
 0x982   : > { %v6465_v9 = vmul.f32 0.5, %v6460_v4  ;;  %v6461_v31 = vadd.f32 1.0, %v11356_v44 }
 0x983   : > { %v6454_v14 = vmul.f32 0.7978846, %v6449_v35 }
 0x984   : > { %v6470_v8 = vmul.f32 %v6465_v9, %v6403_v15  ;;  %v6466_v53 = vmul.f32 0.5, %v6461_v31  ;;  %v11021_v31 = vld [vmem:[%s11576_s14] sm:$0xff]  }
 0x985   : > { %11361 = vtanh.f32 %v6454_v14 }
 0x986   : > { %6475 = vst.msk [vmem:[#allocation6] sm:$0xff] %vm1697_vm2, %v6470_v8  ;;  %v6471_v18 = vmul.f32 %v6466_v53, %v6406_v2  ;;  %v11022_v8 = vld [vmem:[%s11576_s14 + $0x8] sm:$0xff]  }
 0x987   : > { %v11358_v20 = vpop.eup %11357 }
 0x988   : > { %6476 = vst.msk [vmem:[#allocation6 + $0x8] sm:$0xff] %vm1697_vm2, %v6471_v18  ;;  %v6462_v55 = vadd.f32 1.0, %v11358_v20 }
 0x989   : > { %v11360_v22 = vpop.eup %11359 }
 0x98a   : > { %v6467_v60 = vmul.f32 0.5, %v6462_v55  ;;  %v6463_v13 = vadd.f32 1.0, %v11360_v22 }
 0x98c   : > { %v6472_v63 = vmul.f32 %v6467_v60, %v6411_v6  ;;  %v6468_v26 = vmul.f32 0.5, %v6463_v13 }
 0x98e   : > { %6477 = vst.msk [vmem:[#allocation6 + $0x10] sm:$0xff] %vm1697_vm2, %v6472_v63  ;;  %v6473_v43 = vmul.f32 %v6468_v26, %v6414_v37 }
 0x98f   : > { %v11362_v17 = vpop.eup %11361  ;;  %v6492_v11 = vld [vmem:[#allocation6 + $0x1] ss:$2 sm:$0xff]  ;;  %v6480_v12 = vld [vmem:[#allocation6] ss:$2 sm:$0xff] }
 0x990   : > { %6478 = vst.msk [vmem:[#allocation6 + $0x18] sm:$0xff] %vm1697_vm2, %v6473_v43  ;;  %v6464_v21 = vadd.f32 1.0, %v11362_v17 }
 0x992   : > { %v6469_v34 = vmul.f32 0.5, %v6464_v21 }
 0x994   : > { %v6474_v36 = vmul.f32 %v6469_v34, %v6419_v16 }
 0x996   : > { %6479 = vst.msk [vmem:[#allocation6 + $0x20] sm:$0x7f] %vm1855_vm3, %v6474_v36 }
 0x997   : > { %v6494_v23 = vld [vmem:[#allocation6 + $0x11] ss:$2 sm:$0xff]  ;;  %v6482_v51 = vld [vmem:[#allocation6 + $0x10] ss:$2 sm:$0xff] }
 0x998   : > { %v6497_v10 = vpack.c.bf16 %v6494_v23, %v6492_v11  ;;  %v6485_v2 = vpack.c.bf16 %v6482_v51, %v6480_v12 }
 0x99a   : > { %10403 = vmatprep.mubr.msk.bf16.mxu0 %vm1697_vm2, %v6497_v10 }
 0x99d   : > { %v6496_v32 = vld [vmem:[#allocation6 + $0x21] ss:$2 sm:$0x7]  ;;  %v6484_v52 = vld [vmem:[#allocation6 + $0x20] ss:$2 sm:$0x7] }
 0x99e   : > { %v6498_v15 = vpack.c.bf16 %v6496_v32, %v6496_v32  ;;  %v6486_v48 = vpack.c.bf16 %v6484_v52, %v6484_v52 }
 0x9a0   : > { %10404 = vmatmul.mubr.msk.bf16.vlgmr.msra.gmra.mrb[112].mxu0 %vm1697_vm2, %v6498_v15 }
 0x9a1   : > { %10411 = vmatprep.mubr.msk.bf16.mxu0 %vm1697_vm2, %v6485_v2  ;;  %10408 = vmatpush3.bf16.msra.mxu0 %v16164_v56 }
 0x9a2   : > { %10409 = vmatprep.subr.bf16.mxu0 %v11018_v24 }
 0x9a5   : > { %10410 = vmatpush3.bf16.msra.mxu0 %v11018_v24 }
 0x9a6   : > { %10431 = vmatprep.subr.bf16.mxu0 %v11512_v61 }
 0x9ac   : > { %10412 = vmatmul.mubr.msk.bf16.vlgmr.msra.gmra.mrb[112].mxu0 %vm1697_vm2, %v6486_v48 }
 0x9ad   : > { %10435 = vmatprep.mubr.msk.bf16.mxu0 %vm11513_vm4, %v11512_v61 }
 0xa7f   : > { %v10413_v56 = vpop.f32.mrb[112].mxu0 }
 0xa80   : > { %v6638_v29 = vmul.f32 %v10413_v56, %v10413_v56  ;;  %v6622_v54 = vpop.f32.mrb[113].mxu0 }
 0xa81   : > { %v6636_v3 = vmul.f32 %v6622_v54, %v6622_v54  ;;  %v10414_v6 = vpop.f32.mrb[114].mxu0 }
 0xa82   : > { %v6641_v25 = vmul.f32 %v10413_v56, %v6638_v29  ;;  %v6625_v27 = vpop.f32.mrb[115].mxu0 }
 0xa83   : > { %v6639_v39 = vmul.f32 %v6636_v3, %v6622_v54  ;;  %v6637_v28 = vmul.f32 %v6625_v27, %v6625_v27 }
 0xa84   : > { %v6644_v37 = vmul.f32 0.044715, %v6641_v25 }
 0xa85   : > { %v6642_v42 = vmul.f32 0.044715, %v6639_v39  ;;  %v6640_v0 = vmul.f32 %v6637_v28, %v6625_v27 }
 0xa86   : > { %v6647_v1 = vadd.f32 %v10413_v56, %v6644_v37 }
 0xa87   : > { %v6645_v47 = vadd.f32 %v6642_v42, %v6622_v54  ;;  %v6643_v38 = vmul.f32 0.044715, %v6640_v0  ;;  %v11023_v42 = vld [vmem:[%s11591_s30] sm:$0xff]   ;;  %v11024_v0 = vld [vmem:[%s11591_s30 + $0x8] sm:$0xff]  }
 0xa88   : > { %v6650_v5 = vmul.f32 0.7978846, %v6647_v1  ;;  %10432 = vmatpush3.bf16.msra.mxu0 %v11023_v42 }
 0xa89   : > { %v6648_v41 = vmul.f32 0.7978846, %v6645_v47  ;;  %v6646_v62 = vadd.f32 %v6643_v38, %v6625_v27  ;;  %10433 = vmatprep.subr.bf16.mxu0 %v11512_v61 }
 0xa8a   : > { %11363 = vtanh.f32 %v6650_v5 }
 0xa8b   : > { %11365 = vtanh.f32 %v6648_v41  ;;  %v6649_v16 = vmul.f32 0.7978846, %v6646_v62 }
 0xa8c   : > { %10434 = vmatpush3.bf16.msra.mxu0 %v11024_v0 }
 0xa8d   : > { %11367 = vtanh.f32 %v6649_v16  ;;  %10439 = vmatprep.subr.bf16.mxu0 %v11512_v61 }
 0xa94   : > { %v11364_v40 = vpop.eup %11363 }
 0xa95   : > { %v11366_v59 = vpop.eup %11365  ;;  %v6656_v7 = vadd.f32 1.0, %v11364_v40 }
 0xa96   : > { %v6654_v19 = vadd.f32 1.0, %v11366_v59  ;;  %v9595_v59 = vld [vmem:[%s11581_s19] ss:$0 sm:$0xff] }
 0xa97   : > { %v11368_v30 = vpop.eup %11367  ;;  %v6659_v33 = vmul.f32 0.5, %v6656_v7 }
 0xa98   : > { %v6657_v58 = vmul.f32 0.5, %v6654_v19  ;;  %v6655_v46 = vadd.f32 1.0, %v11368_v30 }
 0xa99   : > { %v6662_v50 = vmul.f32 %v10413_v56, %v6659_v33  ;;  %v9596_v33 = vld [vmem:[%s11586_s24] ss:$0 sm:$0xff] }
 0xa9a   : > { %v6660_v57 = vmul.f32 %v6657_v58, %v6622_v54  ;;  %v6658_v4 = vmul.f32 0.5, %v6655_v46 }
 0xa9b   : > { %6666 = vst.msk [vmem:[#allocation7 + $0x10] sm:$0x7] %vm6665_vm5, %v6662_v50  ;;  %vm10642_vm5 = vmpackc.low %vm1697_vm2, %vm1697_vm2 }
 0xa9c   : > { %6663 = vst.msk [vmem:[#allocation7] sm:$0xff] %vm1697_vm2, %v6660_v57  ;;  %v6661_v44 = vmul.f32 %v6658_v4, %v6625_v27  ;;  %v11025_v4 = vld [vmem:[%s11601_s12 + $0x10] sm:$0xff]  }
 0xa9e   : > { %6664 = vst.msk [vmem:[#allocation7 + $0x8] sm:$0xff] %vm1697_vm2, %v6661_v44  ;;  %v11026_v44 = vld [vmem:[%s11601_s12] sm:$0xff]  }
 0xaa2   : > { %v6678_v9 = vld [vmem:[#allocation7 + $0x11] ss:$2 sm:$0x1]  ;;  %v6669_v18 = vld [vmem:[#allocation7 + $0x10] ss:$2 sm:$0x1] }
 0xaa5   : > { %v6676_v35 = vld [vmem:[#allocation7 + $0x1] ss:$2 sm:$0xff]  ;;  %v6667_v53 = vld [vmem:[#allocation7] ss:$2 sm:$0xff] }
 0xaa6   : > { %v6679_v14 = vpack.c.bf16 %v6678_v9, %v6676_v35  ;;  %v6670_v20 = vpack.c.bf16 %v6669_v18, %v6667_v53  ;;  %v11027_v35 = vld [vmem:[%s11601_s12 + $0x18] sm:$0xff]   ;;  %v11028_v9 = vld [vmem:[%s11601_s12 + $0x8] sm:$0xff]  }
 0xaa8   : > { %10420 = vmatmul.mubr.msk.bf16.vlgmr.msra.gmra.mrb[60].mxu1 %vm1697_vm2, %v6679_v14 }
 0xaa9   : > { %10424 = vmatpush3.bf16.msra.mxu1 %v11021_v31  ;;  %10427 = vmatprep.mubr.msk.bf16.mxu1 %vm11513_vm4, %v11512_v61  ;;  %v9597_v31 = vld [vmem:[%s17658_s22] ss:$0 sm:$0xff]  ;;  %s17664_s22 = sld [smem:[#allocation16_spill]] }
 0xaaa   : > { %10425 = vmatprep.subr.bf16.mxu1 %v11512_v61 }
 0xaad   : > { %10426 = vmatpush3.bf16.msra.mxu1 %v11022_v8 }
 0xaae   : > { %10447 = vmatprep.subr.bf16.mxu1 %v11512_v61 }
 0xab4   : > { %10428 = vmatmul.mubr.msk.bf16.vlgmr.msra.gmra.mrb[60].mxu1 %vm1697_vm2, %v6670_v20 }
 0xab5   : > { %10451 = vmatprep.mubr.msk.bf16.mxu1 %vm11513_vm4, %v11512_v61  ;;  %10448 = vmatpush3.bf16.msra.mxu1 %v11026_v44 }
 0xab6   : > { %10449 = vmatprep.subr.bf16.mxu1 %v11512_v61 }
 0xab9   : > { %10450 = vmatpush3.bf16.msra.mxu1 %v11028_v9 }
 0xaba   : > { %10463 = vmatprep.subr.bf16.mxu1 %v11512_v61 }
 0xb87   : > { %v6790_v55 = vpop.f32.mrb[60].mxu1 }
 0xb88   : > { %v6797_v22 = vmul.f32 %v6790_v55, %v6790_v55  ;;  %v10429_v60 = vpop.f32.mrb[61].mxu1 }
 0xb89   : > { %v6793_v13 = vpop.f32.mrb[62].mxu1  ;;  %v11029_v60 = vld [vmem:[%s11601_s12 + $0x20] sm:$0xff]  }
 0xb8a   : > { %v6799_v63 = vmul.f32 %v6797_v22, %v6790_v55  ;;  %v6798_v26 = vmul.f32 %v6793_v13, %v6793_v13  ;;  %v10430_v43 = vpop.f32.mrb[63].mxu1 }
 0xb8c   : > { %v6801_v17 = vmul.f32 0.044715, %v6799_v63  ;;  %v6800_v21 = vmul.f32 %v6798_v26, %v6793_v13 }
 0xb8e   : > { %v6803_v34 = vadd.f32 %v6801_v17, %v6790_v55  ;;  %v6802_v36 = vmul.f32 0.044715, %v6800_v21  ;;  %v11030_v21 = vld [vmem:[%s11601_s12 + $0x28] sm:$0xff]  }
 0xb90   : > { %v6805_v11 = vmul.f32 0.7978846, %v6803_v34  ;;  %v6804_v23 = vadd.f32 %v6802_v36, %v6793_v13 }
 0xb92   : > { %11369 = vtanh.f32 %v6805_v11  ;;  %v6806_v10 = vmul.f32 0.7978846, %v6804_v23 }
 0xb94   : > { %11371 = vtanh.f32 %v6806_v10 }
 0xb9c   : > { %v11370_v51 = vpop.eup %11369 }
 0xb9d   : > { %v6809_v32 = vadd.f32 1.0, %v11370_v51 }
 0xb9e   : > { %v11372_v15 = vpop.eup %11371 }
 0xb9f   : > { %v6811_v12 = vmul.f32 0.5, %v6809_v32  ;;  %v6810_v24 = vadd.f32 1.0, %v11372_v15 }
 0xba1   : > { %v6813_v2 = vmul.f32 %v6811_v12, %v6790_v55  ;;  %v6812_v52 = vmul.f32 0.5, %v6810_v24 }
 0xba3   : > { %v6817_v48 = vsel %vm1697_vm2, %v6813_v2, 0.0  ;;  %v6814_v45 = vmul.f32 %v6812_v52, %v6793_v13 }
 0xba4   : > { %6818 = vadd.xlane.f32.xlu0 %v6817_v48 }
 0xba5   : > { %v6821_v49 = vsel %vm6820_vm6, %v6814_v45, 0.0 }
 0xba8   : > { %6822 = vadd.xlane.f32.xlu0 %v6821_v49 }
 0xc31   : > { %v6819_v56 = vpop.xlane.xlu0 %6818 }
 0xc32   : > { %v6825_v29 = vmul.f32 0.03125, %v6819_v56 }
 0xc34   : > { %v6827_v54 = vsub.f32 %v6813_v2, %v6825_v29 }
 0xc35   : > { %v6823_v3 = vpop.xlane.xlu0 %6822 }
 0xc36   : > { %v6826_v6 = vmul.f32 0.03125, %v6823_v3  ;;  %v6829_v25 = vmul.f32 %v6827_v54, %v6827_v54 }
 0xc38   : > { %v6828_v27 = vsub.f32 %v6814_v45, %v6826_v6  ;;  %v6831_v39 = vsel %vm1697_vm2, %v6829_v25, 0.0  ;;  %v9618_v45 = vld [vmem:[%s17659_s23] ss:$0 sm:$0xff]  ;;  %s16807_s23 = smov 8  }
 0xc39   : > { %6832 = vadd.xlane.f32.xlu1 %v6831_v39 }
 0xc3a   : > { %v6830_v28 = vmul.f32 %v6828_v27, %v6828_v27 }
 0xc3c   : > { %v6834_v37 = vsel %vm6820_vm6, %v6830_v28, 0.0 }
 0xc3d   : > { %6835 = vadd.xlane.f32.xlu1 %v6834_v37 }
 0xcc6   : > { %v6833_v1 = vpop.xlane.xlu1 %6832 }
 0xcc7   : > { %v6837_v47 = vmul.f32 0.03125, %v6833_v1 }
 0xcc9   : > { %v6839_v38 = vadd.f32 1e-05, %v6837_v47 }
 0xcca   : > { %v6836_v5 = vpop.xlane.xlu1 %6835 }
 0xccb   : > { %11373 = vrsqrt.f32 %v6839_v38  ;;  %v6838_v41 = vmul.f32 0.03125, %v6836_v5 }
 0xccd   : > { %v6840_v62 = vadd.f32 1e-05, %v6838_v41 }
 0xccf   : > { %11375 = vrsqrt.f32 %v6840_v62 }
 0xcd5   : > { %v11374_v16 = vpop.eup %11373 }
 0xcd6   : > { %v6843_v40 = vmul.f32 %v11374_v16, %v6827_v54 }
 0xcd8   : > { %v6851_v19 = vmul.f32 %v9595_v59, %v6843_v40 }
 0xcd9   : > { %v11376_v7 = vpop.eup %11375 }
 0xcda   : > { %v6844_v30 = vmul.f32 %v11376_v7, %v6828_v27  ;;  %v6859_v46 = vadd.f32 %v9596_v33, %v6851_v19 }
 0xcdc   : > { %v6852_v58 = vmul.f32 %v9595_v59, %v6844_v30 }
 0xcde   : > { %v6860_v50 = vadd.f32 %v9596_v33, %v6852_v58 }
 0xce0   : > { %v6865_v57 = vpack.c.bf16 %v6860_v50, %v6859_v46 }
 0xce2   : > { %10436 = vmatmul.mubr.msk.bf16.vlgmr.msra.gmra.mrb[116].mxu0 %vm1697_vm2, %v6865_v57 }
 0xce3   : > { %10443 = vmatprep.mubr.msk.bf16.mxu0 %vm11513_vm4, %v11512_v61  ;;  %10440 = vmatpush3.bf16.msra.mxu0 %v11025_v4 }
 0xce4   : > { %10441 = vmatprep.subr.bf16.mxu0 %v11512_v61 }
 0xce7   : > { %10442 = vmatpush3.bf16.msra.mxu0 %v11027_v35 }
 0xce8   : > { %10455 = vmatprep.subr.bf16.mxu0 %v11512_v61 }
 0xdb5   : > { %v6922_v14 = vpop.f32.mrb[116].mxu0 }
 0xdb6   : > { %v16219_v8 = vadd.f32 %v9597_v31, %v6922_v14  ;;  %v10437_v53 = vpop.f32.mrb[117].mxu0 }
 0xdb7   : > { %v6925_v18 = vpop.f32.mrb[118].mxu0 }
 0xdb8   : > { %v6930_v20 = vrot.slane %v16219_v8, 7  ;;  %v16222_v55 = vadd.f32 %v9597_v31, %v6925_v18  ;;  %v10438_v22 = vpop.f32.mrb[119].mxu0  ;;  %v6936_v17 = vrot.slane %v16219_v8, 1 }
 0xdba   : > { %v6933_v13 = vsel %vm6932_vm7, 0.0, %v6930_v20  ;;  %v6950_v63 = vpack.c.bf16 %v16222_v55, %v16219_v8  ;;  %v6937_v43 = vrot.slane %v16222_v55, 1 }
 0xdbb   : > { %v6944_v26 = vpack.c.bf16 %v6930_v20, %v6933_v13  ;;  %v11031_v20 = vld [vmem:[%s17660_s26] sm:$0xff]  }
 0xdbc   : > { %10444 = vmatmul.mubr.msk.bf16.vlgmr.msra.gmra.mrb[120].mxu0 %vm1697_vm2, %v6950_v63  ;;  %v6938_v34 = vsel %vm6935_vm8, %v6936_v17, %v6937_v43 }
 0xdbd   : > { %10452 = vmatmul.mubr.msk.bf16.vlgmr.msra.gmra.mrb[64].mxu1 %vm1697_vm2, %v6944_v26  ;;  %10456 = vmatpush3.bf16.msra.mxu0 %v11029_v60  ;;  %v7068_v36 = vpack.c.bf16 %v11512_v61, %v6938_v34 }
 0xdbe   : > { %10457 = vmatprep.subr.bf16.mxu0 %v11512_v61  ;;  %10459 = vmatprep.mubr.msk.bf16.mxu0 %vm11513_vm4, %v11512_v61 }
 0xdbf   : > { %10467 = vmatprep.mubr.msk.bf16.mxu1 %vm11513_vm4, %v11512_v61  ;;  %10464 = vmatpush3.bf16.msra.mxu1 %v11031_v20 }
 0xdc0   : > { %10465 = vmatprep.subr.bf16.mxu1 %v11512_v61 }
 0xdc1   : > { %10458 = vmatpush3.bf16.msra.mxu0 %v11030_v21  ;;  %v9619_v21 = vld [vmem:[%s17661_s28] ss:$0 sm:$0xff]  ;;  %s16809_s28 = smov 16  }
 0xdc2   : > { %10471 = vmatprep.subr.bf16.mxu0 %v11512_v61 }
 0xdc4   : > { %10460 = vmatmul.mubr.msk.bf16.vlgmr.msra.gmra.mrb[124].mxu0 %vm1697_vm2, %v7068_v36 }
 0xdc5   : > { %10473 = vmatprep.mubr.msk.bf16.mxu0 %vm11513_vm4, %v11512_v61 }
 0xe8f   : > { %v7000_v11 = vpop.f32.mrb[120].mxu0 }
 0xe90   : > { %v10445_v23 = vpop.f32.mrb[121].mxu0  ;;  %v7056_v10 = vpop.f32.mrb[64].mxu1 }
 0xe91   : > { %v7057_v51 = vadd.f32 %v7056_v10, %v7000_v11  ;;  %v7003_v32 = vpop.f32.mrb[122].mxu0  ;;  %v10453_v15 = vpop.f32.mrb[65].mxu1  ;;  %v9620_v10 = vld [vmem:[%s17662_s1] ss:$0 sm:$0xff]  ;;  %s16808_s1 = smov 24  }
 0xe92   : > { %v10446_v12 = vpop.f32.mrb[123].mxu0  ;;  %v7059_v24 = vpop.f32.mrb[66].mxu1 }
 0xe93   : > { %v7060_v2 = vadd.f32 %v7059_v24, %v7003_v32  ;;  %v10454_v52 = vpop.f32.mrb[67].mxu1  ;;  %v9621_v24 = vld [vmem:[%s17663_s2] ss:$0 sm:$0xff] }
 0xe97   : > { %v7118_v48 = vpop.f32.mrb[124].mxu0 }
 0xe98   : > { %v7125_v49 = vadd.f32 %v7118_v48, %v7057_v51  ;;  %v10461_v56 = vpop.f32.mrb[125].mxu0 }
 0xe99   : > { %v7121_v29 = vpop.f32.mrb[126].mxu0 }
 0xe9a   : > { %v7134_v54 = vadd.f32 %v9618_v45, %v7125_v49  ;;  %v7126_v3 = vadd.f32 %v7121_v29, %v7060_v2  ;;  %v10462_v6 = vpop.f32.mrb[127].mxu0 }
 0xe9c   : > { %v7136_v25 = vmul.f32 %v7134_v54, %v7134_v54  ;;  %v7135_v27 = vadd.f32 %v9618_v45, %v7126_v3 }
 0xe9e   : > { %v7138_v39 = vmul.f32 %v7136_v25, %v7134_v54  ;;  %v7137_v28 = vmul.f32 %v7135_v27, %v7135_v27 }
 0xea0   : > { %v7140_v37 = vmul.f32 0.044715, %v7138_v39  ;;  %v7139_v42 = vmul.f32 %v7137_v28, %v7135_v27 }
 0xea2   : > { %v7142_v0 = vadd.f32 %v7140_v37, %v7134_v54  ;;  %v7141_v1 = vmul.f32 0.044715, %v7139_v42 }
 0xea4   : > { %v7143_v47 = vadd.f32 %v7141_v1, %v7135_v27  ;;  %v7144_v38 = vmul.f32 0.7978846, %v7142_v0 }
 0xea6   : > { %11377 = vtanh.f32 %v7144_v38  ;;  %v7145_v5 = vmul.f32 0.7978846, %v7143_v47 }
 0xea8   : > { %11379 = vtanh.f32 %v7145_v5 }
 0xeb0   : > { %v11378_v41 = vpop.eup %11377 }
 0xeb1   : > { %v7148_v62 = vadd.f32 1.0, %v11378_v41 }
 0xeb2   : > { %v11380_v16 = vpop.eup %11379 }
 0xeb3   : > { %v7150_v40 = vmul.f32 0.5, %v7148_v62  ;;  %v7149_v59 = vadd.f32 1.0, %v11380_v16 }
 0xeb5   : > { %v7152_v7 = vmul.f32 %v7150_v40, %v7134_v54  ;;  %v7151_v19 = vmul.f32 0.5, %v7149_v59 }
 0xeb7   : > { %v7154_v30 = vadd.f32 %v7152_v7, %v16219_v8  ;;  %v7153_v33 = vmul.f32 %v7151_v19, %v7135_v27 }
 0xeb9   : > { %v7158_v58 = vsel %vm1697_vm2, %v7154_v30, 0.0  ;;  %v7155_v46 = vadd.f32 %v7153_v33, %v16222_v55  ;;  %v11032_v55 = vld [vmem:[%s17660_s26 + $0x8] sm:$0xff]  }
 0xeba   : > { %7159 = vadd.xlane.f32.xlu0 %v7158_v58  ;;  %10466 = vmatpush3.bf16.msra.mxu1 %v11032_v55 }
 0xebb   : > { %v7161_v50 = vsel %vm6820_vm6, %v7155_v46, 0.0  ;;  %10477 = vmatprep.subr.bf16.mxu1 %v11512_v61 }
 0xebc   : > { %7162 = vadd.xlane.f32.xlu1 %v7161_v50 }
 0xf47   : > { %v7160_v57 = vpop.xlane.xlu0 %7159 }
 0xf48   : > { %v7164_v4 = vmul.f32 0.03125, %v7160_v57 }
 0xf49   : > { %v7163_v44 = vpop.xlane.xlu1 %7162 }
 0xf4a   : > { %v7166_v35 = vsub.f32 %v7154_v30, %v7164_v4  ;;  %v7165_v9 = vmul.f32 0.03125, %v7163_v44 }
 0xf4c   : > { %v7167_v31 = vsub.f32 %v7155_v46, %v7165_v9  ;;  %v7168_v14 = vmul.f32 %v7166_v35, %v7166_v35 }
 0xf4e   : > { %v7170_v8 = vsel %vm1697_vm2, %v7168_v14, 0.0  ;;  %v7169_v53 = vmul.f32 %v7167_v31, %v7167_v31 }
 0xf4f   : > { %7171 = vadd.xlane.f32.xlu0 %v7170_v8 }
 0xf50   : > { %v7173_v18 = vsel %vm6820_vm6, %v7169_v53, 0.0 }
 0xf51   : > { %7174 = vadd.xlane.f32.xlu1 %v7173_v18 }
 0xfdc   : > { %v7172_v22 = vpop.xlane.xlu0 %7171 }
 0xfdd   : > { %v7176_v60 = vmul.f32 0.03125, %v7172_v22 }
 0xfde   : > { %v7175_v13 = vpop.xlane.xlu1 %7174 }
 0xfdf   : > { %v7178_v63 = vadd.f32 1e-05, %v7176_v60  ;;  %v7177_v26 = vmul.f32 0.03125, %v7175_v13 }
 0xfe1   : > { %11381 = vrsqrt.f32 %v7178_v63  ;;  %v7179_v43 = vadd.f32 1e-05, %v7177_v26 }
 0xfe3   : > { %11383 = vrsqrt.f32 %v7179_v43 }
 0xfeb   : > { %v11382_v17 = vpop.eup %11381 }
 0xfec   : > { %v7182_v34 = vmul.f32 %v11382_v17, %v7166_v35 }
 0xfed   : > { %v11384_v36 = vpop.eup %11383 }
 0xfee   : > { %v7190_v11 = vmul.f32 %v9619_v21, %v7182_v34  ;;  %v7183_v23 = vmul.f32 %v11384_v36, %v7167_v31 }
 0xff0   : > { %v7191_v51 = vmul.f32 %v9619_v21, %v7183_v23  ;;  %v16255_v32 = vadd.f32 %v9620_v10, %v7190_v11 }
 0xff2   : > { %v16257_v15 = vadd.f32 %v9620_v10, %v7191_v51 }
 0xff4   : > { %v7204_v12 = vpack.c.bf16 %v16257_v15, %v16255_v32 }
 0xff6   : > { %10468 = vmatmul.mubr.msk.bf16.vlgmr.msra.gmra.mrb[68].mxu1 %vm1697_vm2, %v7204_v12 }
 0xff7   : > { %10479 = vmatprep.mubr.msk.bf16.mxu1 %vm11513_vm4, %v11512_v61 }
0x10c9   : > { %v7261_v2 = vpop.f32.mrb[68].mxu1 }
0x10ca   : > { %v10469_v52 = vpop.f32.mrb[69].mxu1  ;;  %v7262_v45 = vadd.f32 %v9621_v24, %v7261_v2 }
0x10cb   : > { %v7264_v48 = vpop.f32.mrb[70].mxu1 }
0x10cc   : > { %v7265_v49 = vadd.f32 %v9621_v24, %v7264_v48  ;;  %v10470_v56 = vpop.f32.mrb[71].mxu1 }
0x10ce   : > { %v10895_v29 = vpack.i.bf16 %v7265_v49, %v7262_v45  ;;  %v16265_v54 = vpack.c.bf16 %v7265_v49, %v7262_v45 }
0x10d0   : > { %10896 = vrot.lane.b32.xlu1 %v10895_v29, %s11514_s7  ;;  %10891 = vrot.lane.b32.xlu0 %v10895_v29, %s11515_s10 }
0x10d4   : > { %10901 = vrot.lane.b32.xlu1 %v10895_v29, %s16814_s11  ;;  %s17670_s11 = sld [smem:[#allocation21_spill]] }
0x10d8   : > { %7293 = vrot.lane.b32.xlu1 %v16265_v54, %s16812_s0 }
0x1142   : > { %v10897_v3 = vpop.permute.xlu1 %10896  ;;  %v10892_v6 = vpop.permute.xlu0 %10891 }
0x1143   : > { %v10899_v25 = vunpack.i.h.bf16 %v10897_v3  ;;  %v10898_v27 = vunpack.i.l.bf16 %v10897_v3  ;;  %v10894_v39 = vunpack.i.h.bf16 %v10892_v6  ;;  %v10893_v28 = vunpack.i.l.bf16 %v10892_v6 }
0x1144   : > { %v11519_v6 = vmov 65535  }
0x1145   : > { %v16272_v37 = vpack.c.bf16 %v10899_v25, %v10898_v27  ;;  %v16274_v42 = vpack.c.bf16 %v10894_v39, %v10893_v28  ;;  %v7593_v25 = vsel %vm7592_vm12, 4294967295, %v11519_v6 }
0x1146   : > { %v10902_v0 = vpop.permute.xlu1 %10901 }
0x1147   : > { %v10904_v1 = vunpack.i.h.bf16 %v10902_v0  ;;  %v10903_v47 = vunpack.i.l.bf16 %v10902_v0  ;;  %7344 = vrot.lane.b32.xlu0 %v16274_v42, %s16812_s0  ;;  %7394 = vrot.lane.b32.xlu1 %v16272_v37, %s16812_s0 }
0x1149   : > { %v16280_v38 = vpack.c.bf16 %v10904_v1, %v10903_v47  ;;  %v16327_v47 = vsel %vm1340_vm0, %v7593_v25, 0 }
0x114a   : > { %v7294_v5 = vpop.permute.xlu1 %7293 }
0x114b   : > { %v7300_v41 = vsel %vm7295_vm9, %v7294_v5, 0  ;;  %7444 = vrot.lane.b32.xlu0 %v16280_v38, %s16812_s0  ;;  %s17669_s0 = sld [smem:[#allocation22_spill]] }
0x114c   : > { %10472 = vmatpush3.bf16.xpose.msra.mxu0 %v7300_v41 }
0x114d   : > { %10483 = vmatprep.subr.bf16.mxu0 %v11512_v61 }
0x1153   : > { %10474 = vmatmul.mubr.msk.bf16.vlgmr.msra.gmra.mrb[128].mxu0 %vm7295_vm9, %v16265_v54 }
0x1154   : > { %10485 = vmatprep.mubr.msk.bf16.mxu0 %vm11513_vm4, %v11512_v61 }
0x11b9   : > { %v7345_v62 = vpop.permute.xlu0 %7344  ;;  %v7395_v16 = vpop.permute.xlu1 %7394 }
0x11ba   : > { %v7350_v40 = vsel %vm7295_vm9, %v7345_v62, 0  ;;  %v7400_v59 = vsel %vm7295_vm9, %v7395_v16, 0 }
0x11bb   : > { %10478 = vmatpush3.bf16.xpose.msra.mxu1 %v7350_v40  ;;  %10484 = vmatpush3.bf16.xpose.msra.mxu0 %v7400_v59 }
0x11bc   : > { %10489 = vmatprep.subr.bf16.mxu1 %v11512_v61  ;;  %10495 = vmatprep.subr.bf16.mxu0 %v11512_v61 }
0x11bd   : > { %v7445_v7 = vpop.permute.xlu0 %7444 }
0x11be   : > { %v7450_v19 = vsel %vm7295_vm9, %v7445_v7, 0 }
0x11c2   : > { %10480 = vmatmul.mubr.msk.bf16.vlgmr.msra.gmra.mrb[72].mxu1 %vm7295_vm9, %v16274_v42  ;;  %10486 = vmatmul.mubr.msk.bf16.vlgmr.msra.gmra.mrb[132].mxu0 %vm7295_vm9, %v16272_v37 }
0x11c3   : > { %10490 = vmatpush3.bf16.xpose.msra.mxu1 %v7450_v19  ;;  %10491 = vmatprep.mubr.msk.bf16.mxu1 %vm11513_vm4, %v11512_v61 }
0x11c4   : > { %10497 = vmatprep.mubr.msk.bf16.mxu0 %vm11513_vm4, %v11512_v61  ;;  %10501 = vmatprep.subr.bf16.mxu1 %v11512_v61 }
0x11ca   : > { %10492 = vmatmul.mubr.msk.bf16.vlgmr.msra.gmra.mrb[76].mxu1 %vm7295_vm9, %v16280_v38 }
0x11cb   : > { %10503 = vmatprep.mubr.msk.bf16.mxu1 %vm11513_vm4, %v11512_v61 }
0x1226   : > { %v7336_v30 = vpop.f32.mrb[128].mxu0 }
0x1227   : > { %v10475_v33 = vpop.f32.mrb[129].mxu0  ;;  %v7494_v58 = vsel %vm7493_vm10, %v7336_v30, -inf }
0x1228   : > { %7495 = vmax.xlane.f32.xlu1 %v7494_v58  ;;  %v7339_v46 = vpop.f32.mrb[130].mxu0 }
0x1229   : > { %v10476_v50 = vpop.f32.mrb[131].mxu0  ;;  %v7498_v57 = vsel %vm7497_vm11, %v7339_v46, -inf }
0x122a   : > { %7499 = vmax.xlane.f32.xlu0 %v7498_v57 }
0x1295   : > { %v7386_v4 = vpop.f32.mrb[72].mxu1  ;;  %v7436_v44 = vpop.f32.mrb[132].mxu0 }
0x1296   : > { %v10481_v35 = vpop.f32.mrb[73].mxu1  ;;  %v10487_v9 = vpop.f32.mrb[133].mxu0  ;;  %v7507_v31 = vsel %vm7493_vm10, %v7436_v44, -inf  ;;  %v7501_v14 = vsel %vm7493_vm10, %v7386_v4, -inf }
0x1297   : > { %7508 = vmax.xlane.f32.xlu1 %v7507_v31  ;;  %v7439_v8 = vpop.f32.mrb[134].mxu0  ;;  %7502 = vmax.xlane.f32.xlu0 %v7501_v14  ;;  %v7389_v53 = vpop.f32.mrb[74].mxu1 }
0x1298   : > { %v10482_v18 = vpop.f32.mrb[75].mxu1  ;;  %v10488_v20 = vpop.f32.mrb[135].mxu0  ;;  %v7504_v55 = vsel %vm7497_vm11, %v7389_v53, -inf  ;;  %v7510_v13 = vsel %vm7497_vm11, %v7439_v8, -inf }
0x129b   : > { %7505 = vmax.xlane.f32.xlu0 %v7504_v55 }
0x129d   : > { %v7486_v22 = vpop.f32.mrb[76].mxu1 }
0x129e   : > { %v10493_v60 = vpop.f32.mrb[77].mxu1  ;;  %v7513_v63 = vsel %vm7493_vm10, %v7486_v22, -inf }
0x129f   : > { %7511 = vmax.xlane.f32.xlu0 %v7510_v13  ;;  %7514 = vmax.xlane.f32.xlu1 %v7513_v63  ;;  %v7489_v26 = vpop.f32.mrb[78].mxu1 }
0x12a0   : > { %v10494_v43 = vpop.f32.mrb[79].mxu1  ;;  %v7516_v17 = vsel %vm7497_vm11, %v7489_v26, -inf }
0x12a3   : > { %7517 = vmax.xlane.f32.xlu0 %v7516_v17 }
0x12b0   : > { %7587 = vrot.lane.b32.xlu1 %v16265_v54, %s16810_s18 }
0x12b5   : > { %v7496_v11 = vpop.xlane.xlu1 %7495 }
0x12b6   : > { %v7519_v23 = vsub.f32 %v7336_v30, %v7496_v11 }
0x12b7   : > { %v7500_v21 = vpop.xlane.xlu0 %7499 }
0x12b8   : > { %v7520_v34 = vsub.f32 %v7339_v46, %v7500_v21  ;;  %v7527_v10 = vmul.f32 1.442695, %v7519_v23 }
0x12ba   : > { %v7529_v36 = vmul.f32 1.442695, %v7520_v34 }
0x12bc   : > { %11385 = vpow2.f32 %v7529_v36 }
0x12bd   : > { %11387 = vpow2.f32 %v7527_v10 }
0x12c6   : > { %v16318_v51 = vpop.eup %11385 }
0x12c7   : > { %v7546_v12 = vsel %vm7497_vm11, %v16318_v51, 0.0  ;;  %v16322_v24 = vpop.eup %11387 }
0x12c8   : > { %7547 = vadd.xlane.f32.xlu0 %v7546_v12  ;;  %v7543_v2 = vsel %vm7493_vm10, %v16322_v24, 0.0 }
0x12d4   : > { %7544 = vadd.xlane.f32.xlu1 %v7543_v2 }
0x1324   : > { %v7509_v52 = vpop.xlane.xlu1 %7508  ;;  %v7503_v48 = vpop.xlane.xlu0 %7502 }
0x1325   : > { %v7523_v45 = vsub.f32 %v7436_v44, %v7509_v52  ;;  %v7521_v49 = vsub.f32 %v7386_v4, %v7503_v48 }
0x1327   : > { %v7531_v56 = vmul.f32 1.442695, %v7521_v49  ;;  %v7535_v29 = vmul.f32 1.442695, %v7523_v45 }
0x1328   : > { %v7506_v54 = vpop.xlane.xlu0 %7505 }
0x1329   : > { %v7522_v3 = vsub.f32 %v7389_v53, %v7506_v54  ;;  %11389 = vpow2.f32 %v7531_v56 }
0x132a   : > { %11391 = vpow2.f32 %v7535_v29 }
0x132b   : > { %v7533_v27 = vmul.f32 1.442695, %v7522_v3 }
0x132c   : > { %v7512_v39 = vpop.xlane.xlu0 %7511  ;;  %v7515_v28 = vpop.xlane.xlu1 %7514 }
0x132d   : > { %11393 = vpow2.f32 %v7533_v27  ;;  %v7524_v0 = vsub.f32 %v7439_v8, %v7512_v39  ;;  %v7525_v1 = vsub.f32 %v7486_v22, %v7515_v28  ;;  %v11033_v28 = vld [vmem:[%s17664_s22] sm:$0xff]  }
0x132f   : > { %v7537_v5 = vmul.f32 1.442695, %v7524_v0  ;;  %v7539_v41 = vmul.f32 1.442695, %v7525_v1 }
0x1330   : > { %v7588_v62 = vpop.permute.xlu1 %7587  ;;  %v7518_v16 = vpop.xlane.xlu0 %7517 }
0x1331   : > { %11395 = vpow2.f32 %v7537_v5  ;;  %v7596_v40 = vand.u32 %v16327_v47, %v7588_v62  ;;  %v7526_v59 = vsub.f32 %v7489_v26, %v7518_v16 }
0x1332   : > { %11397 = vpow2.f32 %v7539_v41 }
0x1333   : > { %v7541_v7 = vmul.f32 1.442695, %v7526_v59  ;;  %10496 = vmatpush3.bf16.msra.mxu0 %v7596_v40  ;;  %v11390_v19 = vpop.eup %11389  ;;  %v11034_v59 = vld [vmem:[%s17664_s22 + $0x8] sm:$0xff]  }
0x1334   : > { %10507 = vmatprep.subr.bf16.mxu0 %v11512_v61  ;;  %v7549_v30 = vsel %vm7493_vm10, %v11390_v19, 0.0  ;;  %v11392_v33 = vpop.eup %11391 }
0x1335   : > { %11399 = vpow2.f32 %v7541_v7  ;;  %7550 = vadd.xlane.f32.xlu1 %v7549_v30  ;;  %v7555_v50 = vsel %vm7493_vm10, %v11392_v33, 0.0 }
0x1337   : > { %v11394_v58 = vpop.eup %11393 }
0x1338   : > { %v7552_v46 = vsel %vm7497_vm11, %v11394_v58, 0.0 }
0x1339   : > { %7553 = vadd.xlane.f32.xlu0 %v7552_v46  ;;  %7556 = vadd.xlane.f32.xlu1 %v7555_v50 }
0x133b   : > { %v11396_v57 = vpop.eup %11395 }
0x133c   : > { %v16334_v4 = vpop.eup %11397  ;;  %v7558_v44 = vsel %vm7497_vm11, %v11396_v57, 0.0 }
0x133d   : > { %v7561_v35 = vsel %vm7493_vm10, %v16334_v4, 0.0  ;;  %7559 = vadd.xlane.f32.xlu0 %v7558_v44 }
0x133e   : > { %7562 = vadd.xlane.f32.xlu1 %v7561_v35 }
0x133f   : > { %v11400_v9 = vpop.eup %11399 }
0x1340   : > { %v7564_v31 = vsel %vm7497_vm11, %v11400_v9, 0.0 }
0x1341   : > { %7565 = vadd.xlane.f32.xlu0 %v7564_v31 }
0x134f   : > { %7688 = vrot.lane.b32.xlu1 %v16272_v37, %s16810_s18 }
0x1353   : > { %7737 = vrot.lane.b32.xlu1 %v16280_v38, %s16810_s18 }
0x1355   : > { %v7548_v14 = vpop.xlane.xlu0 %7547 }
0x1356   : > { %11401 = vrcp.f32 %v7548_v14 }
0x1357   : > { %7639 = vrot.lane.b32.xlu0 %v16274_v42, %s16810_s18  ;;  %s17668_s18 = sld [smem:[#allocation19_spill]] }
0x1360   : > { %v11402_v53 = vpop.eup %11401 }
0x1361   : > { %v7545_v8 = vpop.xlane.xlu1 %7544  ;;  %v7576_v20 = vmul.f32 %v11402_v53, %v16318_v51 }
0x1362   : > { %11403 = vrcp.f32 %v7545_v8 }
0x136c   : > { %v11404_v18 = vpop.eup %11403 }
0x136d   : > { %v7575_v55 = vmul.f32 %v11404_v18, %v16322_v24 }
0x136f   : > { %v7583_v22 = vpack.c.bf16 %v7576_v20, %v7575_v55 }
0x1371   : > { %10498 = vmatmul.mubr.msk.bf16.vlgmr.msra.gmra.mrb[136].mxu0 %vm7493_vm10, %v7583_v22 }
0x1372   : > { %10509 = vmatprep.mubr.msk.bf16.mxu0 %vm11513_vm4, %v11512_v61 }
0x13c2   : > { %v7551_v37 = vpop.xlane.xlu1 %7550 }
0x13c3   : > { %11405 = vrcp.f32 %v7551_v37 }
0x13c6   : > { %v7554_v38 = vpop.xlane.xlu0 %7553  ;;  %v7557_v42 = vpop.xlane.xlu1 %7556 }
0x13c7   : > { %11407 = vrcp.f32 %v7554_v38 }
0x13c8   : > { %11409 = vrcp.f32 %v7557_v42 }
0x13ca   : > { %v7560_v60 = vpop.xlane.xlu0 %7559 }
0x13cb   : > { %v7563_v13 = vpop.xlane.xlu1 %7562  ;;  %11411 = vrcp.f32 %v7560_v60 }
0x13cc   : > { %11413 = vrcp.f32 %v7563_v13 }
0x13cd   : > { %v11406_v43 = vpop.eup %11405 }
0x13ce   : > { %v7566_v63 = vpop.xlane.xlu0 %7565  ;;  %v7577_v10 = vmul.f32 %v11406_v43, %v11390_v19 }
0x13cf   : > { %v7689_v26 = vpop.permute.xlu1 %7688  ;;  %11415 = vrcp.f32 %v7566_v63 }
0x13d0   : > { %v7694_v17 = vand.u32 %v7689_v26, %v16327_v47 }
0x13d1   : > { %v11408_v21 = vpop.eup %11407 }
0x13d2   : > { %v7578_v34 = vmul.f32 %v11408_v21, %v11394_v58  ;;  %10508 = vmatpush3.bf16.msra.mxu0 %v7694_v17  ;;  %v7640_v36 = vpop.permute.xlu0 %7639  ;;  %v11410_v11 = vpop.eup %11409 }
0x13d3   : > { %v7645_v23 = vand.u32 %v7640_v36, %v16327_v47  ;;  %10519 = vmatprep.subr.bf16.mxu0 %v11512_v61  ;;  %v7738_v51 = vpop.permute.xlu1 %7737  ;;  %v7579_v24 = vmul.f32 %v11410_v11, %v11392_v33 }
0x13d4   : > { %v7584_v52 = vpack.c.bf16 %v7578_v34, %v7577_v10  ;;  %v7743_v48 = vand.u32 %v7738_v51, %v16327_v47 }
0x13d5   : > { %v11412_v12 = vpop.eup %11411  ;;  %10502 = vmatpush3.bf16.msra.mxu1 %v7645_v23 }
0x13d6   : > { %v7580_v2 = vmul.f32 %v11412_v12, %v11396_v57  ;;  %10513 = vmatprep.subr.bf16.mxu1 %v11512_v61  ;;  %v11414_v45 = vpop.eup %11413 }
0x13d7   : > { %v7581_v54 = vmul.f32 %v11414_v45, %v16334_v4 }
0x13d8   : > { %10504 = vmatmul.mubr.msk.bf16.vlgmr.msra.gmra.mrb[80].mxu1 %vm7493_vm10, %v7584_v52  ;;  %v7585_v49 = vpack.c.bf16 %v7580_v2, %v7579_v24 }
0x13d9   : > { %v11416_v56 = vpop.eup %11415  ;;  %10514 = vmatpush3.bf16.msra.mxu1 %v7743_v48  ;;  %10515 = vmatprep.mubr.msk.bf16.mxu1 %vm11513_vm4, %v11512_v61 }
0x13da   : > { %v7582_v29 = vmul.f32 %v11416_v56, %v11400_v9  ;;  %10510 = vmatmul.mubr.msk.bf16.vlgmr.msra.gmra.mrb[140].mxu0 %vm7493_vm10, %v7585_v49  ;;  %10527 = vmatprep.subr.bf16.mxu1 %v11512_v61 }
0x13db   : > { %10523 = vmatprep.mubr.msk.bf16.mxu0 %vm11513_vm4, %v11512_v61  ;;  %10520 = vmatpush3.bf16.msra.mxu0 %v11033_v28 }
0x13dc   : > { %v7586_v3 = vpack.c.bf16 %v7582_v29, %v7581_v54  ;;  %10521 = vmatprep.subr.bf16.mxu0 %v11512_v61 }
0x13df   : > { %10522 = vmatpush3.bf16.msra.mxu0 %v11034_v59 }
0x13e0   : > { %10516 = vmatmul.mubr.msk.bf16.vlgmr.msra.gmra.mrb[84].mxu1 %vm7493_vm10, %v7586_v3  ;;  %10535 = vmatprep.subr.bf16.mxu0 %v11512_v61 }
0x13e1   : > { %10531 = vmatprep.mubr.msk.bf16.mxu1 %vm11513_vm4, %v11512_v61 }
0x1444   : > { %v7632_v6 = vpop.f32.mrb[136].mxu0 }
0x1445   : > { %v10499_v25 = vpop.f32.mrb[137].mxu0 }
0x1446   : > { %v7635_v27 = vpop.f32.mrb[138].mxu0 }
0x1447   : > { %v10500_v39 = vpop.f32.mrb[139].mxu0 }
0x14ab   : > { %v7681_v0 = vpop.f32.mrb[80].mxu1 }
0x14ac   : > { %v10505_v1 = vpop.f32.mrb[81].mxu1 }
0x14ad   : > { %v7684_v5 = vpop.f32.mrb[82].mxu1  ;;  %v7730_v41 = vpop.f32.mrb[140].mxu0 }
0x14ae   : > { %v10905_v62 = vpack.i.bf16 %v7684_v5, %v7681_v0  ;;  %v10506_v16 = vpop.f32.mrb[83].mxu1  ;;  %v10511_v40 = vpop.f32.mrb[141].mxu0 }
0x14af   : > { %v7733_v7 = vpop.f32.mrb[142].mxu0  ;;  %v9638_v16 = vld [vmem:[%s17668_s18] ss:$0 sm:$0xff] }
0x14b0   : > { %v10910_v19 = vpack.i.bf16 %v7733_v7, %v7730_v41  ;;  %v10512_v30 = vpop.f32.mrb[143].mxu0  ;;  %10906 = vrot.lane.b32.xlu1 %v10905_v62, %s16807_s23  ;;  %s17665_s23 = sld [smem:[#allocation17_spill]] }
0x14b1   : > { %v11037_v30 = vld [vmem:[%s17669_s0] sm:$0xff]  }
0x14b2   : > { %10911 = vrot.lane.b32.xlu0 %v10910_v19, %s16809_s28  ;;  %s17667_s28 = sld [smem:[#allocation18_spill]] }
0x14b3   : > { %v7779_v33 = vpop.f32.mrb[84].mxu1 }
0x14b4   : > { %v10517_v58 = vpop.f32.mrb[85].mxu1 }
0x14b5   : > { %v7782_v46 = vpop.f32.mrb[86].mxu1  ;;  %v11039_v58 = vld [vmem:[%s17669_s0 + $0x10] sm:$0xff]  }
0x14b6   : > { %v10915_v50 = vpack.i.bf16 %v7782_v46, %v7779_v33  ;;  %v10518_v57 = vpop.f32.mrb[87].mxu1  ;;  %v9633_v13 = vld [vmem:[%s17665_s23] ss:$0 sm:$0xff]  ;;  %v11038_v33 = vld [vmem:[%s17669_s0 + $0x8] sm:$0xff]   ;;  %v11040_v46 = vld [vmem:[%s17669_s0 + $0x18] sm:$0xff]  }
0x14b8   : > { %10916 = vrot.lane.b32.xlu1 %v10915_v50, %s16808_s1  ;;  %s17666_s1 = sld [smem:[#allocation20_spill]]  ;;  %v9637_v1 = vld [vmem:[%s17667_s28] ss:$0 sm:$0xff] }
0x14b9   : > { %v9639_v50 = vld [vmem:[%s17670_s11] ss:$0 sm:$0xff] }
0x14be   : > { %v11036_v29 = vld [vmem:[%s17666_s1 + $0x8] sm:$0xff]  }
0x1522   : > { %v10907_v4 = vpop.permute.xlu1 %10906 }
0x1523   : > { %v10909_v44 = vunpack.i.h.bf16 %v10907_v4  ;;  %v10908_v35 = vunpack.i.l.bf16 %v10907_v4 }
0x1524   : > { %v10912_v9 = vpop.permute.xlu0 %10911 }
0x1525   : > { %v10914_v31 = vunpack.i.h.bf16 %v10912_v9  ;;  %v10913_v14 = vunpack.i.l.bf16 %v10912_v9  ;;  %v7811_v8 = vsel %vm7295_vm9, %v7635_v27, %v10909_v44  ;;  %v7810_v53 = vsel %vm7295_vm9, %v7632_v6, %v10908_v35 }
0x1527   : > { %v7813_v22 = vsel %vm7812_vm13, %v7810_v53, %v10913_v14  ;;  %v7814_v37 = vsel %vm7812_vm13, %v7811_v8, %v10914_v31 }
0x152a   : > { %v10917_v18 = vpop.permute.xlu1 %10916 }
0x152b   : > { %v10919_v20 = vunpack.i.h.bf16 %v10917_v18  ;;  %v10918_v55 = vunpack.i.l.bf16 %v10917_v18 }
0x152d   : > { %v7817_v38 = vsel %vm7815_vm14, %v7814_v37, %v10919_v20  ;;  %v7816_v42 = vsel %vm7815_vm14, %v7813_v22, %v10918_v55 }
0x152e   : > { %v7822_v60 = vpack.c.bf16 %v7817_v38, %v7816_v42 }
0x1530   : > { %10524 = vmatmul.mubr.msk.bf16.vlgmr.msra.gmra.mrb[144].mxu0 %vm1697_vm2, %v7822_v60 }
0x1531   : > { %10543 = vmatprep.mubr.msk.bf16.mxu0 %vm11513_vm4, %v11512_v61  ;;  %10536 = vmatpush3.bf16.msra.mxu0 %v11037_v30 }
0x1532   : > { %10537 = vmatprep.subr.bf16.mxu0 %v11512_v61 }
0x1535   : > { %10538 = vmatpush3.bf16.msra.mxu0 %v11038_v33 }
0x1536   : > { %10539 = vmatprep.subr.bf16.mxu0 %v11512_v61 }
0x1539   : > { %10540 = vmatpush3.bf16.msra.mxu0 %v11039_v58 }
0x153a   : > { %10541 = vmatprep.subr.bf16.mxu0 %v11512_v61 }
0x153d   : > { %10542 = vmatpush3.bf16.msra.mxu0 %v11040_v46  ;;  %v9650_v46 = vld [vmem:[%s11676_s4] ss:$0 sm:$0xff] }
0x153e   : > { %10561 = vmatprep.subr.bf16.mxu0 %v11512_v61 }
0x1603   : > { %v7879_v63 = vpop.f32.mrb[144].mxu0 }
0x1604   : > { %v7880_v26 = vadd.f32 %v9633_v13, %v7879_v63  ;;  %v10525_v43 = vpop.f32.mrb[145].mxu0 }
0x1605   : > { %v7882_v17 = vpop.f32.mrb[146].mxu0 }
0x1606   : > { %v7883_v21 = vadd.f32 %v9633_v13, %v7882_v17  ;;  %v10526_v34 = vpop.f32.mrb[147].mxu0  ;;  %v7886_v36 = vadd.f32 %v7880_v26, %v16255_v32 }
0x1608   : > { %v7890_v11 = vsel %vm1697_vm2, %v7886_v36, 0.0  ;;  %v7887_v23 = vadd.f32 %v7883_v21, %v16257_v15  ;;  %v11035_v15 = vld [vmem:[%s17666_s1] sm:$0xff]  }
0x1609   : > { %7891 = vadd.xlane.f32.xlu0 %v7890_v11  ;;  %10528 = vmatpush3.bf16.msra.mxu1 %v11035_v15  ;;  %v9643_v11 = vld [vmem:[%s11666_s20] ss:$0 sm:$0xff] }
0x160a   : > { %v7893_v10 = vsel %vm6820_vm6, %v7887_v23, 0.0  ;;  %10529 = vmatprep.subr.bf16.mxu1 %v11512_v61 }
0x160b   : > { %7894 = vadd.xlane.f32.xlu1 %v7893_v10 }
0x160d   : > { %10530 = vmatpush3.bf16.msra.mxu1 %v11036_v29 }
0x160e   : > { %10547 = vmatprep.subr.bf16.mxu1 %v11512_v61 }
0x1696   : > { %v7892_v51 = vpop.xlane.xlu0 %7891 }
0x1697   : > { %v7896_v12 = vmul.f32 0.03125, %v7892_v51 }
0x1698   : > { %v7895_v24 = vpop.xlane.xlu1 %7894 }
0x1699   : > { %v7898_v2 = vsub.f32 %v7886_v36, %v7896_v12  ;;  %v7897_v52 = vmul.f32 0.03125, %v7895_v24 }
0x169b   : > { %v7899_v48 = vsub.f32 %v7887_v23, %v7897_v52  ;;  %v7900_v45 = vmul.f32 %v7898_v2, %v7898_v2 }
0x169d   : > { %v7902_v49 = vsel %vm1697_vm2, %v7900_v45, 0.0  ;;  %v7901_v32 = vmul.f32 %v7899_v48, %v7899_v48 }
0x169e   : > { %7903 = vadd.xlane.f32.xlu0 %v7902_v49 }
0x169f   : > { %v7905_v56 = vsel %vm6820_vm6, %v7901_v32, 0.0 }
0x16a2   : > { %7906 = vadd.xlane.f32.xlu0 %v7905_v56 }
0x172b   : > { %v7904_v54 = vpop.xlane.xlu0 %7903 }
0x172c   : > { %v7908_v3 = vmul.f32 0.03125, %v7904_v54 }
0x172e   : > { %v7910_v6 = vadd.f32 1e-05, %v7908_v3 }
0x172f   : > { %v7907_v25 = vpop.xlane.xlu0 %7906 }
0x1730   : > { %11417 = vrsqrt.f32 %v7910_v6  ;;  %v7909_v27 = vmul.f32 0.03125, %v7907_v25 }
0x1732   : > { %v7911_v39 = vadd.f32 1e-05, %v7909_v27 }
0x1734   : > { %11419 = vrsqrt.f32 %v7911_v39 }
0x173a   : > { %v11418_v28 = vpop.eup %11417 }
0x173b   : > { %v7914_v0 = vmul.f32 %v11418_v28, %v7898_v2  ;;  %v11041_v28 = vld [vmem:[%s17660_s26 + $0x10] sm:$0xff]  }
0x173d   : > { %v7922_v41 = vmul.f32 %v9637_v1, %v7914_v0  ;;  %v11042_v0 = vld [vmem:[%s17660_s26 + $0x18] sm:$0xff]  }
0x173e   : > { %v11420_v5 = vpop.eup %11419 }
0x173f   : > { %v7915_v62 = vmul.f32 %v11420_v5, %v7899_v48  ;;  %v7930_v59 = vadd.f32 %v9638_v16, %v7922_v41 }
0x1741   : > { %v7923_v40 = vmul.f32 %v9637_v1, %v7915_v62 }
0x1743   : > { %v7931_v7 = vadd.f32 %v9638_v16, %v7923_v40 }
0x1745   : > { %v7936_v19 = vpack.c.bf16 %v7931_v7, %v7930_v59 }
0x1747   : > { %10532 = vmatmul.mubr.msk.bf16.vlgmr.msra.gmra.mrb[88].mxu1 %vm1697_vm2, %v7936_v19 }
0x1748   : > { %10551 = vmatprep.mubr.msk.bf16.mxu1 %vm11513_vm4, %v11512_v61  ;;  %10548 = vmatpush3.bf16.msra.mxu1 %v11041_v28 }
0x1749   : > { %10549 = vmatprep.subr.bf16.mxu1 %v11512_v61 }
0x174c   : > { %10550 = vmatpush3.bf16.msra.mxu1 %v11042_v0 }
0x174d   : > { %10555 = vmatprep.subr.bf16.mxu1 %v11512_v61 }
0x181a   : > { %v7993_v57 = vpop.f32.mrb[88].mxu1 }
0x181b   : > { %v7994_v4 = vadd.f32 %v9639_v50, %v7993_v57  ;;  %v10533_v44 = vpop.f32.mrb[89].mxu1 }
0x181c   : > { %v7996_v35 = vpop.f32.mrb[90].mxu1 }
0x181d   : > { %v8000_v9 = vmul.f32 %v7994_v4, %v7994_v4  ;;  %v7997_v31 = vadd.f32 %v9639_v50, %v7996_v35  ;;  %v10534_v14 = vpop.f32.mrb[91].mxu1  ;;  %v9656_v35 = vld [vmem:[%s17663_s2 + $0x1] ss:$0 sm:$0xff] }
0x181f   : > { %v8002_v8 = vmul.f32 %v8000_v9, %v7994_v4  ;;  %v8001_v53 = vmul.f32 %v7997_v31, %v7997_v31 }
0x1821   : > { %v8004_v18 = vmul.f32 0.044715, %v8002_v8  ;;  %v8003_v20 = vmul.f32 %v8001_v53, %v7997_v31 }
0x1823   : > { %v8006_v55 = vadd.f32 %v8004_v18, %v7994_v4  ;;  %v8005_v22 = vmul.f32 0.044715, %v8003_v20 }
0x1825   : > { %v8008_v37 = vmul.f32 0.7978846, %v8006_v55  ;;  %v8007_v38 = vadd.f32 %v8005_v22, %v7997_v31 }
0x1827   : > { %11421 = vtanh.f32 %v8008_v37  ;;  %v8009_v42 = vmul.f32 0.7978846, %v8007_v38 }
0x1829   : > { %11423 = vtanh.f32 %v8009_v42 }
0x1831   : > { %v11422_v60 = vpop.eup %11421 }
0x1832   : > { %v8012_v13 = vadd.f32 1.0, %v11422_v60 }
0x1833   : > { %v11424_v63 = vpop.eup %11423 }
0x1834   : > { %v8014_v26 = vmul.f32 0.5, %v8012_v13  ;;  %v8013_v43 = vadd.f32 1.0, %v11424_v63 }
0x1836   : > { %v8015_v17 = vmul.f32 0.5, %v8013_v43  ;;  %v8016_v21 = vmul.f32 %v8014_v26, %v7994_v4 }
0x1838   : > { %v8017_v34 = vmul.f32 %v8015_v17, %v7997_v31 }
0x183a   : > { %v8026_v36 = vpack.c.bf16 %v8017_v34, %v8016_v21 }
0x183c   : > { %10544 = vmatmul.mubr.msk.bf16.vlgmr.msra.gmra.mrb[148].mxu0 %vm8058_vm15, %v8026_v36 }
0x183d   : > { %10563 = vmatprep.mubr.msk.bf16.mxu0 %vm11513_vm4, %v11512_v61 }
0x190f   : > { %v8096_v23 = vpop.f32.mrb[148].mxu0 }
0x1910   : > { %v8097_v10 = vadd.f32 %v9643_v11, %v8096_v23  ;;  %v10545_v51 = vpop.f32.mrb[149].mxu0 }
0x1911   : > { %v8099_v12 = vpop.f32.mrb[150].mxu0 }
0x1912   : > { %v8100_v24 = vadd.f32 %v9643_v11, %v8099_v12  ;;  %v10546_v2 = vpop.f32.mrb[151].mxu0  ;;  %v8103_v52 = vadd.f32 %v8097_v10, %v7930_v59 }
0x1914   : > { %v8107_v48 = vsel %vm1697_vm2, %v8103_v52, 0.0  ;;  %v8104_v45 = vadd.f32 %v8100_v24, %v7931_v7  ;;  %v9649_v7 = vld [vmem:[%s11671_s27] ss:$0 sm:$0xff] }
0x1915   : > { %8108 = vadd.xlane.f32.xlu0 %v8107_v48 }
0x1916   : > { %v8110_v49 = vsel %vm6820_vm6, %v8104_v45, 0.0 }
0x1917   : > { %8111 = vadd.xlane.f32.xlu1 %v8110_v49 }
0x19a2   : > { %v8109_v32 = vpop.xlane.xlu0 %8108 }
0x19a3   : > { %v8113_v56 = vmul.f32 0.03125, %v8109_v32 }
0x19a4   : > { %v8112_v15 = vpop.xlane.xlu1 %8111 }
0x19a5   : > { %v8115_v29 = vsub.f32 %v8103_v52, %v8113_v56  ;;  %v8114_v54 = vmul.f32 0.03125, %v8112_v15 }
0x19a7   : > { %v8116_v3 = vsub.f32 %v8104_v45, %v8114_v54  ;;  %v8117_v6 = vmul.f32 %v8115_v29, %v8115_v29 }
0x19a9   : > { %v8119_v25 = vsel %vm1697_vm2, %v8117_v6, 0.0  ;;  %v8118_v27 = vmul.f32 %v8116_v3, %v8116_v3 }
0x19aa   : > { %8120 = vadd.xlane.f32.xlu0 %v8119_v25 }
0x19ab   : > { %v8122_v39 = vsel %vm6820_vm6, %v8118_v27, 0.0 }
0x19ac   : > { %8123 = vadd.xlane.f32.xlu1 %v8122_v39 }
0x1a37   : > { %v8121_v1 = vpop.xlane.xlu0 %8120 }
0x1a38   : > { %v8125_v5 = vmul.f32 0.03125, %v8121_v1 }
0x1a39   : > { %v8124_v41 = vpop.xlane.xlu1 %8123 }
0x1a3a   : > { %v8127_v62 = vadd.f32 1e-05, %v8125_v5  ;;  %v8126_v16 = vmul.f32 0.03125, %v8124_v41 }
0x1a3c   : > { %11425 = vrsqrt.f32 %v8127_v62  ;;  %v8128_v40 = vadd.f32 1e-05, %v8126_v16 }
0x1a3e   : > { %11427 = vrsqrt.f32 %v8128_v40 }
0x1a46   : > { %v11426_v59 = vpop.eup %11425 }
0x1a47   : > { %v8131_v19 = vmul.f32 %v11426_v59, %v8115_v29 }
0x1a48   : > { %v11428_v30 = vpop.eup %11427 }
0x1a49   : > { %v8139_v33 = vmul.f32 %v9649_v7, %v8131_v19  ;;  %v8132_v58 = vmul.f32 %v11428_v30, %v8116_v3 }
0x1a4b   : > { %v8140_v50 = vmul.f32 %v9649_v7, %v8132_v58  ;;  %v16422_v57 = vadd.f32 %v9650_v46, %v8139_v33 }
0x1a4d   : > { %v16424_v4 = vadd.f32 %v9650_v46, %v8140_v50 }
0x1a4f   : > { %v8154_v44 = vpack.c.bf16 %v16424_v4, %v16422_v57 }
0x1a51   : > { %10552 = vmatmul.mubr.msk.bf16.vlgmr.msra.gmra.mrb[92].mxu1 %vm1697_vm2, %v8154_v44 }
0x1a52   : > { %10557 = vmatprep.mubr.msk.bf16.mxu1 %vm11513_vm4, %v11512_v61 }
0x1b24   : > { %v8212_v9 = vpop.f32.mrb[92].mxu1 }
0x1b25   : > { %v10553_v31 = vpop.f32.mrb[93].mxu1  ;;  %v8213_v8 = vadd.f32 %v9656_v35, %v8212_v9 }
0x1b26   : > { %v8215_v14 = vpop.f32.mrb[94].mxu1 }
0x1b27   : > { %v8216_v53 = vadd.f32 %v9656_v35, %v8215_v14  ;;  %v10554_v18 = vpop.f32.mrb[95].mxu1 }
0x1b29   : > { %v10925_v20 = vpack.i.bf16 %v8216_v53, %v8213_v8  ;;  %v16432_v55 = vpack.c.bf16 %v8216_v53, %v8213_v8 }
0x1b2b   : > { %10926 = vrot.lane.b32.xlu1 %v10925_v20, %s11514_s7  ;;  %10921 = vrot.lane.b32.xlu0 %v10925_v20, %s11515_s10  ;;  %s17675_s7 = smov 16   ;;  %s17676_s10 = smov 24  }
0x1b2f   : > { %10931 = vrot.lane.b32.xlu1 %v10925_v20, %s17671_s3  ;;  %s17674_s3 = smov 8  }
0x1b33   : > { %8244 = vrot.lane.b32.xlu1 %v16432_v55, %s17672_s5 }
0x1b9d   : > { %v10927_v22 = vpop.permute.xlu1 %10926  ;;  %v10922_v37 = vpop.permute.xlu0 %10921 }
0x1b9e   : > { %v10929_v38 = vunpack.i.h.bf16 %v10927_v22  ;;  %v10928_v42 = vunpack.i.l.bf16 %v10927_v22  ;;  %v10924_v60 = vunpack.i.h.bf16 %v10922_v37  ;;  %v10923_v13 = vunpack.i.l.bf16 %v10922_v37 }
0x1ba0   : > { %v16439_v63 = vpack.c.bf16 %v10929_v38, %v10928_v42  ;;  %v16441_v26 = vpack.c.bf16 %v10924_v60, %v10923_v13 }
0x1ba1   : > { %v10932_v43 = vpop.permute.xlu1 %10931 }
0x1ba2   : > { %v10934_v17 = vunpack.i.h.bf16 %v10932_v43  ;;  %v10933_v21 = vunpack.i.l.bf16 %v10932_v43  ;;  %8294 = vrot.lane.b32.xlu0 %v16441_v26, %s17672_s5  ;;  %8344 = vrot.lane.b32.xlu1 %v16439_v63, %s17672_s5 }
0x1ba4   : > { %v16447_v34 = vpack.c.bf16 %v10934_v17, %v10933_v21 }
0x1ba5   : > { %v8245_v36 = vpop.permute.xlu1 %8244 }
0x1ba6   : > { %v8250_v11 = vsel %vm7295_vm9, %v8245_v36, 0  ;;  %8394 = vrot.lane.b32.xlu0 %v16447_v34, %s17672_s5  ;;  %s17673_s5 = smov 64  }
0x1ba7   : > { %10556 = vmatpush3.bf16.xpose.msra.mxu1 %v8250_v11 }
0x1ba8   : > { %10567 = vmatprep.subr.bf16.mxu1 %v11512_v61 }
0x1bae   : > { %10558 = vmatmul.mubr.msk.bf16.vlgmr.msra.gmra.mrb[96].mxu1 %vm7295_vm9, %v16432_v55 }
0x1baf   : > { %10569 = vmatprep.mubr.msk.bf16.mxu1 %vm11513_vm4, %v11512_v61 }
0x1c14   : > { %v8295_v23 = vpop.permute.xlu0 %8294  ;;  %v8345_v10 = vpop.permute.xlu1 %8344 }
0x1c15   : > { %v8300_v51 = vsel %vm7295_vm9, %v8295_v23, 0  ;;  %v8350_v12 = vsel %vm7295_vm9, %v8345_v10, 0 }
0x1c16   : > { %10562 = vmatpush3.bf16.xpose.msra.mxu0 %v8300_v51  ;;  %10568 = vmatpush3.bf16.xpose.msra.mxu1 %v8350_v12 }
0x1c17   : > { %10573 = vmatprep.subr.bf16.mxu0 %v11512_v61  ;;  %10579 = vmatprep.subr.bf16.mxu1 %v11512_v61 }
0x1c18   : > { %v8395_v24 = vpop.permute.xlu0 %8394 }
0x1c19   : > { %v8400_v2 = vsel %vm7295_vm9, %v8395_v24, 0 }
0x1c1d   : > { %10564 = vmatmul.mubr.msk.bf16.vlgmr.msra.gmra.mrb[152].mxu0 %vm7295_vm9, %v16441_v26  ;;  %10570 = vmatmul.mubr.msk.bf16.vlgmr.msra.gmra.mrb[100].mxu1 %vm7295_vm9, %v16439_v63 }
0x1c1e   : > { %10574 = vmatpush3.bf16.xpose.msra.mxu0 %v8400_v2  ;;  %10575 = vmatprep.mubr.msk.bf16.mxu0 %vm11513_vm4, %v11512_v61 }
0x1c1f   : > { %10581 = vmatprep.mubr.msk.bf16.mxu1 %vm11513_vm4, %v11512_v61  ;;  %10585 = vmatprep.subr.bf16.mxu0 %v11512_v61 }
0x1c25   : > { %10576 = vmatmul.mubr.msk.bf16.vlgmr.msra.gmra.mrb[156].mxu0 %vm7295_vm9, %v16447_v34 }
0x1c26   : > { %10587 = vmatprep.mubr.msk.bf16.mxu0 %vm11513_vm4, %v11512_v61 }
0x1c81   : > { %v8286_v52 = vpop.f32.mrb[96].mxu1 }
0x1c82   : > { %v10559_v48 = vpop.f32.mrb[97].mxu1  ;;  %v8443_v45 = vsel %vm7493_vm10, %v8286_v52, -inf }
0x1c83   : > { %8444 = vmax.xlane.f32.xlu1 %v8443_v45  ;;  %v8289_v49 = vpop.f32.mrb[98].mxu1 }
0x1c84   : > { %v10560_v32 = vpop.f32.mrb[99].mxu1  ;;  %v8446_v56 = vsel %vm7497_vm11, %v8289_v49, -inf }
0x1c85   : > { %8447 = vmax.xlane.f32.xlu0 %v8446_v56 }
0x1cf0   : > { %v8336_v15 = vpop.f32.mrb[152].mxu0  ;;  %v8386_v29 = vpop.f32.mrb[100].mxu1 }
0x1cf1   : > { %v10565_v54 = vpop.f32.mrb[153].mxu0  ;;  %v10571_v3 = vpop.f32.mrb[101].mxu1  ;;  %v8449_v6 = vsel %vm7493_vm10, %v8336_v15, -inf  ;;  %v8455_v25 = vsel %vm7493_vm10, %v8386_v29, -inf }
0x1cf2   : > { %v8339_v27 = vpop.f32.mrb[154].mxu0  ;;  %8450 = vmax.xlane.f32.xlu0 %v8449_v6  ;;  %8456 = vmax.xlane.f32.xlu1 %v8455_v25  ;;  %v8389_v39 = vpop.f32.mrb[102].mxu1 }
0x1cf3   : > { %v10566_v28 = vpop.f32.mrb[155].mxu0  ;;  %v10572_v0 = vpop.f32.mrb[103].mxu1  ;;  %v8452_v1 = vsel %vm7497_vm11, %v8339_v27, -inf  ;;  %v8458_v16 = vsel %vm7497_vm11, %v8389_v39, -inf }
0x1cf6   : > { %8453 = vmax.xlane.f32.xlu0 %v8452_v1 }
0x1cf8   : > { %v8436_v5 = vpop.f32.mrb[156].mxu0 }
0x1cf9   : > { %v10577_v41 = vpop.f32.mrb[157].mxu0  ;;  %v8461_v62 = vsel %vm7493_vm10, %v8436_v5, -inf }
0x1cfa   : > { %v8439_v40 = vpop.f32.mrb[158].mxu0  ;;  %8462 = vmax.xlane.f32.xlu1 %v8461_v62  ;;  %8459 = vmax.xlane.f32.xlu0 %v8458_v16 }
0x1cfb   : > { %v10578_v59 = vpop.f32.mrb[159].mxu0  ;;  %v8464_v7 = vsel %vm7497_vm11, %v8439_v40, -inf }
0x1cfe   : > { %8465 = vmax.xlane.f32.xlu0 %v8464_v7 }
0x1d0b   : > { %8535 = vrot.lane.b32.xlu1 %v16432_v55, %s17673_s5 }
0x1d10   : > { %v8445_v58 = vpop.xlane.xlu1 %8444 }
0x1d11   : > { %v8467_v46 = vsub.f32 %v8286_v52, %v8445_v58 }
0x1d12   : > { %v8448_v19 = vpop.xlane.xlu0 %8447 }
0x1d13   : > { %v8468_v30 = vsub.f32 %v8289_v49, %v8448_v19  ;;  %v8475_v50 = vmul.f32 1.442695, %v8467_v46 }
0x1d15   : > { %v8477_v33 = vmul.f32 1.442695, %v8468_v30 }
0x1d17   : > { %11429 = vpow2.f32 %v8477_v33 }
0x1d18   : > { %11431 = vpow2.f32 %v8475_v50 }
0x1d21   : > { %v11430_v44 = vpop.eup %11429 }
0x1d22   : > { %v8494_v35 = vsel %vm7497_vm11, %v11430_v44, 0.0  ;;  %v11432_v9 = vpop.eup %11431 }
0x1d23   : > { %8495 = vadd.xlane.f32.xlu0 %v8494_v35  ;;  %v8491_v31 = vsel %vm7493_vm10, %v11432_v9, 0.0 }
0x1d2f   : > { %8492 = vadd.xlane.f32.xlu1 %v8491_v31 }
0x1d7f   : > { %v8451_v14 = vpop.xlane.xlu0 %8450  ;;  %v8457_v8 = vpop.xlane.xlu1 %8456 }
0x1d80   : > { %v8469_v53 = vsub.f32 %v8336_v15, %v8451_v14  ;;  %v8471_v18 = vsub.f32 %v8386_v29, %v8457_v8 }
0x1d82   : > { %v8479_v20 = vmul.f32 1.442695, %v8469_v53  ;;  %v8483_v55 = vmul.f32 1.442695, %v8471_v18 }
0x1d83   : > { %v8454_v22 = vpop.xlane.xlu0 %8453 }
0x1d84   : > { %11433 = vpow2.f32 %v8479_v20  ;;  %v8470_v37 = vsub.f32 %v8339_v27, %v8454_v22 }
0x1d85   : > { %11435 = vpow2.f32 %v8483_v55 }
0x1d86   : > { %v8481_v38 = vmul.f32 1.442695, %v8470_v37 }
0x1d87   : > { %v8463_v42 = vpop.xlane.xlu1 %8462  ;;  %v8460_v60 = vpop.xlane.xlu0 %8459 }
0x1d88   : > { %11437 = vpow2.f32 %v8481_v38  ;;  %v8473_v13 = vsub.f32 %v8436_v5, %v8463_v42  ;;  %v8472_v43 = vsub.f32 %v8389_v39, %v8460_v60  ;;  %v11043_v42 = vld [vmem:[%s17664_s22 + $0x10] sm:$0xff]  }
0x1d8a   : > { %v8487_v17 = vmul.f32 1.442695, %v8473_v13  ;;  %v8485_v21 = vmul.f32 1.442695, %v8472_v43 }
0x1d8b   : > { %v8536_v36 = vpop.permute.xlu1 %8535  ;;  %v8466_v11 = vpop.xlane.xlu0 %8465 }
0x1d8c   : > { %11439 = vpow2.f32 %v8487_v17  ;;  %v8541_v23 = vand.u32 %v8536_v36, %v16327_v47  ;;  %v8474_v10 = vsub.f32 %v8439_v40, %v8466_v11 }
0x1d8d   : > { %11441 = vpow2.f32 %v8485_v21 }
0x1d8e   : > { %v11434_v51 = vpop.eup %11433  ;;  %v8489_v12 = vmul.f32 1.442695, %v8474_v10  ;;  %10580 = vmatpush3.bf16.msra.mxu1 %v8541_v23  ;;  %v11044_v23 = vld [vmem:[%s17664_s22 + $0x18] sm:$0xff]  }
0x1d8f   : > { %v8497_v24 = vsel %vm7493_vm10, %v11434_v51, 0.0  ;;  %10591 = vmatprep.subr.bf16.mxu1 %v11512_v61  ;;  %v11436_v2 = vpop.eup %11435 }
0x1d90   : > { %11443 = vpow2.f32 %v8489_v12  ;;  %8498 = vadd.xlane.f32.xlu1 %v8497_v24  ;;  %v8503_v48 = vsel %vm7493_vm10, %v11436_v2, 0.0 }
0x1d92   : > { %v11438_v52 = vpop.eup %11437 }
0x1d93   : > { %v8500_v45 = vsel %vm7497_vm11, %v11438_v52, 0.0 }
0x1d94   : > { %8504 = vadd.xlane.f32.xlu1 %v8503_v48  ;;  %8501 = vadd.xlane.f32.xlu0 %v8500_v45 }
0x1d96   : > { %v16492_v49 = vpop.eup %11439 }
0x1d97   : > { %v11442_v32 = vpop.eup %11441  ;;  %v8509_v56 = vsel %vm7493_vm10, %v16492_v49, 0.0 }
0x1d98   : > { %8510 = vadd.xlane.f32.xlu1 %v8509_v56  ;;  %v8506_v15 = vsel %vm7497_vm11, %v11442_v32, 0.0 }
0x1d99   : > { %8507 = vadd.xlane.f32.xlu0 %v8506_v15 }
0x1d9a   : > { %v11444_v29 = vpop.eup %11443 }
0x1d9b   : > { %v8512_v54 = vsel %vm7497_vm11, %v11444_v29, 0.0 }
0x1d9d   : > { %8513 = vadd.xlane.f32.xlu0 %v8512_v54 }
0x1da9   : > { %8633 = vrot.lane.b32.xlu1 %v16439_v63, %s17673_s5 }
0x1dad   : > { %8682 = vrot.lane.b32.xlu1 %v16447_v34, %s17673_s5 }
0x1db0   : > { %v8496_v3 = vpop.xlane.xlu0 %8495 }
0x1db1   : > { %11445 = vrcp.f32 %v8496_v3 }
0x1db3   : > { %8584 = vrot.lane.b32.xlu0 %v16441_v26, %s17673_s5  ;;  %s9721_s5 = sshll.u32 %s17678_s16, 5 }
0x1dbb   : > { %v11446_v25 = vpop.eup %11445 }
0x1dbc   : > { %v8493_v6 = vpop.xlane.xlu1 %8492  ;;  %v8524_v39 = vmul.f32 %v11446_v25, %v11430_v44 }
0x1dbd   : > { %11447 = vrcp.f32 %v8493_v6 }
0x1dc7   : > { %v11448_v27 = vpop.eup %11447 }
0x1dc8   : > { %v8523_v28 = vmul.f32 %v11448_v27, %v11432_v9 }
0x1dca   : > { %v8531_v0 = vpack.c.bf16 %v8524_v39, %v8523_v28 }
0x1dcc   : > { %10582 = vmatmul.mubr.msk.bf16.vlgmr.msra.gmra.mrb[104].mxu1 %vm7493_vm10, %v8531_v0 }
0x1dcd   : > { %10593 = vmatprep.mubr.msk.bf16.mxu1 %vm11513_vm4, %v11512_v61 }
0x1e1d   : > { %v8499_v63 = vpop.xlane.xlu1 %8498 }
0x1e1e   : > { %11449 = vrcp.f32 %v8499_v63 }
0x1e21   : > { %v8505_v1 = vpop.xlane.xlu1 %8504  ;;  %v8502_v34 = vpop.xlane.xlu0 %8501 }
0x1e22   : > { %11451 = vrcp.f32 %v8502_v34 }
0x1e23   : > { %11453 = vrcp.f32 %v8505_v1 }
0x1e25   : > { %v8511_v26 = vpop.xlane.xlu1 %8510 }
0x1e26   : > { %v8508_v5 = vpop.xlane.xlu0 %8507 }
0x1e27   : > { %11455 = vrcp.f32 %v8508_v5 }
0x1e28   : > { %11457 = vrcp.f32 %v8511_v26  ;;  %v11450_v40 = vpop.eup %11449  ;;  %v9673_v26 = vld [vmem:[%s17665_s23 + $0x1] ss:$0 sm:$0xff] }
0x1e29   : > { %v8634_v41 = vpop.permute.xlu1 %8633  ;;  %v8525_v58 = vmul.f32 %v11450_v40, %v11434_v51 }
0x1e2a   : > { %v8639_v62 = vand.u32 %v8634_v41, %v16327_v47  ;;  %v8514_v16 = vpop.xlane.xlu0 %8513 }
0x1e2b   : > { %11459 = vrcp.f32 %v8514_v16 }
0x1e2c   : > { %10592 = vmatpush3.bf16.msra.mxu1 %v8639_v62  ;;  %v11452_v59 = vpop.eup %11451 }
0x1e2d   : > { %10603 = vmatprep.subr.bf16.mxu1 %v11512_v61  ;;  %v8526_v7 = vmul.f32 %v11452_v59, %v11438_v52  ;;  %v11454_v30 = vpop.eup %11453  ;;  %v8683_v46 = vpop.permute.xlu1 %8682 }
0x1e2e   : > { %v8585_v19 = vpop.permute.xlu0 %8584  ;;  %v8527_v44 = vmul.f32 %v11454_v30, %v11436_v2  ;;  %v8688_v31 = vand.u32 %v8683_v46, %v16327_v47 }
0x1e2f   : > { %v8590_v33 = vand.u32 %v8585_v19, %v16327_v47  ;;  %v8532_v9 = vpack.c.bf16 %v8526_v7, %v8525_v58 }
0x1e31   : > { %v11456_v50 = vpop.eup %11455  ;;  %10586 = vmatpush3.bf16.msra.mxu0 %v8590_v33 }
0x1e32   : > { %v8528_v35 = vmul.f32 %v11456_v50, %v11442_v32  ;;  %10597 = vmatprep.subr.bf16.mxu0 %v11512_v61  ;;  %v11458_v14 = vpop.eup %11457 }
0x1e33   : > { %v8529_v47 = vmul.f32 %v11458_v14, %v16492_v49 }
0x1e34   : > { %10588 = vmatmul.mubr.msk.bf16.vlgmr.msra.gmra.mrb[160].mxu0 %vm7493_vm10, %v8532_v9  ;;  %v8533_v8 = vpack.c.bf16 %v8528_v35, %v8527_v44 }
0x1e35   : > { %v11460_v53 = vpop.eup %11459  ;;  %10598 = vmatpush3.bf16.msra.mxu0 %v8688_v31  ;;  %10599 = vmatprep.mubr.msk.bf16.mxu0 %vm11513_vm4, %v11512_v61 }
0x1e36   : > { %v8530_v18 = vmul.f32 %v11460_v53, %v11444_v29  ;;  %10594 = vmatmul.mubr.msk.bf16.vlgmr.msra.gmra.mrb[108].mxu1 %vm7493_vm10, %v8533_v8  ;;  %10611 = vmatprep.subr.bf16.mxu0 %v11512_v61  ;;  %v11046_v53 = vld [vmem:[%s17666_s1 + $0x18] sm:$0xff]  }
0x1e37   : > { %10607 = vmatprep.mubr.msk.bf16.mxu1 %vm11513_vm4, %v11512_v61  ;;  %10604 = vmatpush3.bf16.msra.mxu1 %v11043_v42 }
0x1e38   : > { %v8534_v20 = vpack.c.bf16 %v8530_v18, %v8529_v47  ;;  %10605 = vmatprep.subr.bf16.mxu1 %v11512_v61 }
0x1e3b   : > { %10606 = vmatpush3.bf16.msra.mxu1 %v11044_v23 }
0x1e3c   : > { %10600 = vmatmul.mubr.msk.bf16.vlgmr.msra.gmra.mrb[164].mxu0 %vm7493_vm10, %v8534_v20  ;;  %10619 = vmatprep.subr.bf16.mxu1 %v11512_v61 }
0x1e3d   : > { %10615 = vmatprep.mubr.msk.bf16.mxu0 %vm11513_vm4, %v11512_v61 }
0x1e9f   : > { %v8577_v55 = vpop.f32.mrb[104].mxu1 }
0x1ea0   : > { %v10583_v22 = vpop.f32.mrb[105].mxu1 }
0x1ea1   : > { %v8580_v37 = vpop.f32.mrb[106].mxu1 }
0x1ea2   : > { %v10584_v38 = vpop.f32.mrb[107].mxu1 }
0x1f07   : > { %v8626_v60 = vpop.f32.mrb[160].mxu0 }
0x1f08   : > { %v10589_v13 = vpop.f32.mrb[161].mxu0 }
0x1f09   : > { %v8629_v43 = vpop.f32.mrb[162].mxu0  ;;  %v8675_v17 = vpop.f32.mrb[108].mxu1 }
0x1f0a   : > { %v10935_v21 = vpack.i.bf16 %v8629_v43, %v8626_v60  ;;  %v10590_v36 = vpop.f32.mrb[163].mxu0  ;;  %v10595_v11 = vpop.f32.mrb[109].mxu1  ;;  %v9679_v60 = vld [vmem:[%s17667_s28 + $0x1] ss:$0 sm:$0xff] }
0x1f0b   : > { %v8678_v10 = vpop.f32.mrb[110].mxu1 }
0x1f0c   : > { %v10940_v51 = vpack.i.bf16 %v8678_v10, %v8675_v17  ;;  %10936 = vrot.lane.b32.xlu1 %v10935_v21, %s17674_s3  ;;  %v10596_v12 = vpop.f32.mrb[111].mxu1  ;;  %v9680_v21 = vld [vmem:[%s17668_s18 + $0x1] ss:$0 sm:$0xff]  ;;  %s930_s3 = scalar_lea.vmem %s11681_s6, %s9721_s5 }
0x1f0d   : > { %v11048_v12 = vld [vmem:[%s17669_s0 + $0x28] sm:$0xff]  }
0x1f0e   : > { %10941 = vrot.lane.b32.xlu0 %v10940_v51, %s17675_s7  ;;  %v11047_v51 = vld [vmem:[%s17669_s0 + $0x20] sm:$0xff]  }
0x1f0f   : > { %v8724_v24 = vpop.f32.mrb[164].mxu0 }
0x1f10   : > { %v10601_v2 = vpop.f32.mrb[165].mxu0 }
0x1f11   : > { %v8727_v52 = vpop.f32.mrb[166].mxu0  ;;  %v11050_v2 = vld [vmem:[%s17669_s0 + $0x38] sm:$0xff]  }
0x1f12   : > { %v10945_v48 = vpack.i.bf16 %v8727_v52, %v8724_v24  ;;  %v10602_v45 = vpop.f32.mrb[167].mxu0  ;;  %v11049_v24 = vld [vmem:[%s17669_s0 + $0x30] sm:$0xff]   ;;  %v9686_v52 = vld [vmem:[%s17670_s11 + $0x1] ss:$0 sm:$0xff] }
0x1f14   : > { %10946 = vrot.lane.b32.xlu1 %v10945_v48, %s17676_s10 }
0x1f7e   : > { %v10937_v49 = vpop.permute.xlu1 %10936 }
0x1f7f   : > { %v10939_v32 = vunpack.i.h.bf16 %v10937_v49  ;;  %v10938_v56 = vunpack.i.l.bf16 %v10937_v49 }
0x1f80   : > { %v10942_v15 = vpop.permute.xlu0 %10941 }
0x1f81   : > { %v10944_v29 = vunpack.i.h.bf16 %v10942_v15  ;;  %v10943_v54 = vunpack.i.l.bf16 %v10942_v15  ;;  %v8755_v3 = vsel %vm7295_vm9, %v8577_v55, %v10938_v56  ;;  %v8756_v6 = vsel %vm7295_vm9, %v8580_v37, %v10939_v32 }
0x1f83   : > { %v8758_v28 = vsel %vm7812_vm13, %v8756_v6, %v10944_v29  ;;  %v8757_v0 = vsel %vm7812_vm13, %v8755_v3, %v10943_v54 }
0x1f86   : > { %v10947_v25 = vpop.permute.xlu1 %10946 }
0x1f87   : > { %v10949_v27 = vunpack.i.h.bf16 %v10947_v25  ;;  %v10948_v39 = vunpack.i.l.bf16 %v10947_v25 }
0x1f89   : > { %v8759_v63 = vsel %vm7815_vm14, %v8757_v0, %v10948_v39  ;;  %v8760_v1 = vsel %vm7815_vm14, %v8758_v28, %v10949_v27 }
0x1f8a   : > { %v8766_v34 = vpack.c.bf16 %v8760_v1, %v8759_v63 }
0x1f8c   : > { %10608 = vmatmul.mubr.msk.bf16.vlgmr.msra.gmra.mrb[112].mxu1 %vm1697_vm2, %v8766_v34 }
0x1f8d   : > { %10627 = vmatprep.mubr.msk.bf16.mxu1 %vm11513_vm4, %v11512_v61  ;;  %10620 = vmatpush3.bf16.msra.mxu1 %v11047_v51 }
0x1f8e   : > { %10621 = vmatprep.subr.bf16.mxu1 %v11512_v61 }
0x1f91   : > { %10622 = vmatpush3.bf16.msra.mxu1 %v11048_v12 }
0x1f92   : > { %10623 = vmatprep.subr.bf16.mxu1 %v11512_v61 }
0x1f95   : > { %10624 = vmatpush3.bf16.msra.mxu1 %v11049_v24  ;;  %v9707_v24 = vld [vmem:[%s11671_s27 + $0x1] ss:$0 sm:$0xff] }
0x1f96   : > { %10625 = vmatprep.subr.bf16.mxu1 %v11512_v61 }
0x1f99   : > { %10626 = vmatpush3.bf16.msra.mxu1 %v11050_v2 }
0x205f   : > { %v8824_v5 = vpop.f32.mrb[112].mxu1 }
0x2060   : > { %v8825_v41 = vadd.f32 %v9673_v26, %v8824_v5  ;;  %v10609_v62 = vpop.f32.mrb[113].mxu1 }
0x2061   : > { %v8827_v16 = vpop.f32.mrb[114].mxu1 }
0x2062   : > { %v8828_v40 = vadd.f32 %v9673_v26, %v8827_v16  ;;  %v10610_v59 = vpop.f32.mrb[115].mxu1  ;;  %v8831_v7 = vadd.f32 %v8825_v41, %v16422_v57 }
0x2064   : > { %v8837_v19 = vsel %vm1697_vm2, %v8831_v7, 0.0  ;;  %v8832_v30 = vadd.f32 %v8828_v40, %v16424_v4  ;;  %v11045_v4 = vld [vmem:[%s17666_s1 + $0x10] sm:$0xff]  }
0x2065   : > { %8838 = vadd.xlane.f32.xlu0 %v8837_v19  ;;  %10612 = vmatpush3.bf16.msra.mxu0 %v11045_v4 }
0x2066   : > { %v8840_v33 = vsel %vm6820_vm6, %v8832_v30, 0.0  ;;  %10613 = vmatprep.subr.bf16.mxu0 %v11512_v61 }
0x2067   : > { %8841 = vadd.xlane.f32.xlu1 %v8840_v33 }
0x2069   : > { %10614 = vmatpush3.bf16.msra.mxu0 %v11046_v53 }
0x20f2   : > { %v8839_v58 = vpop.xlane.xlu0 %8838 }
0x20f3   : > { %v8843_v46 = vmul.f32 0.03125, %v8839_v58 }
0x20f4   : > { %v8842_v50 = vpop.xlane.xlu1 %8841 }
0x20f5   : > { %v8845_v44 = vsub.f32 %v8831_v7, %v8843_v46  ;;  %v8844_v35 = vmul.f32 0.03125, %v8842_v50  ;;  %v9699_v7 = vld [vmem:[%s11666_s20 + $0x1] ss:$0 sm:$0xff] }
0x20f7   : > { %v8846_v9 = vsub.f32 %v8832_v30, %v8844_v35  ;;  %v8847_v31 = vmul.f32 %v8845_v44, %v8845_v44 }
0x20f9   : > { %v8849_v14 = vsel %vm1697_vm2, %v8847_v31, 0.0  ;;  %v8848_v57 = vmul.f32 %v8846_v9, %v8846_v9 }
0x20fa   : > { %8850 = vadd.xlane.f32.xlu0 %v8849_v14 }
0x20fb   : > { %v8852_v8 = vsel %vm6820_vm6, %v8848_v57, 0.0 }
0x20fe   : > { %8853 = vadd.xlane.f32.xlu0 %v8852_v8 }
0x2187   : > { %v8851_v18 = vpop.xlane.xlu0 %8850 }
0x2188   : > { %v8855_v47 = vmul.f32 0.03125, %v8851_v18 }
0x218a   : > { %v8857_v20 = vadd.f32 1e-05, %v8855_v47 }
0x218b   : > { %v8854_v55 = vpop.xlane.xlu0 %8853 }
0x218c   : > { %11461 = vrsqrt.f32 %v8857_v20  ;;  %v8856_v22 = vmul.f32 0.03125, %v8854_v55 }
0x218e   : > { %v8858_v37 = vadd.f32 1e-05, %v8856_v22 }
0x2190   : > { %11463 = vrsqrt.f32 %v8858_v37  ;;  %v9101_v37 = vlaneseq }
0x2196   : > { %v11462_v38 = vpop.eup %11461 }
0x2197   : > { %v8861_v42 = vmul.f32 %v11462_v38, %v8845_v44  ;;  %v9102_v38 = vshrl.u32 %v9101_v37, 7 }
0x2199   : > { %v8869_v43 = vmul.f32 %v9679_v60, %v8861_v42  ;;  %v9107_v42 = vand.u32 127, %v9101_v37 }
0x219a   : > { %v11464_v13 = vpop.eup %11463 }
0x219b   : > { %v8862_v17 = vmul.f32 %v11464_v13, %v8846_v9  ;;  %v8877_v11 = vadd.f32 %v9680_v21, %v8869_v43  ;;  %vm9108_vm0 = vcmp.eq.s32.totalorder %v9102_v38, %v9107_v42  ;;  %v9104_v43 = vadd.s32 16, %v9102_v38 }
0x219c   : > { %v9709_v13 = vsel %vm9108_vm0, 1.0, %v11512_v61 }
0x219d   : > { %v8870_v36 = vmul.f32 %v9679_v60, %v8862_v17  ;;  %v9103_v60 = vadd.s32 8, %v9102_v38  ;;  %v9105_v17 = vadd.s32 24, %v9102_v38  ;;  %vm9110_vm3 = vcmp.eq.s32.totalorder %v9104_v43, %v9107_v42 }
0x219f   : > { %v8878_v23 = vadd.f32 %v9680_v21, %v8870_v36  ;;  %vm9109_vm1 = vcmp.eq.s32.totalorder %v9103_v60, %v9107_v42  ;;  %vm9111_vm4 = vcmp.eq.s32.totalorder %v9105_v17, %v9107_v42 }
0x21a1   : > { %v8884_v10 = vpack.c.bf16 %v8878_v23, %v8877_v11 }
0x21a3   : > { %10616 = vmatmul.mubr.msk.bf16.vlgmr.msra.gmra.mrb[168].mxu0 %vm1697_vm2, %v8884_v10 }
0x21a4   : > { %10635 = vmatprep.mubr.msk.f32.mxu0 %vm1697_vm2, %v9709_v13 }
0x2276   : > { %v8942_v48 = vpop.f32.mrb[168].mxu0 }
0x2277   : > { %v8943_v45 = vadd.f32 %v9686_v52, %v8942_v48  ;;  %v10617_v49 = vpop.f32.mrb[169].mxu0 }
0x2278   : > { %v8945_v32 = vpop.f32.mrb[170].mxu0  ;;  %v9708_v49 = vld [vmem:[%s11676_s4 + $0x1] ss:$0 sm:$0xff] }
0x2279   : > { %v8949_v56 = vmul.f32 %v8943_v45, %v8943_v45  ;;  %v8946_v15 = vadd.f32 %v9686_v52, %v8945_v32  ;;  %v10618_v29 = vpop.f32.mrb[171].mxu0 }
0x227b   : > { %v8951_v54 = vmul.f32 %v8949_v56, %v8943_v45  ;;  %v8950_v3 = vmul.f32 %v8946_v15, %v8946_v15 }
0x227d   : > { %v8953_v6 = vmul.f32 0.044715, %v8951_v54  ;;  %v8952_v25 = vmul.f32 %v8950_v3, %v8946_v15  ;;  %v9710_v54 = vsel %vm9109_vm1, 1.0, %v11512_v61  ;;  %v9711_v3 = vsel %vm9110_vm3, 1.0, %v11512_v61 }
0x227f   : > { %v8955_v27 = vadd.f32 %v8953_v6, %v8943_v45  ;;  %v8954_v39 = vmul.f32 0.044715, %v8952_v25  ;;  %v9712_v6 = vsel %vm9111_vm4, 1.0, %v11512_v61 }
0x2281   : > { %v8957_v28 = vmul.f32 0.7978846, %v8955_v27  ;;  %v8956_v0 = vadd.f32 %v8954_v39, %v8946_v15 }
0x2283   : > { %11465 = vtanh.f32 %v8957_v28  ;;  %v8958_v63 = vmul.f32 0.7978846, %v8956_v0 }
0x2285   : > { %11467 = vtanh.f32 %v8958_v63 }
0x228d   : > { %v11466_v1 = vpop.eup %11465 }
0x228e   : > { %v8961_v34 = vadd.f32 1.0, %v11466_v1 }
0x228f   : > { %v11468_v26 = vpop.eup %11467 }
0x2290   : > { %v8963_v5 = vmul.f32 0.5, %v8961_v34  ;;  %v8962_v41 = vadd.f32 1.0, %v11468_v26 }
0x2292   : > { %v8964_v62 = vmul.f32 0.5, %v8962_v41  ;;  %v8965_v16 = vmul.f32 %v8963_v5, %v8943_v45 }
0x2294   : > { %v8966_v40 = vmul.f32 %v8964_v62, %v8946_v15 }
0x2296   : > { %v8976_v59 = vpack.c.bf16 %v8966_v40, %v8965_v16 }
0x2298   : > { %10628 = vmatmul.mubr.msk.bf16.vlgmr.msra.gmra.mrb[116].mxu1 %vm8058_vm15, %v8976_v59 }
0x236b   : > { %v9046_v19 = vpop.f32.mrb[116].mxu1 }
0x236c   : > { %v9047_v30 = vadd.f32 %v9699_v7, %v9046_v19  ;;  %v10629_v33 = vpop.f32.mrb[117].mxu1 }
0x236d   : > { %v9049_v58 = vpop.f32.mrb[118].mxu1 }
0x236e   : > { %v9050_v46 = vadd.f32 %v9699_v7, %v9049_v58  ;;  %v10630_v50 = vpop.f32.mrb[119].mxu1  ;;  %v9053_v44 = vadd.f32 %v9047_v30, %v8877_v11 }
0x2370   : > { %v9059_v35 = vsel %vm1697_vm2, %v9053_v44, 0.0  ;;  %v9054_v9 = vadd.f32 %v9050_v46, %v8878_v23 }
0x2371   : > { %9060 = vadd.xlane.f32.xlu0 %v9059_v35 }
0x2372   : > { %v9062_v31 = vsel %vm6820_vm6, %v9054_v9, 0.0 }
0x2373   : > { %9063 = vadd.xlane.f32.xlu1 %v9062_v31 }
0x23fe   : > { %v9061_v14 = vpop.xlane.xlu0 %9060 }
0x23ff   : > { %v9065_v57 = vmul.f32 0.03125, %v9061_v14 }
0x2400   : > { %v9064_v8 = vpop.xlane.xlu1 %9063 }
0x2401   : > { %v9067_v4 = vsub.f32 %v9053_v44, %v9065_v57  ;;  %v9066_v53 = vmul.f32 0.03125, %v9064_v8 }
0x2403   : > { %v9068_v18 = vsub.f32 %v9054_v9, %v9066_v53  ;;  %v9069_v47 = vmul.f32 %v9067_v4, %v9067_v4 }
0x2405   : > { %v9071_v20 = vsel %vm1697_vm2, %v9069_v47, 0.0  ;;  %v9070_v55 = vmul.f32 %v9068_v18, %v9068_v18 }
0x2406   : > { %9072 = vadd.xlane.f32.xlu0 %v9071_v20 }
0x2407   : > { %v9074_v22 = vsel %vm6820_vm6, %v9070_v55, 0.0 }
0x2408   : > { %9075 = vadd.xlane.f32.xlu1 %v9074_v22 }
0x2493   : > { %v9073_v21 = vpop.xlane.xlu0 %9072 }
0x2494   : > { %v9077_v36 = vmul.f32 0.03125, %v9073_v21 }
0x2495   : > { %v9076_v11 = vpop.xlane.xlu1 %9075 }
0x2496   : > { %v9079_v23 = vadd.f32 1e-05, %v9077_v36  ;;  %v9078_v10 = vmul.f32 0.03125, %v9076_v11 }
0x2498   : > { %11469 = vrsqrt.f32 %v9079_v23  ;;  %v9080_v51 = vadd.f32 1e-05, %v9078_v10 }
0x249a   : > { %11471 = vrsqrt.f32 %v9080_v51 }
0x24a2   : > { %v11470_v12 = vpop.eup %11469 }
0x24a3   : > { %v9083_v2 = vmul.f32 %v11470_v12, %v9067_v4 }
0x24a4   : > { %v11472_v52 = vpop.eup %11471 }
0x24a5   : > { %v9084_v48 = vmul.f32 %v11472_v52, %v9068_v18  ;;  %v9091_v45 = vmul.f32 %v9707_v24, %v9083_v2 }
0x24a7   : > { %v9092_v32 = vmul.f32 %v9707_v24, %v9084_v48  ;;  %v9099_v56 = vadd.f32 %v9708_v49, %v9091_v45 }
0x24a9   : > { %v9100_v15 = vadd.f32 %v9708_v49, %v9092_v32 }
0x24ab   : > { %v10641_v29 = vpack.c.bf16 %v9100_v15, %v9099_v56 }
0x24ad   : > { %10643 = vmatprep.subr.msk.bf16.mxu0 %vm10642_vm5, %v10641_v29 }
0x24ae   : > { %10646 = vmatpush3.bf16.xpose.msk.msra.mxu0 %vm10642_vm5, %v10641_v29 }
0x24b5   : > { %10636 = vmatmul.mubr.msk.f32.vlgmr.msra.gmra.mrb[172].mxu0 %vm1697_vm2, %v9710_v54 }
0x24b6   : > { %10638 = vmatprep.mubr.msk.f32.mxu0 %vm1697_vm2, %v9711_v3 }
0x24b9   : > { %10639 = vmatmul.mubr.msk.f32.gmra.mrb[174].mxu0 %vm1697_vm2, %v9712_v6 }
0x2588   : > { %v10637_v25 = vpop.f32.mrb[172].mxu0 }
0x2589   : > { %9224 = vst.msk [vmem:[%s930_s3 + $0x8] sm:$0xff] %vm7493_vm10, %v10637_v25  ;;  %v9204_v27 = vpop.f32.mrb[173].mxu0 }
0x258a   : > { %9223 = vst.msk [vmem:[%s930_s3] sm:$0xff] %vm7493_vm10, %v9204_v27 }
0x258c   : > { %v10640_v39 = vpop.f32.mrb[174].mxu0 }
0x258d   : > { %9226 = vst.msk [vmem:[%s930_s3 + $0x18] sm:$0xff] %vm7493_vm10, %v10640_v39  ;;  %v9214_v28 = vpop.f32.mrb[175].mxu0 }
0x258e   : > { %9225 = vst.msk [vmem:[%s930_s3 + $0x10] sm:$0xff] %vm7493_vm10, %v9214_v28 }
0x258f PF: > { %s71_s15 = sadd.s32 1, %s11480_s15  }
0x2590   : > { %p68_p4 = scmp.ge.s32.totalorder %s71_s15, 4  }
0x2592   :  { %70 = sbr.rel (!%p68_p4) target bundleno = 50 (0x32), region = 453 }

</bundles_post_ra>
